<compile_context>
chip_gen: v5e
topology: v5e:2x2
jax: 0.10.0
libtpu: 0.0.40
codegen_flags: <defaults>
</compile_context>

<pallas_src>
import jax
import jax.numpy as jnp
import numpy as np
from jax.experimental import pallas as pl
from jax.experimental.pallas import tpu as pltpu

K = 4        # kernel_size
STRIDE = 2
PAD = 1


def _deconv_phase_kernel(x0_ref, x1_ref, x2_ref, w_ref, b_ref, o_ref):
    """One (batch n, input-depth m) step -> output depth planes 2m and 2m+1.

    x{0,1,2}_ref: (1, 1, Hp, Wp, Cin)  padded input depth planes m, m+1, m+2
    w_ref:        (27*Cin, 8*Cout)     bf16 polyphase weight matrix
    b_ref:        (1, 8*Cout)          f32 bias, tiled over the 8 phases
    o_ref:        (1, 1, H*W, 8*Cout)  phase-packed output block
    """
    Hp, Wp, Cin = x0_ref.shape[2], x0_ref.shape[3], x0_ref.shape[4]
    H, W = Hp - 2, Wp - 2

    planes = (x0_ref[0, 0], x1_ref[0, 0], x2_ref[0, 0])   # each (Hp, Wp, Cin)

    # im2col over the 27 absolute tap offsets (ad, ah, aw) in {0,1,2}^3.
    cols = []
    for ad in range(3):
        plane = planes[ad]
        for ah in range(3):
            for aw in range(3):
                cols.append(plane[ah:ah + H, aw:aw + W, :].reshape(H * W, Cin))
    patches = jnp.concatenate(cols, axis=1).astype(jnp.bfloat16)    # (H*W, 27*Cin)

    acc = jnp.dot(patches, w_ref[...],
                  preferred_element_type=jnp.float32)               # (H*W, 8*Cout)
    o_ref[0, 0] = (acc + b_ref[...]).astype(o_ref.dtype)


def _polyphase_weight_matrix(weight):
    """ConvTranspose3d weights (Cin, Cout, 4, 4, 4) -> (27*Cin, 8*Cout) bf16.

    Row block: tap = ((ad*3+ah)*3+aw)*Cin + ci over the 3x3x3 input window.
    Col block: phase = (pd*2+ph)*2+pw, then co.  Output voxel
    (2m+pd, 2n+ph, 2l+pw) uses only its 2x2x2 taps; the other 19 stay zero.
    """
    Cin, Cout = weight.shape[0], weight.shape[1]
    cols = []
    for pd in range(2):
        for ph in range(2):
            for pw in range(2):
                wtap = jnp.zeros((3, 3, 3, Cin, Cout), jnp.float32)
                for dd in range(2):
                    for dh in range(2):
                        for dw in range(2):
                            blk = weight[:, :,
                                         3 - pd - 2 * dd,
                                         3 - ph - 2 * dh,
                                         3 - pw - 2 * dw].astype(jnp.float32)
                            wtap = wtap.at[pd + dd, ph + dh, pw + dw].set(blk)
                cols.append(wtap.reshape(27 * Cin, Cout))
    return jnp.concatenate(cols, axis=1).astype(jnp.bfloat16)        # (27*Cin, 8*Cout)


def upsampling_deconv3d(x, weight, bias):
    """x: (N, Cin, D, H, W) f32 -> (N, Cout, 2D, 2H, 2W) f32 (ConvTranspose3d k=4,s=2,p=1)."""
    N, Cin, D, H, W = x.shape
    assert weight.shape[0] == Cin and weight.shape[2:] == (K, K, K)
    Cout = weight.shape[1]
    Dp, Hp, Wp = D + 2, H + 2, W + 2

    # --- glue (pure data movement): channels-last + 1-voxel spatial zero-pad ---
    x_cl = jnp.transpose(x, (0, 2, 3, 4, 1))                          # (N, D, H, W, Cin)
    xp = jnp.pad(x_cl, ((0, 0), (1, 1), (1, 1), (1, 1), (0, 0)))      # (N, Dp, Hp, Wp, Cin)

    wm = _polyphase_weight_matrix(weight)                             # (27*Cin, 8*Cout) bf16
    b8 = jnp.tile(bias.astype(jnp.float32), 8).reshape(1, 8 * Cout)

    out_ph = pl.pallas_call(
        _deconv_phase_kernel,
        out_shape=jax.ShapeDtypeStruct((N, D, H * W, 8 * Cout), jnp.float32),
        grid_spec=pltpu.PrefetchScalarGridSpec(
            num_scalar_prefetch=0,
            grid=(N, D),
            in_specs=[
                # only the 3 padded depth planes needed for output planes (2m, 2m+1)
                pl.BlockSpec((1, 1, Hp, Wp, Cin), lambda n, m: (n, m, 0, 0, 0)),
                pl.BlockSpec((1, 1, Hp, Wp, Cin), lambda n, m: (n, m + 1, 0, 0, 0)),
                pl.BlockSpec((1, 1, Hp, Wp, Cin), lambda n, m: (n, m + 2, 0, 0, 0)),
                # grid-invariant weight matrix and bias
                pl.BlockSpec((27 * Cin, 8 * Cout), lambda n, m: (0, 0)),
                pl.BlockSpec((1, 8 * Cout), lambda n, m: (0, 0)),
            ],
            out_specs=pl.BlockSpec((1, 1, H * W, 8 * Cout),
                                   lambda n, m: (n, m, 0, 0)),
        ),
        compiler_params=pltpu.CompilerParams(
            dimension_semantics=("parallel", "parallel")),
    )(xp, xp, xp, wm, b8)

    # un-shuffle phases: (N, D, H, W, pd, ph, pw, Cout) -> (N, Cout, 2D, 2H, 2W)
    out_ph = out_ph.reshape(N, D, H, W, 2, 2, 2, Cout)
    out = jnp.transpose(out_ph, (0, 7, 1, 4, 2, 5, 3, 6))
    return out.reshape(N, Cout, STRIDE * D, STRIDE * H, STRIDE * W)


if __name__ == "__main__":
    key = jax.random.PRNGKey(0)
    N, Cin, Cout, D, H, W = 2, 4, 8, 8, 16, 16

    kx, kw, kb = jax.random.split(key, 3)
    x = jax.random.normal(kx, (N, Cin, D, H, W), jnp.float32)
    fan = Cin * K * K * K
    scale = 1.0 / np.sqrt(fan)
    # deterministic synthetic parameters (ConvTranspose3d weight: (Cin, Cout, 4, 4, 4))
    weight = jax.random.uniform(kw, (Cin, Cout, K, K, K), jnp.float32, -scale, scale)
    bias = jax.random.uniform(kb, (Cout,), jnp.float32, -scale, scale)

    y = jax.block_until_ready(upsampling_deconv3d(x, weight, bias))
    assert y.shape == (N, Cout, STRIDE * D, STRIDE * H, STRIDE * W)

    # independent reference: same transposed conv via XLA conv with lhs dilation (f32, HIGHEST)
    w_rot = jnp.transpose(weight[:, :, ::-1, ::-1, ::-1], (1, 0, 2, 3, 4))  # (Cout, Cin, k, k, k)
    y_ref = jax.lax.conv_general_dilated(
        x, w_rot, window_strides=(1, 1, 1),
        padding=[(K - 1 - PAD, K - 1 - PAD)] * 3,
        lhs_dilation=(STRIDE, STRIDE, STRIDE), rhs_dilation=(1, 1, 1),
        dimension_numbers=("NCDHW", "OIDHW", "NCDHW"),
        precision=jax.lax.Precision.HIGHEST) + bias.reshape(1, Cout, 1, 1, 1)

    # bf16 MXU operands (f32 accumulation) -> tolerance loosened vs the f32 reference
    np.testing.assert_allclose(np.asarray(y), np.asarray(y_ref), rtol=2e-2, atol=2e-2)
    print("KERNEL_OK")
</pallas_src>

<mosaic_0001>
module attributes {stable_mosaic.version = 11 : i64} {
  func.func @_deconv_phase_kernel(%arg0: i32, %arg1: i32, %arg2: memref<1x1x18x18x4xf32, #tpu.memory_space<vmem>>, %arg3: memref<1x1x18x18x4xf32, #tpu.memory_space<vmem>>, %arg4: memref<1x1x18x18x4xf32, #tpu.memory_space<vmem>>, %arg5: memref<108x64xbf16, #tpu.memory_space<vmem>>, %arg6: memref<1x64xf32, #tpu.memory_space<vmem>>, %arg7: memref<1x1x256x64xf32, #tpu.memory_space<vmem>>) attributes {dimension_semantics = [#tpu.dimension_semantics<parallel>, #tpu.dimension_semantics<parallel>], iteration_bounds = array<i64: 2, 8>, scalar_prefetch = 0 : i64, scratch_operands = 0 : i64, tpu.core_type = #tpu.core_type<tc>, window_params = [{transform_indices = @transform_0, window_bounds = array<i64: 1, 1, 18, 18, 4>}, {transform_indices = @transform_1, window_bounds = array<i64: 1, 1, 18, 18, 4>}, {transform_indices = @transform_2, window_bounds = array<i64: 1, 1, 18, 18, 4>}, {pipeline_mode = #tpu.pipeline_mode<synchronous>, transform_indices = @transform_3, window_bounds = array<i64: 108, 64>}, {pipeline_mode = #tpu.pipeline_mode<synchronous>, transform_indices = @transform_4, window_bounds = array<i64: 1, 64>}, {transform_indices = @transform_5, window_bounds = array<i64: 1, 1, 256, 64>}]} {
    %c0 = arith.constant 0 : index
    %c0_0 = arith.constant 0 : index
    %c0_1 = arith.constant 0 : index
    %c0_2 = arith.constant 0 : index
    %c0_3 = arith.constant 0 : index
    %0 = vector.load %arg2[%c0, %c0_0, %c0_1, %c0_2, %c0_3] : memref<1x1x18x18x4xf32, #tpu.memory_space<vmem>>, vector<1x1x18x18x4xf32>
    %1 = vector.shape_cast %0 : vector<1x1x18x18x4xf32> to vector<18x18x4xf32>
    %c0_4 = arith.constant 0 : index
    %c0_5 = arith.constant 0 : index
    %c0_6 = arith.constant 0 : index
    %c0_7 = arith.constant 0 : index
    %c0_8 = arith.constant 0 : index
    %2 = vector.load %arg3[%c0_4, %c0_5, %c0_6, %c0_7, %c0_8] : memref<1x1x18x18x4xf32, #tpu.memory_space<vmem>>, vector<1x1x18x18x4xf32>
    %3 = vector.shape_cast %2 : vector<1x1x18x18x4xf32> to vector<18x18x4xf32>
    %c0_9 = arith.constant 0 : index
    %c0_10 = arith.constant 0 : index
    %c0_11 = arith.constant 0 : index
    %c0_12 = arith.constant 0 : index
    %c0_13 = arith.constant 0 : index
    %4 = vector.load %arg4[%c0_9, %c0_10, %c0_11, %c0_12, %c0_13] : memref<1x1x18x18x4xf32, #tpu.memory_space<vmem>>, vector<1x1x18x18x4xf32>
    %5 = vector.shape_cast %4 : vector<1x1x18x18x4xf32> to vector<18x18x4xf32>
    %6 = vector.extract_strided_slice %1 {offsets = [0, 0, 0], sizes = [16, 16, 4], strides = [1, 1, 1]} : vector<18x18x4xf32> to vector<16x16x4xf32>
    %7 = vector.shape_cast %6 : vector<16x16x4xf32> to vector<256x4xf32>
    %8 = vector.extract_strided_slice %1 {offsets = [0, 1, 0], sizes = [16, 16, 4], strides = [1, 1, 1]} : vector<18x18x4xf32> to vector<16x16x4xf32>
    %9 = vector.shape_cast %8 : vector<16x16x4xf32> to vector<256x4xf32>
    %10 = vector.extract_strided_slice %1 {offsets = [0, 2, 0], sizes = [16, 16, 4], strides = [1, 1, 1]} : vector<18x18x4xf32> to vector<16x16x4xf32>
    %11 = vector.shape_cast %10 : vector<16x16x4xf32> to vector<256x4xf32>
    %12 = vector.extract_strided_slice %1 {offsets = [1, 0, 0], sizes = [16, 16, 4], strides = [1, 1, 1]} : vector<18x18x4xf32> to vector<16x16x4xf32>
    %13 = vector.shape_cast %12 : vector<16x16x4xf32> to vector<256x4xf32>
    %14 = vector.extract_strided_slice %1 {offsets = [1, 1, 0], sizes = [16, 16, 4], strides = [1, 1, 1]} : vector<18x18x4xf32> to vector<16x16x4xf32>
    %15 = vector.shape_cast %14 : vector<16x16x4xf32> to vector<256x4xf32>
    %16 = vector.extract_strided_slice %1 {offsets = [1, 2, 0], sizes = [16, 16, 4], strides = [1, 1, 1]} : vector<18x18x4xf32> to vector<16x16x4xf32>
    %17 = vector.shape_cast %16 : vector<16x16x4xf32> to vector<256x4xf32>
    %18 = vector.extract_strided_slice %1 {offsets = [2, 0, 0], sizes = [16, 16, 4], strides = [1, 1, 1]} : vector<18x18x4xf32> to vector<16x16x4xf32>
    %19 = vector.shape_cast %18 : vector<16x16x4xf32> to vector<256x4xf32>
    %20 = vector.extract_strided_slice %1 {offsets = [2, 1, 0], sizes = [16, 16, 4], strides = [1, 1, 1]} : vector<18x18x4xf32> to vector<16x16x4xf32>
    %21 = vector.shape_cast %20 : vector<16x16x4xf32> to vector<256x4xf32>
    %22 = vector.extract_strided_slice %1 {offsets = [2, 2, 0], sizes = [16, 16, 4], strides = [1, 1, 1]} : vector<18x18x4xf32> to vector<16x16x4xf32>
    %23 = vector.shape_cast %22 : vector<16x16x4xf32> to vector<256x4xf32>
    %24 = vector.extract_strided_slice %3 {offsets = [0, 0, 0], sizes = [16, 16, 4], strides = [1, 1, 1]} : vector<18x18x4xf32> to vector<16x16x4xf32>
    %25 = vector.shape_cast %24 : vector<16x16x4xf32> to vector<256x4xf32>
    %26 = vector.extract_strided_slice %3 {offsets = [0, 1, 0], sizes = [16, 16, 4], strides = [1, 1, 1]} : vector<18x18x4xf32> to vector<16x16x4xf32>
    %27 = vector.shape_cast %26 : vector<16x16x4xf32> to vector<256x4xf32>
    %28 = vector.extract_strided_slice %3 {offsets = [0, 2, 0], sizes = [16, 16, 4], strides = [1, 1, 1]} : vector<18x18x4xf32> to vector<16x16x4xf32>
    %29 = vector.shape_cast %28 : vector<16x16x4xf32> to vector<256x4xf32>
    %30 = vector.extract_strided_slice %3 {offsets = [1, 0, 0], sizes = [16, 16, 4], strides = [1, 1, 1]} : vector<18x18x4xf32> to vector<16x16x4xf32>
    %31 = vector.shape_cast %30 : vector<16x16x4xf32> to vector<256x4xf32>
    %32 = vector.extract_strided_slice %3 {offsets = [1, 1, 0], sizes = [16, 16, 4], strides = [1, 1, 1]} : vector<18x18x4xf32> to vector<16x16x4xf32>
    %33 = vector.shape_cast %32 : vector<16x16x4xf32> to vector<256x4xf32>
    %34 = vector.extract_strided_slice %3 {offsets = [1, 2, 0], sizes = [16, 16, 4], strides = [1, 1, 1]} : vector<18x18x4xf32> to vector<16x16x4xf32>
    %35 = vector.shape_cast %34 : vector<16x16x4xf32> to vector<256x4xf32>
    %36 = vector.extract_strided_slice %3 {offsets = [2, 0, 0], sizes = [16, 16, 4], strides = [1, 1, 1]} : vector<18x18x4xf32> to vector<16x16x4xf32>
    %37 = vector.shape_cast %36 : vector<16x16x4xf32> to vector<256x4xf32>
    %38 = vector.extract_strided_slice %3 {offsets = [2, 1, 0], sizes = [16, 16, 4], strides = [1, 1, 1]} : vector<18x18x4xf32> to vector<16x16x4xf32>
    %39 = vector.shape_cast %38 : vector<16x16x4xf32> to vector<256x4xf32>
    %40 = vector.extract_strided_slice %3 {offsets = [2, 2, 0], sizes = [16, 16, 4], strides = [1, 1, 1]} : vector<18x18x4xf32> to vector<16x16x4xf32>
    %41 = vector.shape_cast %40 : vector<16x16x4xf32> to vector<256x4xf32>
    %42 = vector.extract_strided_slice %5 {offsets = [0, 0, 0], sizes = [16, 16, 4], strides = [1, 1, 1]} : vector<18x18x4xf32> to vector<16x16x4xf32>
    %43 = vector.shape_cast %42 : vector<16x16x4xf32> to vector<256x4xf32>
    %44 = vector.extract_strided_slice %5 {offsets = [0, 1, 0], sizes = [16, 16, 4], strides = [1, 1, 1]} : vector<18x18x4xf32> to vector<16x16x4xf32>
    %45 = vector.shape_cast %44 : vector<16x16x4xf32> to vector<256x4xf32>
    %46 = vector.extract_strided_slice %5 {offsets = [0, 2, 0], sizes = [16, 16, 4], strides = [1, 1, 1]} : vector<18x18x4xf32> to vector<16x16x4xf32>
    %47 = vector.shape_cast %46 : vector<16x16x4xf32> to vector<256x4xf32>
    %48 = vector.extract_strided_slice %5 {offsets = [1, 0, 0], sizes = [16, 16, 4], strides = [1, 1, 1]} : vector<18x18x4xf32> to vector<16x16x4xf32>
    %49 = vector.shape_cast %48 : vector<16x16x4xf32> to vector<256x4xf32>
    %50 = vector.extract_strided_slice %5 {offsets = [1, 1, 0], sizes = [16, 16, 4], strides = [1, 1, 1]} : vector<18x18x4xf32> to vector<16x16x4xf32>
    %51 = vector.shape_cast %50 : vector<16x16x4xf32> to vector<256x4xf32>
    %52 = vector.extract_strided_slice %5 {offsets = [1, 2, 0], sizes = [16, 16, 4], strides = [1, 1, 1]} : vector<18x18x4xf32> to vector<16x16x4xf32>
    %53 = vector.shape_cast %52 : vector<16x16x4xf32> to vector<256x4xf32>
    %54 = vector.extract_strided_slice %5 {offsets = [2, 0, 0], sizes = [16, 16, 4], strides = [1, 1, 1]} : vector<18x18x4xf32> to vector<16x16x4xf32>
    %55 = vector.shape_cast %54 : vector<16x16x4xf32> to vector<256x4xf32>
    %56 = vector.extract_strided_slice %5 {offsets = [2, 1, 0], sizes = [16, 16, 4], strides = [1, 1, 1]} : vector<18x18x4xf32> to vector<16x16x4xf32>
    %57 = vector.shape_cast %56 : vector<16x16x4xf32> to vector<256x4xf32>
    %58 = vector.extract_strided_slice %5 {offsets = [2, 2, 0], sizes = [16, 16, 4], strides = [1, 1, 1]} : vector<18x18x4xf32> to vector<16x16x4xf32>
    %59 = vector.shape_cast %58 : vector<16x16x4xf32> to vector<256x4xf32>
    %60 = tpu.concatenate %7, %9, %11, %13, %15, %17, %19, %21, %23, %25, %27, %29, %31, %33, %35, %37 in 1 : vector<256x4xf32>, vector<256x4xf32>, vector<256x4xf32>, vector<256x4xf32>, vector<256x4xf32>, vector<256x4xf32>, vector<256x4xf32>, vector<256x4xf32>, vector<256x4xf32>, vector<256x4xf32>, vector<256x4xf32>, vector<256x4xf32>, vector<256x4xf32>, vector<256x4xf32>, vector<256x4xf32>, vector<256x4xf32> -> vector<256x64xf32>
    %61 = tpu.concatenate %39, %41, %43, %45, %47, %49, %51, %53, %55, %57, %59 in 1 : vector<256x4xf32>, vector<256x4xf32>, vector<256x4xf32>, vector<256x4xf32>, vector<256x4xf32>, vector<256x4xf32>, vector<256x4xf32>, vector<256x4xf32>, vector<256x4xf32>, vector<256x4xf32>, vector<256x4xf32> -> vector<256x44xf32>
    %62 = tpu.concatenate %60, %61 in 1 : vector<256x64xf32>, vector<256x44xf32> -> vector<256x108xf32>
    %63 = arith.truncf %62 : vector<256x108xf32> to vector<256x108xbf16>
    %c0_14 = arith.constant 0 : index
    %c0_15 = arith.constant 0 : index
    %64 = vector.load %arg5[%c0_14, %c0_15] : memref<108x64xbf16, #tpu.memory_space<vmem>>, vector<108x64xbf16>
    %cst = arith.constant dense<0.000000e+00> : vector<256x64xf32>
    %65 = tpu.matmul %63, %64, %cst {dimension_numbers = #tpu.dot_dimension_numbers<[1], [0], [0], [1], [0, 0, 1, 1], [], []>} : vector<256x108xbf16>, vector<108x64xbf16>, vector<256x64xf32> -> vector<256x64xf32>
    %c0_16 = arith.constant 0 : index
    %c0_17 = arith.constant 0 : index
    %66 = vector.load %arg6[%c0_16, %c0_17] : memref<1x64xf32, #tpu.memory_space<vmem>>, vector<1x64xf32>
    %67 = vector.broadcast %66 : vector<1x64xf32> to vector<256x64xf32>
    %68 = arith.addf %65, %67 : vector<256x64xf32>
    %c0_18 = arith.constant 0 : index
    %c0_19 = arith.constant 0 : index
    %c0_20 = arith.constant 0 : index
    %c0_21 = arith.constant 0 : index
    %69 = vector.load %arg7[%c0_18, %c0_19, %c0_20, %c0_21] : memref<1x1x256x64xf32, #tpu.memory_space<vmem>>, vector<1x1x256x64xf32>
    %70 = vector.shape_cast %69 : vector<1x1x256x64xf32> to vector<256x64xf32>
    %71 = vector.shape_cast %68 : vector<256x64xf32> to vector<1x1x256x64xf32>
    tpu.vector_store %arg7[%c0_18, %c0_19, %c0_20, %c0_21], %71 {strides = array<i32>} : memref<1x1x256x64xf32, #tpu.memory_space<vmem>>, vector<1x1x256x64xf32>,
    return
  }
  func.func @transform_0(%arg0: i32, %arg1: i32) -> (i32, i32, i32, i32, i32) {
    %c0_i32 = arith.constant 0 : i32
    %c0_i32_0 = arith.constant 0 : i32
    %c0_i32_1 = arith.constant 0 : i32
    %c0_i32_2 = arith.constant 0 : i32
    return %arg0, %arg1, %c0_i32, %c0_i32_0, %c0_i32_1 : i32, i32, i32, i32, i32
  }
  func.func @transform_1(%arg0: i32, %arg1: i32) -> (i32, i32, i32, i32, i32) {
    %c1_i32 = arith.constant 1 : i32
    %0 = arith.addi %arg1, %c1_i32 : i32
    %c0_i32 = arith.constant 0 : i32
    %c0_i32_0 = arith.constant 0 : i32
    %c0_i32_1 = arith.constant 0 : i32
    %c0_i32_2 = arith.constant 0 : i32
    return %arg0, %0, %c0_i32, %c0_i32_0, %c0_i32_1 : i32, i32, i32, i32, i32
  }
  func.func @transform_2(%arg0: i32, %arg1: i32) -> (i32, i32, i32, i32, i32) {
    %c2_i32 = arith.constant 2 : i32
    %0 = arith.addi %arg1, %c2_i32 : i32
    %c0_i32 = arith.constant 0 : i32
    %c0_i32_0 = arith.constant 0 : i32
    %c0_i32_1 = arith.constant 0 : i32
    %c0_i32_2 = arith.constant 0 : i32
    return %arg0, %0, %c0_i32, %c0_i32_0, %c0_i32_1 : i32, i32, i32, i32, i32
  }
  func.func @transform_3(%arg0: i32, %arg1: i32) -> (i32, i32) {
    %c0_i32 = arith.constant 0 : i32
    %c0_i32_0 = arith.constant 0 : i32
    %c0_i32_1 = arith.constant 0 : i32
    return %c0_i32, %c0_i32_0 : i32, i32
  }
  func.func @transform_4(%arg0: i32, %arg1: i32) -> (i32, i32) {
    %c0_i32 = arith.constant 0 : i32
    %c0_i32_0 = arith.constant 0 : i32
    %c0_i32_1 = arith.constant 0 : i32
    return %c0_i32, %c0_i32_0 : i32, i32
  }
  func.func @transform_5(%arg0: i32, %arg1: i32) -> (i32, i32, i32, i32) {
    %c0_i32 = arith.constant 0 : i32
    %c0_i32_0 = arith.constant 0 : i32
    %c0_i32_1 = arith.constant 0 : i32
    return %arg0, %arg1, %c0_i32, %c0_i32_0 : i32, i32, i32, i32
  }
}

</mosaic_0001>

<bundles_post_ra>
// kernel: tpu_custom_call.1
= control target key start
LH: loop header
LB: loop body
LE: loop exit
PB: predicated region body
PF: predicated region fallthrough
CT: control target
= control target key end

     0   :  { %s7379_s18 = smov 0   ;;  %s7381_s19 = smov 0   ;;  %s13125_s0 = inlined_call_operand.vmem [shape: f32[2,10,18,18,4], index: 0, kind: input, shape index: {}]   ;;  %s13126_s1 = inlined_call_operand.vmem [shape: f32[2,10,18,18,4], index: 1, kind: input, shape index: {}]   ;;  %s13127_s2 = inlined_call_operand.vmem [shape: f32[2,10,18,18,4], index: 2, kind: input, shape index: {}]   ;;  %s13128_s3 = inlined_call_operand.vmem [shape: bf16[108,64], index: 3, kind: input, shape index: {}]   ;;  %s13129_s4 = inlined_call_operand.vmem [shape: f32[1,64], index: 4, kind: input, shape index: {}]   ;;  %s13130_s5 = inlined_call_operand.vmem [shape: f32[2,8,256,64], index: 5, kind: output, shape index: {}]  }
   0x1   :  { %s7383_s20 = smov 0   ;;  %s7385_s21 = smov 0  }
   0x2   :  { %s7387_s22 = smov 0  }
   0x3 LB: > { %s24_s23 = sadd.s32 1, %s7323_s20  ;;  %s27_s24 = sadd.s32 1, %s7327_s21  ;;  %s7331_s22 = sphi %s7387_s22, %s15_s22   ;;  %s7327_s21 = sphi %s7385_s21, %s14422_s21   ;;  %s7323_s20 = sphi %s7383_s20, %s14421_s20   ;;  %s7319_s19 = sphi %s7381_s19, %s14420_s19   ;;  %s7315_s18 = sphi %s7379_s18, %s14419_s18  }
   0x4   : > { %p25_p0 = scmp.ge.s32.totalorder %s24_s23, 8  ;;  %p5007_p1 = scmp.ge.s32.totalorder %s7331_s22, 1 }
   0x5   : > { %p247_p2 = scmp.lt.s32.totalorder %s7331_s22, 17 }
   0x6   : > { %s14424_s23 = smov (%p25_p0, %s24_s23), 0  ;;  %s14426_s24 = smov (!%p25_p0, %s27_s24), %s7327_s21 }
   0x7   : > { %p248_p3 = pnand %p5007_p1, %p247_p2  ;;  %p29_p4 = scmp.ge.s32.totalorder %s14426_s24, 2 }
   0x9   : > { %s14428_s24 = smov (%p29_p4, %s14426_s24), 0  ;;  %251 = sbr.rel (%p248_p3) target bundleno = 1556 (0x614), region = 40 }
   0xe   : > { %p303_p5 = scmp.lt.s32.totalorder %s7319_s19, 1  ;;  %p305_p6 = scmp.lt.s32.totalorder %s7315_s18, 9  ;;  %vm554_vm0 = vcmask 1046528   ;;  %vm635_vm1 = vcmask 1045504   ;;  %vm2682_vm2 = vcmask 31744   ;;  %vm2715_vm3 = vcmask 64512  }
   0xf   : > { %s7333_s8 = smov 4   ;;  %s7334_s9 = smov 8   ;;  %vm2748_vm4 = vcmask 97280   ;;  %vm2781_vm5 = vcmask 130048   ;;  %vm2814_vm6 = vcmask 162816   ;;  %vm2847_vm7 = vcmask 195584  }
  0x10   : > { %s14430_s19 = smov (!%p303_p5, %s7319_s19), 1  ;;  %s7335_s10 = smov 12   ;;  %vm2880_vm8 = vcmask 228352   ;;  %vm13553_vm9 = vcmask 261120   ;;  %vm2946_vm10 = vcmask 293888   ;;  %vm2979_vm11 = vcmask 326656  }
  0x11   : > { %s306_s25 = scalar_select %p305_p6, %s7315_s18, 9  ;;  %vm3012_vm12 = vcmask 359424   ;;  %vm3045_vm13 = vcmask 392192   ;;  %vm3078_vm14 = vcmask 424960   ;;  %vm3111_vm15 = vcmask 457728  }
  0x12   : > { %s7416_s26 = smul.u32 540, %s14430_s19  ;;  %s7336_s11 = smov 16  }
  0x13   : > { %s5088_s27 = smul.u32 54, %s306_s25  ;;  %s7337_s12 = smov 20  }
  0x14   : > { %s7338_s13 = smov 24   ;;  %s7339_s14 = smov 28  }
  0x15   : > { %s309_s28 = sadd.s32 %s7416_s26, %s5088_s27  ;;  %s7340_s15 = smov 32  }
  0x16   : > { %s5008_s29 = sshll.u32 %s309_s28, 3  ;;  %s312_s16 = sadd.s32 1, %s7315_s18 }
  0x17   : > { %s7422_s7 = scalar_lea.vmem %s13125_s0, %s5008_s29  ;;  %p315_p7 = scmp.lt.s32.totalorder %s312_s16, 9 }
  0x18   : > { %v7425_v0 = vld [vmem:[%s7422_s7 + $0x60] sm:$0xff]  ;;  %v7428_v1 = vld [vmem:[%s7422_s7 + $0x68] sm:$0xff]  ;;  %v7431_v2 = vld [vmem:[%s7422_s7 + $0x70] sm:$0x3]  ;;  %s7341_s6 = smov 36   ;;  %s7346_s28 = smov 56  }
  0x19   : > { %v575_v3 = vrot.slane %v7425_v0, 1  ;;  %v576_v4 = vrot.slane %v7428_v1, 1  ;;  %v578_v5 = vrot.slane %v7431_v2, 1  ;;  %v7437_v6 = vld [vmem:[%s7422_s7 + $0x30] sm:$0xff]  ;;  %v7440_v7 = vld [vmem:[%s7422_s7 + $0x38] sm:$0xff]  ;;  %v7448_v11 = vld [vmem:[%s7422_s7] sm:$0xff] }
  0x1a   : > { %v7443_v8 = vld [vmem:[%s7422_s7 + $0x40] sm:$0x3]  ;;  %v565_v9 = vrot.slane %v7437_v6, 1  ;;  %v566_v10 = vrot.slane %v7440_v7, 1  ;;  %v7451_v12 = vld [vmem:[%s7422_s7 + $0x8] sm:$0xff]  ;;  %v7460_v17 = vld [vmem:[%s7422_s7 + $0x78] sm:$0xff] }
  0x1b   : > { %v577_v13 = vsel %vm554_vm0, %v575_v3, %v576_v4  ;;  %v579_v14 = vsel %vm554_vm0, %v576_v4, %v578_v5  ;;  %v568_v15 = vrot.slane %v7443_v8, 1  ;;  %v7457_v16 = vld [vmem:[%s7422_s7 + $0x10] sm:$0x3]  ;;  %v7463_v18 = vld [vmem:[%s7422_s7 + $0x80] sm:$0xff]  ;;  %v555_v21 = vrot.slane %v7448_v11, 1  ;;  %v7474_v24 = vld [vmem:[%s7422_s7 + $0x48] sm:$0xff] }
  0x1c   : > { %v7465_v19 = vpack.i.bf16 %v579_v14, %v577_v13  ;;  %v567_v20 = vsel %vm554_vm0, %v565_v9, %v566_v10  ;;  %v556_v22 = vrot.slane %v7451_v12, 1  ;;  %v7471_v23 = vld [vmem:[%s7422_s7 + $0x88] sm:$0x3]  ;;  %v7477_v25 = vld [vmem:[%s7422_s7 + $0x50] sm:$0xff]  ;;  %v558_v27 = vrot.slane %v7457_v16, 1  ;;  %v7486_v30 = vld [vmem:[%s7422_s7 + $0x18] sm:$0xff] }
  0x1d   : > { %v569_v26 = vsel %vm554_vm0, %v566_v10, %v568_v15  ;;  %v580_v28 = vrot.slane %v7460_v17, 1  ;;  %v7483_v29 = vld [vmem:[%s7422_s7 + $0x58] sm:$0x3]  ;;  %v581_v33 = vrot.slane %v7463_v18, 1  ;;  %v583_v34 = vrot.slane %v7471_v23, 1  ;;  %v7496_v35 = vld [vmem:[%s7422_s7 + $0x20] sm:$0xff] }
  0x1e   : > { %13554 = vst [vmem:[#allocation2_spill] sm:$0xff] %v7465_v19  ;;  %5169 = vrot.lane.b32.xlu2 %v7465_v19, %s7333_s8  ;;  %v7490_v31 = vpack.i.bf16 %v569_v26, %v567_v20  ;;  %v557_v32 = vsel %vm554_vm0, %v555_v21, %v556_v22  ;;  %v7499_v36 = vld [vmem:[%s7422_s7 + $0x28] sm:$0x3]  ;;  %v559_v37 = vsel %vm554_vm0, %v556_v22, %v558_v27  ;;  %v570_v38 = vrot.slane %v7474_v24, 1  ;;  %v7506_v41 = vld [vmem:[%s7422_s7 + $0xc0] sm:$0xff]  ;;  %v7532_v56 = vld [vmem:[%s7422_s7 + $0xb0] sm:$0xff] }
  0x1f   : > { %v571_v39 = vrot.slane %v7477_v25, 1  ;;  %v573_v40 = vrot.slane %v7483_v29, 1  ;;  %v7509_v42 = vld [vmem:[%s7422_s7 + $0xc8] sm:$0xff]  ;;  %v5148_v43 = vpack.i.bf16 %v559_v37, %v557_v32  ;;  %v582_v44 = vsel %vm554_vm0, %v580_v28, %v581_v33  ;;  %v7517_v47 = vld [vmem:[%s7422_s7 + $0xd0] sm:$0x3]  ;;  %v7546_v63 = vld [vmem:[%s7422_s7 + $0x98] sm:$0xff] }
  0x20   : > { %13555 = vst [vmem:[#allocation3_spill] sm:$0xff] %v7490_v31  ;;  %5159 = vrot.lane.b32.xlu1 %v7490_v31, %s7333_s8  ;;  %v584_v45 = vsel %vm554_vm0, %v581_v33, %v583_v34  ;;  %v560_v46 = vrot.slane %v7486_v30, 1  ;;  %v561_v50 = vrot.slane %v7496_v35, 1  ;;  %v7523_v51 = vld [vmem:[%s7422_s7 + $0xa8] sm:$0xff]  ;;  %v563_v53 = vrot.slane %v7499_v36, 1  ;;  %v7543_v62 = vld [vmem:[%s7422_s7 + $0x90] sm:$0xff] }
  0x21   : > { %v572_v48 = vsel %vm554_vm0, %v570_v38, %v571_v39  ;;  %v574_v49 = vsel %vm554_vm0, %v571_v39, %v573_v40  ;;  %5149 = vrot.lane.b32.xlu0 %v5148_v43, %s7333_s8  ;;  %v7526_v52 = vpack.i.bf16 %v584_v45, %v582_v44  ;;  %v595_v54 = vrot.slane %v7506_v41, 1  ;;  %v7535_v57 = vld [vmem:[%s7422_s7 + $0xb8] sm:$0x3]  ;;  %v7549_v3 = vld [vmem:[%s7422_s7 + $0xa0] sm:$0x3]  ;;  %v7564_v22 = vld [vmem:[%s7422_s7 + $0x108] sm:$0xff] }
  0x22   : > { %v596_v55 = vrot.slane %v7509_v42, 1  ;;  %v562_v58 = vsel %vm554_vm0, %v560_v46, %v561_v50  ;;  %v598_v59 = vrot.slane %v7517_v47, 1  ;;  %v7539_v60 = vpack.i.bf16 %v574_v49, %v572_v48  ;;  %v7567_v26 = vld [vmem:[%s7422_s7 + $0x110] sm:$0xff]  ;;  %v7572_v27 = vld [vmem:[%s7422_s7 + $0x118] sm:$0x3]  ;;  %v7600_v49 = vld [vmem:[%s7422_s7 + $0xe0] sm:$0xff] }
  0x23   : > { %13556 = vst [vmem:[#allocation4_spill] sm:$0xff] %v7526_v52  ;;  %v564_v61 = vsel %vm554_vm0, %v561_v50, %v563_v53  ;;  %v590_v4 = vrot.slane %v7523_v51, 1  ;;  %v591_v5 = vrot.slane %v7532_v56, 1  ;;  %v593_v9 = vrot.slane %v7535_v57, 1  ;;  %v7583_v38 = vld [vmem:[%s7422_s7 + $0xf0] sm:$0xff]  ;;  %v7586_v39 = vld [vmem:[%s7422_s7 + $0xf8] sm:$0xff] }
  0x24   : > { %v7556_v10 = vpack.i.bf16 %v564_v61, %v562_v58  ;;  %v597_v13 = vsel %vm554_vm0, %v595_v54, %v596_v55  ;;  %v599_v14 = vsel %vm554_vm0, %v596_v55, %v598_v59  ;;  %v585_v15 = vrot.slane %v7543_v62, 1  ;;  %v7589_v40 = vld [vmem:[%s7422_s7 + $0x100] sm:$0x3]  ;;  %v7597_v48 = vld [vmem:[%s7422_s7 + $0xd8] sm:$0xff]  ;;  %v7603_v50 = vld [vmem:[%s7422_s7 + $0xe8] sm:$0x3] }
  0x25   : > { %v586_v20 = vrot.slane %v7546_v63, 1  ;;  %v588_v21 = vrot.slane %v7549_v3, 1  ;;  %v592_v28 = vsel %vm554_vm0, %v590_v4, %v591_v5  ;;  %v594_v32 = vsel %vm554_vm0, %v591_v5, %v593_v9  ;;  %s14432_s16 = smov (!%p315_p7, %s312_s16), 9  ;;  %s7347_s29 = smov 60  }
  0x26   : > { %5174 = vrot.lane.b32.xlu2 %v7526_v52, %s7333_s8  ;;  %13557 = vst [vmem:[#allocation5_spill] sm:$0xff] %v7556_v10  ;;  %v7578_v33 = vpack.i.bf16 %v599_v14, %v597_v13  ;;  %v610_v34 = vrot.slane %v7564_v22, 1  ;;  %v611_v37 = vrot.slane %v7567_v26, 1  ;;  %v613_v45 = vrot.slane %v7572_v27, 1  ;;  %v7618_v13 = vld [vmem:[%s7422_s7 + $0x150] sm:$0xff]  ;;  %v7621_v14 = vld [vmem:[%s7422_s7 + $0x158] sm:$0xff] }
  0x27   : > { %v587_v43 = vsel %vm554_vm0, %v585_v15, %v586_v20  ;;  %v589_v44 = vsel %vm554_vm0, %v586_v20, %v588_v21  ;;  %v7594_v46 = vpack.i.bf16 %v594_v32, %v592_v28  ;;  %v605_v53 = vrot.slane %v7583_v38, 1  ;;  %v7626_v15 = vld [vmem:[%s7422_s7 + $0x160] sm:$0x3]  ;;  %s5090_s17 = smul.u32 54, %s14432_s16  ;;  %s13374_s16 = smov 40  }
  0x28   : > { %5164 = vrot.lane.b32.xlu1 %v7539_v60, %s7333_s8  ;;  %13558 = vst [vmem:[#allocation6_spill] sm:$0xff] %v7578_v33  ;;  %v606_v54 = vrot.slane %v7586_v39, 1  ;;  %v608_v55 = vrot.slane %v7589_v40, 1  ;;  %v7610_v58 = vpack.i.bf16 %v589_v44, %v587_v43  ;;  %v612_v59 = vsel %vm554_vm0, %v610_v34, %v611_v37  ;;  %v7640_v43 = vld [vmem:[%s7422_s7 + $0x140] sm:$0xff]  ;;  %v7643_v44 = vld [vmem:[%s7422_s7 + $0x148] sm:$0x3] }
  0x29   : > { %5154 = vrot.lane.b32.xlu0 %v7556_v10, %s7333_s8  ;;  %13559 = vst [vmem:[#allocation7_spill] sm:$0xff] %v7594_v46  ;;  %v614_v61 = vsel %vm554_vm0, %v611_v37, %v613_v45  ;;  %v600_v4 = vrot.slane %v7597_v48, 1  ;;  %v601_v5 = vrot.slane %v7600_v49, 1  ;;  %v603_v9 = vrot.slane %v7603_v50, 1  ;;  %v7637_v37 = vld [vmem:[%s7422_s7 + $0x138] sm:$0xff]  ;;  %s319_s25 = sadd.s32 %s5090_s17, %s7416_s26  ;;  %s7343_s17 = smov 44  }
  0x2a   : > { %13560 = vst [vmem:[#allocation8_spill] sm:$0xff] %v7610_v58  ;;  %v607_v20 = vsel %vm554_vm0, %v605_v53, %v606_v54  ;;  %v609_v21 = vsel %vm554_vm0, %v606_v54, %v608_v55  ;;  %v7632_v28 = vpack.i.bf16 %v614_v61, %v612_v59  ;;  %v625_v32 = vrot.slane %v7618_v13, 1  ;;  %v7651_v59 = vld [vmem:[%s7422_s7 + $0x120] sm:$0xff]  ;;  %v7654_v61 = vld [vmem:[%s7422_s7 + $0x128] sm:$0xff]  ;;  %s5009_s27 = sshll.u32 %s319_s25, 3  ;;  %s7344_s25 = smov 48  }
  0x2b   : > { %v626_v34 = vrot.slane %v7621_v14, 1  ;;  %v602_v45 = vsel %vm554_vm0, %v600_v4, %v601_v5  ;;  %v604_v53 = vsel %vm554_vm0, %v601_v5, %v603_v9  ;;  %v628_v54 = vrot.slane %v7626_v15, 1  ;;  %s8300_s30 = scalar_lea.vmem %s13126_s1, %s5009_s27  ;;  %s7345_s27 = smov 52  }
  0x2c   : > { %13561 = vst [vmem:[#allocation9_spill] sm:$0xff] %v7632_v28  ;;  %v7648_v55 = vpack.i.bf16 %v609_v21, %v607_v20  ;;  %v621_v19 = vrot.slane %v7640_v43, 1  ;;  %v623_v52 = vrot.slane %v7643_v44, 1  ;;  %v7664_v4 = vpack.i.bf16 %v604_v53, %v602_v45  ;;  %p336_p9 = scmp.lt.s32.totalorder %s7315_s18, 7 }
  0x2d   : > { %v627_v5 = vsel %vm554_vm0, %v625_v32, %v626_v34  ;;  %v629_v9 = vsel %vm554_vm0, %v626_v34, %v628_v54  ;;  %v615_v20 = vrot.slane %v7651_v59, 1  ;;  %v616_v21 = vrot.slane %v7654_v61, 1 }
  0x2e   : > { %5189 = vrot.lane.b32.xlu2 %v7578_v33, %s7333_s8  ;;  %13562 = vst [vmem:[#allocation10_spill] sm:$0xff] %v7648_v55  ;;  %v620_v33 = vrot.slane %v7637_v37, 1  ;;  %v624_v45 = vsel %vm554_vm0, %v621_v19, %v623_v52  ;;  %v7677_v32 = vpack.i.bf16 %v629_v9, %v627_v5  ;;  %v641_v34 = vrot.slane %v7486_v30, 2  ;;  %v7693_v52 = vld [vmem:[%s7422_s7 + $0x178] sm:$0x3] }
  0x2f   : > { %13563 = vst [vmem:[#allocation11_spill] sm:$0xff] %v7664_v4  ;;  %v642_v53 = vrot.slane %v7496_v35, 2  ;;  %v617_v54 = vsel %vm554_vm0, %v615_v20, %v616_v21  ;;  %v639_v5 = vrot.slane %v7457_v16, 2  ;;  %v636_v9 = vrot.slane %v7448_v11, 2 }
  0x30   : > { %5184 = vrot.lane.b32.xlu1 %v7594_v46, %s7333_s8  ;;  %v7657_v46 = vld [vmem:[%s7422_s7 + $0x130] sm:$0x3]  ;;  %v659_v16 = vrot.slane %v7431_v2, 2  ;;  %v654_v2 = vrot.slane %v7483_v29, 2 }
  0x31   : > { %5179 = vrot.lane.b32.xlu0 %v7610_v58, %s7333_s8  ;;  %v618_v58 = vrot.slane %v7657_v46, 1 }
  0x33   : > { %v619_v10 = vsel %vm554_vm0, %v616_v21, %v618_v58 }
  0x34   : > { %v7700_v58 = vpack.i.bf16 %v619_v10, %v617_v54  ;;  %v657_v54 = vrot.slane %v7428_v1, 2 }
  0x36   : > { %5204 = vrot.lane.b32.xlu2 %v7632_v28, %s7333_s8  ;;  %v622_v28 = vsel %vm554_vm0, %v620_v33, %v621_v19  ;;  %v7687_v33 = vld [vmem:[%s7422_s7 + $0x168] sm:$0xff]  ;;  %v7690_v19 = vld [vmem:[%s7422_s7 + $0x170] sm:$0xff] }
  0x37   : > { %v7684_v31 = vpack.i.bf16 %v624_v45, %v622_v28  ;;  %v630_v20 = vrot.slane %v7687_v33, 1  ;;  %v631_v21 = vrot.slane %v7690_v19, 1  ;;  %v633_v45 = vrot.slane %v7693_v52, 1 }
  0x38   : > { %5199 = vrot.lane.b32.xlu1 %v7648_v55, %s7333_s8  ;;  %v644_v55 = vrot.slane %v7499_v36, 2  ;;  %v643_v36 = vsel %vm635_vm1, %v641_v34, %v642_v53 }
  0x39   : > { %5194 = vrot.lane.b32.xlu0 %v7664_v4, %s7333_s8  ;;  %13564 = vst [vmem:[#allocation12_spill] sm:$0xff] %v7684_v31  ;;  %v637_v4 = vrot.slane %v7451_v12, 2  ;;  %v634_v34 = vsel %vm554_vm0, %v631_v21, %v633_v45  ;;  %v647_v45 = vrot.slane %v7440_v7, 2 }
  0x3a   : > { %v645_v28 = vsel %vm635_vm1, %v642_v53, %v644_v55  ;;  %v632_v55 = vsel %vm554_vm0, %v630_v20, %v631_v21  ;;  %v656_v53 = vrot.slane %v7425_v0, 2  ;;  %v660_v20 = vsel %vm635_vm1, %v657_v54, %v659_v16 }
  0x3b   : > { %v638_v11 = vsel %vm635_vm1, %v636_v9, %v637_v4  ;;  %v640_v12 = vsel %vm635_vm1, %v637_v4, %v639_v5  ;;  %v7714_v10 = vpack.i.bf16 %v645_v28, %v643_v36  ;;  %v651_v9 = vrot.slane %v7474_v24, 2 }
  0x3c   : > { %v652_v4 = vrot.slane %v7477_v25, 2  ;;  %v649_v5 = vrot.slane %v7443_v8, 2  ;;  %v7726_v36 = vpack.i.bf16 %v634_v34, %v632_v55  ;;  %v658_v28 = vsel %vm635_vm1, %v656_v53, %v657_v54 }
  0x3d   : > { %v646_v21 = vrot.slane %v7437_v6, 2  ;;  %v672_v34 = vrot.slane %v7532_v56, 2  ;;  %v674_v53 = vrot.slane %v7535_v57, 2  ;;  %v666_v54 = vrot.slane %v7543_v62, 2 }
  0x3e   : > { %5219 = vrot.lane.b32.xlu2 %v7677_v32, %s7333_s8  ;;  %v653_v29 = vsel %vm635_vm1, %v651_v9, %v652_v4  ;;  %v655_v8 = vsel %vm635_vm1, %v652_v4, %v654_v2  ;;  %v650_v16 = vsel %vm635_vm1, %v647_v45, %v649_v5  ;;  %v667_v9 = vrot.slane %v7546_v63, 2 }
  0x3f   : > { %v648_v55 = vsel %vm635_vm1, %v646_v21, %v647_v45  ;;  %v669_v4 = vrot.slane %v7549_v3, 2  ;;  %v662_v57 = vrot.slane %v7463_v18, 2  ;;  %v664_v21 = vrot.slane %v7471_v23, 2 }
  0x40   : > { %5214 = vrot.lane.b32.xlu1 %v7684_v31, %s7333_s8  ;;  %v5228_v31 = vpack.i.bf16 %v640_v12, %v638_v11  ;;  %v7737_v11 = vpack.i.bf16 %v660_v20, %v658_v28  ;;  %v671_v12 = vrot.slane %v7523_v51, 2  ;;  %v7751_v2 = vpack.i.bf16 %v650_v16, %v648_v55 }
  0x41   : > { %5209 = vrot.lane.b32.xlu0 %v7700_v58, %s7333_s8  ;;  %v661_v28 = vrot.slane %v7460_v17, 2  ;;  %v675_v20 = vsel %vm635_vm1, %v672_v34, %v674_v53  ;;  %v668_v3 = vsel %vm635_vm1, %v666_v54, %v667_v9  ;;  %v670_v45 = vsel %vm635_vm1, %v667_v9, %v669_v4 }
  0x42   : > { %v673_v5 = vsel %vm635_vm1, %v671_v12, %v672_v34  ;;  %v687_v12 = vrot.slane %v7586_v39, 2  ;;  %v665_v23 = vsel %vm635_vm1, %v662_v57, %v664_v21  ;;  %v689_v16 = vrot.slane %v7589_v40, 2 }
  0x43   : > { %v663_v55 = vsel %vm635_vm1, %v661_v28, %v662_v57  ;;  %v7771_v34 = vpack.i.bf16 %v670_v45, %v668_v3  ;;  %v681_v53 = vrot.slane %v7597_v48, 2  ;;  %v682_v54 = vrot.slane %v7600_v49, 2 }
  0x44   : > { %v684_v9 = vrot.slane %v7603_v50, 2  ;;  %v7778_v4 = vpack.i.bf16 %v665_v23, %v663_v55  ;;  %v690_v28 = vsel %vm635_vm1, %v687_v12, %v689_v16  ;;  %v677_v40 = vrot.slane %v7509_v42, 2 }
  0x45   : > { %v679_v57 = vrot.slane %v7517_v47, 2  ;;  %v683_v50 = vsel %vm635_vm1, %v681_v53, %v682_v54  ;;  %v701_v45 = vrot.slane %v7637_v37, 2  ;;  %v704_v55 = vrot.slane %v7643_v44, 2 }
  0x46   : > { %5234 = vrot.lane.b32.xlu2 %v7714_v10, %s7334_s9  ;;  %v685_v21 = vsel %vm635_vm1, %v682_v54, %v684_v9  ;;  %v696_v16 = vrot.slane %v7651_v59, 2  ;;  %v697_v53 = vrot.slane %v7654_v61, 2  ;;  %v699_v54 = vrot.slane %v7657_v46, 2 }
  0x47   : > { %v680_v47 = vsel %vm635_vm1, %v677_v40, %v679_v57  ;;  %v7798_v23 = vpack.i.bf16 %v685_v21, %v683_v50  ;;  %v692_v44 = vrot.slane %v7567_v26, 2 }
  0x48   : > { %5229 = vrot.lane.b32.xlu1 %v5228_v31, %s7334_s9  ;;  %v7744_v31 = vpack.i.bf16 %v655_v8, %v653_v29  ;;  %v7764_v29 = vpack.i.bf16 %v675_v20, %v673_v5  ;;  %v686_v8 = vrot.slane %v7583_v38, 2  ;;  %v676_v20 = vrot.slane %v7506_v41, 2 }
  0x49   : > { %5224 = vrot.lane.b32.xlu0 %v7726_v36, %s7333_s8  ;;  %v698_v46 = vsel %vm635_vm1, %v696_v16, %v697_v53  ;;  %v700_v57 = vsel %vm635_vm1, %v697_v53, %v699_v54  ;;  %v706_v16 = vrot.slane %v7618_v13, 2  ;;  %v707_v53 = vrot.slane %v7621_v14, 2 }
  0x4a   : > { %v688_v5 = vsel %vm635_vm1, %v686_v8, %v687_v12  ;;  %v702_v8 = vrot.slane %v7640_v43, 2  ;;  %v678_v12 = vsel %vm635_vm1, %v676_v20, %v677_v40  ;;  %v691_v20 = vrot.slane %v7564_v22, 2 }
  0x4b   : > { %v7791_v3 = vpack.i.bf16 %v690_v28, %v688_v5  ;;  %v7805_v9 = vpack.i.bf16 %v680_v47, %v678_v12  ;;  %v694_v40 = vrot.slane %v7572_v27, 2  ;;  %v711_v27 = vrot.slane %v7687_v33, 2 }
  0x4c   : > { %v703_v5 = vsel %vm635_vm1, %v701_v45, %v702_v8  ;;  %v705_v28 = vsel %vm635_vm1, %v702_v8, %v704_v55  ;;  %v693_v21 = vsel %vm635_vm1, %v691_v20, %v692_v44  ;;  %v7822_v8 = vpack.i.bf16 %v700_v57, %v698_v46 }
  0x4d   : > { %v7818_v50 = vpack.i.bf16 %v705_v28, %v703_v5  ;;  %v695_v45 = vsel %vm635_vm1, %v692_v44, %v694_v40  ;;  %v712_v12 = vrot.slane %v7690_v19, 2  ;;  %v714_v47 = vrot.slane %v7693_v52, 2 }
  0x4e   : > { %5249 = vrot.lane.b32.xlu2 %v7737_v11, %s7334_s9  ;;  %v7829_v55 = vpack.i.bf16 %v695_v45, %v693_v21  ;;  %v709_v54 = vrot.slane %v7626_v15, 2  ;;  %v5308_v52 = vpack.i.bf16 %v7496_v35, %v7486_v30  ;;  %v708_v20 = vsel %vm635_vm1, %v706_v16, %v707_v53  ;;  %v13580_v21 = vld [vmem:[#allocation4_spill] sm:$0xff]  ;;  %v13585_v16 = vld [vmem:[#allocation11_spill] sm:$0xff] }
  0x4f   : > { %v713_v5 = vsel %vm635_vm1, %v711_v27, %v712_v12  ;;  %v715_v28 = vsel %vm635_vm1, %v712_v12, %v714_v47  ;;  %v7855_v30 = vpack.i.bf16 %v7428_v1, %v7425_v0  ;;  %v7859_v35 = vpack.i.bf16 %v7477_v25, %v7474_v24  ;;  %v13582_v27 = vld [vmem:[#allocation2_spill] sm:$0xff] }
  0x50   : > { %5244 = vrot.lane.b32.xlu1 %v7744_v31, %s7334_s9  ;;  %v710_v44 = vsel %vm635_vm1, %v707_v53, %v709_v54  ;;  %v7844_v40 = vpack.i.bf16 %v715_v28, %v713_v5  ;;  %v7865_v46 = vpack.i.bf16 %v7440_v7, %v7437_v6  ;;  %v7875_v0 = vpack.i.bf16 %v7532_v56, %v7523_v51  ;;  %v13586_v53 = vld [vmem:[#allocation6_spill] sm:$0xff]  ;;  %v13588_v5 = vld [vmem:[#allocation7_spill] sm:$0xff] }
  0x51   : > { %5239 = vrot.lane.b32.xlu0 %v7751_v2, %s7334_s9  ;;  %v7847_v15 = vpack.i.bf16 %v710_v44, %v708_v20  ;;  %v7879_v1 = vpack.i.bf16 %v7546_v63, %v7543_v62  ;;  %v7885_v6 = vpack.i.bf16 %v7463_v18, %v7460_v17  ;;  %v7895_v24 = vpack.i.bf16 %v7586_v39, %v7583_v38  ;;  %v7931_v62 = vld [vmem:[%s7422_s7 + $0x188] sm:$0xff]  ;;  %v13591_v20 = vld [vmem:[#allocation9_spill] sm:$0xff] }
  0x52   : > { %v7899_v25 = vpack.i.bf16 %v7600_v49, %v7597_v48  ;;  %v7905_v17 = vpack.i.bf16 %v7509_v42, %v7506_v41  ;;  %v7915_v51 = vpack.i.bf16 %v7640_v43, %v7637_v37  ;;  %v7919_v56 = vpack.i.bf16 %v7654_v61, %v7651_v59  ;;  %v7928_v42 = vld [vmem:[%s7422_s7 + $0x180] sm:$0xff]  ;;  %v13574_v59 = vld [vmem:[#allocation3_spill] sm:$0xff] }
  0x53   : > { %v7925_v41 = vpack.i.bf16 %v7567_v26, %v7564_v22  ;;  %v7943_v39 = vpack.i.bf16 %v7931_v62, %v7928_v42  ;;  %v7949_v26 = vpack.i.bf16 %v7690_v19, %v7687_v33  ;;  %v7955_v48 = vpack.i.bf16 %v7621_v14, %v7618_v13  ;;  %v13576_v14 = vld [vmem:[#allocation5_spill] sm:$0xff]  ;;  %v13579_v19 = vld [vmem:[#allocation8_spill] sm:$0xff] }
  0x56   : > { %5264 = vrot.lane.b32.xlu2 %v7764_v29, %s7334_s9 }
  0x58   : > { %5259 = vrot.lane.b32.xlu1 %v7771_v34, %s7334_s9 }
  0x59   : > { %5254 = vrot.lane.b32.xlu0 %v7778_v4, %s7334_s9 }
  0x5e   : > { %5279 = vrot.lane.b32.xlu2 %v7791_v3, %s7334_s9 }
  0x60   : > { %5274 = vrot.lane.b32.xlu1 %v7798_v23, %s7334_s9 }
  0x61   : > { %5269 = vrot.lane.b32.xlu0 %v7805_v9, %s7334_s9 }
  0x66   : > { %5294 = vrot.lane.b32.xlu2 %v7818_v50, %s7334_s9 }
  0x68   : > { %5289 = vrot.lane.b32.xlu1 %v7822_v8, %s7334_s9 }
  0x69   : > { %5284 = vrot.lane.b32.xlu0 %v7829_v55, %s7334_s9 }
  0x6e   : > { %5309 = vrot.lane.b32.xlu2 %v5308_v52, %s7335_s10 }
  0x70   : > { %5304 = vrot.lane.b32.xlu1 %v7844_v40, %s7334_s9 }
  0x71   : > { %5299 = vrot.lane.b32.xlu0 %v7847_v15, %s7334_s9 }
  0x76   : > { %5324 = vrot.lane.b32.xlu2 %v7855_v30, %s7335_s10 }
  0x78   : > { %5319 = vrot.lane.b32.xlu1 %v7859_v35, %s7335_s10  ;;  %v7869_v57 = vpop.permute.xlu2 %5169 }
  0x79   : > { %13565 = vst [vmem:[#allocation13_spill] sm:$0xff] %v7869_v57  ;;  %5314 = vrot.lane.b32.xlu0 %v7865_v46, %s7335_s10 }
  0x7e   : > { %5339 = vrot.lane.b32.xlu2 %v7875_v0, %s7335_s10 }
  0x80   : > { %5334 = vrot.lane.b32.xlu1 %v7879_v1, %s7335_s10  ;;  %v7889_v7 = vpop.permute.xlu2 %5174 }
  0x81   : > { %13566 = vst [vmem:[#allocation14_spill] sm:$0xff] %v7889_v7  ;;  %5329 = vrot.lane.b32.xlu0 %v7885_v6, %s7335_s10  ;;  %v8578_v7 = vld [vmem:[%s8300_s30 + $0x70] sm:$0x3] }
  0x86   : > { %5354 = vrot.lane.b32.xlu2 %v7895_v24, %s7335_s10 }
  0x88   : > { %5349 = vrot.lane.b32.xlu1 %v7899_v25, %s7335_s10  ;;  %v7909_v18 = vpop.permute.xlu2 %5189 }
  0x89   : > { %13567 = vst [vmem:[#allocation15_spill] sm:$0xff] %v7909_v18  ;;  %5344 = vrot.lane.b32.xlu0 %v7905_v17, %s7335_s10 }
  0x8e   : > { %5369 = vrot.lane.b32.xlu2 %v7915_v51, %s7335_s10 }
  0x90   : > { %5364 = vrot.lane.b32.xlu1 %v7919_v56, %s7335_s10  ;;  %v7935_v63 = vpop.permute.xlu2 %5204 }
  0x91   : > { %13568 = vst [vmem:[#allocation16_spill] sm:$0xff] %v7935_v63  ;;  %5359 = vrot.lane.b32.xlu0 %v7925_v41, %s7335_s10  ;;  %v719_v63 = vrot.slane %v7928_v42, 1 }
  0x92   : > { %v7939_v38 = vpop.permute.xlu1 %5159 }
  0x93   : > { %13569 = vst [vmem:[#allocation17_spill] sm:$0xff] %v7939_v38  ;;  %v7945_v22 = vpop.permute.xlu0 %5149  ;;  %v8565_v38 = vld [vmem:[%s8300_s30 + $0x88] sm:$0x3] }
  0x94   : > { %13570 = vst [vmem:[#allocation18_spill] sm:$0xff] %v7945_v22 }
  0x96   : > { %5384 = vrot.lane.b32.xlu2 %v7943_v39, %s7335_s10 }
  0x98   : > { %5379 = vrot.lane.b32.xlu1 %v7949_v26, %s7335_s10  ;;  %v7959_v49 = vpop.permute.xlu2 %5219 }
  0x99   : > { %13571 = vst [vmem:[#allocation19_spill] sm:$0xff] %v7959_v49  ;;  %5374 = vrot.lane.b32.xlu0 %v7955_v48, %s7335_s10 }
  0x9a   : > { %v7963_v37 = vpop.permute.xlu1 %5164 }
  0x9b   : > { %13572 = vst [vmem:[#allocation20_spill] sm:$0xff] %v7963_v37  ;;  %v7965_v43 = vpop.permute.xlu0 %5154  ;;  %v394_v37 = vld [vmem:[%s7422_s7 + $0x190] sm:$0x3] }
  0x9c   : > { %13573 = vst [vmem:[#allocation21_spill] sm:$0xff] %v7965_v43 }
  0x9e   : > { %5399 = vrot.lane.b32.xlu2 %v7539_v60, %s7336_s11 }
  0xa0   : > { %5394 = vrot.lane.b32.xlu1 %v13574_v59, %s7336_s11  ;;  %v7971_v13 = vpop.permute.xlu2 %5234 }
  0xa1   : > { %13575 = vst [vmem:[#allocation3_spill] sm:$0xff] %v7971_v13  ;;  %5389 = vrot.lane.b32.xlu0 %v13576_v14, %s7336_s11  ;;  %v13593_v14 = vld [vmem:[#allocation10_spill] sm:$0xff] }
  0xa2   : > { %v7975_v61 = vpop.permute.xlu1 %5184 }
  0xa3   : > { %13577 = vst [vmem:[#allocation5_spill] sm:$0xff] %v7975_v61  ;;  %v7977_v33 = vpop.permute.xlu0 %5179 }
  0xa4   : > { %13578 = vst [vmem:[#allocation22_spill] sm:$0xff] %v7977_v33 }
  0xa6   : > { %5414 = vrot.lane.b32.xlu2 %v13579_v19, %s7336_s11 }
  0xa8   : > { %5409 = vrot.lane.b32.xlu1 %v13580_v21, %s7336_s11  ;;  %v7983_v45 = vpop.permute.xlu2 %5249 }
  0xa9   : > { %13581 = vst [vmem:[#allocation8_spill] sm:$0xff] %v7983_v45  ;;  %5404 = vrot.lane.b32.xlu0 %v13582_v27, %s7336_s11 }
  0xaa   : > { %v7987_v12 = vpop.permute.xlu1 %5199 }
  0xab   : > { %13583 = vst [vmem:[#allocation4_spill] sm:$0xff] %v7987_v12  ;;  %v7989_v47 = vpop.permute.xlu0 %5194 }
  0xac   : > { %13584 = vst [vmem:[#allocation2_spill] sm:$0xff] %v7989_v47  ;;  %v13597_v47 = vld [vmem:[#allocation12_spill] sm:$0xff] }
  0xae   : > { %5429 = vrot.lane.b32.xlu2 %v13585_v16, %s7336_s11 }
  0xb0   : > { %5424 = vrot.lane.b32.xlu1 %v13586_v53, %s7336_s11  ;;  %v7995_v54 = vpop.permute.xlu2 %5264 }
  0xb1   : > { %13587 = vst [vmem:[#allocation11_spill] sm:$0xff] %v7995_v54  ;;  %5419 = vrot.lane.b32.xlu0 %v13588_v5, %s7336_s11 }
  0xb2   : > { %v7999_v28 = vpop.permute.xlu1 %5214 }
  0xb3   : > { %13589 = vst [vmem:[#allocation6_spill] sm:$0xff] %v7999_v28  ;;  %v8001_v52 = vpop.permute.xlu0 %5209  ;;  %v722_v28 = vrot.slane %v394_v37, 1 }
  0xb4   : > { %13590 = vst [vmem:[#allocation7_spill] sm:$0xff] %v8001_v52  ;;  %v720_v52 = vrot.slane %v7931_v62, 1 }
  0xb6   : > { %5444 = vrot.lane.b32.xlu2 %v7700_v58, %s7336_s11  ;;  %v723_v12 = vsel %vm554_vm0, %v720_v52, %v722_v28 }
  0xb8   : > { %5439 = vrot.lane.b32.xlu1 %v13591_v20, %s7336_s11  ;;  %v8007_v44 = vpop.permute.xlu2 %5279 }
  0xb9   : > { %13592 = vst [vmem:[#allocation9_spill] sm:$0xff] %v8007_v44  ;;  %5434 = vrot.lane.b32.xlu0 %v13593_v14, %s7336_s11 }
  0xba   : > { %v8011_v61 = vpop.permute.xlu1 %5229 }
  0xbb   : > { %13594 = vst [vmem:[#allocation10_spill] sm:$0xff] %v8011_v61  ;;  %v8013_v54 = vpop.permute.xlu0 %5224 }
  0xbc   : > { %13595 = vst [vmem:[#allocation23_spill] sm:$0xff] %v8013_v54  ;;  %v721_v54 = vsel %vm554_vm0, %v719_v63, %v720_v52 }
  0xbd   : > { %v8034_v33 = vpack.i.bf16 %v723_v12, %v721_v54 }
  0xbe   : > { %5459 = vrot.lane.b32.xlu2 %v7726_v36, %s7336_s11 }
  0xc0   : > { %5454 = vrot.lane.b32.xlu1 %v7677_v32, %s7336_s11  ;;  %v8022_v44 = vpop.permute.xlu2 %5294 }
  0xc1   : > { %13596 = vst [vmem:[#allocation24_spill] sm:$0xff] %v8022_v44  ;;  %5449 = vrot.lane.b32.xlu0 %v13597_v47, %s7336_s11 }
  0xc2   : > { %v8026_v61 = vpop.permute.xlu1 %5244 }
  0xc3   : > { %13598 = vst [vmem:[#allocation12_spill] sm:$0xff] %v8026_v61  ;;  %v8030_v45 = vpop.permute.xlu0 %5239 }
  0xc4   : > { %13599 = vst [vmem:[#allocation25_spill] sm:$0xff] %v8030_v45 }
  0xc6   : > { %5474 = vrot.lane.b32.xlu2 %v7751_v2, %s7337_s12 }
  0xc8   : > { %5469 = vrot.lane.b32.xlu1 %v7714_v10, %s7337_s12  ;;  %v8038_v44 = vpop.permute.xlu2 %5309 }
  0xc9   : > { %13600 = vst [vmem:[#allocation26_spill] sm:$0xff] %v8038_v44  ;;  %5464 = vrot.lane.b32.xlu0 %v8034_v33, %s7336_s11 }
  0xca   : > { %v8042_v61 = vpop.permute.xlu1 %5259 }
  0xcb   : > { %13601 = vst [vmem:[#allocation27_spill] sm:$0xff] %v8042_v61  ;;  %v8044_v63 = vpop.permute.xlu0 %5254 }
  0xcc   : > { %13602 = vst [vmem:[#allocation28_spill] sm:$0xff] %v8044_v63  ;;  %v724_v63 = vrot.slane %v7928_v42, 2 }
  0xce   : > { %5489 = vrot.lane.b32.xlu2 %v7778_v4, %s7337_s12 }
  0xd0   : > { %5484 = vrot.lane.b32.xlu1 %v7737_v11, %s7337_s12  ;;  %v8050_v12 = vpop.permute.xlu2 %5324 }
  0xd1   : > { %13603 = vst [vmem:[#allocation29_spill] sm:$0xff] %v8050_v12  ;;  %5479 = vrot.lane.b32.xlu0 %v7744_v31, %s7337_s12 }
  0xd2   : > { %v8054_v10 = vpop.permute.xlu1 %5274 }
  0xd3   : > { %13604 = vst [vmem:[#allocation30_spill] sm:$0xff] %v8054_v10  ;;  %v8056_v54 = vpop.permute.xlu0 %5269 }
  0xd4   : > { %13605 = vst [vmem:[#allocation31_spill] sm:$0xff] %v8056_v54 }
  0xd6   : > { %5504 = vrot.lane.b32.xlu2 %v7805_v9, %s7337_s12 }
  0xd8   : > { %5499 = vrot.lane.b32.xlu1 %v7764_v29, %s7337_s12  ;;  %v8062_v28 = vpop.permute.xlu2 %5339 }
  0xd9   : > { %13606 = vst [vmem:[#allocation32_spill] sm:$0xff] %v8062_v28  ;;  %5494 = vrot.lane.b32.xlu0 %v7771_v34, %s7337_s12 }
  0xda   : > { %v8066_v52 = vpop.permute.xlu1 %5289 }
  0xdb   : > { %13607 = vst [vmem:[#allocation33_spill] sm:$0xff] %v8066_v52  ;;  %v8068_v12 = vpop.permute.xlu0 %5284  ;;  %v725_v52 = vrot.slane %v7931_v62, 2 }
  0xdc   : > { %13608 = vst [vmem:[#allocation34_spill] sm:$0xff] %v8068_v12  ;;  %v727_v12 = vrot.slane %v394_v37, 2 }
  0xde   : > { %5519 = vrot.lane.b32.xlu2 %v7829_v55, %s7337_s12  ;;  %v728_v44 = vsel %vm635_vm1, %v725_v52, %v727_v12 }
  0xe0   : > { %5514 = vrot.lane.b32.xlu1 %v7791_v3, %s7337_s12  ;;  %v8074_v54 = vpop.permute.xlu2 %5354 }
  0xe1   : > { %13609 = vst [vmem:[#allocation35_spill] sm:$0xff] %v8074_v54  ;;  %5509 = vrot.lane.b32.xlu0 %v7798_v23, %s7337_s12  ;;  %v726_v54 = vsel %vm635_vm1, %v724_v63, %v725_v52 }
  0xe2   : > { %v8078_v10 = vpop.permute.xlu1 %5304  ;;  %v8098_v62 = vpack.i.bf16 %v728_v44, %v726_v54 }
  0xe3   : > { %13610 = vst [vmem:[#allocation36_spill] sm:$0xff] %v8078_v10  ;;  %v8080_v28 = vpop.permute.xlu0 %5299 }
  0xe4   : > { %13611 = vst [vmem:[#allocation37_spill] sm:$0xff] %v8080_v28 }
  0xe6   : > { %5534 = vrot.lane.b32.xlu2 %v7847_v15, %s7337_s12 }
  0xe8   : > { %5529 = vrot.lane.b32.xlu1 %v7818_v50, %s7337_s12  ;;  %v8088_v61 = vpop.permute.xlu2 %5369 }
  0xe9   : > { %13612 = vst [vmem:[#allocation38_spill] sm:$0xff] %v8088_v61  ;;  %5524 = vrot.lane.b32.xlu0 %v7822_v8, %s7337_s12  ;;  %v8543_v61 = vld [vmem:[%s8300_s30 + $0x10] sm:$0x3] }
  0xea   : > { %v8094_v10 = vpop.permute.xlu1 %5319  ;;  %v793_v22 = vrot.slane %v8543_v61, 1 }
  0xeb   : > { %13613 = vst [vmem:[#allocation39_spill] sm:$0xff] %v8094_v10  ;;  %v8096_v42 = vpop.permute.xlu0 %5314 }
  0xec   : > { %13614 = vst [vmem:[#allocation40_spill] sm:$0xff] %v8096_v42 }
  0xee   : > { %5549 = vrot.lane.b32.xlu2 %v7865_v46, %s7338_s13 }
  0xf0   : > { %5544 = vrot.lane.b32.xlu1 %v8098_v62, %s7337_s12  ;;  %v8104_v37 = vpop.permute.xlu2 %5384 }
  0xf1   : > { %13615 = vst [vmem:[#allocation41_spill] sm:$0xff] %v8104_v37  ;;  %5539 = vrot.lane.b32.xlu0 %v7844_v40, %s7337_s12 }
  0xf2   : > { %v8108_v63 = vpop.permute.xlu1 %5334 }
  0xf3   : > { %13616 = vst [vmem:[#allocation42_spill] sm:$0xff] %v8108_v63  ;;  %v8110_v12 = vpop.permute.xlu0 %5329 }
  0xf4   : > { %13617 = vst [vmem:[#allocation43_spill] sm:$0xff] %v8110_v12  ;;  %v8531_v12 = vld [vmem:[%s8300_s30 + $0x140] sm:$0xff] }
  0xf6   : > { %5564 = vrot.lane.b32.xlu2 %v7885_v6, %s7338_s13 }
  0xf8   : > { %5559 = vrot.lane.b32.xlu1 %v7855_v30, %s7338_s13  ;;  %v8116_v44 = vpop.permute.xlu2 %5399 }
  0xf9   : > { %13618 = vst [vmem:[#allocation44_spill] sm:$0xff] %v8116_v44  ;;  %5554 = vrot.lane.b32.xlu0 %v7859_v35, %s7338_s13  ;;  %v8528_v44 = vld [vmem:[%s8300_s30 + $0x138] sm:$0xff] }
  0xfa   : > { %v8120_v46 = vpop.permute.xlu1 %5349  ;;  %v8550_v45 = vpack.i.bf16 %v8531_v12, %v8528_v44 }
  0xfb   : > { %13619 = vst [vmem:[#allocation45_spill] sm:$0xff] %v8120_v46  ;;  %v8122_v54 = vpop.permute.xlu0 %5344 }
  0xfc   : > { %13620 = vst [vmem:[#allocation46_spill] sm:$0xff] %v8122_v54 }
  0xfd   : > { %13691 = vst [vmem:[#allocation117_spill] sm:$0xff] %v8550_v45 }
  0xfe   : > { %5579 = vrot.lane.b32.xlu2 %v7905_v17, %s7338_s13 }
 0x100   : > { %5574 = vrot.lane.b32.xlu1 %v7875_v0, %s7338_s13  ;;  %v8128_v6 = vpop.permute.xlu2 %5414 }
 0x101   : > { %13621 = vst [vmem:[#allocation47_spill] sm:$0xff] %v8128_v6  ;;  %5569 = vrot.lane.b32.xlu0 %v7879_v1, %s7338_s13  ;;  %v8151_v1 = vld [vmem:[%s7422_s7 + $0x198] sm:$0xff] }
 0x102   : > { %v8132_v30 = vpop.permute.xlu1 %5364 }
 0x103   : > { %13622 = vst [vmem:[#allocation48_spill] sm:$0xff] %v8132_v30  ;;  %v8134_v35 = vpop.permute.xlu0 %5359  ;;  %v8154_v30 = vld [vmem:[%s7422_s7 + $0x1a0] sm:$0xff] }
 0x104   : > { %13623 = vst [vmem:[#allocation49_spill] sm:$0xff] %v8134_v35  ;;  %v8517_v35 = vld [vmem:[%s8300_s30 + $0x158] sm:$0xff] }
 0x106   : > { %5594 = vrot.lane.b32.xlu2 %v7925_v41, %s7338_s13  ;;  %v5623_v41 = vpack.i.bf16 %v8154_v30, %v8151_v1 }
 0x108   : > { %5589 = vrot.lane.b32.xlu1 %v7895_v24, %s7338_s13  ;;  %v8140_v52 = vpop.permute.xlu2 %5429 }
 0x109   : > { %13624 = vst [vmem:[#allocation50_spill] sm:$0xff] %v8140_v52  ;;  %5584 = vrot.lane.b32.xlu0 %v7899_v25, %s7338_s13  ;;  %v8514_v52 = vld [vmem:[%s8300_s30 + $0x150] sm:$0xff] }
 0x10a   : > { %v8144_v0 = vpop.permute.xlu1 %5379 }
 0x10b   : > { %13625 = vst [vmem:[#allocation51_spill] sm:$0xff] %v8144_v0  ;;  %v8146_v17 = vpop.permute.xlu0 %5374  ;;  %v8511_v0 = vld [vmem:[%s8300_s30 + $0x40] sm:$0x3] }
 0x10c   : > { %13626 = vst [vmem:[#allocation52_spill] sm:$0xff] %v8146_v17  ;;  %v8504_v17 = vld [vmem:[%s8300_s30 + $0x170] sm:$0xff]  ;;  %v803_v42 = vrot.slane %v8511_v0, 1 }
 0x10e   : > { %5609 = vrot.lane.b32.xlu2 %v7955_v48, %s7338_s13 }
 0x110   : > { %5604 = vrot.lane.b32.xlu1 %v7915_v51, %s7338_s13  ;;  %v8158_v24 = vpop.permute.xlu2 %5444 }
 0x111   : > { %13627 = vst [vmem:[#allocation53_spill] sm:$0xff] %v8158_v24  ;;  %5599 = vrot.lane.b32.xlu0 %v7919_v56, %s7338_s13 }
 0x112   : > { %v8162_v25 = vpop.permute.xlu1 %5394 }
 0x113   : > { %13628 = vst [vmem:[#allocation54_spill] sm:$0xff] %v8162_v25  ;;  %v8166_v54 = vpop.permute.xlu0 %5389  ;;  %v8501_v25 = vld [vmem:[%s8300_s30 + $0x168] sm:$0xff] }
 0x114   : > { %13629 = vst [vmem:[#allocation55_spill] sm:$0xff] %v8166_v54  ;;  %v8525_v46 = vpack.i.bf16 %v8504_v17, %v8501_v25 }
 0x116   : > { %5624 = vrot.lane.b32.xlu2 %v5623_v41, %s7338_s13  ;;  %13688 = vst [vmem:[#allocation114_spill] sm:$0xff] %v8525_v46 }
 0x118   : > { %5619 = vrot.lane.b32.xlu1 %v7943_v39, %s7338_s13  ;;  %v8171_v48 = vpop.permute.xlu2 %5459 }
 0x119   : > { %13630 = vst [vmem:[#allocation56_spill] sm:$0xff] %v8171_v48  ;;  %5614 = vrot.lane.b32.xlu0 %v7949_v26, %s7338_s13 }
 0x11a   : > { %v8175_v51 = vpop.permute.xlu1 %5409 }
 0x11b   : > { %13631 = vst [vmem:[#allocation57_spill] sm:$0xff] %v8175_v51  ;;  %v8177_v56 = vpop.permute.xlu0 %5404  ;;  %v8483_v51 = vld [vmem:[%s8300_s30 + $0xf0] sm:$0xff] }
 0x11c   : > { %13632 = vst [vmem:[#allocation58_spill] sm:$0xff] %v8177_v56 }
 0x11e   : > { %5639 = vrot.lane.b32.xlu2 %v13582_v27, %s7339_s14 }
 0x120   : > { %5634 = vrot.lane.b32.xlu1 %v7539_v60, %s7339_s14  ;;  %v8183_v41 = vpop.permute.xlu2 %5474 }
 0x121   : > { %13633 = vst [vmem:[#allocation59_spill] sm:$0xff] %v8183_v41  ;;  %5629 = vrot.lane.b32.xlu0 %v13574_v59, %s7339_s14 }
 0x122   : > { %v8187_v39 = vpop.permute.xlu1 %5424 }
 0x123   : > { %13634 = vst [vmem:[#allocation60_spill] sm:$0xff] %v8187_v39  ;;  %v8189_v24 = vpop.permute.xlu0 %5419 }
 0x124   : > { %13635 = vst [vmem:[#allocation61_spill] sm:$0xff] %v8189_v24 }
 0x126   : > { %5654 = vrot.lane.b32.xlu2 %v13588_v5, %s7339_s14 }
 0x128   : > { %5649 = vrot.lane.b32.xlu1 %v13579_v19, %s7339_s14  ;;  %v8195_v26 = vpop.permute.xlu2 %5489 }
 0x129   : > { %13636 = vst [vmem:[#allocation62_spill] sm:$0xff] %v8195_v26  ;;  %5644 = vrot.lane.b32.xlu0 %v13580_v21, %s7339_s14 }
 0x12a   : > { %v8199_v60 = vpop.permute.xlu1 %5439 }
 0x12b   : > { %13637 = vst [vmem:[#allocation63_spill] sm:$0xff] %v8199_v60  ;;  %v8201_v27 = vpop.permute.xlu0 %5434 }
 0x12c   : > { %13638 = vst [vmem:[#allocation64_spill] sm:$0xff] %v8201_v27 }
 0x12e   : > { %5669 = vrot.lane.b32.xlu2 %v13593_v14, %s7339_s14 }
 0x130   : > { %5664 = vrot.lane.b32.xlu1 %v13585_v16, %s7339_s14  ;;  %v8207_v59 = vpop.permute.xlu2 %5504 }
 0x131   : > { %13639 = vst [vmem:[#allocation65_spill] sm:$0xff] %v8207_v59  ;;  %5659 = vrot.lane.b32.xlu0 %v13586_v53, %s7339_s14  ;;  %v397_v53 = vld [vmem:[%s7422_s7 + $0x1a8] sm:$0x3]  ;;  %v733_v59 = vrot.slane %v8154_v30, 1 }
 0x132   : > { %v8211_v19 = vpop.permute.xlu1 %5454  ;;  %v735_v39 = vrot.slane %v397_v53, 1 }
 0x133   : > { %13640 = vst [vmem:[#allocation66_spill] sm:$0xff] %v8211_v19  ;;  %v8213_v5 = vpop.permute.xlu0 %5449 }
 0x134   : > { %13641 = vst [vmem:[#allocation67_spill] sm:$0xff] %v8213_v5  ;;  %v8440_v5 = vld [vmem:[%s8300_s30 + $0xb0] sm:$0xff] }
 0x136   : > { %5684 = vrot.lane.b32.xlu2 %v13597_v47, %s7339_s14  ;;  %v732_v47 = vrot.slane %v8151_v1, 1 }
 0x138   : > { %5679 = vrot.lane.b32.xlu1 %v7700_v58, %s7339_s14  ;;  %v8219_v21 = vpop.permute.xlu2 %5519 }
 0x139   : > { %13642 = vst [vmem:[#allocation68_spill] sm:$0xff] %v8219_v21  ;;  %5674 = vrot.lane.b32.xlu0 %v13591_v20, %s7339_s14 }
 0x13a   : > { %v8223_v16 = vpop.permute.xlu1 %5469 }
 0x13b   : > { %13643 = vst [vmem:[#allocation69_spill] sm:$0xff] %v8223_v16  ;;  %v8225_v14 = vpop.permute.xlu0 %5464 }
 0x13c   : > { %13644 = vst [vmem:[#allocation70_spill] sm:$0xff] %v8225_v14  ;;  %v734_v14 = vsel %vm554_vm0, %v732_v47, %v733_v59  ;;  %v738_v47 = vrot.slane %v8154_v30, 2 }
 0x13e   : > { %5699 = vrot.lane.b32.xlu2 %v8034_v33, %s7339_s14  ;;  %v736_v33 = vsel %vm554_vm0, %v733_v59, %v735_v39  ;;  %v737_v39 = vrot.slane %v8151_v1, 2 }
 0x13f   : > { %v5703_v37 = vpack.i.bf16 %v736_v33, %v734_v14 }
 0x140   : > { %5694 = vrot.lane.b32.xlu1 %v7726_v36, %s7339_s14  ;;  %v8234_v58 = vpop.permute.xlu2 %5534  ;;  %v739_v14 = vsel %vm635_vm1, %v737_v39, %v738_v47  ;;  %v8324_v39 = vld [vmem:[%s8300_s30 + $0x48] sm:$0xff] }
 0x141   : > { %13645 = vst [vmem:[#allocation71_spill] sm:$0xff] %v8234_v58  ;;  %5689 = vrot.lane.b32.xlu0 %v7677_v32, %s7339_s14  ;;  %v8426_v58 = vld [vmem:[%s8300_s30 + $0xc8] sm:$0xff] }
 0x142   : > { %v8238_v20 = vpop.permute.xlu1 %5484 }
 0x143   : > { %13646 = vst [vmem:[#allocation72_spill] sm:$0xff] %v8238_v20  ;;  %v8242_v56 = vpop.permute.xlu0 %5479  ;;  %v8368_v20 = vld [vmem:[%s8300_s30 + $0x98] sm:$0xff] }
 0x144   : > { %13647 = vst [vmem:[#allocation73_spill] sm:$0xff] %v8242_v56  ;;  %v8423_v56 = vld [vmem:[%s8300_s30 + $0xc0] sm:$0xff] }
 0x146   : > { %5714 = vrot.lane.b32.xlu2 %v7744_v31, %s7340_s15  ;;  %v740_v31 = vrot.slane %v397_v53, 2 }
 0x148   : > { %5709 = vrot.lane.b32.xlu1 %v7751_v2, %s7340_s15  ;;  %v8248_v36 = vpop.permute.xlu2 %5549 }
 0x149   : > { %13648 = vst [vmem:[#allocation74_spill] sm:$0xff] %v8248_v36  ;;  %5704 = vrot.lane.b32.xlu0 %v5703_v37, %s7339_s14  ;;  %v741_v37 = vsel %vm635_vm1, %v738_v47, %v740_v31  ;;  %v8333_v31 = vld [vmem:[%s8300_s30 + $0x30] sm:$0xff] }
 0x14a   : > { %v8251_v32 = vpop.permute.xlu1 %5499  ;;  %v5783_v1 = vpack.i.bf16 %v741_v37, %v739_v14  ;;  %v8336_v14 = vld [vmem:[%s8300_s30 + $0x38] sm:$0xff] }
 0x14b   : > { %13649 = vst [vmem:[#allocation75_spill] sm:$0xff] %v8251_v32  ;;  %v8255_v59 = vpop.permute.xlu0 %5494  ;;  %v801_v63 = vrot.slane %v8336_v14, 1 }
 0x14c   : > { %13650 = vst [vmem:[#allocation76_spill] sm:$0xff] %v8255_v59 }
 0x14d   : > { %v8557_v49 = vsel %vm554_vm0, %v801_v63, %v803_v42 }
 0x14e   : > { %5729 = vrot.lane.b32.xlu2 %v7771_v34, %s7340_s15  ;;  %13693 = vst [vmem:[#allocation119_spill] sm:$0xff] %v8557_v49 }
 0x150   : > { %5724 = vrot.lane.b32.xlu1 %v7778_v4, %s7340_s15  ;;  %v8263_v2 = vpop.permute.xlu2 %5564 }
 0x151   : > { %13651 = vst [vmem:[#allocation77_spill] sm:$0xff] %v8263_v2  ;;  %5719 = vrot.lane.b32.xlu0 %v7737_v11, %s7340_s15 }
 0x152   : > { %v8268_v30 = vpop.permute.xlu1 %5514 }
 0x153   : > { %13652 = vst [vmem:[#allocation78_spill] sm:$0xff] %v8268_v30  ;;  %v8270_v34 = vpop.permute.xlu0 %5509  ;;  %v8413_v30 = vld [vmem:[%s8300_s30 + $0xe0] sm:$0xff] }
 0x154   : > { %13653 = vst [vmem:[#allocation79_spill] sm:$0xff] %v8270_v34  ;;  %v8410_v34 = vld [vmem:[%s8300_s30 + $0xd8] sm:$0xff] }
 0x155   : > { %v8434_v21 = vpack.i.bf16 %v8413_v30, %v8410_v34 }
 0x156   : > { %5744 = vrot.lane.b32.xlu2 %v7798_v23, %s7340_s15 }
 0x157   : > { %13675 = vst [vmem:[#allocation101_spill] sm:$0xff] %v8434_v21 }
 0x158   : > { %5739 = vrot.lane.b32.xlu1 %v7805_v9, %s7340_s15  ;;  %v8276_v4 = vpop.permute.xlu2 %5579 }
 0x159   : > { %13654 = vst [vmem:[#allocation80_spill] sm:$0xff] %v8276_v4  ;;  %5734 = vrot.lane.b32.xlu0 %v7764_v29, %s7340_s15  ;;  %v8401_v4 = vld [vmem:[%s8300_s30 + $0x28] sm:$0x3] }
 0x15a   : > { %v8280_v53 = vpop.permute.xlu1 %5529  ;;  %v798_v36 = vrot.slane %v8401_v4, 1 }
 0x15b   : > { %13655 = vst [vmem:[#allocation81_spill] sm:$0xff] %v8280_v53  ;;  %v8282_v11 = vpop.permute.xlu0 %5524 }
 0x15c   : > { %13656 = vst [vmem:[#allocation82_spill] sm:$0xff] %v8282_v11  ;;  %v8347_v11 = vld [vmem:[%s8300_s30 + $0x18] sm:$0xff] }
 0x15e   : > { %5759 = vrot.lane.b32.xlu2 %v7822_v8, %s7340_s15  ;;  %v8305_v8 = vld [vmem:[%s8300_s30] sm:$0xff] }
 0x15f   : > { %v790_v13 = vrot.slane %v8305_v8, 1 }
 0x160   : > { %5754 = vrot.lane.b32.xlu1 %v7829_v55, %s7340_s15  ;;  %v8289_v23 = vpop.permute.xlu2 %5594 }
 0x161   : > { %13657 = vst [vmem:[#allocation83_spill] sm:$0xff] %v8289_v23  ;;  %5749 = vrot.lane.b32.xlu0 %v7791_v3, %s7340_s15  ;;  %v8308_v3 = vld [vmem:[%s8300_s30 + $0x8] sm:$0xff] }
 0x162   : > { %v8293_v9 = vpop.permute.xlu1 %5544  ;;  %v8392_v23 = vld [vmem:[%s8300_s30 + $0x68] sm:$0xff]  ;;  %v791_v28 = vrot.slane %v8308_v3, 1 }
 0x163   : > { %13658 = vst [vmem:[#allocation84_spill] sm:$0xff] %v8293_v9  ;;  %v8295_v29 = vpop.permute.xlu0 %5539  ;;  %v8365_v9 = vld [vmem:[%s8300_s30 + $0x90] sm:$0xff] }
 0x164   : > { %13659 = vst [vmem:[#allocation85_spill] sm:$0xff] %v8295_v29  ;;  %v8389_v29 = vld [vmem:[%s8300_s30 + $0x60] sm:$0xff]  ;;  %v792_v57 = vsel %vm554_vm0, %v790_v13, %v791_v28 }
 0x166   : > { %5774 = vrot.lane.b32.xlu2 %v7844_v40, %s7340_s15  ;;  %v5788_v40 = vpack.i.bf16 %v8308_v3, %v8305_v8 }
 0x168   : > { %5769 = vrot.lane.b32.xlu1 %v7847_v15, %s7340_s15  ;;  %v8312_v55 = vpop.permute.xlu2 %5609  ;;  %v8327_v15 = vld [vmem:[%s8300_s30 + $0x50] sm:$0xff] }
 0x169   : > { %13660 = vst [vmem:[#allocation86_spill] sm:$0xff] %v8312_v55  ;;  %5764 = vrot.lane.b32.xlu0 %v7818_v50, %s7340_s15  ;;  %v8386_v55 = vpack.i.bf16 %v8368_v20, %v8365_v9 }
 0x16a   : > { %v8316_v33 = vpop.permute.xlu1 %5559 }
 0x16b   : > { %13661 = vst [vmem:[#allocation87_spill] sm:$0xff] %v8316_v33  ;;  %v8320_v47 = vpop.permute.xlu0 %5554 }
 0x16c   : > { %13662 = vst [vmem:[#allocation88_spill] sm:$0xff] %v8320_v47  ;;  %v8378_v47 = vld [vmem:[%s8300_s30 + $0x80] sm:$0xff] }
 0x16d   : > { %13670 = vst [vmem:[#allocation96_spill] sm:$0xff] %v8386_v55 }
 0x16e   : > { %5789 = vrot.lane.b32.xlu2 %v5788_v40, %s7341_s6  ;;  %v8344_v40 = vpack.i.bf16 %v8327_v15, %v8324_v39 }
 0x170   : > { %5784 = vrot.lane.b32.xlu1 %v5783_v1, %s7340_s15  ;;  %v8330_v50 = vpop.permute.xlu2 %5624  ;;  %13665 = vst [vmem:[#allocation91_spill] sm:$0xff] %v8344_v40  ;;  %v8350_v1 = vld [vmem:[%s8300_s30 + $0x20] sm:$0xff] }
 0x171   : > { %13663 = vst [vmem:[#allocation89_spill] sm:$0xff] %v8330_v50  ;;  %5779 = vrot.lane.b32.xlu0 %v8098_v62, %s7340_s15  ;;  %v8356_v50 = vpack.i.bf16 %v8336_v14, %v8333_v31  ;;  %v8362_v62 = vpack.i.bf16 %v8350_v1, %v8347_v11  ;;  %v796_v59 = vrot.slane %v8350_v1, 1 }
 0x172   : > { %v8340_v37 = vpop.permute.xlu1 %5574 }
 0x173   : > { %13664 = vst [vmem:[#allocation90_spill] sm:$0xff] %v8340_v37  ;;  %v8352_v2 = vpop.permute.xlu0 %5569  ;;  %v8375_v37 = vld [vmem:[%s8300_s30 + $0x78] sm:$0xff]  ;;  %v799_v27 = vsel %vm554_vm0, %v796_v59, %v798_v36  ;;  %v8462_v36 = vld [vmem:[%s8300_s30 + $0x128] sm:$0xff] }
 0x174   : > { %13666 = vst [vmem:[#allocation92_spill] sm:$0xff] %v8352_v2  ;;  %v8398_v53 = vpack.i.bf16 %v8378_v47, %v8375_v37  ;;  %v815_v42 = vrot.slane %v8375_v37, 1 }
 0x175   : > { %13667 = vst [vmem:[#allocation93_spill] sm:$0xff] %v8356_v50 }
 0x176   : > { %5804 = vrot.lane.b32.xlu2 %v8344_v40, %s7341_s6  ;;  %13672 = vst [vmem:[#allocation98_spill] sm:$0xff] %v8398_v53 }
 0x178   : > { %5799 = vrot.lane.b32.xlu1 %v8356_v50, %s7341_s6  ;;  %v8372_v2 = vpop.permute.xlu2 %5639  ;;  %v856_v50 = vrot.slane %v8531_v12, 1 }
 0x179   : > { %13668 = vst [vmem:[#allocation94_spill] sm:$0xff] %v8372_v2  ;;  %5794 = vrot.lane.b32.xlu0 %v8362_v62, %s7341_s6 }
 0x17a   : > { %v8382_v33 = vpop.permute.xlu1 %5589 }
 0x17b   : > { %13669 = vst [vmem:[#allocation95_spill] sm:$0xff] %v8382_v33  ;;  %v8394_v2 = vpop.permute.xlu0 %5584  ;;  %v8407_v33 = vpack.i.bf16 %v8392_v23, %v8389_v29 }
 0x17c   : > { %13671 = vst [vmem:[#allocation97_spill] sm:$0xff] %v8394_v2  ;;  %v795_v2 = vrot.slane %v8347_v11, 1 }
 0x17e   : > { %5819 = vrot.lane.b32.xlu2 %v8386_v55, %s7341_s6  ;;  %v797_v19 = vsel %vm554_vm0, %v795_v2, %v796_v59  ;;  %v8459_v2 = vld [vmem:[%s8300_s30 + $0x120] sm:$0xff] }
 0x17f   : > { %v8450_v26 = vpack.i.bf16 %v799_v27, %v797_v19  ;;  %v8469_v27 = vld [vmem:[%s8300_s30 + $0x108] sm:$0xff]  ;;  %v8472_v19 = vld [vmem:[%s8300_s30 + $0x110] sm:$0xff]  ;;  %v8480_v41 = vpack.i.bf16 %v8462_v36, %v8459_v2 }
 0x180   : > { %5814 = vrot.lane.b32.xlu1 %v8398_v53, %s7341_s6  ;;  %v8419_v32 = vpop.permute.xlu2 %5654  ;;  %v8492_v54 = vpack.i.bf16 %v8472_v19, %v8469_v27 }
 0x181   : > { %13673 = vst [vmem:[#allocation99_spill] sm:$0xff] %v8419_v32  ;;  %5809 = vrot.lane.b32.xlu0 %v8407_v33, %s7341_s6  ;;  %v8437_v32 = vld [vmem:[%s8300_s30 + $0xa8] sm:$0xff] }
 0x182   : > { %v8430_v16 = vpop.permute.xlu1 %5604  ;;  %13678 = vst [vmem:[#allocation104_spill] sm:$0xff] %v8450_v26  ;;  %v8456_v24 = vpack.i.bf16 %v8440_v5, %v8437_v32 }
 0x183   : > { %13674 = vst [vmem:[#allocation100_spill] sm:$0xff] %v8430_v16  ;;  %v8444_v60 = vpop.permute.xlu0 %5599  ;;  %v8448_v16 = vpack.i.bf16 %v8426_v58, %v8423_v56 }
 0x184   : > { %13676 = vst [vmem:[#allocation102_spill] sm:$0xff] %v8444_v60 }
 0x185   : > { %13677 = vst [vmem:[#allocation103_spill] sm:$0xff] %v8448_v16 }
 0x186   : > { %5834 = vrot.lane.b32.xlu2 %v8434_v21, %s7341_s6  ;;  %13679 = vst [vmem:[#allocation105_spill] sm:$0xff] %v8456_v24 }
 0x187   : > { %13682 = vst [vmem:[#allocation108_spill] sm:$0xff] %v8480_v41 }
 0x188   : > { %5829 = vrot.lane.b32.xlu1 %v8448_v16, %s7341_s6  ;;  %v8466_v59 = vpop.permute.xlu2 %5669  ;;  %13684 = vst [vmem:[#allocation110_spill] sm:$0xff] %v8492_v54 }
 0x189   : > { %13680 = vst [vmem:[#allocation106_spill] sm:$0xff] %v8466_v59  ;;  %5824 = vrot.lane.b32.xlu0 %v8456_v24, %s7341_s6  ;;  %v8486_v59 = vld [vmem:[%s8300_s30 + $0xf8] sm:$0xff]  ;;  %v8756_v24 = vld [vmem:[%s8300_s30 + $0x148] sm:$0x3] }
 0x18a   : > { %v8476_v60 = vpop.permute.xlu1 %5619  ;;  %v841_v53 = vrot.slane %v8486_v59, 1 }
 0x18b   : > { %13681 = vst [vmem:[#allocation107_spill] sm:$0xff] %v8476_v60  ;;  %v8488_v48 = vpop.permute.xlu0 %5614  ;;  %v8498_v60 = vpack.i.bf16 %v8486_v59, %v8483_v51 }
 0x18c   : > { %13683 = vst [vmem:[#allocation109_spill] sm:$0xff] %v8488_v48 }
 0x18d   : > { %13685 = vst [vmem:[#allocation111_spill] sm:$0xff] %v8498_v60 }
 0x18e   : > { %5849 = vrot.lane.b32.xlu2 %v8480_v41, %s7341_s6  ;;  %v806_v41 = vrot.slane %v8327_v15, 1 }
 0x190   : > { %5844 = vrot.lane.b32.xlu1 %v8492_v54, %s7341_s6  ;;  %v8508_v48 = vpop.permute.xlu2 %5684  ;;  %v813_v54 = vrot.slane %v8578_v7, 1 }
 0x191   : > { %13686 = vst [vmem:[#allocation112_spill] sm:$0xff] %v8508_v48  ;;  %5839 = vrot.lane.b32.xlu0 %v8498_v60, %s7341_s6  ;;  %v800_v48 = vrot.slane %v8333_v31, 1 }
 0x192   : > { %v8521_v6 = vpop.permute.xlu1 %5634 }
 0x193   : > { %13687 = vst [vmem:[#allocation113_spill] sm:$0xff] %v8521_v6  ;;  %v8536_v10 = vpop.permute.xlu0 %5629  ;;  %v8540_v6 = vpack.i.bf16 %v8517_v35, %v8514_v52 }
 0x194   : > { %13689 = vst [vmem:[#allocation115_spill] sm:$0xff] %v8536_v10  ;;  %v8554_v10 = vsel %vm554_vm0, %v800_v48, %v801_v63  ;;  %v816_v63 = vrot.slane %v8378_v47, 1 }
 0x195   : > { %13690 = vst [vmem:[#allocation116_spill] sm:$0xff] %v8540_v6  ;;  %v8573_v48 = vpack.i.bf16 %v8557_v49, %v8554_v10  ;;  %v811_v49 = vrot.slane %v8392_v23, 1 }
 0x196   : > { %5864 = vrot.lane.b32.xlu2 %v8525_v46, %s7341_s6  ;;  %13692 = vst [vmem:[#allocation118_spill] sm:$0xff] %v8554_v10  ;;  %v810_v10 = vrot.slane %v8389_v29, 1 }
 0x197   : > { %13696 = vst [vmem:[#allocation122_spill] sm:$0xff] %v8573_v48 }
 0x198   : > { %5859 = vrot.lane.b32.xlu1 %v8540_v6, %s7341_s6  ;;  %v8562_v43 = vpop.permute.xlu2 %5699  ;;  %v818_v6 = vrot.slane %v8565_v38, 1 }
 0x199   : > { %13694 = vst [vmem:[#allocation120_spill] sm:$0xff] %v8562_v43  ;;  %5854 = vrot.lane.b32.xlu0 %v8550_v45, %s7341_s6  ;;  %v794_v43 = vsel %vm554_vm0, %v791_v28, %v793_v22  ;;  %v8594_v22 = vsel %vm554_vm0, %v815_v42, %v816_v63 }
 0x19a   : > { %v8569_v18 = vpop.permute.xlu1 %5649  ;;  %v5868_v13 = vpack.i.bf16 %v794_v43, %v792_v57  ;;  %13698 = vst [vmem:[#allocation124_spill] sm:$0xff] %v8594_v22  ;;  %v8597_v28 = vsel %vm554_vm0, %v816_v63, %v818_v6  ;;  %v8610_v57 = vsel %vm554_vm0, %v810_v10, %v811_v49  ;;  %v8613_v43 = vsel %vm554_vm0, %v811_v49, %v813_v54 }
 0x19b   : > { %13695 = vst [vmem:[#allocation121_spill] sm:$0xff] %v8569_v18  ;;  %v8583_v46 = vpop.permute.xlu0 %5644  ;;  %v8586_v18 = vld [vmem:[%s8300_s30 + $0x58] sm:$0x3]  ;;  %v8620_v42 = vpack.i.bf16 %v8597_v28, %v8594_v22  ;;  %v830_v63 = vrot.slane %v8423_v56, 1  ;;  %v873_v22 = vrot.slane %v8543_v61, 2  ;;  %v8641_v21 = vpack.i.bf16 %v8613_v43, %v8610_v57 }
 0x19c   : > { %13697 = vst [vmem:[#allocation123_spill] sm:$0xff] %v8583_v46  ;;  %v805_v46 = vrot.slane %v8324_v39, 1  ;;  %v808_v45 = vrot.slane %v8586_v18, 1 }
 0x19d   : > { %13699 = vst [vmem:[#allocation125_spill] sm:$0xff] %v8597_v28 }
 0x19e   : > { %5879 = vrot.lane.b32.xlu2 %v8573_v48, %s13374_s16  ;;  %v8607_v48 = vld [vmem:[%s8300_s30 + $0xd0] sm:$0x3]  ;;  %13701 = vst [vmem:[#allocation127_spill] sm:$0xff] %v8610_v57  ;;  %v8628_v10 = vsel %vm554_vm0, %v805_v46, %v806_v41  ;;  %v8631_v49 = vsel %vm554_vm0, %v806_v41, %v808_v45  ;;  %v8644_v46 = vld [vmem:[%s8300_s30 + $0xa0] sm:$0x3]  ;;  %v825_v45 = vrot.slane %v8437_v32, 1 }
 0x19f   : > { %13702 = vst [vmem:[#allocation128_spill] sm:$0xff] %v8613_v43  ;;  %v833_v54 = vrot.slane %v8607_v48, 1  ;;  %v826_v41 = vrot.slane %v8440_v5, 1  ;;  %v8653_v61 = vpack.i.bf16 %v8631_v49, %v8628_v10  ;;  %v821_v57 = vrot.slane %v8368_v20, 1 }
 0x1a0   : > { %5874 = vrot.lane.b32.xlu1 %v8450_v26, %s13374_s16  ;;  %v8604_v16 = vpop.permute.xlu2 %5714  ;;  %13704 = vst [vmem:[#allocation130_spill] sm:$0xff] %v8620_v42  ;;  %v8625_v26 = vld [vmem:[%s8300_s30 + $0xb8] sm:$0x3]  ;;  %v823_v43 = vrot.slane %v8644_v46, 1 }
 0x1a1   : > { %13700 = vst [vmem:[#allocation126_spill] sm:$0xff] %v8604_v16  ;;  %5869 = vrot.lane.b32.xlu0 %v5868_v13, %s13374_s16  ;;  %v831_v16 = vrot.slane %v8426_v58, 1  ;;  %v871_v13 = vrot.slane %v8308_v3, 2  ;;  %v828_v60 = vrot.slane %v8625_v26, 1 }
 0x1a2   : > { %v8616_v6 = vpop.permute.xlu1 %5664  ;;  %13705 = vst [vmem:[#allocation131_spill] sm:$0xff] %v8628_v10  ;;  %v8669_v10 = vld [vmem:[%s8300_s30 + $0x118] sm:$0x3] }
 0x1a3   : > { %13703 = vst [vmem:[#allocation129_spill] sm:$0xff] %v8616_v6  ;;  %v870_v6 = vrot.slane %v8305_v8, 2  ;;  %v8637_v28 = vpop.permute.xlu0 %5659  ;;  %v8656_v8 = vsel %vm554_vm0, %v830_v63, %v831_v16  ;;  %v8659_v3 = vsel %vm554_vm0, %v831_v16, %v833_v54  ;;  %v8675_v16 = vsel %vm635_vm1, %v871_v13, %v873_v22 }
 0x1a4   : > { %13706 = vst [vmem:[#allocation132_spill] sm:$0xff] %v8631_v49  ;;  %v8678_v54 = vsel %vm554_vm0, %v825_v45, %v826_v41  ;;  %v8681_v49 = vsel %vm554_vm0, %v826_v41, %v828_v60  ;;  %v845_v22 = vrot.slane %v8469_v27, 1  ;;  %v8696_v45 = vld [vmem:[%s8300_s30 + $0x100] sm:$0x3]  ;;  %v8702_v41 = vsel %vm554_vm0, %v821_v57, %v823_v43 }
 0x1a5   : > { %13707 = vst [vmem:[#allocation133_spill] sm:$0xff] %v8637_v28  ;;  %v820_v28 = vrot.slane %v8365_v9, 1  ;;  %v8672_v63 = vsel %vm635_vm1, %v870_v6, %v871_v13  ;;  %v8691_v6 = vpack.i.bf16 %v8659_v3, %v8656_v8  ;;  %v846_v13 = vrot.slane %v8472_v19, 1 }
 0x1a6   : > { %13708 = vst [vmem:[#allocation134_spill] sm:$0xff] %v8641_v21  ;;  %5894 = vrot.lane.b32.xlu2 %v8620_v42, %s13374_s16 }
 0x1a7   : > { %13709 = vst [vmem:[#allocation135_spill] sm:$0xff] %v8653_v61  ;;  %v8699_v60 = vsel %vm554_vm0, %v820_v28, %v821_v57  ;;  %v843_v28 = vrot.slane %v8696_v45, 1  ;;  %v8724_v43 = vsel %vm554_vm0, %v845_v22, %v846_v13 }
 0x1a8   : > { %13710 = vst [vmem:[#allocation136_spill] sm:$0xff] %v8656_v8  ;;  %5889 = vrot.lane.b32.xlu1 %v8641_v21, %s13374_s16  ;;  %v8666_v42 = vpop.permute.xlu2 %5729  ;;  %v848_v21 = vrot.slane %v8669_v10, 1  ;;  %v8709_v8 = vpack.i.bf16 %v8681_v49, %v8678_v54  ;;  %v8721_v57 = vpack.i.bf16 %v8702_v41, %v8699_v60 }
 0x1a9   : > { %13711 = vst [vmem:[#allocation137_spill] sm:$0xff] %v8659_v3  ;;  %5884 = vrot.lane.b32.xlu0 %v8653_v61, %s13374_s16  ;;  %v8712_v3 = vld [vmem:[%s8300_s30 + $0xe8] sm:$0x3]  ;;  %v840_v61 = vrot.slane %v8483_v51, 1 }
 0x1aa   : > { %13712 = vst [vmem:[#allocation138_spill] sm:$0xff] %v8666_v42  ;;  %v8687_v42 = vpop.permute.xlu1 %5679  ;;  %v838_v55 = vrot.slane %v8712_v3, 1 }
 0x1ab   : > { %13713 = vst [vmem:[#allocation139_spill] sm:$0xff] %v8678_v54  ;;  %v835_v54 = vrot.slane %v8410_v34, 1  ;;  %v8740_v22 = vsel %vm554_vm0, %v840_v61, %v841_v53 }
 0x1ac   : > { %13714 = vst [vmem:[#allocation140_spill] sm:$0xff] %v8681_v49  ;;  %v836_v49 = vrot.slane %v8413_v30, 1 }
 0x1ad   : > { %13715 = vst [vmem:[#allocation141_spill] sm:$0xff] %v8687_v42  ;;  %v8705_v42 = vpop.permute.xlu0 %5674 }
 0x1ae   : > { %13716 = vst [vmem:[#allocation142_spill] sm:$0xff] %v8691_v6  ;;  %5909 = vrot.lane.b32.xlu2 %v8691_v6, %s13374_s16  ;;  %v8759_v61 = vsel %vm554_vm0, %v835_v54, %v836_v49  ;;  %v858_v54 = vrot.slane %v8756_v24, 1 }
 0x1af   : > { %13717 = vst [vmem:[#allocation143_spill] sm:$0xff] %v8699_v60  ;;  %v8737_v60 = vld [vmem:[%s8300_s30 + $0x160] sm:$0x3] }
 0x1b0   : > { %13718 = vst [vmem:[#allocation144_spill] sm:$0xff] %v8702_v41  ;;  %5904 = vrot.lane.b32.xlu1 %v8709_v8, %s13374_s16  ;;  %v8734_v6 = vpop.permute.xlu2 %5744 }
 0x1b1   : > { %13719 = vst [vmem:[#allocation145_spill] sm:$0xff] %v8705_v42  ;;  %v8727_v42 = vsel %vm554_vm0, %v846_v13, %v848_v21  ;;  %v8743_v21 = vsel %vm554_vm0, %v841_v53, %v843_v28  ;;  %5899 = vrot.lane.b32.xlu0 %v8721_v57, %s13374_s16  ;;  %v8762_v53 = vsel %vm554_vm0, %v836_v49, %v838_v55  ;;  %v863_v28 = vrot.slane %v8737_v60, 1 }
 0x1b2   : > { %13720 = vst [vmem:[#allocation146_spill] sm:$0xff] %v8709_v8  ;;  %v8747_v13 = vpop.permute.xlu1 %5694  ;;  %v8751_v41 = vpack.i.bf16 %v8727_v42, %v8724_v43  ;;  %v860_v8 = vrot.slane %v8514_v52, 1  ;;  %v8781_v55 = vpack.i.bf16 %v8762_v53, %v8759_v61 }
 0x1b3   : > { %13721 = vst [vmem:[#allocation147_spill] sm:$0xff] %v8721_v57 }
 0x1b4   : > { %13722 = vst [vmem:[#allocation148_spill] sm:$0xff] %v8724_v43  ;;  %v8772_v43 = vld [vmem:[%s8300_s30 + $0x130] sm:$0x3] }
 0x1b5   : > { %13723 = vst [vmem:[#allocation149_spill] sm:$0xff] %v8727_v42  ;;  %v8765_v57 = vpop.permute.xlu0 %5689  ;;  %v855_v42 = vrot.slane %v8528_v44, 1  ;;  %v853_v40 = vrot.slane %v8772_v43, 1 }
 0x1b6   : > { %13724 = vst [vmem:[#allocation150_spill] sm:$0xff] %v8734_v6  ;;  %v861_v6 = vrot.slane %v8517_v35, 1  ;;  %5924 = vrot.lane.b32.xlu2 %v8751_v41, %s13374_s16 }
 0x1b7   : > { %13725 = vst [vmem:[#allocation151_spill] sm:$0xff] %v8740_v22 }
 0x1b8   : > { %13726 = vst [vmem:[#allocation152_spill] sm:$0xff] %v8743_v21  ;;  %v8784_v49 = vsel %vm554_vm0, %v860_v8, %v861_v6  ;;  %v8800_v8 = vsel %vm554_vm0, %v856_v50, %v858_v54 }
 0x1b9   : > { %13727 = vst [vmem:[#allocation153_spill] sm:$0xff] %v8747_v13  ;;  %v8769_v13 = vpack.i.bf16 %v8743_v21, %v8740_v22  ;;  %v850_v22 = vrot.slane %v8459_v2, 1  ;;  %v851_v21 = vrot.slane %v8462_v36, 1  ;;  %5914 = vrot.lane.b32.xlu0 %v8781_v55, %s13374_s16 }
 0x1ba   : > { %13728 = vst [vmem:[#allocation154_spill] sm:$0xff] %v8751_v41  ;;  %v8794_v41 = vpop.permute.xlu2 %5759 }
 0x1bb   : > { %13729 = vst [vmem:[#allocation155_spill] sm:$0xff] %v8759_v61  ;;  %5919 = vrot.lane.b32.xlu1 %v8769_v13, %s13374_s16  ;;  %v8797_v61 = vsel %vm554_vm0, %v855_v42, %v856_v50  ;;  %v8814_v42 = vsel %vm554_vm0, %v850_v22, %v851_v21  ;;  %v8817_v50 = vsel %vm554_vm0, %v851_v21, %v853_v40  ;;  %v866_v40 = vrot.slane %v8504_v17, 1 }
 0x1bc   : > { %13730 = vst [vmem:[#allocation156_spill] sm:$0xff] %v8762_v53  ;;  %v8823_v54 = vpack.i.bf16 %v8800_v8, %v8797_v61 }
 0x1bd   : > { %13731 = vst [vmem:[#allocation157_spill] sm:$0xff] %v8765_v57  ;;  %v8787_v57 = vsel %vm554_vm0, %v861_v6, %v863_v28  ;;  %v876_v6 = vrot.slane %v8350_v1, 2  ;;  %v8805_v28 = vpop.permute.xlu1 %5709  ;;  %v8819_v1 = vpop.permute.xlu0 %5704 }
 0x1be   : > { %13732 = vst [vmem:[#allocation158_spill] sm:$0xff] %v8769_v13  ;;  %v8809_v53 = vpack.i.bf16 %v8787_v57, %v8784_v49  ;;  %v875_v13 = vrot.slane %v8347_v11, 2  ;;  %v865_v11 = vrot.slane %v8501_v25, 1 }
 0x1bf   : > { %13733 = vst [vmem:[#allocation159_spill] sm:$0xff] %v8784_v49 }
 0x1c0   : > { %13734 = vst [vmem:[#allocation160_spill] sm:$0xff] %v8787_v57  ;;  %5939 = vrot.lane.b32.xlu2 %v8809_v53, %s13374_s16  ;;  %v877_v22 = vsel %vm635_vm1, %v875_v13, %v876_v6 }
 0x1c1   : > { %13735 = vst [vmem:[#allocation161_spill] sm:$0xff] %v8794_v41  ;;  %v878_v41 = vrot.slane %v8401_v4, 2  ;;  %v8832_v4 = vpack.i.bf16 %v8817_v50, %v8814_v42 }
 0x1c2   : > { %13736 = vst [vmem:[#allocation162_spill] sm:$0xff] %v8797_v61  ;;  %v8841_v49 = vpop.permute.xlu2 %5774  ;;  %v893_v61 = vrot.slane %v8578_v7, 2 }
 0x1c3   : > { %13737 = vst [vmem:[#allocation163_spill] sm:$0xff] %v8800_v8  ;;  %v879_v21 = vsel %vm635_vm1, %v876_v6, %v878_v41  ;;  %5934 = vrot.lane.b32.xlu1 %v8823_v54, %s13374_s16  ;;  %5929 = vrot.lane.b32.xlu0 %v8832_v4, %s13374_s16  ;;  %v890_v41 = vrot.slane %v8389_v29, 2  ;;  %v891_v6 = vrot.slane %v8392_v23, 2  ;;  %v885_v8 = vrot.slane %v8324_v39, 2 }
 0x1c4   : > { %13738 = vst [vmem:[#allocation164_spill] sm:$0xff] %v8805_v28  ;;  %v8826_v28 = vld [vmem:[%s8300_s30 + $0x178] sm:$0x3]  ;;  %v880_v39 = vrot.slane %v8333_v31, 2  ;;  %v905_v31 = vrot.slane %v8437_v32, 2 }
 0x1c5   : > { %13739 = vst [vmem:[#allocation165_spill] sm:$0xff] %v8814_v42  ;;  %v8845_v57 = vpop.permute.xlu1 %5724  ;;  %v8847_v42 = vpack.i.bf16 %v879_v21, %v877_v22  ;;  %v888_v22 = vrot.slane %v8586_v18, 2  ;;  %v892_v7 = vsel %vm635_vm1, %v890_v41, %v891_v6  ;;  %v894_v23 = vsel %vm635_vm1, %v891_v6, %v893_v61 }
 0x1c6   : > { %13740 = vst [vmem:[#allocation166_spill] sm:$0xff] %v8817_v50  ;;  %v8850_v50 = vsel %vm554_vm0, %v865_v11, %v866_v40  ;;  %v883_v11 = vrot.slane %v8511_v0, 2  ;;  %v13747_v18 = vpack.i.bf16 %v8675_v16, %v8672_v63  ;;  %v8886_v61 = vpack.i.bf16 %v894_v23, %v892_v7 }
 0x1c7   : > { %13741 = vst [vmem:[#allocation167_spill] sm:$0xff] %v8819_v1  ;;  %v868_v1 = vrot.slane %v8826_v28, 1  ;;  %v908_v41 = vrot.slane %v8625_v26, 2  ;;  %v900_v6 = vrot.slane %v8365_v9, 2  ;;  %v903_v7 = vrot.slane %v8644_v46, 2 }
 0x1c8   : > { %13742 = vst [vmem:[#allocation168_spill] sm:$0xff] %v8841_v49  ;;  %v8858_v49 = vpop.permute.xlu0 %5719  ;;  %5954 = vrot.lane.b32.xlu2 %v8847_v42, %s7343_s17  ;;  %v895_v26 = vrot.slane %v8375_v37, 2  ;;  %v896_v23 = vrot.slane %v8378_v47, 2  ;;  %v920_v47 = vrot.slane %v8483_v51, 2 }
 0x1c9   : > { %13743 = vst [vmem:[#allocation169_spill] sm:$0xff] %v8845_v57  ;;  %v8853_v13 = vsel %vm554_vm0, %v866_v40, %v868_v1  ;;  %v886_v57 = vrot.slane %v8327_v15, 2  ;;  %v881_v15 = vrot.slane %v8336_v14, 2  ;;  %v906_v14 = vrot.slane %v8440_v5, 2 }
 0x1ca   : > { %13744 = vst [vmem:[#allocation170_spill] sm:$0xff] %v8850_v50  ;;  %v8868_v29 = vpack.i.bf16 %v8853_v13, %v8850_v50  ;;  %v8878_v0 = vpop.permute.xlu2 %5789  ;;  %v897_v37 = vsel %vm635_vm1, %v895_v26, %v896_v23 }
 0x1cb   : > { %13745 = vst [vmem:[#allocation171_spill] sm:$0xff] %v8853_v13  ;;  %5949 = vrot.lane.b32.xlu1 %v13747_v18, %s7343_s17  ;;  %v887_v1 = vsel %vm635_vm1, %v885_v8, %v886_v57  ;;  %v889_v40 = vsel %vm635_vm1, %v886_v57, %v888_v22  ;;  %v882_v63 = vsel %vm635_vm1, %v880_v39, %v881_v15  ;;  %v901_v22 = vrot.slane %v8368_v20, 2 }
 0x1cc   : > { %13746 = vst [vmem:[#allocation172_spill] sm:$0xff] %v8858_v49  ;;  %5944 = vrot.lane.b32.xlu0 %v8868_v29, %s13374_s16  ;;  %v884_v16 = vsel %vm635_vm1, %v881_v15, %v883_v11  ;;  %v8895_v57 = vpack.i.bf16 %v889_v40, %v887_v1  ;;  %v907_v32 = vsel %vm635_vm1, %v905_v31, %v906_v14  ;;  %v898_v39 = vrot.slane %v8565_v38, 2 }
 0x1cd   : > { %13748 = vst [vmem:[#allocation173_spill] sm:$0xff] %v8878_v0  ;;  %v8884_v21 = vpop.permute.xlu1 %5739  ;;  %v8902_v5 = vpack.i.bf16 %v884_v16, %v882_v63  ;;  %v909_v11 = vsel %vm635_vm1, %v906_v14, %v908_v41  ;;  %v902_v9 = vsel %vm635_vm1, %v900_v6, %v901_v22  ;;  %v904_v46 = vsel %vm635_vm1, %v901_v22, %v903_v7 }
 0x1ce   : > { %13749 = vst [vmem:[#allocation174_spill] sm:$0xff] %v8884_v21  ;;  %v8919_v18 = vpack.i.bf16 %v909_v11, %v907_v32  ;;  %v921_v38 = vrot.slane %v8486_v59, 2  ;;  %v899_v1 = vsel %vm635_vm1, %v896_v23, %v898_v39  ;;  %v923_v40 = vrot.slane %v8696_v45, 2 }
 0x1cf   : > { %v8928_v14 = vpack.i.bf16 %v904_v46, %v902_v9  ;;  %v915_v63 = vrot.slane %v8410_v34, 2  ;;  %v916_v16 = vrot.slane %v8413_v30, 2  ;;  %v918_v41 = vrot.slane %v8712_v3, 2 }
 0x1d0   : > { %v8893_v8 = vpop.permute.xlu0 %5734  ;;  %5969 = vrot.lane.b32.xlu2 %v8886_v61, %s7343_s17  ;;  %v8935_v51 = vpack.i.bf16 %v899_v1, %v897_v37  ;;  %v922_v59 = vsel %vm635_vm1, %v920_v47, %v921_v38  ;;  %v924_v6 = vsel %vm635_vm1, %v921_v38, %v923_v40  ;;  %v910_v45 = vrot.slane %v8423_v56, 2 }
 0x1d1   : > { %13750 = vst [vmem:[#allocation175_spill] sm:$0xff] %v8893_v8  ;;  %v911_v22 = vrot.slane %v8426_v58, 2  ;;  %v913_v7 = vrot.slane %v8607_v48, 2  ;;  %v917_v34 = vsel %vm635_vm1, %v915_v63, %v916_v16  ;;  %v919_v3 = vsel %vm635_vm1, %v916_v16, %v918_v41 }
 0x1d2   : > { %v8911_v20 = vpop.permute.xlu2 %5804  ;;  %v8952_v11 = vpack.i.bf16 %v924_v6, %v922_v59  ;;  %v935_v56 = vrot.slane %v8528_v44, 2  ;;  %v936_v58 = vrot.slane %v8531_v12, 2  ;;  %v938_v23 = vrot.slane %v8756_v24, 2 }
 0x1d3   : > { %5964 = vrot.lane.b32.xlu1 %v8895_v57, %s7343_s17  ;;  %13751 = vst [vmem:[#allocation176_spill] sm:$0xff] %v8911_v20  ;;  %v912_v48 = vsel %vm635_vm1, %v910_v45, %v911_v22  ;;  %v914_v26 = vsel %vm635_vm1, %v911_v22, %v913_v7  ;;  %v8961_v9 = vpack.i.bf16 %v919_v3, %v917_v34  ;;  %v930_v46 = vrot.slane %v8459_v2, 2 }
 0x1d4   : > { %5959 = vrot.lane.b32.xlu0 %v8902_v5, %s7343_s17  ;;  %v931_v47 = vrot.slane %v8462_v36, 2  ;;  %v933_v38 = vrot.slane %v8772_v43, 2  ;;  %v8968_v12 = vpack.i.bf16 %v914_v26, %v912_v48  ;;  %v937_v44 = vsel %vm635_vm1, %v935_v56, %v936_v58 }
 0x1d5   : > { %v8917_v15 = vpop.permute.xlu1 %5754  ;;  %v939_v37 = vsel %vm635_vm1, %v936_v58, %v938_v23  ;;  %v925_v24 = vrot.slane %v8469_v27, 2  ;;  %v926_v1 = vrot.slane %v8472_v19, 2  ;;  %v928_v40 = vrot.slane %v8669_v10, 2 }
 0x1d6   : > { %13752 = vst [vmem:[#allocation177_spill] sm:$0xff] %v8917_v15  ;;  %v932_v36 = vsel %vm635_vm1, %v930_v46, %v931_v47  ;;  %v934_v43 = vsel %vm635_vm1, %v931_v47, %v933_v38  ;;  %v8985_v16 = vpack.i.bf16 %v939_v37, %v937_v44  ;;  %v945_v59 = vrot.slane %v8501_v25, 2  ;;  %v13766_v47 = vld [vmem:[#allocation91_spill] sm:$0xff]  ;;  %v13768_v38 = vld [vmem:[#allocation93_spill] sm:$0xff] }
 0x1d7   : > { %v927_v27 = vsel %vm635_vm1, %v925_v24, %v926_v1  ;;  %v929_v19 = vsel %vm635_vm1, %v926_v1, %v928_v40  ;;  %v8991_v41 = vpack.i.bf16 %v934_v43, %v932_v36  ;;  %v946_v6 = vrot.slane %v8504_v17, 2  ;;  %v13771_v24 = vld [vmem:[#allocation105_spill] sm:$0xff]  ;;  %v13772_v1 = vld [vmem:[#allocation96_spill] sm:$0xff]  ;;  %v13774_v36 = vld [vmem:[#allocation98_spill] sm:$0xff] }
 0x1d8   : > { %v8926_v31 = vpop.permute.xlu0 %5749  ;;  %5984 = vrot.lane.b32.xlu2 %v8919_v18, %s7343_s17  ;;  %v948_v45 = vrot.slane %v8826_v28, 2  ;;  %v8998_v22 = vpack.i.bf16 %v929_v19, %v927_v27  ;;  %v940_v7 = vrot.slane %v8514_v52, 2  ;;  %v941_v34 = vrot.slane %v8517_v35, 2  ;;  %v13777_v19 = vld [vmem:[#allocation111_spill] sm:$0xff] }
 0x1d9   : > { %13753 = vst [vmem:[#allocation178_spill] sm:$0xff] %v8926_v31  ;;  %v943_v3 = vrot.slane %v8737_v60, 2  ;;  %v947_v17 = vsel %vm635_vm1, %v945_v59, %v946_v6  ;;  %v13778_v59 = vld [vmem:[#allocation101_spill] sm:$0xff] }
 0x1da   : > { %v8944_v30 = vpop.permute.xlu2 %5819  ;;  %v949_v25 = vsel %vm635_vm1, %v946_v6, %v948_v45  ;;  %v942_v52 = vsel %vm635_vm1, %v940_v7, %v941_v34  ;;  %v13780_v45 = vld [vmem:[#allocation103_spill] sm:$0xff] }
 0x1db   : > { %5979 = vrot.lane.b32.xlu1 %v8928_v14, %s7343_s17  ;;  %13754 = vst [vmem:[#allocation179_spill] sm:$0xff] %v8944_v30  ;;  %v944_v35 = vsel %vm635_vm1, %v941_v34, %v943_v3  ;;  %v9017_v60 = vpack.i.bf16 %v949_v25, %v947_v17  ;;  %v13783_v3 = vld [vmem:[#allocation117_spill] sm:$0xff]  ;;  %v9072_v17 = vld [vmem:[%s8300_s30 + $0x180] sm:$0xff]  ;;  %v9075_v25 = vld [vmem:[%s8300_s30 + $0x188] sm:$0xff] }
 0x1dc   : > { %5974 = vrot.lane.b32.xlu0 %v8935_v51, %s7343_s17  ;;  %v9021_v48 = vpack.i.bf16 %v944_v35, %v942_v52  ;;  %v13784_v52 = vld [vmem:[#allocation108_spill] sm:$0xff] }
 0x1dd   : > { %v8950_v32 = vpop.permute.xlu1 %5769 }
 0x1de   : > { %13755 = vst [vmem:[#allocation180_spill] sm:$0xff] %v8950_v32 }
 0x1e0   : > { %v8959_v39 = vpop.permute.xlu0 %5764  ;;  %5999 = vrot.lane.b32.xlu2 %v8952_v11, %s7343_s17 }
 0x1e1   : > { %13756 = vst [vmem:[#allocation181_spill] sm:$0xff] %v8959_v39 }
 0x1e2   : > { %v8977_v2 = vpop.permute.xlu2 %5834 }
 0x1e3   : > { %5994 = vrot.lane.b32.xlu1 %v8961_v9, %s7343_s17  ;;  %13757 = vst [vmem:[#allocation182_spill] sm:$0xff] %v8977_v2 }
 0x1e4   : > { %5989 = vrot.lane.b32.xlu0 %v8968_v12, %s7343_s17 }
 0x1e5   : > { %v8983_v63 = vpop.permute.xlu1 %5784 }
 0x1e6   : > { %13758 = vst [vmem:[#allocation183_spill] sm:$0xff] %v8983_v63 }
 0x1e8   : > { %v8989_v10 = vpop.permute.xlu0 %5779  ;;  %6014 = vrot.lane.b32.xlu2 %v8985_v16, %s7343_s17 }
 0x1e9   : > { %13759 = vst [vmem:[#allocation184_spill] sm:$0xff] %v8989_v10 }
 0x1ea   : > { %v9005_v56 = vpop.permute.xlu2 %5849 }
 0x1eb   : > { %6009 = vrot.lane.b32.xlu1 %v8991_v41, %s7343_s17  ;;  %13760 = vst [vmem:[#allocation185_spill] sm:$0xff] %v9005_v56 }
 0x1ec   : > { %6004 = vrot.lane.b32.xlu0 %v8998_v22, %s7343_s17 }
 0x1ed   : > { %v9011_v28 = vpop.permute.xlu1 %5799 }
 0x1ee   : > { %13761 = vst [vmem:[#allocation186_spill] sm:$0xff] %v9011_v28 }
 0x1f0   : > { %v9015_v58 = vpop.permute.xlu0 %5794  ;;  %6029 = vrot.lane.b32.xlu2 %v8362_v62, %s7344_s25 }
 0x1f1   : > { %13762 = vst [vmem:[#allocation187_spill] sm:$0xff] %v9015_v58 }
 0x1f2   : > { %v9025_v26 = vpop.permute.xlu2 %5864 }
 0x1f3   : > { %6024 = vrot.lane.b32.xlu1 %v9017_v60, %s7343_s17  ;;  %13763 = vst [vmem:[#allocation188_spill] sm:$0xff] %v9025_v26 }
 0x1f4   : > { %6019 = vrot.lane.b32.xlu0 %v9021_v48, %s7343_s17  ;;  %s323_s17 = sadd.s32 2, %s7315_s18  ;;  %s14436_s18 = smov (!%p336_p9, %s7315_s18), 7 }
 0x1f5   : > { %v9029_v23 = vpop.permute.xlu1 %5814  ;;  %p326_p8 = scmp.lt.s32.totalorder %s323_s17, 9 }
 0x1f6   : > { %13764 = vst [vmem:[#allocation189_spill] sm:$0xff] %v9029_v23 }
 0x1f7   : > { %s14434_s17 = smov (!%p326_p8, %s323_s17), 9 }
 0x1f8   : > { %v9031_v46 = vpop.permute.xlu0 %5809  ;;  %6044 = vrot.lane.b32.xlu2 %v8407_v33, %s7344_s25 }
 0x1f9   : > { %13765 = vst [vmem:[#allocation190_spill] sm:$0xff] %v9031_v46 }
 0x1fa   : > { %v9037_v62 = vpop.permute.xlu2 %5879 }
 0x1fb   : > { %6039 = vrot.lane.b32.xlu1 %v13766_v47, %s7344_s25  ;;  %13767 = vst [vmem:[#allocation91_spill] sm:$0xff] %v9037_v62  ;;  %v13786_v47 = vld [vmem:[#allocation110_spill] sm:$0xff] }
 0x1fc   : > { %6034 = vrot.lane.b32.xlu0 %v13768_v38, %s7344_s25 }
 0x1fd   : > { %v9041_v44 = vpop.permute.xlu1 %5829 }
 0x1fe   : > { %13769 = vst [vmem:[#allocation93_spill] sm:$0xff] %v9041_v44 }
 0x200   : > { %v9043_v37 = vpop.permute.xlu0 %5824  ;;  %6059 = vrot.lane.b32.xlu2 %v13771_v24, %s7344_s25 }
 0x201   : > { %13770 = vst [vmem:[#allocation191_spill] sm:$0xff] %v9043_v37  ;;  %v9087_v37 = vpack.i.bf16 %v9075_v25, %v9072_v17 }
 0x202   : > { %v9049_v40 = vpop.permute.xlu2 %5894 }
 0x203   : > { %6054 = vrot.lane.b32.xlu1 %v13772_v1, %s7344_s25  ;;  %13773 = vst [vmem:[#allocation105_spill] sm:$0xff] %v9049_v40 }
 0x204   : > { %6049 = vrot.lane.b32.xlu0 %v13774_v36, %s7344_s25 }
 0x205   : > { %v9053_v43 = vpop.permute.xlu1 %5844 }
 0x206   : > { %13775 = vst [vmem:[#allocation96_spill] sm:$0xff] %v9053_v43  ;;  %v13789_v43 = vld [vmem:[#allocation114_spill] sm:$0xff] }
 0x208   : > { %v9055_v27 = vpop.permute.xlu0 %5839  ;;  %6074 = vrot.lane.b32.xlu2 %v13777_v19, %s7344_s25 }
 0x209   : > { %13776 = vst [vmem:[#allocation98_spill] sm:$0xff] %v9055_v27 }
 0x20a   : > { %v9061_v6 = vpop.permute.xlu2 %5909 }
 0x20b   : > { %6069 = vrot.lane.b32.xlu1 %v13778_v59, %s7344_s25  ;;  %13779 = vst [vmem:[#allocation111_spill] sm:$0xff] %v9061_v6 }
 0x20c   : > { %6064 = vrot.lane.b32.xlu0 %v13780_v45, %s7344_s25 }
 0x20d   : > { %v9065_v7 = vpop.permute.xlu1 %5859 }
 0x20e   : > { %13781 = vst [vmem:[#allocation101_spill] sm:$0xff] %v9065_v7  ;;  %v13797_v7 = vld [vmem:[#allocation104_spill] sm:$0xff] }
 0x210   : > { %v9067_v34 = vpop.permute.xlu0 %5854  ;;  %6089 = vrot.lane.b32.xlu2 %v13783_v3, %s7344_s25 }
 0x211   : > { %13782 = vst [vmem:[#allocation103_spill] sm:$0xff] %v9067_v34 }
 0x212   : > { %v9079_v35 = vpop.permute.xlu2 %5924 }
 0x213   : > { %6084 = vrot.lane.b32.xlu1 %v13784_v52, %s7344_s25  ;;  %13785 = vst [vmem:[#allocation117_spill] sm:$0xff] %v9079_v35  ;;  %v13791_v35 = vld [vmem:[#allocation116_spill] sm:$0xff] }
 0x214   : > { %6079 = vrot.lane.b32.xlu0 %v13786_v47, %s7344_s25 }
 0x215   : > { %v9083_v1 = vpop.permute.xlu1 %5874 }
 0x216   : > { %13787 = vst [vmem:[#allocation108_spill] sm:$0xff] %v9083_v1  ;;  %v13794_v1 = vld [vmem:[#allocation135_spill] sm:$0xff] }
 0x218   : > { %v9089_v20 = vpop.permute.xlu0 %5869  ;;  %6104 = vrot.lane.b32.xlu2 %v9087_v37, %s7344_s25 }
 0x219   : > { %13788 = vst [vmem:[#allocation110_spill] sm:$0xff] %v9089_v20  ;;  %v13795_v20 = vld [vmem:[#allocation122_spill] sm:$0xff] }
 0x21a   : > { %v9095_v39 = vpop.permute.xlu2 %5939 }
 0x21b   : > { %6099 = vrot.lane.b32.xlu1 %v13789_v43, %s7344_s25  ;;  %13790 = vst [vmem:[#allocation114_spill] sm:$0xff] %v9095_v39 }
 0x21c   : > { %6094 = vrot.lane.b32.xlu0 %v13791_v35, %s7344_s25  ;;  %s5091_s25 = smul.u32 54, %s14434_s17 }
 0x21d   : > { %v9099_v26 = vpop.permute.xlu1 %5889 }
 0x21e   : > { %13792 = vst [vmem:[#allocation116_spill] sm:$0xff] %v9099_v26  ;;  %v13800_v26 = vld [vmem:[#allocation147_spill] sm:$0xff] }
 0x220   : > { %v9101_v63 = vpop.permute.xlu0 %5884  ;;  %6119 = vrot.lane.b32.xlu2 %v13794_v1, %s7345_s27  ;;  %v13803_v1 = vld [vmem:[#allocation134_spill] sm:$0xff] }
 0x221   : > { %13793 = vst [vmem:[#allocation192_spill] sm:$0xff] %v9101_v63  ;;  %v13801_v63 = vld [vmem:[#allocation130_spill] sm:$0xff] }
 0x222   : > { %v9107_v34 = vpop.permute.xlu2 %5954 }
 0x223   : > { %6114 = vrot.lane.b32.xlu1 %v13795_v20, %s7345_s27  ;;  %13796 = vst [vmem:[#allocation135_spill] sm:$0xff] %v9107_v34 }
 0x224   : > { %6109 = vrot.lane.b32.xlu0 %v13797_v7, %s7345_s27  ;;  %v13806_v7 = vld [vmem:[#allocation142_spill] sm:$0xff] }
 0x225   : > { %v9111_v39 = vpop.permute.xlu1 %5904 }
 0x226   : > { %13798 = vst [vmem:[#allocation122_spill] sm:$0xff] %v9111_v39 }
 0x228   : > { %v9113_v6 = vpop.permute.xlu0 %5899  ;;  %6134 = vrot.lane.b32.xlu2 %v13800_v26, %s7345_s27 }
 0x229   : > { %13799 = vst [vmem:[#allocation104_spill] sm:$0xff] %v9113_v6 }
 0x22a   : > { %v9119_v27 = vpop.permute.xlu2 %5969 }
 0x22b   : > { %6129 = vrot.lane.b32.xlu1 %v13801_v63, %s7345_s27  ;;  %13802 = vst [vmem:[#allocation147_spill] sm:$0xff] %v9119_v27  ;;  %v13808_v63 = vld [vmem:[#allocation146_spill] sm:$0xff] }
 0x22c   : > { %6124 = vrot.lane.b32.xlu0 %v13803_v1, %s7345_s27  ;;  %v13811_v1 = vld [vmem:[#allocation154_spill] sm:$0xff] }
 0x22d   : > { %v9123_v20 = vpop.permute.xlu1 %5919 }
 0x22e   : > { %13804 = vst [vmem:[#allocation130_spill] sm:$0xff] %v9123_v20 }
 0x230   : > { %v9125_v34 = vpop.permute.xlu0 %5914  ;;  %6149 = vrot.lane.b32.xlu2 %v8781_v55, %s7345_s27  ;;  %v13813_v55 = vld [vmem:[#allocation158_spill] sm:$0xff] }
 0x231   : > { %13805 = vst [vmem:[#allocation134_spill] sm:$0xff] %v9125_v34 }
 0x232   : > { %v9131_v26 = vpop.permute.xlu2 %5984 }
 0x233   : > { %6144 = vrot.lane.b32.xlu1 %v13806_v7, %s7345_s27  ;;  %13807 = vst [vmem:[#allocation142_spill] sm:$0xff] %v9131_v26 }
 0x234   : > { %6139 = vrot.lane.b32.xlu0 %v13808_v63, %s7345_s27  ;;  %v448_v63 = vld [vmem:[%s8300_s30 + $0x190] sm:$0x3] }
 0x235   : > { %v9135_v39 = vpop.permute.xlu1 %5934 }
 0x236   : > { %13809 = vst [vmem:[#allocation146_spill] sm:$0xff] %v9135_v39  ;;  %v956_v39 = vrot.slane %v448_v63, 1 }
 0x238   : > { %v9137_v27 = vpop.permute.xlu0 %5929  ;;  %6164 = vrot.lane.b32.xlu2 %v8832_v4, %s7345_s27  ;;  %v954_v4 = vrot.slane %v9075_v25, 1 }
 0x239   : > { %13810 = vst [vmem:[#allocation193_spill] sm:$0xff] %v9137_v27  ;;  %v953_v27 = vrot.slane %v9072_v17, 1 }
 0x23a   : > { %v9143_v34 = vpop.permute.xlu2 %5999 }
 0x23b   : > { %6159 = vrot.lane.b32.xlu1 %v13811_v1, %s7345_s27  ;;  %13812 = vst [vmem:[#allocation154_spill] sm:$0xff] %v9143_v34 }
 0x23c   : > { %6154 = vrot.lane.b32.xlu0 %v13813_v55, %s7345_s27 }
 0x23d   : > { %v9147_v7 = vpop.permute.xlu1 %5949 }
 0x23e   : > { %13814 = vst [vmem:[#allocation158_spill] sm:$0xff] %v9147_v7 }
 0x240   : > { %v9149_v26 = vpop.permute.xlu0 %5944  ;;  %6179 = vrot.lane.b32.xlu2 %v8868_v29, %s7345_s27  ;;  %v9168_v29 = vsel %vm554_vm0, %v954_v4, %v956_v39 }
 0x241   : > { %13815 = vst [vmem:[#allocation194_spill] sm:$0xff] %v9149_v26  ;;  %v9165_v26 = vsel %vm554_vm0, %v953_v27, %v954_v4 }
 0x242   : > { %v9158_v1 = vpop.permute.xlu2 %6014  ;;  %13818 = vst [vmem:[#allocation197_spill] sm:$0xff] %v9165_v26 }
 0x243   : > { %6174 = vrot.lane.b32.xlu1 %v8809_v53, %s7345_s27  ;;  %13816 = vst [vmem:[#allocation195_spill] sm:$0xff] %v9158_v1  ;;  %v6183_v53 = vpack.i.bf16 %v9168_v29, %v9165_v26 }
 0x244   : > { %6169 = vrot.lane.b32.xlu0 %v8823_v54, %s7345_s27  ;;  %13819 = vst [vmem:[#allocation198_spill] sm:$0xff] %v9168_v29 }
 0x245   : > { %v9162_v55 = vpop.permute.xlu1 %5964 }
 0x246   : > { %13817 = vst [vmem:[#allocation196_spill] sm:$0xff] %v9162_v55 }
 0x248   : > { %v9170_v7 = vpop.permute.xlu0 %5959  ;;  %6194 = vrot.lane.b32.xlu2 %v8902_v5, %s7346_s28 }
 0x249   : > { %13820 = vst [vmem:[#allocation199_spill] sm:$0xff] %v9170_v7 }
 0x24a   : > { %v9178_v54 = vpop.permute.xlu2 %6029 }
 0x24b   : > { %6189 = vrot.lane.b32.xlu1 %v8847_v42, %s7346_s28  ;;  %13821 = vst [vmem:[#allocation200_spill] sm:$0xff] %v9178_v54  ;;  %v958_v54 = vrot.slane %v9072_v17, 2 }
 0x24c   : > { %6184 = vrot.lane.b32.xlu0 %v6183_v53, %s7345_s27  ;;  %s330_s27 = sadd.s32 %s5091_s25, %s7416_s26  ;;  %s14074_s26 = smov 40  }
 0x24d   : > { %v9181_v27 = vpop.permute.xlu1 %5979 }
 0x24e   : > { %13822 = vst [vmem:[#allocation201_spill] sm:$0xff] %v9181_v27 }
 0x250   : > { %v9183_v39 = vpop.permute.xlu0 %5974  ;;  %6209 = vrot.lane.b32.xlu2 %v8935_v51, %s7346_s28 }
 0x251   : > { %13823 = vst [vmem:[#allocation202_spill] sm:$0xff] %v9183_v39 }
 0x252   : > { %v9189_v4 = vpop.permute.xlu2 %6044 }
 0x253   : > { %6204 = vrot.lane.b32.xlu1 %v8886_v61, %s7346_s28  ;;  %13824 = vst [vmem:[#allocation203_spill] sm:$0xff] %v9189_v4 }
 0x254   : > { %6199 = vrot.lane.b32.xlu0 %v8895_v57, %s7346_s28 }
 0x255   : > { %v9193_v42 = vpop.permute.xlu1 %5994 }
 0x256   : > { %13825 = vst [vmem:[#allocation204_spill] sm:$0xff] %v9193_v42 }
 0x258   : > { %v9195_v55 = vpop.permute.xlu0 %5989  ;;  %6224 = vrot.lane.b32.xlu2 %v8968_v12, %s7346_s28 }
 0x259   : > { %13826 = vst [vmem:[#allocation205_spill] sm:$0xff] %v9195_v55 }
 0x25a   : > { %v9201_v53 = vpop.permute.xlu2 %6059 }
 0x25b   : > { %6219 = vrot.lane.b32.xlu1 %v8919_v18, %s7346_s28  ;;  %13827 = vst [vmem:[#allocation206_spill] sm:$0xff] %v9201_v53 }
 0x25c   : > { %6214 = vrot.lane.b32.xlu0 %v8928_v14, %s7346_s28 }
 0x25d   : > { %v9205_v39 = vpop.permute.xlu1 %6009 }
 0x25e   : > { %13828 = vst [vmem:[#allocation207_spill] sm:$0xff] %v9205_v39  ;;  %v959_v39 = vrot.slane %v9075_v25, 2 }
 0x260   : > { %v9207_v4 = vpop.permute.xlu0 %6004  ;;  %6239 = vrot.lane.b32.xlu2 %v8998_v22, %s7346_s28  ;;  %v960_v7 = vsel %vm635_vm1, %v958_v54, %v959_v39 }
 0x261   : > { %13829 = vst [vmem:[#allocation208_spill] sm:$0xff] %v9207_v4  ;;  %v961_v4 = vrot.slane %v448_v63, 2 }
 0x262   : > { %v9213_v42 = vpop.permute.xlu2 %6074 }
 0x263   : > { %6234 = vrot.lane.b32.xlu1 %v8952_v11, %s7346_s28  ;;  %13830 = vst [vmem:[#allocation209_spill] sm:$0xff] %v9213_v42 }
 0x264   : > { %6229 = vrot.lane.b32.xlu0 %v8961_v9, %s7346_s28 }
 0x265   : > { %v9217_v27 = vpop.permute.xlu1 %6024 }
 0x266   : > { %13831 = vst [vmem:[#allocation210_spill] sm:$0xff] %v9217_v27  ;;  %v962_v27 = vsel %vm635_vm1, %v959_v39, %v961_v4 }
 0x267   : > { %v9237_v63 = vpack.i.bf16 %v962_v27, %v960_v7  ;;  %v7229_v7 = vld [vmem:[%s8300_s30 + $0x48] sm:$0xff]  ;;  %v7230_v27 = vld [vmem:[%s8300_s30 + $0x50] sm:$0xff] }
 0x268   : > { %v9219_v53 = vpop.permute.xlu0 %6019  ;;  %6254 = vrot.lane.b32.xlu2 %v9021_v48, %s7346_s28 }
 0x269   : > { %13832 = vst [vmem:[#allocation211_spill] sm:$0xff] %v9219_v53 }
 0x26a   : > { %v9227_v42 = vpop.permute.xlu2 %6089 }
 0x26b   : > { %6249 = vrot.lane.b32.xlu1 %v8985_v16, %s7346_s28  ;;  %13833 = vst [vmem:[#allocation212_spill] sm:$0xff] %v9227_v42 }
 0x26c   : > { %6244 = vrot.lane.b32.xlu0 %v8991_v41, %s7346_s28 }
 0x26d   : > { %v9233_v17 = vpop.permute.xlu1 %6039 }
 0x26e   : > { %13834 = vst [vmem:[#allocation213_spill] sm:$0xff] %v9233_v17 }
 0x270   : > { %v9235_v25 = vpop.permute.xlu0 %6034  ;;  %6269 = vrot.lane.b32.xlu2 %v13768_v38, %s7347_s29  ;;  %v6273_v38 = vpack.i.bf16 %v7230_v27, %v7229_v7 }
 0x271   : > { %13835 = vst [vmem:[#allocation214_spill] sm:$0xff] %v9235_v25 }
 0x272   : > { %v9243_v54 = vpop.permute.xlu2 %6104 }
 0x273   : > { %6264 = vrot.lane.b32.xlu1 %v9237_v63, %s7346_s28  ;;  %13836 = vst [vmem:[#allocation215_spill] sm:$0xff] %v9243_v54 }
 0x274   : > { %6259 = vrot.lane.b32.xlu0 %v9017_v60, %s7346_s28  ;;  %s5010_s28 = sshll.u32 %s330_s27, 3 }
 0x275   : > { %v9247_v39 = vpop.permute.xlu1 %6054  ;;  %s9373_s16 = scalar_lea.vmem %s13127_s2, %s5010_s28 }
 0x276   : > { %13837 = vst [vmem:[#allocation216_spill] sm:$0xff] %v9247_v39  ;;  %v7231_v39 = vld [vmem:[%s8300_s30 + $0x90] sm:$0xff]  ;;  %v9511_v53 = vld [vmem:[%s9373_s16 + $0xe0] sm:$0xff]  ;;  %v9556_v20 = vld [vmem:[%s9373_s16 + $0x128] sm:$0xff] }
 0x277   : > { %v9522_v1 = vld [vmem:[%s9373_s16 + $0xc0] sm:$0xff]  ;;  %v9569_v62 = vld [vmem:[%s9373_s16 + $0x108] sm:$0xff]  ;;  %v9572_v46 = vld [vmem:[%s9373_s16 + $0x110] sm:$0xff] }
 0x278   : > { %v9249_v4 = vpop.permute.xlu0 %6049  ;;  %6284 = vrot.lane.b32.xlu2 %v13774_v36, %s7347_s29  ;;  %v7232_v36 = vld [vmem:[%s8300_s30 + $0x98] sm:$0xff]  ;;  %v9553_v55 = vld [vmem:[%s9373_s16 + $0x120] sm:$0xff]  ;;  %v9585_v28 = vpack.i.bf16 %v9572_v46, %v9569_v62  ;;  %v9597_v32 = vld [vmem:[%s9373_s16 + $0x168] sm:$0xff] }
 0x279   : > { %13838 = vst [vmem:[#allocation217_spill] sm:$0xff] %v9249_v4  ;;  %v6288_v42 = vpack.i.bf16 %v7232_v36, %v7231_v39  ;;  %v9525_v4 = vld [vmem:[%s9373_s16 + $0xc8] sm:$0xff]  ;;  %v9594_v2 = vld [vmem:[%s9373_s16 + $0x58] sm:$0x3]  ;;  %v9600_v30 = vld [vmem:[%s9373_s16 + $0x170] sm:$0xff] }
 0x27a   : > { %v9257_v25 = vpop.permute.xlu2 %6119  ;;  %13894 = vst [vmem:[#allocation273_spill] sm:$0xff] %v9585_v28  ;;  %v9609_v15 = vld [vmem:[%s9373_s16 + $0x40] sm:$0x3]  ;;  %v9612_v8 = vld [vmem:[%s9373_s16 + $0x150] sm:$0xff]  ;;  %v1074_v21 = vrot.slane %v9594_v2, 1  ;;  %v9622_v49 = vpack.i.bf16 %v9600_v30, %v9597_v32 }
 0x27b   : > { %6279 = vrot.lane.b32.xlu1 %v8407_v33, %s7347_s29  ;;  %13839 = vst [vmem:[#allocation218_spill] sm:$0xff] %v9257_v25  ;;  %v1069_v50 = vrot.slane %v9609_v15, 1 }
 0x27c   : > { %6274 = vrot.lane.b32.xlu0 %v6273_v38, %s7347_s29  ;;  %v9295_v38 = vld [vmem:[%s8300_s30 + $0x1a0] sm:$0xff]  ;;  %13898 = vst [vmem:[#allocation277_spill] sm:$0xff] %v9622_v49 }
 0x27d   : > { %v9260_v54 = vpop.permute.xlu1 %6069 }
 0x27e   : > { %13840 = vst [vmem:[#allocation219_spill] sm:$0xff] %v9260_v54  ;;  %v9550_v54 = vld [vmem:[%s9373_s16 + $0x10] sm:$0x3] }
 0x27f   : > { %v1059_v23 = vrot.slane %v9550_v54, 1 }
 0x280   : > { %v9262_v17 = vpop.permute.xlu0 %6064  ;;  %6299 = vrot.lane.b32.xlu2 %v13780_v45, %s7347_s29 }
 0x281   : > { %13841 = vst [vmem:[#allocation220_spill] sm:$0xff] %v9262_v17 }
 0x282   : > { %v9270_v33 = vpop.permute.xlu2 %6134 }
 0x283   : > { %6294 = vrot.lane.b32.xlu1 %v13771_v24, %s7347_s29  ;;  %13842 = vst [vmem:[#allocation221_spill] sm:$0xff] %v9270_v33 }
 0x284   : > { %6289 = vrot.lane.b32.xlu0 %v6288_v42, %s7347_s29  ;;  %v9292_v42 = vld [vmem:[%s8300_s30 + $0x198] sm:$0xff] }
 0x285   : > { %v9273_v7 = vpop.permute.xlu1 %6084 }
 0x286   : > { %13843 = vst [vmem:[#allocation222_spill] sm:$0xff] %v9273_v7 }
 0x288   : > { %v9275_v27 = vpop.permute.xlu0 %6079  ;;  %6314 = vrot.lane.b32.xlu2 %v13786_v47, %s7347_s29  ;;  %v6343_v47 = vpack.i.bf16 %v9295_v38, %v9292_v42 }
 0x289   : > { %13844 = vst [vmem:[#allocation223_spill] sm:$0xff] %v9275_v27 }
 0x28a   : > { %v9281_v45 = vpop.permute.xlu2 %6149 }
 0x28b   : > { %6309 = vrot.lane.b32.xlu1 %v13777_v19, %s7347_s29  ;;  %13845 = vst [vmem:[#allocation224_spill] sm:$0xff] %v9281_v45  ;;  %v9543_v45 = vld [vmem:[%s9373_s16 + $0x140] sm:$0xff] }
 0x28c   : > { %6304 = vrot.lane.b32.xlu0 %v13778_v59, %s7347_s29 }
 0x28d   : > { %v9285_v24 = vpop.permute.xlu1 %6099 }
 0x28e   : > { %13846 = vst [vmem:[#allocation225_spill] sm:$0xff] %v9285_v24 }
 0x290   : > { %v9287_v39 = vpop.permute.xlu0 %6094  ;;  %6329 = vrot.lane.b32.xlu2 %v13791_v35, %s7347_s29 }
 0x291   : > { %13847 = vst [vmem:[#allocation226_spill] sm:$0xff] %v9287_v39  ;;  %v9469_v39 = vld [vmem:[%s9373_s16 + $0x98] sm:$0xff] }
 0x292   : > { %v9299_v19 = vpop.permute.xlu2 %6164 }
 0x293   : > { %6324 = vrot.lane.b32.xlu1 %v13783_v3, %s7347_s29  ;;  %13848 = vst [vmem:[#allocation227_spill] sm:$0xff] %v9299_v19  ;;  %v9394_v19 = vld [vmem:[%s9373_s16] sm:$0xff] }
 0x294   : > { %6319 = vrot.lane.b32.xlu0 %v13784_v52, %s7347_s29  ;;  %v1056_v44 = vrot.slane %v9394_v19, 1 }
 0x295   : > { %v9303_v59 = vpop.permute.xlu1 %6114 }
 0x296   : > { %13849 = vst [vmem:[#allocation228_spill] sm:$0xff] %v9303_v59  ;;  %v9466_v59 = vld [vmem:[%s9373_s16 + $0x90] sm:$0xff] }
 0x298   : > { %v9307_v36 = vpop.permute.xlu0 %6109  ;;  %6344 = vrot.lane.b32.xlu2 %v6343_v47, %s7347_s29 }
 0x299   : > { %13850 = vst [vmem:[#allocation229_spill] sm:$0xff] %v9307_v36  ;;  %v9501_v36 = vld [vmem:[%s9373_s16 + $0xf8] sm:$0xff] }
 0x29a   : > { %v9312_v35 = vpop.permute.xlu2 %6179 }
 0x29b   : > { %6339 = vrot.lane.b32.xlu1 %v9087_v37, %s7347_s29  ;;  %13851 = vst [vmem:[#allocation230_spill] sm:$0xff] %v9312_v35 }
 0x29c   : > { %6334 = vrot.lane.b32.xlu0 %v13789_v43, %s7347_s29  ;;  %v9383_v43 = vld [vmem:[%s9373_s16 + $0x18] sm:$0xff] }
 0x29d   : > { %v9316_v3 = vpop.permute.xlu1 %6129  ;;  %v1061_v29 = vrot.slane %v9383_v43, 1 }
 0x29e   : > { %13852 = vst [vmem:[#allocation231_spill] sm:$0xff] %v9316_v3 }
 0x2a0   : > { %v9318_v52 = vpop.permute.xlu0 %6124  ;;  %6359 = vrot.lane.b32.xlu2 %v8886_v61, %s7333_s8 }
 0x2a1   : > { %13853 = vst [vmem:[#allocation232_spill] sm:$0xff] %v9318_v52 }
 0x2a2   : > { %v9324_v17 = vpop.permute.xlu2 %6194 }
 0x2a3   : > { %6354 = vrot.lane.b32.xlu1 %v8895_v57, %s7333_s8  ;;  %13854 = vst [vmem:[#allocation233_spill] sm:$0xff] %v9324_v17  ;;  %v9419_v17 = vld [vmem:[%s9373_s16 + $0x68] sm:$0xff] }
 0x2a4   : > { %6349 = vrot.lane.b32.xlu0 %v8902_v5, %s7333_s8 }
 0x2a5   : > { %v9328_v37 = vpop.permute.xlu1 %6144 }
 0x2a6   : > { %13855 = vst [vmem:[#allocation234_spill] sm:$0xff] %v9328_v37 }
 0x2a8   : > { %v9330_v47 = vpop.permute.xlu0 %6139  ;;  %6374 = vrot.lane.b32.xlu2 %v8919_v18, %s7333_s8 }
 0x2a9   : > { %13856 = vst [vmem:[#allocation235_spill] sm:$0xff] %v9330_v47 }
 0x2aa   : > { %v9337_v61 = vpop.permute.xlu2 %6209 }
 0x2ab   : > { %6369 = vrot.lane.b32.xlu1 %v8928_v14, %s7333_s8  ;;  %13857 = vst [vmem:[#allocation236_spill] sm:$0xff] %v9337_v61 }
 0x2ac   : > { %6364 = vrot.lane.b32.xlu0 %v8935_v51, %s7333_s8 }
 0x2ad   : > { %v9341_v57 = vpop.permute.xlu1 %6159 }
 0x2ae   : > { %13858 = vst [vmem:[#allocation237_spill] sm:$0xff] %v9341_v57 }
 0x2b0   : > { %v9343_v5 = vpop.permute.xlu0 %6154  ;;  %6389 = vrot.lane.b32.xlu2 %v8952_v11, %s7333_s8 }
 0x2b1   : > { %13859 = vst [vmem:[#allocation238_spill] sm:$0xff] %v9343_v5  ;;  %v9498_v5 = vld [vmem:[%s9373_s16 + $0xf0] sm:$0xff] }
 0x2b2   : > { %v9349_v18 = vpop.permute.xlu2 %6224  ;;  %v9519_v3 = vpack.i.bf16 %v9501_v36, %v9498_v5 }
 0x2b3   : > { %6384 = vrot.lane.b32.xlu1 %v8961_v9, %s7333_s8  ;;  %13860 = vst [vmem:[#allocation239_spill] sm:$0xff] %v9349_v18  ;;  %v9386_v18 = vld [vmem:[%s9373_s16 + $0x20] sm:$0xff] }
 0x2b4   : > { %6379 = vrot.lane.b32.xlu0 %v8968_v12, %s7333_s8  ;;  %13885 = vst [vmem:[#allocation264_spill] sm:$0xff] %v9519_v3 }
 0x2b5   : > { %v9353_v14 = vpop.permute.xlu1 %6174 }
 0x2b6   : > { %13861 = vst [vmem:[#allocation240_spill] sm:$0xff] %v9353_v14  ;;  %v9459_v14 = vld [vmem:[%s9373_s16 + $0xb0] sm:$0xff] }
 0x2b8   : > { %v9355_v51 = vpop.permute.xlu0 %6169  ;;  %6404 = vrot.lane.b32.xlu2 %v8985_v16, %s7333_s8  ;;  %v9376_v16 = vld [vmem:[%s8300_s30 + $0x1a8] sm:$0x3] }
 0x2b9   : > { %13862 = vst [vmem:[#allocation241_spill] sm:$0xff] %v9355_v51  ;;  %v1006_v37 = vrot.slane %v9376_v16, 2  ;;  %v9508_v51 = vld [vmem:[%s9373_s16 + $0xd8] sm:$0xff] }
 0x2ba   : > { %v9362_v11 = vpop.permute.xlu2 %6239  ;;  %13866 = vst [vmem:[#allocation245_spill] sm:$0xff] %v9376_v16  ;;  %v9531_v34 = vpack.i.bf16 %v9511_v53, %v9508_v51  ;;  %v9658_v16 = vld [vmem:[%s9373_s16 + $0x88] sm:$0x3] }
 0x2bb   : > { %6399 = vrot.lane.b32.xlu1 %v8991_v41, %s7333_s8  ;;  %13863 = vst [vmem:[#allocation242_spill] sm:$0xff] %v9362_v11  ;;  %v1004_v41 = vrot.slane %v9295_v38, 2 }
 0x2bc   : > { %6394 = vrot.lane.b32.xlu0 %v8998_v22, %s7333_s8  ;;  %v1003_v22 = vrot.slane %v9292_v42, 2  ;;  %13887 = vst [vmem:[#allocation266_spill] sm:$0xff] %v9531_v34 }
 0x2bd   : > { %v9366_v9 = vpop.permute.xlu1 %6189  ;;  %v1007_v47 = vsel %vm635_vm1, %v1004_v41, %v1006_v37  ;;  %v9425_v37 = vld [vmem:[%s9373_s16 + $0x48] sm:$0xff] }
 0x2be   : > { %13864 = vst [vmem:[#allocation243_spill] sm:$0xff] %v9366_v9  ;;  %v9489_v9 = vpack.i.bf16 %v9469_v39, %v9466_v59 }
 0x2c0   : > { %v9368_v12 = vpop.permute.xlu0 %6184  ;;  %6419 = vrot.lane.b32.xlu2 %v9237_v63, %s7333_s8  ;;  %v9397_v63 = vld [vmem:[%s9373_s16 + $0x8] sm:$0xff]  ;;  %13881 = vst [vmem:[#allocation260_spill] sm:$0xff] %v9489_v9 }
 0x2c1   : > { %13865 = vst [vmem:[#allocation244_spill] sm:$0xff] %v9368_v12  ;;  %v9405_v12 = vpack.i.bf16 %v9386_v18, %v9383_v43  ;;  %v6428_v57 = vpack.i.bf16 %v9397_v63, %v9394_v19 }
 0x2c2   : > { %v9391_v52 = vpop.permute.xlu2 %6254 }
 0x2c3   : > { %6414 = vrot.lane.b32.xlu1 %v9017_v60, %s7333_s8  ;;  %13867 = vst [vmem:[#allocation246_spill] sm:$0xff] %v9391_v52  ;;  %v1005_v60 = vsel %vm635_vm1, %v1003_v22, %v1004_v41  ;;  %v9428_v41 = vld [vmem:[%s9373_s16 + $0x50] sm:$0xff] }
 0x2c4   : > { %6409 = vrot.lane.b32.xlu0 %v9021_v48, %s7333_s8  ;;  %13869 = vst [vmem:[#allocation248_spill] sm:$0xff] %v9405_v12  ;;  %v6423_v48 = vpack.i.bf16 %v1007_v47, %v1005_v60  ;;  %v9438_v60 = vld [vmem:[%s9373_s16 + $0x30] sm:$0xff]  ;;  %v9447_v52 = vpack.i.bf16 %v9428_v41, %v9425_v37 }
 0x2c5   : > { %v9401_v7 = vpop.permute.xlu1 %6204 }
 0x2c6   : > { %13868 = vst [vmem:[#allocation247_spill] sm:$0xff] %v9401_v7  ;;  %v9416_v7 = vld [vmem:[%s9373_s16 + $0x60] sm:$0xff] }
 0x2c7   : > { %v9435_v47 = vpack.i.bf16 %v9419_v17, %v9416_v7  ;;  %13875 = vst [vmem:[#allocation254_spill] sm:$0xff] %v9447_v52 }
 0x2c8   : > { %v9409_v11 = vpop.permute.xlu0 %6199  ;;  %6434 = vrot.lane.b32.xlu2 %v9405_v12, %s7334_s9 }
 0x2c9   : > { %13870 = vst [vmem:[#allocation249_spill] sm:$0xff] %v9409_v11 }
 0x2ca   : > { %v9422_v22 = vpop.permute.xlu2 %6269  ;;  %13873 = vst [vmem:[#allocation252_spill] sm:$0xff] %v9435_v47 }
 0x2cb   : > { %6429 = vrot.lane.b32.xlu1 %v6428_v57, %s7334_s9  ;;  %13871 = vst [vmem:[#allocation250_spill] sm:$0xff] %v9422_v22  ;;  %v9441_v57 = vld [vmem:[%s9373_s16 + $0x38] sm:$0xff] }
 0x2cc   : > { %6424 = vrot.lane.b32.xlu0 %v6423_v48, %s7333_s8  ;;  %v9453_v48 = vpack.i.bf16 %v9441_v57, %v9438_v60  ;;  %s7348_s8 = smov 64  }
 0x2cd   : > { %v9431_v11 = vpop.permute.xlu1 %6219 }
 0x2ce   : > { %13872 = vst [vmem:[#allocation251_spill] sm:$0xff] %v9431_v11  ;;  %v9456_v11 = vld [vmem:[%s9373_s16 + $0xa8] sm:$0xff] }
 0x2cf   : > { %13876 = vst [vmem:[#allocation255_spill] sm:$0xff] %v9453_v48  ;;  %v9477_v27 = vpack.i.bf16 %v9459_v14, %v9456_v11 }
 0x2d0   : > { %v9443_v35 = vpop.permute.xlu0 %6214  ;;  %6449 = vrot.lane.b32.xlu2 %v9435_v47, %s7334_s9 }
 0x2d1   : > { %13874 = vst [vmem:[#allocation253_spill] sm:$0xff] %v9443_v35  ;;  %v9480_v35 = vld [vmem:[%s9373_s16 + $0x78] sm:$0xff] }
 0x2d2   : > { %v9463_v25 = vpop.permute.xlu2 %6284  ;;  %13879 = vst [vmem:[#allocation258_spill] sm:$0xff] %v9477_v27 }
 0x2d3   : > { %6444 = vrot.lane.b32.xlu1 %v9447_v52, %s7334_s9  ;;  %13877 = vst [vmem:[#allocation256_spill] sm:$0xff] %v9463_v25  ;;  %v9483_v25 = vld [vmem:[%s9373_s16 + $0x80] sm:$0xff]  ;;  %v1097_v52 = vrot.slane %v9525_v4, 1 }
 0x2d4   : > { %6439 = vrot.lane.b32.xlu0 %v9453_v48, %s7334_s9 }
 0x2d5   : > { %v9473_v24 = vpop.permute.xlu1 %6234 }
 0x2d6   : > { %13878 = vst [vmem:[#allocation257_spill] sm:$0xff] %v9473_v24  ;;  %v9495_v24 = vpack.i.bf16 %v9483_v25, %v9480_v35 }
 0x2d8   : > { %v9485_v22 = vpop.permute.xlu0 %6229  ;;  %6464 = vrot.lane.b32.xlu2 %v9477_v27, %s7334_s9  ;;  %13882 = vst [vmem:[#allocation261_spill] sm:$0xff] %v9495_v24 }
 0x2d9   : > { %13880 = vst [vmem:[#allocation259_spill] sm:$0xff] %v9485_v22  ;;  %v9540_v22 = vld [vmem:[%s9373_s16 + $0x138] sm:$0xff] }
 0x2da   : > { %v9505_v33 = vpop.permute.xlu2 %6299  ;;  %v9564_v40 = vpack.i.bf16 %v9543_v45, %v9540_v22 }
 0x2db   : > { %6459 = vrot.lane.b32.xlu1 %v9489_v9, %s7334_s9  ;;  %13883 = vst [vmem:[#allocation262_spill] sm:$0xff] %v9505_v33 }
 0x2dc   : > { %6454 = vrot.lane.b32.xlu0 %v9495_v24, %s7334_s9  ;;  %13891 = vst [vmem:[#allocation270_spill] sm:$0xff] %v9564_v40 }
 0x2dd   : > { %v9515_v61 = vpop.permute.xlu1 %6249 }
 0x2de   : > { %13884 = vst [vmem:[#allocation263_spill] sm:$0xff] %v9515_v61  ;;  %v9537_v61 = vpack.i.bf16 %v9525_v4, %v9522_v1 }
 0x2e0   : > { %v9527_v33 = vpop.permute.xlu0 %6244  ;;  %6479 = vrot.lane.b32.xlu2 %v9519_v3, %s7334_s9  ;;  %13888 = vst [vmem:[#allocation267_spill] sm:$0xff] %v9537_v61 }
 0x2e1   : > { %13886 = vst [vmem:[#allocation265_spill] sm:$0xff] %v9527_v33 }
 0x2e2   : > { %v9547_v33 = vpop.permute.xlu2 %6314 }
 0x2e3   : > { %6474 = vrot.lane.b32.xlu1 %v9531_v34, %s7334_s9  ;;  %13889 = vst [vmem:[#allocation268_spill] sm:$0xff] %v9547_v33  ;;  %v1057_v33 = vrot.slane %v9397_v63, 1  ;;  %v9645_v34 = vld [vmem:[%s9373_s16 + $0xa0] sm:$0x3] }
 0x2e4   : > { %6469 = vrot.lane.b32.xlu0 %v9537_v61, %s7334_s9  ;;  %v9707_v61 = vld [vmem:[%s9373_s16 + $0xd0] sm:$0x3] }
 0x2e5   : > { %v9560_v6 = vpop.permute.xlu1 %6264  ;;  %v1058_v56 = vsel %vm554_vm0, %v1056_v44, %v1057_v33  ;;  %v1060_v10 = vsel %vm554_vm0, %v1057_v33, %v1059_v23  ;;  %v1071_v23 = vrot.slane %v9425_v37, 1  ;;  %v1072_v33 = vrot.slane %v9428_v41, 1 }
 0x2e6   : > { %13890 = vst [vmem:[#allocation269_spill] sm:$0xff] %v9560_v6  ;;  %v9579_v6 = vpack.i.bf16 %v9556_v20, %v9553_v55  ;;  %v6508_v44 = vpack.i.bf16 %v1060_v10, %v1058_v56  ;;  %v9625_v10 = vld [vmem:[%s9373_s16 + $0x28] sm:$0x3]  ;;  %v1066_v56 = vrot.slane %v9438_v60, 1 }
 0x2e7   : > { %v1075_v26 = vsel %vm554_vm0, %v1072_v33, %v1074_v21 }
 0x2e8   : > { %v9575_v58 = vpop.permute.xlu0 %6259  ;;  %13893 = vst [vmem:[#allocation272_spill] sm:$0xff] %v9579_v6  ;;  %6494 = vrot.lane.b32.xlu2 %v9564_v40, %s7334_s9  ;;  %v1064_v40 = vrot.slane %v9625_v10, 1 }
 0x2e9   : > { %13892 = vst [vmem:[#allocation271_spill] sm:$0xff] %v9575_v58 }
 0x2ea   : > { %v9591_v58 = vpop.permute.xlu2 %6329 }
 0x2eb   : > { %6489 = vrot.lane.b32.xlu1 %v9579_v6, %s7334_s9  ;;  %13895 = vst [vmem:[#allocation274_spill] sm:$0xff] %v9591_v58  ;;  %v9615_v58 = vld [vmem:[%s9373_s16 + $0x158] sm:$0xff]  ;;  %v1062_v6 = vrot.slane %v9386_v18, 1 }
 0x2ec   : > { %6484 = vrot.lane.b32.xlu0 %v9585_v28, %s7334_s9  ;;  %v9633_v13 = vpack.i.bf16 %v9615_v58, %v9612_v8  ;;  %v1086_v28 = vrot.slane %v9466_v59, 1 }
 0x2ed   : > { %v9604_v31 = vpop.permute.xlu1 %6279  ;;  %v1065_v9 = vsel %vm554_vm0, %v1062_v6, %v1064_v40 }
 0x2ee   : > { %13896 = vst [vmem:[#allocation275_spill] sm:$0xff] %v9604_v31  ;;  %v1067_v31 = vrot.slane %v9441_v57, 1 }
 0x2ef   : > { %13899 = vst [vmem:[#allocation278_spill] sm:$0xff] %v9633_v13 }
 0x2f0   : > { %v9618_v0 = vpop.permute.xlu0 %6274  ;;  %6509 = vrot.lane.b32.xlu2 %v6508_v44, %s7335_s10  ;;  %v1068_v3 = vsel %vm554_vm0, %v1066_v56, %v1067_v31  ;;  %v1089_v56 = vrot.slane %v9645_v34, 1 }
 0x2f1   : > { %13897 = vst [vmem:[#allocation276_spill] sm:$0xff] %v9618_v0  ;;  %v1073_v0 = vsel %vm554_vm0, %v1071_v23, %v1072_v33  ;;  %v1070_v23 = vsel %vm554_vm0, %v1067_v31, %v1069_v50 }
 0x2f2   : > { %v9642_v44 = vpop.permute.xlu2 %6344  ;;  %v9653_v33 = vpack.i.bf16 %v1075_v26, %v1073_v0  ;;  %v9665_v31 = vpack.i.bf16 %v1070_v23, %v1068_v3  ;;  %v1081_v0 = vrot.slane %v9480_v35, 1  ;;  %v1082_v26 = vrot.slane %v9483_v25, 1 }
 0x2f3   : > { %6504 = vrot.lane.b32.xlu1 %v9622_v49, %s7334_s9  ;;  %13900 = vst [vmem:[#allocation279_spill] sm:$0xff] %v9642_v44  ;;  %v1087_v49 = vrot.slane %v9469_v39, 1  ;;  %v1063_v44 = vsel %vm554_vm0, %v1061_v29, %v1062_v6  ;;  %v1076_v3 = vrot.slane %v9416_v7, 1  ;;  %v1077_v23 = vrot.slane %v9419_v17, 1 }
 0x2f4   : > { %6499 = vrot.lane.b32.xlu0 %v9633_v13, %s7334_s9  ;;  %13902 = vst [vmem:[#allocation281_spill] sm:$0xff] %v9653_v33  ;;  %v1084_v13 = vrot.slane %v9658_v16, 1  ;;  %v9675_v29 = vpack.i.bf16 %v1065_v9, %v1063_v44  ;;  %v9691_v9 = vld [vmem:[%s9373_s16 + $0xe8] sm:$0x3] }
 0x2f5   : > { %v9651_v21 = vpop.permute.xlu1 %6294  ;;  %13904 = vst [vmem:[#allocation283_spill] sm:$0xff] %v9665_v31  ;;  %v9678_v40 = vsel %vm554_vm0, %v1086_v28, %v1087_v49  ;;  %v9681_v6 = vsel %vm554_vm0, %v1087_v49, %v1089_v56  ;;  %v1083_v28 = vsel %vm554_vm0, %v1081_v0, %v1082_v26  ;;  %v1136_v49 = vrot.slane %v9394_v19, 2 }
 0x2f6   : > { %13901 = vst [vmem:[#allocation280_spill] sm:$0xff] %v9651_v21  ;;  %v9668_v21 = vld [vmem:[%s9373_s16 + $0x70] sm:$0x3]  ;;  %v1085_v44 = vsel %vm554_vm0, %v1082_v26, %v1084_v13  ;;  %v1137_v0 = vrot.slane %v9397_v63, 2  ;;  %v9711_v13 = vsel %vm554_vm0, %v1076_v3, %v1077_v23  ;;  %v1104_v26 = vrot.slane %v9691_v9, 1 }
 0x2f7   : > { %13905 = vst [vmem:[#allocation284_spill] sm:$0xff] %v9675_v29  ;;  %v1099_v63 = vrot.slane %v9707_v61, 1 }
 0x2f8   : > { %v9663_v50 = vpop.permute.xlu0 %6289  ;;  %6524 = vrot.lane.b32.xlu2 %v9653_v33, %s7335_s10  ;;  %13906 = vst [vmem:[#allocation285_spill] sm:$0xff] %v9678_v40  ;;  %v9702_v33 = vpack.i.bf16 %v9681_v6, %v9678_v40  ;;  %v9722_v40 = vld [vmem:[%s9373_s16 + $0xb8] sm:$0x3]  ;;  %v9739_v47 = vsel %vm635_vm1, %v1136_v49, %v1137_v0 }
 0x2f9   : > { %13903 = vst [vmem:[#allocation282_spill] sm:$0xff] %v9663_v50  ;;  %v1079_v50 = vrot.slane %v9668_v21, 1  ;;  %v1100_v24 = vsel %vm554_vm0, %v1097_v52, %v1099_v63 }
 0x2fa   : > { %13907 = vst [vmem:[#allocation286_spill] sm:$0xff] %v9681_v6  ;;  %v9688_v27 = vpop.permute.xlu2 %6359  ;;  %v9719_v6 = vpack.i.bf16 %v1085_v44, %v1083_v28  ;;  %v1092_v28 = vrot.slane %v9459_v14, 1 }
 0x2fb   : > { %6519 = vrot.lane.b32.xlu1 %v9665_v31, %s7335_s10  ;;  %13908 = vst [vmem:[#allocation287_spill] sm:$0xff] %v9688_v27  ;;  %v1101_v31 = vrot.slane %v9508_v51, 1  ;;  %v1102_v27 = vrot.slane %v9511_v53, 1  ;;  %v9714_v19 = vsel %vm554_vm0, %v1077_v23, %v1079_v50  ;;  %v1091_v23 = vrot.slane %v9456_v11, 1 }
 0x2fc   : > { %6514 = vrot.lane.b32.xlu0 %v9675_v29, %s7335_s10  ;;  %13910 = vst [vmem:[#allocation289_spill] sm:$0xff] %v9702_v33  ;;  %v1096_v29 = vrot.slane %v9522_v1, 1  ;;  %v9731_v50 = vpack.i.bf16 %v9714_v19, %v9711_v13 }
 0x2fd   : > { %v9698_v56 = vpop.permute.xlu1 %6309  ;;  %13911 = vst [vmem:[#allocation290_spill] sm:$0xff] %v9711_v13  ;;  %v1103_v3 = vsel %vm554_vm0, %v1101_v31, %v1102_v27  ;;  %v1105_v44 = vsel %vm554_vm0, %v1102_v27, %v1104_v26  ;;  %v9747_v31 = vld [vmem:[%s9373_s16 + $0x130] sm:$0x3]  ;;  %v9761_v26 = vld [vmem:[%s9373_s16 + $0x118] sm:$0x3] }
 0x2fe   : > { %13909 = vst [vmem:[#allocation288_spill] sm:$0xff] %v9698_v56  ;;  %v1098_v13 = vsel %vm554_vm0, %v1096_v29, %v1097_v52  ;;  %v9755_v49 = vpack.i.bf16 %v1105_v44, %v1103_v3  ;;  %v1116_v52 = vrot.slane %v9553_v55, 1  ;;  %v1117_v29 = vrot.slane %v9556_v20, 1 }
 0x2ff   : > { %13912 = vst [vmem:[#allocation291_spill] sm:$0xff] %v9714_v19  ;;  %v1119_v63 = vrot.slane %v9747_v31, 1  ;;  %v9774_v3 = vpack.i.bf16 %v1100_v24, %v1098_v13  ;;  %v1106_v24 = vrot.slane %v9498_v5, 1  ;;  %v1107_v13 = vrot.slane %v9501_v36, 1 }
 0x300   : > { %v9717_v56 = vpop.permute.xlu0 %6304  ;;  %13914 = vst [vmem:[#allocation293_spill] sm:$0xff] %v9719_v6  ;;  %6539 = vrot.lane.b32.xlu2 %v9702_v33, %s7335_s10  ;;  %v1139_v33 = vrot.slane %v9550_v54, 2  ;;  %v9758_v54 = vsel %vm554_vm0, %v1091_v23, %v1092_v28  ;;  %v9777_v23 = vld [vmem:[%s9373_s16 + $0x100] sm:$0x3] }
 0x301   : > { %13913 = vst [vmem:[#allocation292_spill] sm:$0xff] %v9717_v56  ;;  %v1094_v56 = vrot.slane %v9722_v40, 1 }
 0x302   : > { %13915 = vst [vmem:[#allocation294_spill] sm:$0xff] %v9731_v50  ;;  %v9744_v19 = vpop.permute.xlu2 %6374 }
 0x303   : > { %6534 = vrot.lane.b32.xlu1 %v9719_v6, %s7335_s10  ;;  %13916 = vst [vmem:[#allocation295_spill] sm:$0xff] %v9744_v19  ;;  %v9764_v6 = vsel %vm635_vm1, %v1137_v0, %v1139_v33  ;;  %v9767_v19 = vsel %vm554_vm0, %v1092_v28, %v1094_v56  ;;  %v1111_v0 = vrot.slane %v9569_v62, 1  ;;  %v1112_v56 = vrot.slane %v9572_v46, 1 }
 0x304   : > { %6529 = vrot.lane.b32.xlu0 %v9731_v50, %s7335_s10  ;;  %13918 = vst [vmem:[#allocation297_spill] sm:$0xff] %v9755_v49  ;;  %v1114_v28 = vrot.slane %v9761_v26, 1  ;;  %v9788_v44 = vpack.i.bf16 %v9767_v19, %v9758_v54  ;;  %v9793_v33 = vsel %vm554_vm0, %v1116_v52, %v1117_v29  ;;  %v1109_v50 = vrot.slane %v9777_v23, 1 }
 0x305   : > { %v9753_v27 = vpop.permute.xlu1 %6324  ;;  %13919 = vst [vmem:[#allocation298_spill] sm:$0xff] %v9758_v54  ;;  %v9807_v54 = vsel %vm554_vm0, %v1111_v0, %v1112_v56 }
 0x306   : > { %13917 = vst [vmem:[#allocation296_spill] sm:$0xff] %v9753_v27  ;;  %v9810_v12 = vsel %vm554_vm0, %v1112_v56, %v1114_v28  ;;  %v9827_v0 = vsel %vm554_vm0, %v1107_v13, %v1109_v50  ;;  %v1131_v56 = vrot.slane %v9597_v32, 1  ;;  %v1132_v28 = vrot.slane %v9600_v30, 1 }
 0x307   : > { %13920 = vst [vmem:[#allocation299_spill] sm:$0xff] %v9767_v19  ;;  %v9804_v19 = vld [vmem:[%s9373_s16 + $0x178] sm:$0x3] }
 0x308   : > { %v9772_v27 = vpop.permute.xlu0 %6319  ;;  %13922 = vst [vmem:[#allocation301_spill] sm:$0xff] %v9774_v3  ;;  %6554 = vrot.lane.b32.xlu2 %v9755_v49, %s7335_s10 }
 0x309   : > { %13921 = vst [vmem:[#allocation300_spill] sm:$0xff] %v9772_v27  ;;  %v9796_v27 = vsel %vm554_vm0, %v1117_v29, %v1119_v63  ;;  %v9821_v63 = vsel %vm554_vm0, %v1106_v24, %v1107_v13  ;;  %v1126_v24 = vrot.slane %v9612_v8, 1 }
 0x30a   : > { %13923 = vst [vmem:[#allocation302_spill] sm:$0xff] %v9788_v44  ;;  %v9801_v49 = vpop.permute.xlu2 %6389  ;;  %v9818_v29 = vpack.i.bf16 %v9796_v27, %v9793_v33  ;;  %v9848_v13 = vpack.i.bf16 %v9827_v0, %v9821_v63 }
 0x30b   : > { %13924 = vst [vmem:[#allocation303_spill] sm:$0xff] %v9793_v33  ;;  %6549 = vrot.lane.b32.xlu1 %v9774_v3, %s7335_s10  ;;  %v9824_v3 = vld [vmem:[%s9373_s16 + $0x160] sm:$0x3]  ;;  %v1127_v33 = vrot.slane %v9615_v58, 1 }
 0x30c   : > { %13925 = vst [vmem:[#allocation304_spill] sm:$0xff] %v9796_v27  ;;  %6544 = vrot.lane.b32.xlu0 %v9788_v44, %s7335_s10  ;;  %v1134_v44 = vrot.slane %v9804_v19, 1  ;;  %v9839_v27 = vld [vmem:[%s9373_s16 + $0x148] sm:$0x3]  ;;  %v1129_v50 = vrot.slane %v9824_v3, 1 }
 0x30d   : > { %13926 = vst [vmem:[#allocation305_spill] sm:$0xff] %v9801_v49  ;;  %v9814_v52 = vpop.permute.xlu1 %6339 }
 0x30e   : > { %13927 = vst [vmem:[#allocation306_spill] sm:$0xff] %v9804_v19  ;;  %v9856_v48 = vsel %vm554_vm0, %v1132_v28, %v1134_v44  ;;  %v1124_v19 = vrot.slane %v9839_v27, 1 }
 0x30f   : > { %13928 = vst [vmem:[#allocation307_spill] sm:$0xff] %v9807_v54 }
 0x310   : > { %13929 = vst [vmem:[#allocation308_spill] sm:$0xff] %v9810_v12  ;;  %v9832_v49 = vpop.permute.xlu0 %6334  ;;  %6569 = vrot.lane.b32.xlu2 %v9818_v29, %s7335_s10 }
 0x311   : > { %13930 = vst [vmem:[#allocation309_spill] sm:$0xff] %v9814_v52  ;;  %v9836_v52 = vpack.i.bf16 %v9810_v12, %v9807_v54  ;;  %v1122_v12 = vrot.slane %v9543_v45, 1  ;;  %v9853_v54 = vsel %vm554_vm0, %v1131_v56, %v1132_v28 }
 0x312   : > { %13931 = vst [vmem:[#allocation310_spill] sm:$0xff] %v9818_v29  ;;  %v9861_v29 = vpop.permute.xlu2 %6404  ;;  %v9875_v44 = vpack.i.bf16 %v9856_v48, %v9853_v54 }
 0x313   : > { %13932 = vst [vmem:[#allocation311_spill] sm:$0xff] %v9821_v63  ;;  %6564 = vrot.lane.b32.xlu1 %v9836_v52, %s7335_s10  ;;  %v9864_v63 = vsel %vm554_vm0, %v1126_v24, %v1127_v33  ;;  %v1147_v24 = vrot.slane %v9441_v57, 2 }
 0x314   : > { %13933 = vst [vmem:[#allocation312_spill] sm:$0xff] %v9827_v0  ;;  %v9867_v0 = vsel %vm554_vm0, %v1127_v33, %v1129_v50  ;;  %6559 = vrot.lane.b32.xlu0 %v9848_v13, %s7335_s10  ;;  %v1149_v33 = vrot.slane %v9609_v15, 2 }
 0x315   : > { %13934 = vst [vmem:[#allocation313_spill] sm:$0xff] %v9832_v49  ;;  %v1121_v49 = vrot.slane %v9540_v22, 1  ;;  %v9871_v56 = vpop.permute.xlu1 %6354 }
 0x316   : > { %13935 = vst [vmem:[#allocation314_spill] sm:$0xff] %v9836_v52  ;;  %v1125_v52 = vsel %vm554_vm0, %v1122_v12, %v1124_v19  ;;  %v1150_v15 = vsel %vm635_vm1, %v1147_v24, %v1149_v33  ;;  %v966_v19 = vrot.slane %v9292_v42, 1  ;;  %v1164_v33 = vrot.slane %v9658_v16, 2 }
 0x317   : > { %13936 = vst [vmem:[#allocation315_spill] sm:$0xff] %v9848_v13  ;;  %v1123_v28 = vsel %vm554_vm0, %v1121_v49, %v1122_v12  ;;  %v9886_v13 = vpack.i.bf16 %v9867_v0, %v9864_v63  ;;  %v1144_v49 = vrot.slane %v9625_v10, 2  ;;  %v1157_v42 = vrot.slane %v9419_v17, 2 }
 0x318   : > { %13937 = vst [vmem:[#allocation316_spill] sm:$0xff] %v9853_v54  ;;  %v9882_v50 = vpop.permute.xlu0 %6349  ;;  %v1142_v54 = vrot.slane %v9386_v18, 2  ;;  %6584 = vrot.lane.b32.xlu2 %v9875_v44, %s7335_s10  ;;  %v9893_v12 = vpack.i.bf16 %v1125_v52, %v1123_v28  ;;  %v1161_v28 = vrot.slane %v9480_v35, 2  ;;  %v13945_v35 = vrot.slane %v9295_v38, 1 }
 0x319   : > { %13938 = vst [vmem:[#allocation317_spill] sm:$0xff] %v9856_v48  ;;  %v1154_v17 = vrot.slane %v9594_v2, 2  ;;  %v1176_v2 = vrot.slane %v9522_v1, 2 }
 0x31a   : > { %13939 = vst [vmem:[#allocation318_spill] sm:$0xff] %v9861_v29  ;;  %v1146_v29 = vrot.slane %v9438_v60, 2  ;;  %v9899_v57 = vpop.permute.xlu2 %6419  ;;  %v1145_v10 = vsel %vm635_vm1, %v1142_v54, %v1144_v49  ;;  %v1159_v49 = vrot.slane %v9668_v21, 2 }
 0x31b   : > { %13940 = vst [vmem:[#allocation319_spill] sm:$0xff] %v9864_v63  ;;  %6579 = vrot.lane.b32.xlu1 %v9886_v13, %s7335_s10 }
 0x31c   : > { %13941 = vst [vmem:[#allocation320_spill] sm:$0xff] %v9867_v0  ;;  %v1148_v60 = vsel %vm635_vm1, %v1146_v29, %v1147_v24  ;;  %6574 = vrot.lane.b32.xlu0 %v9893_v12, %s7335_s10  ;;  %v1162_v24 = vrot.slane %v9483_v25, 2  ;;  %v9927_v25 = vsel %vm554_vm0, %v966_v19, %v13945_v35  ;;  %v13946_v19 = vpack.i.bf16 %v9764_v6, %v9739_v47  ;;  %v13985_v0 = vld [vmem:[#allocation305_spill] sm:$0xff] }
 0x31d   : > { %13942 = vst [vmem:[#allocation321_spill] sm:$0xff] %v9871_v56  ;;  %v1141_v56 = vrot.slane %v9383_v43, 2  ;;  %v9907_v52 = vpop.permute.xlu1 %6369  ;;  %v9909_v29 = vpack.i.bf16 %v1150_v15, %v1148_v60  ;;  %v1151_v15 = vrot.slane %v9425_v37, 2  ;;  %v1171_v47 = vrot.slane %v9456_v11, 2 }
 0x31e   : > { %13943 = vst [vmem:[#allocation322_spill] sm:$0xff] %v9893_v12  ;;  %v1163_v60 = vsel %vm635_vm1, %v1161_v28, %v1162_v24  ;;  %v1165_v16 = vsel %vm635_vm1, %v1162_v24, %v1164_v33  ;;  %v1172_v6 = vrot.slane %v9459_v14, 2  ;;  %v6392_v63 = vunpack.i.h.bf16 %v13985_v0 }
 0x31f   : > { %v1143_v18 = vsel %vm635_vm1, %v1141_v56, %v1142_v54  ;;  %v1156_v54 = vrot.slane %v9416_v7, 2  ;;  %v1152_v7 = vrot.slane %v9428_v41, 2  ;;  %v9945_v37 = vpack.i.bf16 %v1165_v16, %v1163_v60 }
 0x320   : > { %v9914_v43 = vpop.permute.xlu0 %6364  ;;  %v9916_v56 = vpack.i.bf16 %v1145_v10, %v1143_v18  ;;  %6599 = vrot.lane.b32.xlu2 %v9909_v29, %s7336_s11  ;;  %v1160_v10 = vsel %vm635_vm1, %v1157_v42, %v1159_v49  ;;  %v1177_v41 = vrot.slane %v9525_v4, 2  ;;  %v1174_v60 = vrot.slane %v9722_v40, 2 }
 0x321   : > { %v1158_v18 = vsel %vm635_vm1, %v1156_v54, %v1157_v42  ;;  %13947 = vst [vmem:[#allocation324_spill] sm:$0xff] %v9945_v37  ;;  %v1153_v24 = vsel %vm635_vm1, %v1151_v15, %v1152_v7  ;;  %v1155_v33 = vsel %vm635_vm1, %v1152_v7, %v1154_v17  ;;  %v1179_v54 = vrot.slane %v9707_v61, 2 }
 0x322   : > { %13944 = vst [vmem:[#allocation323_spill] sm:$0xff] %v9916_v56  ;;  %v9935_v21 = vpop.permute.xlu2 %6434  ;;  %v9954_v49 = vpack.i.bf16 %v1160_v10, %v1158_v18  ;;  %v9961_v1 = vpack.i.bf16 %v1155_v33, %v1153_v24  ;;  %v1178_v4 = vsel %vm635_vm1, %v1176_v2, %v1177_v41  ;;  %v1166_v61 = vrot.slane %v9466_v59, 2 }
 0x323   : > { %6594 = vrot.lane.b32.xlu1 %v9916_v56, %s7336_s11  ;;  %v1180_v35 = vsel %vm635_vm1, %v1177_v41, %v1179_v54  ;;  %v1167_v16 = vrot.slane %v9469_v39, 2  ;;  %v1169_v15 = vrot.slane %v9645_v34, 2  ;;  %v1173_v11 = vsel %vm635_vm1, %v1171_v47, %v1172_v6  ;;  %v14008_v56 = vld [vmem:[#allocation283_spill] sm:$0xff] }
 0x324   : > { %6589 = vrot.lane.b32.xlu0 %v13946_v19, %s7336_s11  ;;  %13948 = vst [vmem:[#allocation325_spill] sm:$0xff] %v9954_v49  ;;  %v1175_v40 = vsel %vm635_vm1, %v1172_v6, %v1174_v60  ;;  %v9978_v17 = vpack.i.bf16 %v1180_v35, %v1178_v4  ;;  %v1191_v39 = vrot.slane %v9569_v62, 2  ;;  %v1192_v34 = vrot.slane %v9572_v46, 2 }
 0x325   : > { %v9943_v28 = vpop.permute.xlu1 %6384  ;;  %v1168_v59 = vsel %vm635_vm1, %v1166_v61, %v1167_v16  ;;  %v1170_v18 = vsel %vm635_vm1, %v1167_v16, %v1169_v15  ;;  %v1194_v10 = vrot.slane %v9761_v26, 2  ;;  %v9987_v2 = vpack.i.bf16 %v1175_v40, %v1173_v11 }
 0x326   : > { %13949 = vst [vmem:[#allocation326_spill] sm:$0xff] %v9978_v17  ;;  %v1186_v41 = vrot.slane %v9498_v5, 2  ;;  %v1187_v24 = vrot.slane %v9501_v36, 2  ;;  %v1189_v33 = vrot.slane %v9777_v23, 2  ;;  %v9994_v46 = vpack.i.bf16 %v1170_v18, %v1168_v59 }
 0x327   : > { %13950 = vst [vmem:[#allocation327_spill] sm:$0xff] %v9987_v2  ;;  %v1193_v62 = vsel %vm635_vm1, %v1191_v39, %v1192_v34  ;;  %v1195_v54 = vsel %vm635_vm1, %v1192_v34, %v1194_v10  ;;  %v1181_v26 = vrot.slane %v9508_v51, 2  ;;  %v1182_v47 = vrot.slane %v9511_v53, 2 }
 0x328   : > { %v9952_v42 = vpop.permute.xlu0 %6379  ;;  %6614 = vrot.lane.b32.xlu2 %v9945_v37, %s7336_s11  ;;  %13951 = vst [vmem:[#allocation328_spill] sm:$0xff] %v9994_v46  ;;  %v1184_v6 = vrot.slane %v9691_v9, 2  ;;  %v1188_v5 = vsel %vm635_vm1, %v1186_v41, %v1187_v24  ;;  %v1190_v23 = vsel %vm635_vm1, %v1187_v24, %v1189_v33  ;;  %v10011_v4 = vpack.i.bf16 %v1195_v54, %v1193_v62 }
 0x329   : > { %v1206_v53 = vrot.slane %v9612_v8, 2  ;;  %v1207_v51 = vrot.slane %v9615_v58, 2  ;;  %v1183_v9 = vsel %vm635_vm1, %v1181_v26, %v1182_v47  ;;  %v1209_v61 = vrot.slane %v9824_v3, 2  ;;  %v13959_v26 = vld [vmem:[#allocation306_spill] sm:$0xff] }
 0x32a   : > { %v9970_v14 = vpop.permute.xlu2 %6449  ;;  %13952 = vst [vmem:[#allocation329_spill] sm:$0xff] %v10011_v4  ;;  %v1185_v35 = vsel %vm635_vm1, %v1182_v47, %v1184_v6  ;;  %v10020_v15 = vpack.i.bf16 %v1190_v23, %v1188_v5  ;;  %v1201_v11 = vrot.slane %v9540_v22, 2  ;;  %v1202_v40 = vrot.slane %v9543_v45, 2 }
 0x32b   : > { %6609 = vrot.lane.b32.xlu1 %v9954_v49, %s7336_s11  ;;  %v1204_v39 = vrot.slane %v9839_v27, 2  ;;  %v10027_v8 = vpack.i.bf16 %v1185_v35, %v1183_v9  ;;  %v1208_v58 = vsel %vm635_vm1, %v1206_v53, %v1207_v51  ;;  %v1210_v34 = vsel %vm635_vm1, %v1207_v51, %v1209_v61  ;;  %v13962_v9 = vld [vmem:[#allocation248_spill] sm:$0xff] }
 0x32c   : > { %6604 = vrot.lane.b32.xlu0 %v9961_v1, %s7336_s11  ;;  %13954 = vst [vmem:[#allocation331_spill] sm:$0xff] %v10020_v15  ;;  %v1196_v3 = vrot.slane %v9553_v55, 2  ;;  %v1197_v59 = vrot.slane %v9556_v20, 2  ;;  %v1199_v18 = vrot.slane %v9747_v31, 2  ;;  %v1203_v22 = vsel %vm635_vm1, %v1201_v11, %v1202_v40 }
 0x32d   : > { %v9976_v7 = vpop.permute.xlu1 %6399  ;;  %13955 = vst [vmem:[#allocation332_spill] sm:$0xff] %v10027_v8  ;;  %v1205_v27 = vsel %vm635_vm1, %v1202_v40, %v1204_v39  ;;  %v10044_v41 = vpack.i.bf16 %v1210_v34, %v1208_v58  ;;  %v1211_v62 = vrot.slane %v9597_v32, 2  ;;  %v1212_v54 = vrot.slane %v9600_v30, 2  ;;  %v13960_v30 = vld [vmem:[#allocation255_spill] sm:$0xff]  ;;  %v13963_v40 = vld [vmem:[#allocation261_spill] sm:$0xff]  ;;  %v13964_v39 = vld [vmem:[#allocation252_spill] sm:$0xff] }
 0x32e   : > { %v1198_v20 = vsel %vm635_vm1, %v1196_v3, %v1197_v59  ;;  %v1200_v55 = vsel %vm635_vm1, %v1197_v59, %v1199_v18  ;;  %v10048_v24 = vpack.i.bf16 %v1205_v27, %v1203_v22  ;;  %v1214_v47 = vrot.slane %v13959_v26, 2  ;;  %v13965_v34 = vld [vmem:[#allocation254_spill] sm:$0xff]  ;;  %v13967_v18 = vld [vmem:[#allocation267_spill] sm:$0xff] }
 0x32f   : > { %13956 = vst [vmem:[#allocation333_spill] sm:$0xff] %v10044_v41  ;;  %v10052_v33 = vpack.i.bf16 %v1200_v55, %v1198_v20  ;;  %v1213_v23 = vsel %vm635_vm1, %v1211_v62, %v1212_v54  ;;  %v13968_v22 = vld [vmem:[#allocation258_spill] sm:$0xff]  ;;  %v13970_v20 = vld [vmem:[#allocation260_spill] sm:$0xff] }
 0x330   : > { %v9985_v19 = vpop.permute.xlu0 %6394  ;;  %6629 = vrot.lane.b32.xlu2 %v9978_v17, %s7336_s11  ;;  %13957 = vst [vmem:[#allocation334_spill] sm:$0xff] %v10048_v24  ;;  %v1215_v53 = vsel %vm635_vm1, %v1212_v54, %v1214_v47  ;;  %v13972_v54 = vld [vmem:[#allocation245_spill] sm:$0xff] }
 0x331   : > { %13958 = vst [vmem:[#allocation335_spill] sm:$0xff] %v10052_v33  ;;  %v10071_v32 = vpack.i.bf16 %v1215_v53, %v1213_v23  ;;  %v969_v26 = vrot.slane %v13972_v54, 1  ;;  %v13973_v47 = vld [vmem:[#allocation273_spill] sm:$0xff] }
 0x332   : > { %v10003_v36 = vpop.permute.xlu2 %6464 }
 0x333   : > { %6624 = vrot.lane.b32.xlu1 %v9987_v2, %s7336_s11  ;;  %13961 = vst [vmem:[#allocation306_spill] sm:$0xff] %v10071_v32 }
 0x334   : > { %6619 = vrot.lane.b32.xlu0 %v9994_v46, %s7336_s11 }
 0x335   : > { %v10009_v60 = vpop.permute.xlu1 %6414 }
 0x338   : > { %v10018_v16 = vpop.permute.xlu0 %6409  ;;  %6644 = vrot.lane.b32.xlu2 %v10011_v4, %s7336_s11 }
 0x339   : > { %13953 = vst [vmem:[#allocation330_spill] sm:$0xff] %v10018_v16 }
 0x33a   : > { %v10036_v45 = vpop.permute.xlu2 %6479 }
 0x33b   : > { %6639 = vrot.lane.b32.xlu1 %v10020_v15, %s7336_s11  ;;  %v13989_v15 = vld [vmem:[#allocation140_spill] sm:$0xff] }
 0x33c   : > { %6634 = vrot.lane.b32.xlu0 %v10027_v8, %s7336_s11  ;;  %v6351_v8 = vunpack.i.l.bf16 %v9882_v50 }
 0x33d   : > { %v10042_v10 = vpop.permute.xlu1 %6429 }
 0x340   : > { %v6425_v31 = vpop.permute.xlu0 %6424  ;;  %6659 = vrot.lane.b32.xlu2 %v10044_v41, %s7336_s11  ;;  %v13987_v41 = vld [vmem:[#allocation128_spill] sm:$0xff] }
 0x341   : > { %v6427_v23 = vunpack.i.h.bf16 %v6425_v31  ;;  %v6426_v53 = vunpack.i.l.bf16 %v6425_v31 }
 0x342   : > { %v10059_v6 = vpop.permute.xlu2 %6494 }
 0x343   : > { %6654 = vrot.lane.b32.xlu1 %v10048_v24, %s7336_s11  ;;  %v4167_v54 = vsel %vm2682_vm2, %v9927_v25, %v6426_v53  ;;  %v13981_v25 = vld [vmem:[#allocation272_spill] sm:$0xff] }
 0x344   : > { %6649 = vrot.lane.b32.xlu0 %v10052_v33, %s7336_s11  ;;  %v13986_v24 = vld [vmem:[#allocation284_spill] sm:$0xff]  ;;  %v13990_v33 = vld [vmem:[#allocation139_spill] sm:$0xff] }
 0x345   : > { %v10063_v5 = vpop.permute.xlu1 %6444 }
 0x348   : > { %v10067_v51 = vpop.permute.xlu0 %6439  ;;  %6674 = vrot.lane.b32.xlu2 %v13960_v30, %s7337_s12  ;;  %v13974_v30 = vld [vmem:[#allocation264_spill] sm:$0xff] }
 0x34a   : > { %v10075_v35 = vpop.permute.xlu2 %6509 }
 0x34b   : > { %6669 = vrot.lane.b32.xlu1 %v13962_v9, %s7337_s12 }
 0x34c   : > { %6664 = vrot.lane.b32.xlu0 %v10071_v32, %s7336_s11  ;;  %v13988_v32 = vld [vmem:[#allocation127_spill] sm:$0xff] }
 0x34d   : > { %v10079_v61 = vpop.permute.xlu1 %6459 }
 0x350   : > { %v10081_v11 = vpop.permute.xlu0 %6454  ;;  %6689 = vrot.lane.b32.xlu2 %v13963_v40, %s7337_s12  ;;  %v13976_v40 = vrot.slane %v9295_v38, 1 }
 0x352   : > { %v10087_v58 = vpop.permute.xlu2 %6524 }
 0x353   : > { %6684 = vrot.lane.b32.xlu1 %v13964_v39, %s7337_s12  ;;  %v970_v39 = vsel %vm554_vm0, %v13976_v40, %v969_v26  ;;  %v13979_v40 = vld [vmem:[#allocation270_spill] sm:$0xff] }
 0x354   : > { %6679 = vrot.lane.b32.xlu0 %v13965_v34, %s7337_s12  ;;  %v13977_v34 = vld [vmem:[#allocation266_spill] sm:$0xff]  ;;  %v4168_v31 = vsel %vm2682_vm2, %v970_v39, %v6427_v23  ;;  %v10136_v23 = vld [vmem:[%s9373_s16 + $0x188] sm:$0xff] }
 0x355   : > { %v10091_v3 = vpop.permute.xlu1 %6474  ;;  %v13982_v39 = vld [vmem:[#allocation287_spill] sm:$0xff] }
 0x356   : > { %13966 = vst [vmem:[#allocation255_spill] sm:$0xff] %v10091_v3 }
 0x358   : > { %v10093_v59 = vpop.permute.xlu0 %6469  ;;  %6704 = vrot.lane.b32.xlu2 %v13967_v18, %s7337_s12 }
 0x35a   : > { %v10099_v27 = vpop.permute.xlu2 %6539 }
 0x35b   : > { %6699 = vrot.lane.b32.xlu1 %v13968_v22, %s7337_s12  ;;  %13969 = vst [vmem:[#allocation248_spill] sm:$0xff] %v10099_v27  ;;  %v6382_v27 = vunpack.i.h.bf16 %v9952_v42 }
 0x35c   : > { %6694 = vrot.lane.b32.xlu0 %v13970_v20, %s7337_s12 }
 0x35d   : > { %v10103_v55 = vpop.permute.xlu1 %6489 }
 0x35e   : > { %13971 = vst [vmem:[#allocation261_spill] sm:$0xff] %v10103_v55 }
 0x360   : > { %v10105_v62 = vpop.permute.xlu0 %6484  ;;  %6719 = vrot.lane.b32.xlu2 %v13973_v47, %s7337_s12 }
 0x362   : > { %v10112_v9 = vpop.permute.xlu2 %6554 }
 0x363   : > { %6714 = vrot.lane.b32.xlu1 %v13974_v30, %s7337_s12  ;;  %13975 = vst [vmem:[#allocation252_spill] sm:$0xff] %v10112_v9  ;;  %v13978_v30 = vld [vmem:[#allocation278_spill] sm:$0xff] }
 0x364   : > { %6709 = vrot.lane.b32.xlu0 %v13977_v34, %s7337_s12 }
 0x365   : > { %v6505_v18 = vpop.permute.xlu1 %6504 }
 0x366   : > { %v6507_v22 = vunpack.i.h.bf16 %v6505_v18  ;;  %v6506_v20 = vunpack.i.l.bf16 %v6505_v18  ;;  %v10133_v18 = vld [vmem:[%s9373_s16 + $0x180] sm:$0xff] }
 0x367   : > { %v10150_v48 = vpack.i.bf16 %v10136_v23, %v10133_v18 }
 0x368   : > { %v10122_v47 = vpop.permute.xlu0 %6499  ;;  %v4199_v38 = vsel %vm2715_vm3, %v4167_v54, %v6506_v20  ;;  %v4200_v26 = vsel %vm2715_vm3, %v4168_v31, %v6507_v22  ;;  %6734 = vrot.lane.b32.xlu2 %v13978_v30, %s7337_s12  ;;  %v6362_v20 = vunpack.i.h.bf16 %v13982_v39  ;;  %v6361_v22 = vunpack.i.l.bf16 %v13982_v39  ;;  %v13983_v31 = vld [vmem:[#allocation295_spill] sm:$0xff] }
 0x369   : > { %v6377_v54 = vunpack.i.h.bf16 %v13983_v31  ;;  %v6376_v30 = vunpack.i.l.bf16 %v13983_v31  ;;  %13984 = vst [vmem:[#allocation267_spill] sm:$0xff] %v10150_v48 }
 0x36a   : > { %v10130_v34 = vpop.permute.xlu2 %6569  ;;  %v4142_v39 = vsel %vm2682_vm2, %v13987_v41, %v6362_v20  ;;  %v4141_v31 = vsel %vm2682_vm2, %v13988_v32, %v6361_v22  ;;  %v6352_v20 = vunpack.i.h.bf16 %v9882_v50  ;;  %v13999_v50 = vld [vmem:[#allocation162_spill] sm:$0xff] }
 0x36b   : > { %6729 = vrot.lane.b32.xlu1 %v13979_v40, %s7337_s12  ;;  %13980 = vst [vmem:[#allocation254_spill] sm:$0xff] %v10130_v34  ;;  %v10162_v4 = vsel %vm2682_vm2, %v13989_v15, %v6377_v54  ;;  %v10166_v2 = vsel %vm2682_vm2, %v13990_v33, %v6376_v30  ;;  %v13991_v34 = vld [vmem:[#allocation318_spill] sm:$0xff]  ;;  %v13993_v54 = vld [vmem:[#allocation152_spill] sm:$0xff]  ;;  %v13994_v30 = vld [vmem:[#allocation151_spill] sm:$0xff] }
 0x36c   : > { %6724 = vrot.lane.b32.xlu0 %v13981_v25, %s7337_s12  ;;  %v6391_v25 = vunpack.i.l.bf16 %v13985_v0  ;;  %v6407_v0 = vunpack.i.h.bf16 %v13991_v34  ;;  %v6406_v17 = vunpack.i.l.bf16 %v13991_v34  ;;  %v10177_v33 = vsel %vm2682_vm2, %v13993_v54, %v6392_v63  ;;  %v13998_v54 = vld [vmem:[#allocation163_spill] sm:$0xff] }
 0x36d   : > { %v10140_v53 = vpop.permute.xlu1 %6519 }
 0x36e   : > { %v10181_v34 = vsel %vm2682_vm2, %v13994_v30, %v6391_v25  ;;  %v10198_v25 = vsel %vm2682_vm2, %v13998_v54, %v6407_v0  ;;  %v10202_v30 = vsel %vm2682_vm2, %v13999_v50, %v6406_v17  ;;  %v6441_v0 = vunpack.i.l.bf16 %v10067_v51  ;;  %v14003_v54 = vld [vmem:[#allocation118_spill] sm:$0xff] }
 0x36f   : > { %v10218_v17 = vsel %vm2682_vm2, %v14003_v54, %v6351_v8  ;;  %v6522_v50 = vunpack.i.h.bf16 %v10140_v53  ;;  %v6371_v8 = vunpack.i.l.bf16 %v9907_v52  ;;  %v6367_v54 = vunpack.i.h.bf16 %v9914_v43 }
 0x370   : > { %v10146_v40 = vpop.permute.xlu0 %6514  ;;  %6749 = vrot.lane.b32.xlu2 %v13986_v24, %s7338_s13  ;;  %v13992_v24 = vld [vmem:[#allocation321_spill] sm:$0xff] }
 0x371   : > { %v6357_v55 = vunpack.i.h.bf16 %v13992_v24  ;;  %v6356_v32 = vunpack.i.l.bf16 %v13992_v24  ;;  %v6422_v24 = vunpack.i.h.bf16 %v9899_v57 }
 0x372   : > { %v6585_v41 = vpop.permute.xlu2 %6584 }
 0x373   : > { %6744 = vrot.lane.b32.xlu1 %v10150_v48, %s7337_s12  ;;  %v6587_v15 = vunpack.i.h.bf16 %v6585_v41  ;;  %v6586_v22 = vunpack.i.l.bf16 %v6585_v41  ;;  %v13995_v48 = vld [vmem:[#allocation277_spill] sm:$0xff]  ;;  %v6421_v41 = vunpack.i.l.bf16 %v9899_v57  ;;  %v14001_v57 = vld [vmem:[#allocation131_spill] sm:$0xff] }
 0x374   : > { %6739 = vrot.lane.b32.xlu0 %v13995_v48, %s7337_s12  ;;  %v14000_v48 = vld [vmem:[#allocation132_spill] sm:$0xff] }
 0x375   : > { %v10186_v49 = vpop.permute.xlu1 %6534  ;;  %v10191_v9 = vsel %vm2748_vm4, %v4199_v38, %v6586_v22  ;;  %v10194_v63 = vsel %vm2748_vm4, %v4200_v26, %v6587_v15  ;;  %v4140_v37 = vsel %vm2682_vm2, %v14000_v48, %v6357_v55  ;;  %v4139_v38 = vsel %vm2682_vm2, %v14001_v57, %v6356_v32  ;;  %v14002_v22 = vld [vmem:[#allocation119_spill] sm:$0xff]  ;;  %v14004_v48 = vld [vmem:[#allocation294_spill] sm:$0xff] }
 0x376   : > { %13996 = vst [vmem:[#allocation258_spill] sm:$0xff] %v10191_v9  ;;  %v10212_v26 = vsel %vm2682_vm2, %v14002_v22, %v6352_v20  ;;  %v6442_v15 = vunpack.i.h.bf16 %v10067_v51  ;;  %v6521_v55 = vunpack.i.l.bf16 %v10140_v53  ;;  %v14005_v32 = vld [vmem:[#allocation198_spill] sm:$0xff]  ;;  %v14006_v20 = vld [vmem:[#allocation197_spill] sm:$0xff]  ;;  %v6372_v51 = vunpack.i.h.bf16 %v9907_v52 }
 0x377   : > { %13997 = vst [vmem:[#allocation260_spill] sm:$0xff] %v10194_v63  ;;  %v10226_v57 = vsel %vm2682_vm2, %v14005_v32, %v6422_v24  ;;  %v10230_v22 = vsel %vm2682_vm2, %v14006_v20, %v6421_v41  ;;  %v6366_v63 = vunpack.i.l.bf16 %v9914_v43  ;;  %v6437_v53 = vunpack.i.h.bf16 %v9935_v21  ;;  %v14007_v9 = vld [vmem:[#allocation281_spill] sm:$0xff] }
 0x378   : > { %v10206_v16 = vpop.permute.xlu0 %6529  ;;  %6764 = vrot.lane.b32.xlu2 %v14004_v48, %s7338_s13  ;;  %v6436_v48 = vunpack.i.l.bf16 %v9935_v21  ;;  %v4174_v32 = vsel %vm2715_vm3, %v4142_v39, %v6442_v15  ;;  %v4173_v41 = vsel %vm2715_vm3, %v4141_v31, %v6441_v0  ;;  %v6387_v52 = vunpack.i.h.bf16 %v9943_v28  ;;  %v14010_v15 = vld [vmem:[#allocation144_spill] sm:$0xff] }
 0x379   : > { %v4205_v3 = vsel %vm2748_vm4, %v4173_v41, %v6521_v55  ;;  %v4206_v43 = vsel %vm2748_vm4, %v4174_v32, %v6522_v50  ;;  %v4146_v0 = vsel %vm2682_vm2, %v14010_v15, %v6372_v51  ;;  %v14011_v55 = vld [vmem:[#allocation143_spill] sm:$0xff]  ;;  %v6456_v51 = vunpack.i.l.bf16 %v10081_v11 }
 0x37a   : > { %v6600_v24 = vpop.permute.xlu2 %6599  ;;  %v4145_v50 = vsel %vm2682_vm2, %v14011_v55, %v6371_v8  ;;  %v6537_v8 = vunpack.i.h.bf16 %v10186_v49  ;;  %v10282_v15 = vsel %vm2715_vm3, %v4140_v37, %v6437_v53  ;;  %v6416_v37 = vunpack.i.l.bf16 %v10009_v60  ;;  %v14018_v53 = vld [vmem:[#allocation289_spill] sm:$0xff] }
 0x37b   : > { %6759 = vrot.lane.b32.xlu1 %v14007_v9, %s7338_s13  ;;  %v6602_v20 = vunpack.i.h.bf16 %v6600_v24  ;;  %v6601_v46 = vunpack.i.l.bf16 %v6600_v24  ;;  %v6386_v9 = vunpack.i.l.bf16 %v9943_v28  ;;  %v14012_v24 = vld [vmem:[#allocation125_spill] sm:$0xff]  ;;  %v14013_v28 = vld [vmem:[#allocation124_spill] sm:$0xff] }
 0x37c   : > { %6754 = vrot.lane.b32.xlu0 %v14008_v56, %s7338_s13  ;;  %v10263_v32 = vsel %vm2682_vm2, %v14012_v24, %v6367_v54  ;;  %v10269_v56 = vsel %vm2682_vm2, %v14013_v28, %v6366_v63  ;;  %v6536_v54 = vunpack.i.l.bf16 %v10186_v49  ;;  %v14015_v63 = vld [vmem:[#allocation156_spill] sm:$0xff]  ;;  %v6452_v49 = vunpack.i.h.bf16 %v9970_v14 }
 0x37d   : > { %v10247_v21 = vpop.permute.xlu1 %6549  ;;  %v10252_v39 = vsel %vm2781_vm5, %v4205_v3, %v6601_v46  ;;  %v10255_v31 = vsel %vm2781_vm5, %v4206_v43, %v6602_v20  ;;  %v10272_v46 = vsel %vm2715_vm3, %v4139_v38, %v6436_v48  ;;  %v6457_v3 = vunpack.i.h.bf16 %v10081_v11  ;;  %v14014_v43 = vld [vmem:[#allocation302_spill] sm:$0xff]  ;;  %v14016_v48 = vld [vmem:[#allocation155_spill] sm:$0xff]  ;;  %v14017_v11 = vld [vmem:[#allocation137_spill] sm:$0xff] }
 0x37e   : > { %14009 = vst [vmem:[#allocation245_spill] sm:$0xff] %v10255_v31  ;;  %v6381_v20 = vunpack.i.l.bf16 %v9952_v42  ;;  %v10286_v38 = vsel %vm2682_vm2, %v14015_v63, %v6387_v52  ;;  %v10290_v55 = vsel %vm2682_vm2, %v14016_v48, %v6386_v9  ;;  %v10294_v42 = vsel %vm2682_vm2, %v14017_v11, %v6382_v27  ;;  %v14019_v48 = vld [vmem:[#allocation136_spill] sm:$0xff]  ;;  %v14020_v31 = vld [vmem:[#allocation293_spill] sm:$0xff] }
 0x37f   : > { %v6451_v24 = vunpack.i.l.bf16 %v9970_v14  ;;  %v6417_v28 = vunpack.i.h.bf16 %v10009_v60  ;;  %v4180_v9 = vsel %vm2715_vm3, %v10162_v4, %v6457_v3  ;;  %v6496_v4 = vunpack.i.l.bf16 %v10059_v6 }
 0x380   : > { %v10265_v41 = vpop.permute.xlu0 %6544  ;;  %6779 = vrot.lane.b32.xlu2 %v14014_v43, %s7338_s13  ;;  %v4179_v43 = vsel %vm2715_vm3, %v10166_v2, %v6456_v51  ;;  %v10308_v11 = vsel %vm2682_vm2, %v14019_v48, %v6381_v20  ;;  %v4212_v60 = vsel %vm2748_vm4, %v4180_v9, %v6537_v8  ;;  %v6472_v3 = vunpack.i.h.bf16 %v10093_v59  ;;  %v14026_v9 = vld [vmem:[#allocation297_spill] sm:$0xff] }
 0x381   : > { %v4211_v14 = vsel %vm2748_vm4, %v4179_v43, %v6536_v54  ;;  %v10325_v20 = vsel %vm2715_vm3, %v4145_v50, %v6451_v24  ;;  %v10328_v8 = vsel %vm2715_vm3, %v4146_v0, %v6452_v49  ;;  %v6471_v54 = vunpack.i.l.bf16 %v10093_v59  ;;  %v14025_v59 = vld [vmem:[#allocation315_spill] sm:$0xff] }
 0x382   : > { %v6615_v52 = vpop.permute.xlu2 %6614  ;;  %v6552_v24 = vunpack.i.h.bf16 %v10247_v21  ;;  %v6551_v0 = vunpack.i.l.bf16 %v10247_v21  ;;  %v6431_v49 = vunpack.i.l.bf16 %v10042_v10  ;;  %v6502_v21 = vunpack.i.h.bf16 %v10122_v47 }
 0x383   : > { %6774 = vrot.lane.b32.xlu1 %v14018_v53, %s7338_s13  ;;  %v6617_v27 = vunpack.i.h.bf16 %v6615_v52  ;;  %v6616_v63 = vunpack.i.l.bf16 %v6615_v52 }
 0x384   : > { %6769 = vrot.lane.b32.xlu0 %v14020_v31, %s7338_s13  ;;  %v1220_v31 = vrot.slane %v10136_v23, 1 }
 0x385   : > { %v10314_v53 = vpop.permute.xlu1 %6564  ;;  %v10319_v2 = vsel %vm2781_vm5, %v4211_v14, %v6616_v63  ;;  %v10322_v51 = vsel %vm2781_vm5, %v4212_v60, %v6617_v27  ;;  %v14023_v63 = vld [vmem:[#allocation171_spill] sm:$0xff]  ;;  %v14024_v27 = vld [vmem:[#allocation170_spill] sm:$0xff]  ;;  %v6497_v60 = vunpack.i.h.bf16 %v10059_v6 }
 0x386   : > { %14021 = vst [vmem:[#allocation273_spill] sm:$0xff] %v10319_v2  ;;  %v4164_v48 = vsel %vm2682_vm2, %v14023_v63, %v6417_v28  ;;  %v4163_v14 = vsel %vm2682_vm2, %v14024_v27, %v6416_v37  ;;  %v4186_v28 = vsel %vm2715_vm3, %v10177_v33, %v6472_v3  ;;  %v10350_v63 = vld [vmem:[%s9373_s16 + $0x190] sm:$0x3]  ;;  %v4185_v37 = vsel %vm2715_vm3, %v10181_v34, %v6471_v54  ;;  %v14027_v34 = vld [vmem:[#allocation301_spill] sm:$0xff] }
 0x387   : > { %14022 = vst [vmem:[#allocation264_spill] sm:$0xff] %v10322_v51  ;;  %v4195_v43 = vsel %vm2715_vm3, %v4163_v14, %v6496_v4  ;;  %v6487_v27 = vunpack.i.h.bf16 %v10105_v62  ;;  %v1219_v14 = vrot.slane %v10133_v18, 1  ;;  %v4217_v33 = vsel %vm2748_vm4, %v4185_v37, %v6551_v0 }
 0x388   : > { %v10331_v52 = vpop.permute.xlu0 %6559  ;;  %6794 = vrot.lane.b32.xlu2 %v14025_v59, %s7338_s13  ;;  %v6501_v59 = vunpack.i.l.bf16 %v10122_v47  ;;  %v4218_v3 = vsel %vm2748_vm4, %v4186_v28, %v6552_v24  ;;  %v1222_v47 = vrot.slane %v10350_v63, 1  ;;  %v6486_v0 = vunpack.i.l.bf16 %v10105_v62 }
 0x389   : > { %v4198_v24 = vsel %vm2715_vm3, %v10226_v57, %v6502_v21  ;;  %v6566_v62 = vunpack.i.l.bf16 %v10314_v53 }
 0x38a   : > { %v6630_v6 = vpop.permute.xlu2 %6629  ;;  %v4197_v28 = vsel %vm2715_vm3, %v10230_v22, %v6501_v59  ;;  %v10398_v21 = vsel %vm554_vm0, %v1220_v31, %v1222_v47  ;;  %v6516_v59 = vunpack.i.l.bf16 %v10146_v40 }
 0x38b   : > { %6789 = vrot.lane.b32.xlu1 %v14026_v9, %s7338_s13  ;;  %v6632_v50 = vunpack.i.h.bf16 %v6630_v6  ;;  %v6631_v4 = vunpack.i.l.bf16 %v6630_v6 }
 0x38c   : > { %6784 = vrot.lane.b32.xlu0 %v14027_v34, %s7338_s13 }
 0x38d   : > { %v6580_v54 = vpop.permute.xlu1 %6579  ;;  %v10367_v51 = vsel %vm2781_vm5, %v4217_v33, %v6631_v4  ;;  %v10370_v9 = vsel %vm2781_vm5, %v4218_v3, %v6632_v50  ;;  %v4196_v3 = vsel %vm2715_vm3, %v4164_v48, %v6497_v60  ;;  %v4169_v48 = vsel %vm2715_vm3, %v10218_v17, %v6431_v49 }
 0x38e   : > { %v6582_v6 = vunpack.i.h.bf16 %v6580_v54  ;;  %v6581_v2 = vunpack.i.l.bf16 %v6580_v54  ;;  %v6567_v54 = vunpack.i.h.bf16 %v10314_v53  ;;  %v6512_v53 = vunpack.i.h.bf16 %v10075_v35 }
 0x38f   : > { %v6517_v60 = vunpack.i.h.bf16 %v10146_v40  ;;  %v6511_v17 = vunpack.i.l.bf16 %v10075_v35  ;;  %v14029_v40 = vld [vmem:[#allocation314_spill] sm:$0xff]  ;;  %v14030_v35 = vunpack.i.h.bf16 %v10042_v10  ;;  %v6446_v10 = vunpack.i.l.bf16 %v10063_v5 }
 0x390   : > { %v6575_v37 = vpop.permute.xlu0 %6574  ;;  %v10378_v34 = vsel %vm2748_vm4, %v4197_v28, %v6581_v2  ;;  %v10381_v4 = vsel %vm2748_vm4, %v4198_v24, %v6582_v6  ;;  %6809 = vrot.lane.b32.xlu2 %v9893_v12, %s7338_s13  ;;  %v10395_v2 = vsel %vm554_vm0, %v1219_v14, %v1220_v31  ;;  %v14028_v6 = vld [vmem:[#allocation310_spill] sm:$0xff]  ;;  %v4192_v14 = vsel %vm2715_vm3, %v10198_v25, %v6487_v27 }
 0x391   : > { %v6577_v33 = vunpack.i.h.bf16 %v6575_v37  ;;  %v6576_v50 = vunpack.i.l.bf16 %v6575_v37  ;;  %v4191_v31 = vsel %vm2715_vm3, %v10202_v30, %v6486_v0  ;;  %v4224_v28 = vsel %vm2748_vm4, %v4192_v14, %v6567_v54 }
 0x392   : > { %v4223_v49 = vsel %vm2748_vm4, %v4191_v31, %v6566_v62  ;;  %v4203_v54 = vsel %vm2748_vm4, %v10272_v46, %v6516_v59  ;;  %v14032_v46 = vld [vmem:[#allocation166_spill] sm:$0xff]  ;;  %v14033_v59 = vunpack.i.l.bf16 %v9976_v7 }
 0x393   : > { %v10389_v57 = vsel %vm2748_vm4, %v4196_v3, %v6577_v33  ;;  %v10392_v22 = vsel %vm2748_vm4, %v4195_v43, %v6576_v50  ;;  %6804 = vrot.lane.b32.xlu1 %v14028_v6, %s7338_s13  ;;  %v6645_v43 = vpop.permute.xlu2 %6644  ;;  %v6823_v33 = vpack.i.bf16 %v10398_v21, %v10395_v2  ;;  %v4170_v50 = vsel %vm2715_vm3, %v10212_v26, %v14030_v35 }
 0x394   : > { %v6647_v47 = vunpack.i.h.bf16 %v6645_v43  ;;  %v6646_v24 = vunpack.i.l.bf16 %v6645_v43  ;;  %6799 = vrot.lane.b32.xlu0 %v14029_v40, %s7338_s13  ;;  %v4204_v3 = vsel %vm2748_vm4, %v10282_v15, %v6517_v60  ;;  %v4202_v26 = vsel %vm2748_vm4, %v4170_v50, %v6512_v53 }
 0x395   : > { %v6595_v37 = vpop.permute.xlu1 %6594  ;;  %v14031_v15 = vunpack.i.h.bf16 %v9976_v7  ;;  %v6397_v53 = vunpack.i.h.bf16 %v9985_v19  ;;  %v6532_v40 = vunpack.i.h.bf16 %v10206_v16  ;;  %v4175_v50 = vsel %vm2715_vm3, %v10269_v56, %v6446_v10 }
 0x396   : > { %v10419_v25 = vsel %vm2781_vm5, %v4223_v49, %v6646_v24  ;;  %v10422_v30 = vsel %vm2781_vm5, %v4224_v28, %v6647_v47  ;;  %v6597_v27 = vunpack.i.h.bf16 %v6595_v37  ;;  %v6596_v0 = vunpack.i.l.bf16 %v6595_v37  ;;  %v14034_v24 = vld [vmem:[#allocation165_spill] sm:$0xff] }
 0x397   : > { %v4201_v47 = vsel %vm2748_vm4, %v4169_v48, %v6511_v17  ;;  %v10446_v60 = vsel %vm2682_vm2, %v14032_v46, %v14031_v15  ;;  %v10452_v49 = vsel %vm2682_vm2, %v14034_v24, %v14033_v59  ;;  %v6447_v17 = vunpack.i.h.bf16 %v10063_v5 }
 0x398   : > { %v6590_v62 = vpop.permute.xlu0 %6589  ;;  %v10433_v6 = vsel %vm2781_vm5, %v4203_v54, %v6596_v0  ;;  %v10436_v43 = vsel %vm2781_vm5, %v4204_v3, %v6597_v27  ;;  %6824 = vrot.lane.b32.xlu2 %v6823_v33, %s7338_s13  ;;  %v6531_v37 = vunpack.i.l.bf16 %v10206_v16  ;;  %v6467_v33 = vunpack.i.h.bf16 %v10003_v36 }
 0x399   : > { %v6592_v14 = vunpack.i.h.bf16 %v6590_v62  ;;  %v6591_v31 = vunpack.i.l.bf16 %v6590_v62  ;;  %v6466_v27 = vunpack.i.l.bf16 %v10003_v36  ;;  %v6527_v5 = vunpack.i.h.bf16 %v10087_v58 }
 0x39a   : > { %v6526_v3 = vunpack.i.l.bf16 %v10087_v58  ;;  %v4176_v56 = vsel %vm2715_vm3, %v10263_v32, %v6447_v17  ;;  %v4210_v58 = vsel %vm2748_vm4, %v10328_v8, %v6532_v40  ;;  %v4184_v59 = vsel %vm2715_vm3, %v10286_v38, %v6467_v33  ;;  %v14035_v38 = vld [vmem:[#allocation248_spill] sm:$0xff] }
 0x39b   : > { %v10455_v28 = vsel %vm2781_vm5, %v4201_v47, %v6591_v31  ;;  %v10458_v48 = vsel %vm2781_vm5, %v4202_v26, %v6592_v14  ;;  %6819 = vrot.lane.b32.xlu1 %v9875_v44, %s7338_s13  ;;  %v6660_v7 = vpop.permute.xlu2 %6659  ;;  %v6461_v47 = vunpack.i.l.bf16 %v10079_v61  ;;  %v4208_v32 = vsel %vm2748_vm4, %v4176_v56, %v6527_v5 }
 0x39c   : > { %v6662_v0 = vunpack.i.h.bf16 %v6660_v7  ;;  %v6661_v35 = vunpack.i.l.bf16 %v6660_v7  ;;  %6814 = vrot.lane.b32.xlu0 %v9886_v13, %s7338_s13  ;;  %v4209_v13 = vsel %vm2748_vm4, %v10325_v20, %v6531_v37  ;;  %v4207_v26 = vsel %vm2748_vm4, %v4175_v50, %v6526_v3  ;;  %v14036_v50 = vld [vmem:[#allocation323_spill] sm:$0xff] }
 0x39d   : > { %v6610_v16 = vpop.permute.xlu1 %6609  ;;  %v6396_v20 = vunpack.i.l.bf16 %v9985_v19  ;;  %v4183_v8 = vsel %vm2715_vm3, %v10290_v55, %v6466_v27  ;;  %v6462_v24 = vunpack.i.h.bf16 %v10079_v61  ;;  %v6547_v17 = vunpack.i.h.bf16 %v10265_v41 }
 0x39e   : > { %v10476_v44 = vsel %vm2781_vm5, %v10378_v34, %v6661_v35  ;;  %v10480_v36 = vsel %vm2781_vm5, %v10381_v4, %v6662_v0  ;;  %v6612_v54 = vunpack.i.h.bf16 %v6610_v16  ;;  %v6611_v62 = vunpack.i.l.bf16 %v6610_v16 }
 0x39f   : > { %v6546_v40 = vunpack.i.l.bf16 %v10265_v41  ;;  %v6482_v55 = vunpack.i.h.bf16 %v10036_v45  ;;  %v6481_v7 = vunpack.i.l.bf16 %v10036_v45  ;;  %v4181_v35 = vsel %vm2715_vm3, %v10308_v11, %v6461_v47 }
 0x3a0   : > { %v6605_v14 = vpop.permute.xlu0 %6604  ;;  %v10489_v31 = vsel %vm2781_vm5, %v4209_v13, %v6611_v62  ;;  %v10492_v34 = vsel %vm2781_vm5, %v4210_v58, %v6612_v54  ;;  %6839 = vrot.lane.b32.xlu2 %v9961_v1, %s7339_s14  ;;  %v6542_v33 = vunpack.i.h.bf16 %v14035_v38  ;;  %v6541_v61 = vunpack.i.l.bf16 %v14035_v38 }
 0x3a1   : > { %v6607_v4 = vunpack.i.h.bf16 %v6605_v14  ;;  %v6606_v10 = vunpack.i.l.bf16 %v6605_v14  ;;  %v4182_v11 = vsel %vm2715_vm3, %v10294_v42, %v6462_v24  ;;  %v4216_v54 = vsel %vm2748_vm4, %v4184_v59, %v6547_v17  ;;  %v14039_v42 = vld [vmem:[#allocation149_spill] sm:$0xff] }
 0x3a2   : > { %v4215_v62 = vsel %vm2748_vm4, %v4183_v8, %v6546_v40  ;;  %v4214_v47 = vsel %vm2748_vm4, %v4182_v11, %v6542_v33  ;;  %v14040_v8 = vld [vmem:[#allocation148_spill] sm:$0xff]  ;;  %v14041_v40 = vld [vmem:[#allocation330_spill] sm:$0xff]  ;;  %v6561_v19 = vunpack.i.l.bf16 %v10331_v52  ;;  %v4190_v38 = vsel %vm2715_vm3, %v10446_v60, %v6482_v55 }
 0x3a3   : > { %v10503_v15 = vsel %vm2781_vm5, %v4207_v26, %v6606_v10  ;;  %v10506_v46 = vsel %vm2781_vm5, %v4208_v32, %v6607_v4  ;;  %6834 = vrot.lane.b32.xlu1 %v9909_v29, %s7339_s14  ;;  %v6675_v37 = vpop.permute.xlu2 %6674  ;;  %v14037_v4 = vld [vmem:[#allocation255_spill] sm:$0xff]  ;;  %v14038_v26 = vld [vmem:[#allocation328_spill] sm:$0xff]  ;;  %v4156_v32 = vsel %vm2682_vm2, %v14039_v42, %v6397_v53  ;;  %v4155_v59 = vsel %vm2682_vm2, %v14040_v8, %v6396_v20 }
 0x3a4   : > { %v6677_v27 = vunpack.i.h.bf16 %v6675_v37  ;;  %v6676_v0 = vunpack.i.l.bf16 %v6675_v37  ;;  %6829 = vrot.lane.b32.xlu0 %v14036_v50, %s7339_s14  ;;  %v6476_v10 = vunpack.i.l.bf16 %v14037_v4  ;;  %v6412_v37 = vunpack.i.h.bf16 %v14041_v40  ;;  %v14045_v42 = vld [vmem:[#allocation332_spill] sm:$0xff] }
 0x3a5   : > { %v6625_v41 = vpop.permute.xlu1 %6624  ;;  %v4189_v20 = vsel %vm2715_vm3, %v10452_v49, %v6481_v7 }
 0x3a6   : > { %v10525_v5 = vsel %vm2814_vm6, %v10433_v6, %v6676_v0  ;;  %v10529_v45 = vsel %vm2814_vm6, %v10436_v43, %v6677_v27  ;;  %v6627_v3 = vunpack.i.h.bf16 %v6625_v41  ;;  %v6626_v16 = vunpack.i.l.bf16 %v6625_v41  ;;  %v14043_v41 = vld [vmem:[#allocation252_spill] sm:$0xff] }
 0x3a7   : > { %v4213_v43 = vsel %vm2748_vm4, %v4181_v35, %v6541_v61  ;;  %v6477_v27 = vunpack.i.h.bf16 %v14037_v4  ;;  %v6562_v0 = vunpack.i.h.bf16 %v10331_v52  ;;  %v14042_v35 = vld [vmem:[#allocation324_spill] sm:$0xff]  ;;  %v4187_v50 = vsel %vm2715_vm3, %v4155_v59, %v6476_v10  ;;  %v14044_v52 = vld [vmem:[#allocation325_spill] sm:$0xff] }
 0x3a8   : > { %v6620_v56 = vpop.permute.xlu0 %6619  ;;  %v4247_v58 = vsel %vm2781_vm5, %v4215_v62, %v6626_v16  ;;  %v4248_v13 = vsel %vm2781_vm5, %v4216_v54, %v6627_v3  ;;  %6854 = vrot.lane.b32.xlu2 %v14038_v26, %s7339_s14  ;;  %v6557_v3 = vunpack.i.h.bf16 %v14043_v41  ;;  %v6556_v16 = vunpack.i.l.bf16 %v14043_v41  ;;  %v14046_v59 = vld [vmem:[#allocation261_spill] sm:$0xff]  ;;  %v14050_v41 = vld [vmem:[#allocation254_spill] sm:$0xff] }
 0x3a9   : > { %v6622_v6 = vunpack.i.h.bf16 %v6620_v56  ;;  %v6621_v14 = vunpack.i.l.bf16 %v6620_v56  ;;  %v4188_v7 = vsel %vm2715_vm3, %v4156_v32, %v6477_v27  ;;  %v4222_v62 = vsel %vm2748_vm4, %v4190_v38, %v6562_v0 }
 0x3aa   : > { %v4221_v56 = vsel %vm2748_vm4, %v4189_v20, %v6561_v19  ;;  %v6492_v27 = vunpack.i.h.bf16 %v14046_v59  ;;  %v6491_v0 = vunpack.i.l.bf16 %v14046_v59  ;;  %v14047_v19 = vld [vmem:[#allocation326_spill] sm:$0xff]  ;;  %v14052_v59 = vld [vmem:[#allocation335_spill] sm:$0xff] }
 0x3ab   : > { %v10549_v24 = vsel %vm2781_vm5, %v4213_v43, %v6621_v14  ;;  %v10552_v17 = vsel %vm2781_vm5, %v4214_v47, %v6622_v6  ;;  %6849 = vrot.lane.b32.xlu1 %v14042_v35, %s7339_s14  ;;  %v6690_v53 = vpop.permute.xlu2 %6689  ;;  %v6411_v43 = vunpack.i.l.bf16 %v14041_v40  ;;  %v4220_v47 = vsel %vm2748_vm4, %v4188_v7, %v6557_v3 }
 0x3ac   : > { %v6692_v33 = vunpack.i.h.bf16 %v6690_v53  ;;  %v6691_v61 = vunpack.i.l.bf16 %v6690_v53  ;;  %6844 = vrot.lane.b32.xlu0 %v14044_v52, %s7339_s14  ;;  %v14048_v53 = vld [vmem:[#allocation160_spill] sm:$0xff]  ;;  %v6572_v3 = vunpack.i.h.bf16 %v14050_v41 }
 0x3ad   : > { %v6640_v11 = vpop.permute.xlu1 %6639  ;;  %v4162_v20 = vsel %vm2682_vm2, %v14048_v53, %v6412_v37 }
 0x3ae   : > { %v10571_v54 = vsel %vm2814_vm6, %v10489_v31, %v6691_v61  ;;  %v10575_v49 = vsel %vm2814_vm6, %v10492_v34, %v6692_v33  ;;  %v6642_v60 = vunpack.i.h.bf16 %v6640_v11  ;;  %v6641_v55 = vunpack.i.l.bf16 %v6640_v11  ;;  %v14049_v61 = vld [vmem:[#allocation159_spill] sm:$0xff] }
 0x3af   : > { %v4219_v34 = vsel %vm2748_vm4, %v4187_v50, %v6556_v16  ;;  %v4161_v50 = vsel %vm2682_vm2, %v14049_v61, %v6411_v43  ;;  %v6571_v16 = vunpack.i.l.bf16 %v14050_v41  ;;  %v14051_v11 = vld [vmem:[#allocation327_spill] sm:$0xff] }
 0x3b0   : > { %v6635_v6 = vpop.permute.xlu0 %6634  ;;  %v4253_v14 = vsel %vm2781_vm5, %v4221_v56, %v6641_v55  ;;  %v4254_v4 = vsel %vm2781_vm5, %v4222_v62, %v6642_v60  ;;  %6869 = vrot.lane.b32.xlu2 %v14045_v42, %s7339_s14  ;;  %v4193_v56 = vsel %vm2715_vm3, %v4161_v50, %v6491_v0 }
 0x3b1   : > { %v6637_v10 = vunpack.i.h.bf16 %v6635_v6  ;;  %v6636_v31 = vunpack.i.l.bf16 %v6635_v6  ;;  %v4194_v6 = vsel %vm2715_vm3, %v4162_v20, %v6492_v27  ;;  %v14054_v20 = vld [vmem:[#allocation331_spill] sm:$0xff] }
 0x3b3   : > { %v10588_v32 = vsel %vm2781_vm5, %v4219_v34, %v6636_v31  ;;  %v10591_v8 = vsel %vm2781_vm5, %v4220_v47, %v6637_v10  ;;  %6864 = vrot.lane.b32.xlu1 %v14047_v19, %s7339_s14  ;;  %v6705_v40 = vpop.permute.xlu2 %6704 }
 0x3b4   : > { %v6707_v38 = vunpack.i.h.bf16 %v6705_v40  ;;  %v6706_v33 = vunpack.i.l.bf16 %v6705_v40  ;;  %6859 = vrot.lane.b32.xlu0 %v14051_v11, %s7339_s14 }
 0x3b5   : > { %v6655_v60 = vpop.permute.xlu1 %6654 }
 0x3b6   : > { %v10606_v55 = vsel %vm2814_vm6, %v4247_v58, %v6706_v33  ;;  %v10609_v7 = vsel %vm2814_vm6, %v4248_v13, %v6707_v38  ;;  %v6657_v37 = vunpack.i.h.bf16 %v6655_v60  ;;  %v6656_v62 = vunpack.i.l.bf16 %v6655_v60 }
 0x3b7   : > { %v4225_v58 = vsel %vm2748_vm4, %v4193_v56, %v6571_v16  ;;  %v4226_v13 = vsel %vm2748_vm4, %v4194_v6, %v6572_v3  ;;  %v14055_v56 = vld [vmem:[#allocation306_spill] sm:$0xff]  ;;  %v1227_v6 = vrot.slane %v10350_v63, 2 }
 0x3b8   : > { %v6650_v10 = vpop.permute.xlu0 %6649  ;;  %v4259_v31 = vsel %vm2781_vm5, %v10392_v22, %v6656_v62  ;;  %v4260_v43 = vsel %vm2781_vm5, %v10389_v57, %v6657_v37  ;;  %6884 = vrot.lane.b32.xlu2 %v14052_v59, %s7339_s14  ;;  %v14053_v22 = vld [vmem:[#allocation329_spill] sm:$0xff] }
 0x3b9   : > { %v6652_v34 = vunpack.i.h.bf16 %v6650_v10  ;;  %v6651_v47 = vunpack.i.l.bf16 %v6650_v10  ;;  %v14056_v10 = vld [vmem:[#allocation258_spill] sm:$0xff] }
 0x3bb   : > { %v10622_v0 = vsel %vm2781_vm5, %v4225_v58, %v6651_v47  ;;  %v10625_v27 = vsel %vm2781_vm5, %v4226_v13, %v6652_v34  ;;  %6879 = vrot.lane.b32.xlu1 %v14053_v22, %s7339_s14  ;;  %v6720_v40 = vpop.permute.xlu2 %6719 }
 0x3bc   : > { %v6722_v57 = vunpack.i.h.bf16 %v6720_v40  ;;  %v6721_v53 = vunpack.i.l.bf16 %v6720_v40  ;;  %6874 = vrot.lane.b32.xlu0 %v14054_v20, %s7339_s14  ;;  %v7233_v40 = vld [vmem:[%s9373_s16 + $0x48] sm:$0xff] }
 0x3bd   : > { %v6670_v38 = vpop.permute.xlu1 %6669 }
 0x3be   : > { %v10632_v33 = vsel %vm2814_vm6, %v4253_v14, %v6721_v53  ;;  %v10635_v61 = vsel %vm2814_vm6, %v4254_v4, %v6722_v57  ;;  %v6672_v50 = vunpack.i.h.bf16 %v6670_v38  ;;  %v6671_v41 = vunpack.i.l.bf16 %v6670_v38  ;;  %v7234_v57 = vld [vmem:[%s9373_s16 + $0x50] sm:$0xff] }
 0x3bf   : > { %v1224_v14 = vrot.slane %v10133_v18, 2  ;;  %v1225_v4 = vrot.slane %v10136_v23, 2  ;;  %v14059_v23 = vld [vmem:[#allocation334_spill] sm:$0xff]  ;;  %v6913_v53 = vpack.i.bf16 %v7234_v57, %v7233_v40 }
 0x3c0   : > { %v6665_v3 = vpop.permute.xlu0 %6664  ;;  %v4265_v16 = vsel %vm2814_vm6, %v10455_v28, %v6671_v41  ;;  %v4266_v60 = vsel %vm2814_vm6, %v10458_v48, %v6672_v50  ;;  %6899 = vrot.lane.b32.xlu2 %v14055_v56, %s7339_s14  ;;  %v14057_v28 = vld [vmem:[#allocation260_spill] sm:$0xff]  ;;  %v14058_v48 = vld [vmem:[#allocation333_spill] sm:$0xff] }
 0x3c1   : > { %v6667_v37 = vunpack.i.h.bf16 %v6665_v3  ;;  %v6666_v62 = vunpack.i.l.bf16 %v6665_v3  ;;  %v1226_v38 = vsel %vm635_vm1, %v1224_v14, %v1225_v4  ;;  %v1228_v50 = vsel %vm635_vm1, %v1225_v4, %v1227_v6 }
 0x3c3   : > { %v10648_v34 = vsel %vm2781_vm5, %v14056_v10, %v6666_v62  ;;  %v10652_v47 = vsel %vm2781_vm5, %v14057_v28, %v6667_v37  ;;  %6894 = vrot.lane.b32.xlu1 %v14058_v48, %s7339_s14  ;;  %v6735_v58 = vpop.permute.xlu2 %6734  ;;  %v7235_v28 = vld [vmem:[%s9373_s16 + $0x30] sm:$0xff] }
 0x3c4   : > { %v6737_v13 = vunpack.i.h.bf16 %v6735_v58  ;;  %v6736_v18 = vunpack.i.l.bf16 %v6735_v58  ;;  %6889 = vrot.lane.b32.xlu0 %v14059_v23, %s7339_s14  ;;  %v7236_v58 = vld [vmem:[%s9373_s16 + $0x38] sm:$0xff]  ;;  %v14072_v23 = vld [vmem:[#allocation311_spill] sm:$0xff] }
 0x3c5   : > { %v6685_v63 = vpop.permute.xlu1 %6684  ;;  %v6908_v42 = vpack.i.bf16 %v7236_v58, %v7235_v28  ;;  %v7239_v28 = vld [vmem:[%s9373_s16 + $0x78] sm:$0xff]  ;;  %v7240_v58 = vld [vmem:[%s9373_s16 + $0x80] sm:$0xff] }
 0x3c6   : > { %v10663_v41 = vsel %vm2814_vm6, %v4259_v31, %v6736_v18  ;;  %v10666_v3 = vsel %vm2814_vm6, %v4260_v43, %v6737_v13  ;;  %v6687_v37 = vunpack.i.h.bf16 %v6685_v63  ;;  %v6686_v62 = vunpack.i.l.bf16 %v6685_v63  ;;  %v14060_v13 = vld [vmem:[#allocation245_spill] sm:$0xff] }
 0x3c7   : > { %v10675_v43 = vpack.i.bf16 %v1228_v50, %v1226_v38 }
 0x3c8   : > { %v6680_v10 = vpop.permute.xlu0 %6679  ;;  %v4271_v40 = vsel %vm2814_vm6, %v10503_v15, %v6686_v62  ;;  %v4272_v14 = vsel %vm2814_vm6, %v10506_v46, %v6687_v37  ;;  %6914 = vrot.lane.b32.xlu2 %v6913_v53, %s7340_s15  ;;  %v7237_v53 = vld [vmem:[%s9373_s16 + $0x90] sm:$0xff] }
 0x3c9   : > { %v6682_v4 = vunpack.i.h.bf16 %v6680_v10  ;;  %v6681_v31 = vunpack.i.l.bf16 %v6680_v10 }
 0x3cb   : > { %v10679_v6 = vsel %vm2814_vm6, %v10252_v39, %v6681_v31  ;;  %v10683_v18 = vsel %vm2814_vm6, %v14060_v13, %v6682_v4  ;;  %6909 = vrot.lane.b32.xlu1 %v6908_v42, %s7340_s15  ;;  %v6750_v15 = vpop.permute.xlu2 %6749  ;;  %v7238_v39 = vld [vmem:[%s9373_s16 + $0x98] sm:$0xff]  ;;  %v6923_v4 = vpack.i.bf16 %v7240_v58, %v7239_v28  ;;  %v7244_v28 = vld [vmem:[%s9373_s16 + $0xe0] sm:$0xff] }
 0x3cc   : > { %v6752_v46 = vunpack.i.h.bf16 %v6750_v15  ;;  %v6751_v63 = vunpack.i.l.bf16 %v6750_v15  ;;  %6904 = vrot.lane.b32.xlu0 %v10675_v43, %s7339_s14  ;;  %v6928_v38 = vpack.i.bf16 %v7238_v39, %v7237_v53  ;;  %v14062_v39 = vld [vmem:[#allocation264_spill] sm:$0xff] }
 0x3cd   : > { %v6700_v57 = vpop.permute.xlu1 %6699 }
 0x3ce   : > { %v10691_v50 = vsel %vm2847_vm7, %v4265_v16, %v6751_v63  ;;  %v10694_v37 = vsel %vm2847_vm7, %v4266_v60, %v6752_v46  ;;  %v6702_v42 = vunpack.i.h.bf16 %v6700_v57  ;;  %v6701_v62 = vunpack.i.l.bf16 %v6700_v57  ;;  %v7241_v60 = vld [vmem:[%s9373_s16 + $0x60] sm:$0xff]  ;;  %v7242_v46 = vld [vmem:[%s9373_s16 + $0x68] sm:$0xff]  ;;  %v14061_v57 = vld [vmem:[#allocation273_spill] sm:$0xff] }
 0x3cf   : > { %v6918_v63 = vpack.i.bf16 %v7242_v46, %v7241_v60 }
 0x3d0   : > { %v6695_v10 = vpop.permute.xlu0 %6694  ;;  %v4277_v31 = vsel %vm2814_vm6, %v10549_v24, %v6701_v62  ;;  %v4278_v13 = vsel %vm2814_vm6, %v10552_v17, %v6702_v42  ;;  %6929 = vrot.lane.b32.xlu2 %v6928_v38, %s7340_s15 }
 0x3d1   : > { %v6697_v15 = vunpack.i.h.bf16 %v6695_v10  ;;  %v6696_v16 = vunpack.i.l.bf16 %v6695_v10  ;;  %v7243_v10 = vld [vmem:[%s9373_s16 + $0xd8] sm:$0xff] }
 0x3d2   : > { %v6943_v58 = vpack.i.bf16 %v7244_v28, %v7243_v10 }
 0x3d3   : > { %v10707_v53 = vsel %vm2814_vm6, %v14061_v57, %v6696_v16  ;;  %v10711_v24 = vsel %vm2814_vm6, %v14062_v39, %v6697_v15  ;;  %6924 = vrot.lane.b32.xlu1 %v6923_v4, %s7340_s15  ;;  %v6765_v17 = vpop.permute.xlu2 %6764  ;;  %v7245_v57 = vld [vmem:[%s9373_s16 + $0xc0] sm:$0xff]  ;;  %v7246_v39 = vld [vmem:[%s9373_s16 + $0xc8] sm:$0xff] }
 0x3d4   : > { %v6767_v42 = vunpack.i.h.bf16 %v6765_v17  ;;  %v6766_v62 = vunpack.i.l.bf16 %v6765_v17  ;;  %6919 = vrot.lane.b32.xlu0 %v6918_v63, %s7340_s15  ;;  %v6938_v17 = vpack.i.bf16 %v7246_v39, %v7245_v57 }
 0x3d5   : > { %v6715_v38 = vpop.permute.xlu1 %6714 }
 0x3d6   : > { %v10718_v16 = vsel %vm2847_vm7, %v4271_v40, %v6766_v62  ;;  %v10721_v15 = vsel %vm2847_vm7, %v4272_v14, %v6767_v42  ;;  %v6717_v60 = vunpack.i.h.bf16 %v6715_v38  ;;  %v6716_v46 = vunpack.i.l.bf16 %v6715_v38  ;;  %v7247_v14 = vld [vmem:[%s9373_s16 + $0xa8] sm:$0xff]  ;;  %v7248_v42 = vld [vmem:[%s9373_s16 + $0xb0] sm:$0xff] }
 0x3d7   : > { %v6933_v62 = vpack.i.bf16 %v7248_v42, %v7247_v14  ;;  %v7252_v14 = vld [vmem:[%s9373_s16 + $0x110] sm:$0xff] }
 0x3d8   : > { %v6710_v4 = vpop.permute.xlu0 %6709  ;;  %v4283_v63 = vsel %vm2814_vm6, %v10588_v32, %v6716_v46  ;;  %v4284_v35 = vsel %vm2814_vm6, %v10591_v8, %v6717_v60  ;;  %6944 = vrot.lane.b32.xlu2 %v6943_v58, %s7340_s15  ;;  %v7249_v46 = vld [vmem:[%s9373_s16 + $0x120] sm:$0xff] }
 0x3d9   : > { %v6712_v10 = vunpack.i.h.bf16 %v6710_v4  ;;  %v6711_v40 = vunpack.i.l.bf16 %v6710_v4  ;;  %v7250_v4 = vld [vmem:[%s9373_s16 + $0x128] sm:$0xff] }
 0x3db   : > { %v10734_v38 = vsel %vm2814_vm6, %v10367_v51, %v6711_v40  ;;  %v10738_v32 = vsel %vm2814_vm6, %v10370_v9, %v6712_v10  ;;  %6939 = vrot.lane.b32.xlu1 %v6938_v17, %s7340_s15  ;;  %v6780_v8 = vpop.permute.xlu2 %6779  ;;  %v6958_v51 = vpack.i.bf16 %v7250_v4, %v7249_v46  ;;  %v7251_v40 = vld [vmem:[%s9373_s16 + $0x108] sm:$0xff] }
 0x3dc   : > { %v6782_v28 = vunpack.i.h.bf16 %v6780_v8  ;;  %v6781_v60 = vunpack.i.l.bf16 %v6780_v8  ;;  %6934 = vrot.lane.b32.xlu0 %v6933_v62, %s7340_s15  ;;  %v6953_v42 = vpack.i.bf16 %v7252_v14, %v7251_v40 }
 0x3dd   : > { %v6730_v58 = vpop.permute.xlu1 %6729 }
 0x3de   : > { %v10745_v57 = vsel %vm2847_vm7, %v4277_v31, %v6781_v60  ;;  %v10748_v9 = vsel %vm2847_vm7, %v4278_v13, %v6782_v28  ;;  %v6732_v39 = vunpack.i.h.bf16 %v6730_v58  ;;  %v6731_v10 = vunpack.i.l.bf16 %v6730_v58  ;;  %v7253_v13 = vld [vmem:[%s9373_s16 + $0xf0] sm:$0xff]  ;;  %v7254_v28 = vld [vmem:[%s9373_s16 + $0xf8] sm:$0xff] }
 0x3df   : > { %v6948_v60 = vpack.i.bf16 %v7254_v28, %v7253_v13  ;;  %v7258_v13 = vld [vmem:[%s9373_s16 + $0x158] sm:$0xff] }
 0x3e0   : > { %v6725_v17 = vpop.permute.xlu0 %6724  ;;  %v4289_v62 = vsel %vm2814_vm6, %v10622_v0, %v6731_v10  ;;  %v4290_v8 = vsel %vm2814_vm6, %v10625_v27, %v6732_v39  ;;  %6959 = vrot.lane.b32.xlu2 %v6958_v51, %s7340_s15  ;;  %v7255_v10 = vld [vmem:[%s9373_s16 + $0x168] sm:$0xff] }
 0x3e1   : > { %v6727_v46 = vunpack.i.h.bf16 %v6725_v17  ;;  %v6726_v31 = vunpack.i.l.bf16 %v6725_v17  ;;  %v7256_v17 = vld [vmem:[%s9373_s16 + $0x170] sm:$0xff] }
 0x3e3   : > { %v10761_v58 = vsel %vm2814_vm6, %v10419_v25, %v6726_v31  ;;  %v10765_v0 = vsel %vm2814_vm6, %v10422_v30, %v6727_v46  ;;  %6954 = vrot.lane.b32.xlu1 %v6953_v42, %s7340_s15  ;;  %v6795_v27 = vpop.permute.xlu2 %6794  ;;  %v6973_v25 = vpack.i.bf16 %v7256_v17, %v7255_v10  ;;  %v7257_v31 = vld [vmem:[%s9373_s16 + $0x150] sm:$0xff] }
 0x3e4   : > { %v6797_v4 = vunpack.i.h.bf16 %v6795_v27  ;;  %v6796_v39 = vunpack.i.l.bf16 %v6795_v27  ;;  %6949 = vrot.lane.b32.xlu0 %v6948_v60, %s7340_s15  ;;  %v6968_v28 = vpack.i.bf16 %v7258_v13, %v7257_v31 }
 0x3e5   : > { %v6745_v51 = vpop.permute.xlu1 %6744 }
 0x3e6   : > { %v10772_v40 = vsel %vm2847_vm7, %v4283_v63, %v6796_v39  ;;  %v10775_v30 = vsel %vm2847_vm7, %v4284_v35, %v6797_v4  ;;  %v6747_v14 = vunpack.i.h.bf16 %v6745_v51  ;;  %v6746_v46 = vunpack.i.l.bf16 %v6745_v51  ;;  %v7259_v35 = vld [vmem:[%s9373_s16 + $0x138] sm:$0xff]  ;;  %v7260_v4 = vld [vmem:[%s9373_s16 + $0x140] sm:$0xff] }
 0x3e7   : > { %v6963_v39 = vpack.i.bf16 %v7260_v4, %v7259_v35 }
 0x3e8   : > { %v6740_v42 = vpop.permute.xlu0 %6739  ;;  %v4295_v60 = vsel %vm2814_vm6, %v10648_v34, %v6746_v46  ;;  %v4296_v27 = vsel %vm2814_vm6, %v10652_v47, %v6747_v14  ;;  %6974 = vrot.lane.b32.xlu2 %v6973_v25, %s7340_s15  ;;  %v10796_v14 = vld [vmem:[%s9373_s16 + $0x198] sm:$0xff] }
 0x3e9   : > { %v6742_v10 = vunpack.i.h.bf16 %v6740_v42  ;;  %v6741_v63 = vunpack.i.l.bf16 %v6740_v42  ;;  %14063 = vst [vmem:[#allocation266_spill] sm:$0xff] %v10796_v14  ;;  %v10799_v42 = vld [vmem:[%s9373_s16 + $0x1a0] sm:$0xff] }
 0x3ea   : > { %14064 = vst [vmem:[#allocation278_spill] sm:$0xff] %v10799_v42 }
 0x3eb   : > { %v10788_v51 = vsel %vm2814_vm6, %v10476_v44, %v6741_v63  ;;  %v10792_v17 = vsel %vm2814_vm6, %v10480_v36, %v6742_v10  ;;  %6969 = vrot.lane.b32.xlu1 %v6968_v28, %s7340_s15  ;;  %v6810_v34 = vpop.permute.xlu2 %6809  ;;  %v6983_v28 = vpack.i.bf16 %v10799_v42, %v10796_v14  ;;  %v14123_v14 = vld [vmem:[#allocation26_spill] sm:$0xff] }
 0x3ec   : > { %v6812_v46 = vunpack.i.h.bf16 %v6810_v34  ;;  %v6811_v47 = vunpack.i.l.bf16 %v6810_v34  ;;  %6964 = vrot.lane.b32.xlu0 %v6963_v39, %s7340_s15  ;;  %v5311_v42 = vunpack.i.l.bf16 %v14123_v14 }
 0x3ed   : > { %v6760_v25 = vpop.permute.xlu1 %6759 }
 0x3ee   : > { %v10803_v31 = vsel %vm2847_vm7, %v4289_v62, %v6811_v47  ;;  %v10806_v44 = vsel %vm2847_vm7, %v4290_v8, %v6812_v46  ;;  %v6762_v36 = vunpack.i.h.bf16 %v6760_v25  ;;  %v6761_v13 = vunpack.i.l.bf16 %v6760_v25  ;;  %v14067_v62 = vld [vmem:[#allocation283_spill] sm:$0xff] }
 0x3ef   : > { %14065 = vst [vmem:[#allocation270_spill] sm:$0xff] %v10803_v31 }
 0x3f0   : > { %14066 = vst [vmem:[#allocation272_spill] sm:$0xff] %v10806_v44  ;;  %v6755_v10 = vpop.permute.xlu0 %6754  ;;  %v4301_v63 = vsel %vm2847_vm7, %v10679_v6, %v6761_v13  ;;  %v4302_v35 = vsel %vm2847_vm7, %v10683_v18, %v6762_v36  ;;  %6989 = vrot.lane.b32.xlu2 %v14067_v62, %s7341_s6  ;;  %v14068_v18 = vld [vmem:[#allocation267_spill] sm:$0xff]  ;;  %v14069_v36 = vld [vmem:[#allocation312_spill] sm:$0xff] }
 0x3f1   : > { %v6757_v4 = vunpack.i.h.bf16 %v6755_v10  ;;  %v6756_v39 = vunpack.i.l.bf16 %v6755_v10  ;;  %v14070_v13 = vld [vmem:[#allocation319_spill] sm:$0xff] }
 0x3f2   : > { %v7003_v10 = vpack.i.bf16 %v14070_v13, %v14069_v36 }
 0x3f3   : > { %v10818_v8 = vsel %vm2847_vm7, %v10525_v5, %v6756_v39  ;;  %v10822_v34 = vsel %vm2847_vm7, %v10529_v45, %v6757_v4  ;;  %6984 = vrot.lane.b32.xlu1 %v6983_v28, %s7340_s15  ;;  %v6825_v46 = vpop.permute.xlu2 %6824  ;;  %v14071_v28 = vld [vmem:[#allocation290_spill] sm:$0xff] }
 0x3f4   : > { %v6827_v6 = vunpack.i.h.bf16 %v6825_v46  ;;  %v6826_v47 = vunpack.i.l.bf16 %v6825_v46  ;;  %6979 = vrot.lane.b32.xlu0 %v14068_v18, %s7340_s15  ;;  %v6998_v12 = vpack.i.bf16 %v14072_v23, %v14071_v28 }
 0x3f5   : > { %v6775_v25 = vpop.permute.xlu1 %6774 }
 0x3f6   : > { %v10830_v62 = vsel %vm2847_vm7, %v4295_v60, %v6826_v47  ;;  %v10833_v5 = vsel %vm2847_vm7, %v4296_v27, %v6827_v6  ;;  %v6777_v45 = vunpack.i.h.bf16 %v6775_v25  ;;  %v6776_v4 = vunpack.i.l.bf16 %v6775_v25 }
 0x3f8   : > { %v6770_v39 = vpop.permute.xlu0 %6769  ;;  %v4307_v46 = vsel %vm2847_vm7, %v10707_v53, %v6776_v4  ;;  %v4308_v18 = vsel %vm2847_vm7, %v10711_v24, %v6777_v45  ;;  %7004 = vrot.lane.b32.xlu2 %v7003_v10, %s7341_s6  ;;  %v14073_v24 = vld [vmem:[#allocation281_spill] sm:$0xff] }
 0x3f9   : > { %v6772_v44 = vunpack.i.h.bf16 %v6770_v39  ;;  %v6771_v36 = vunpack.i.l.bf16 %v6770_v39  ;;  %v14075_v39 = vld [vmem:[#allocation320_spill] sm:$0xff] }
 0x3fb   : > { %v10844_v60 = vsel %vm2847_vm7, %v10571_v54, %v6771_v36  ;;  %v10848_v27 = vsel %vm2847_vm7, %v10575_v49, %v6772_v44  ;;  %6999 = vrot.lane.b32.xlu1 %v6998_v12, %s7341_s6  ;;  %v6840_v23 = vpop.permute.xlu2 %6839 }
 0x3fc   : > { %v6842_v6 = vunpack.i.h.bf16 %v6840_v23  ;;  %v6841_v53 = vunpack.i.l.bf16 %v6840_v23  ;;  %6994 = vrot.lane.b32.xlu0 %v14073_v24, %s7341_s6 }
 0x3fd   : > { %v6790_v47 = vpop.permute.xlu1 %6789 }
 0x3fe   : > { %v10854_v25 = vsel %vm2880_vm8, %v4301_v63, %v6841_v53  ;;  %v10857_v54 = vsel %vm2880_vm8, %v4302_v35, %v6842_v6  ;;  %v6792_v13 = vunpack.i.h.bf16 %v6790_v47  ;;  %v6791_v10 = vunpack.i.l.bf16 %v6790_v47  ;;  %v14076_v63 = vld [vmem:[#allocation285_spill] sm:$0xff] }
 0x3ff   : > { %v7008_v28 = vpack.i.bf16 %v14076_v63, %v14075_v39 }
 0x400   : > { %v6785_v49 = vpop.permute.xlu0 %6784  ;;  %v4313_v12 = vsel %vm2847_vm7, %v10734_v38, %v6791_v10  ;;  %v4314_v44 = vsel %vm2847_vm7, %v10738_v32, %v6792_v13  ;;  %7019 = vrot.lane.b32.xlu2 %v14058_v48, %s14074_s26 }
 0x401   : > { %v6787_v45 = vunpack.i.h.bf16 %v6785_v49  ;;  %v6786_v4 = vunpack.i.l.bf16 %v6785_v49  ;;  %v14077_v49 = vld [vmem:[#allocation286_spill] sm:$0xff] }
 0x403   : > { %v10869_v35 = vsel %vm2847_vm7, %v10606_v55, %v6786_v4  ;;  %v10873_v36 = vsel %vm2847_vm7, %v10609_v7, %v6787_v45  ;;  %7014 = vrot.lane.b32.xlu1 %v14054_v20, %s14074_s26  ;;  %v6855_v38 = vpop.permute.xlu2 %6854 }
 0x404   : > { %v6857_v32 = vunpack.i.h.bf16 %v6855_v38  ;;  %v6856_v23 = vunpack.i.l.bf16 %v6855_v38  ;;  %7009 = vrot.lane.b32.xlu0 %v7008_v28, %s7341_s6 }
 0x405   : > { %v6805_v48 = vpop.permute.xlu1 %6804 }
 0x406   : > { %v10879_v6 = vsel %vm2880_vm8, %v4307_v46, %v6856_v23  ;;  %v10882_v53 = vsel %vm2880_vm8, %v4308_v18, %v6857_v32  ;;  %v6807_v55 = vunpack.i.h.bf16 %v6805_v48  ;;  %v6806_v24 = vunpack.i.l.bf16 %v6805_v48  ;;  %v14078_v46 = vld [vmem:[#allocation307_spill] sm:$0xff]  ;;  %v14082_v23 = vld [vmem:[#allocation298_spill] sm:$0xff] }
 0x407   : > { %v7023_v45 = vpack.i.bf16 %v14078_v46, %v14077_v49 }
 0x408   : > { %v6800_v47 = vpop.permute.xlu0 %6799  ;;  %v4319_v7 = vsel %vm2847_vm7, %v10761_v58, %v6806_v24  ;;  %v4320_v20 = vsel %vm2847_vm7, %v10765_v0, %v6807_v55  ;;  %7034 = vrot.lane.b32.xlu2 %v14038_v26, %s14074_s26 }
 0x409   : > { %v6802_v13 = vunpack.i.h.bf16 %v6800_v47  ;;  %v6801_v10 = vunpack.i.l.bf16 %v6800_v47 }
 0x40b   : > { %v10894_v18 = vsel %vm2847_vm7, %v10632_v33, %v6801_v10  ;;  %v10898_v4 = vsel %vm2847_vm7, %v10635_v61, %v6802_v13  ;;  %7029 = vrot.lane.b32.xlu1 %v9909_v29, %s14074_s26  ;;  %v6870_v58 = vpop.permute.xlu2 %6869  ;;  %v14081_v61 = vld [vmem:[#allocation317_spill] sm:$0xff] }
 0x40c   : > { %v6872_v0 = vunpack.i.h.bf16 %v6870_v58  ;;  %v6871_v39 = vunpack.i.l.bf16 %v6870_v58  ;;  %7024 = vrot.lane.b32.xlu0 %v7023_v45, %s7341_s6  ;;  %v7043_v48 = vpack.i.bf16 %v14082_v23, %v14081_v61 }
 0x40d   : > { %v6820_v26 = vpop.permute.xlu1 %6819 }
 0x40e   : > { %v10904_v63 = vsel %vm2880_vm8, %v4313_v12, %v6871_v39  ;;  %v10907_v28 = vsel %vm2880_vm8, %v4314_v44, %v6872_v0  ;;  %v6822_v33 = vunpack.i.h.bf16 %v6820_v26  ;;  %v6821_v38 = vunpack.i.l.bf16 %v6820_v26  ;;  %v14083_v12 = vld [vmem:[#allocation308_spill] sm:$0xff]  ;;  %v14087_v39 = vld [vmem:[#allocation13_spill] sm:$0xff] }
 0x40f   : > { %14079 = vst [vmem:[#allocation287_spill] sm:$0xff] %v10904_v63  ;;  %v14084_v44 = vld [vmem:[#allocation316_spill] sm:$0xff]  ;;  %v7282_v63 = vld [vmem:[%s7422_s7 + $0x138] sm:$0xff] }
 0x410   : > { %14080 = vst [vmem:[#allocation295_spill] sm:$0xff] %v10907_v28  ;;  %v6815_v32 = vpop.permute.xlu0 %6814  ;;  %v4325_v29 = vsel %vm2847_vm7, %v10788_v51, %v6821_v38  ;;  %v4326_v55 = vsel %vm2847_vm7, %v10792_v17, %v6822_v33  ;;  %7049 = vrot.lane.b32.xlu2 %v14053_v22, %s14074_s26  ;;  %v7038_v13 = vpack.i.bf16 %v14084_v44, %v14083_v12  ;;  %v14088_v33 = vld [vmem:[#allocation299_spill] sm:$0xff] }
 0x411   : > { %v6817_v24 = vunpack.i.h.bf16 %v6815_v32  ;;  %v6816_v47 = vunpack.i.l.bf16 %v6815_v32  ;;  %v14089_v38 = vld [vmem:[#allocation303_spill] sm:$0xff] }
 0x412   : > { %v7058_v32 = vpack.i.bf16 %v14089_v38, %v14088_v33  ;;  %v7261_v44 = vld [vmem:[%s7422_s7 + $0x68] sm:$0xff] }
 0x413   : > { %v10921_v10 = vsel %vm2847_vm7, %v10663_v41, %v6816_v47  ;;  %v10925_v49 = vsel %vm2847_vm7, %v10666_v3, %v6817_v24  ;;  %7044 = vrot.lane.b32.xlu1 %v7043_v48, %s7341_s6  ;;  %v6885_v51 = vpop.permute.xlu2 %6884  ;;  %v5172_v3 = vunpack.i.h.bf16 %v14087_v39  ;;  %v14092_v47 = vld [vmem:[#allocation14_spill] sm:$0xff] }
 0x414   : > { %v6887_v17 = vunpack.i.h.bf16 %v6885_v51  ;;  %v6886_v46 = vunpack.i.l.bf16 %v6885_v51  ;;  %7039 = vrot.lane.b32.xlu0 %v7038_v13, %s7341_s6  ;;  %v5177_v12 = vunpack.i.h.bf16 %v14092_v47 }
 0x415   : > { %v6835_v45 = vpop.permute.xlu1 %6834  ;;  %v10961_v13 = vsel %vm2682_vm2, %v7261_v44, %v5172_v3 }
 0x416   : > { %v10930_v22 = vsel %vm2880_vm8, %v4319_v7, %v6886_v46  ;;  %v10933_v58 = vsel %vm2880_vm8, %v4320_v20, %v6887_v17  ;;  %v6837_v41 = vunpack.i.h.bf16 %v6835_v45  ;;  %v6836_v0 = vunpack.i.l.bf16 %v6835_v45  ;;  %v14093_v17 = vld [vmem:[#allocation15_spill] sm:$0xff]  ;;  %v14094_v45 = vld [vmem:[#allocation17_spill] sm:$0xff] }
 0x417   : > { %14085 = vst [vmem:[#allocation305_spill] sm:$0xff] %v10930_v22  ;;  %v5191_v46 = vunpack.i.l.bf16 %v14093_v17 }
 0x418   : > { %14086 = vst [vmem:[#allocation284_spill] sm:$0xff] %v10933_v58  ;;  %v6830_v26 = vpop.permute.xlu0 %6829  ;;  %v10940_v61 = vsel %vm2880_vm8, %v10818_v8, %v6836_v0  ;;  %v10944_v7 = vsel %vm2880_vm8, %v10822_v34, %v6837_v41  ;;  %7064 = vrot.lane.b32.xlu2 %v9961_v1, %s14074_s26  ;;  %v5171_v8 = vunpack.i.l.bf16 %v14087_v39  ;;  %v5176_v1 = vunpack.i.l.bf16 %v14092_v47  ;;  %v14095_v39 = vld [vmem:[#allocation291_spill] sm:$0xff] }
 0x419   : > { %v6832_v23 = vunpack.i.h.bf16 %v6830_v26  ;;  %v6831_v20 = vunpack.i.l.bf16 %v6830_v26  ;;  %v5162_v41 = vunpack.i.h.bf16 %v14094_v45  ;;  %v7078_v26 = vpack.i.bf16 %v14095_v39, %v10398_v21  ;;  %v14124_v58 = vld [vmem:[#allocation27_spill] sm:$0xff] }
 0x41a   : > { %v5161_v21 = vunpack.i.l.bf16 %v14094_v45  ;;  %v7265_v45 = vld [vmem:[%s7422_s7 + $0xc8] sm:$0xff]  ;;  %v5261_v22 = vunpack.i.l.bf16 %v14124_v58 }
 0x41b   : > { %v10950_v48 = vsel %vm2880_vm8, %v10691_v50, %v6831_v20  ;;  %v10954_v24 = vsel %vm2880_vm8, %v10694_v37, %v6832_v23  ;;  %7059 = vrot.lane.b32.xlu1 %v7058_v32, %s7341_s6  ;;  %v6900_v34 = vpop.permute.xlu2 %6899  ;;  %v5192_v37 = vunpack.i.h.bf16 %v14093_v17  ;;  %v7262_v23 = vld [vmem:[%s7422_s7 + $0x60] sm:$0xff] }
 0x41c   : > { %14090 = vst [vmem:[#allocation128_spill] sm:$0xff] %v10950_v48  ;;  %v6902_v50 = vunpack.i.h.bf16 %v6900_v34  ;;  %v6901_v51 = vunpack.i.l.bf16 %v6900_v34  ;;  %7054 = vrot.lane.b32.xlu0 %v14055_v56, %s14074_s26  ;;  %v10979_v20 = vsel %vm2682_vm2, %v7262_v23, %v5171_v8  ;;  %v7263_v56 = vld [vmem:[%s7422_s7 + $0x80] sm:$0xff]  ;;  %v14098_v34 = vld [vmem:[#allocation304_spill] sm:$0xff] }
 0x41d   : > { %14091 = vst [vmem:[#allocation127_spill] sm:$0xff] %v10954_v24  ;;  %v6850_v0 = vpop.permute.xlu1 %6849  ;;  %v10983_v47 = vsel %vm2682_vm2, %v7263_v56, %v5177_v12  ;;  %v7264_v12 = vld [vmem:[%s7422_s7 + $0x78] sm:$0xff]  ;;  %v7268_v23 = vld [vmem:[%s7422_s7 + $0x30] sm:$0xff]  ;;  %v14102_v56 = vld [vmem:[#allocation18_spill] sm:$0xff] }
 0x41e   : > { %v10972_v3 = vsel %vm2880_vm8, %v4325_v29, %v6901_v51  ;;  %v10975_v33 = vsel %vm2880_vm8, %v4326_v55, %v6902_v50  ;;  %v6852_v38 = vunpack.i.h.bf16 %v6850_v0  ;;  %v6851_v32 = vunpack.i.l.bf16 %v6850_v0  ;;  %v14109_v24 = vld [vmem:[#allocation301_spill] sm:$0xff] }
 0x41f   : > { %14096 = vst [vmem:[#allocation140_spill] sm:$0xff] %v10972_v3  ;;  %v7073_v55 = vpack.i.bf16 %v10395_v2, %v14098_v34  ;;  %v10998_v17 = vsel %vm2682_vm2, %v7264_v12, %v5176_v1  ;;  %v11002_v0 = vsel %vm2682_vm2, %v7265_v45, %v5192_v37  ;;  %v14101_v2 = vld [vmem:[#allocation21_spill] sm:$0xff]  ;;  %v14103_v34 = vld [vmem:[#allocation19_spill] sm:$0xff]  ;;  %v14108_v3 = vld [vmem:[#allocation8_spill] sm:$0xff] }
 0x420   : > { %14097 = vst [vmem:[#allocation139_spill] sm:$0xff] %v10975_v33  ;;  %v6845_v29 = vpop.permute.xlu0 %6844  ;;  %v10990_v44 = vsel %vm2880_vm8, %v10844_v60, %v6851_v32  ;;  %v10994_v8 = vsel %vm2880_vm8, %v10848_v27, %v6852_v38  ;;  %v5156_v39 = vunpack.i.l.bf16 %v14101_v2  ;;  %7079 = vrot.lane.b32.xlu2 %v7078_v26, %s7341_s6  ;;  %v7266_v60 = vld [vmem:[%s7422_s7 + $0xc0] sm:$0xff]  ;;  %v7267_v27 = vld [vmem:[%s7422_s7 + $0x38] sm:$0xff]  ;;  %v11024_v26 = vsel %vm2682_vm2, %v7268_v23, %v5161_v21  ;;  %v14104_v21 = vld [vmem:[#allocation3_spill] sm:$0xff] }
 0x421   : > { %14099 = vst [vmem:[#allocation318_spill] sm:$0xff] %v10990_v44  ;;  %v6847_v50 = vunpack.i.h.bf16 %v6845_v29  ;;  %v6846_v51 = vunpack.i.l.bf16 %v6845_v29  ;;  %v11008_v32 = vsel %vm2682_vm2, %v7266_v60, %v5191_v46  ;;  %v11012_v38 = vsel %vm2682_vm2, %v7267_v27, %v5162_v41 }
 0x422   : > { %14100 = vst [vmem:[#allocation321_spill] sm:$0xff] %v10994_v8  ;;  %v5152_v46 = vunpack.i.h.bf16 %v14102_v56  ;;  %v5151_v29 = vunpack.i.l.bf16 %v14102_v56  ;;  %v5222_v12 = vunpack.i.h.bf16 %v14103_v34  ;;  %v5237_v27 = vunpack.i.h.bf16 %v14104_v21 }
 0x423   : > { %v11016_v1 = vsel %vm2880_vm8, %v10718_v16, %v6846_v51  ;;  %v11020_v37 = vsel %vm2880_vm8, %v10721_v15, %v6847_v50  ;;  %7074 = vrot.lane.b32.xlu1 %v7073_v55, %s7341_s6  ;;  %v6915_v41 = vpop.permute.xlu2 %6914  ;;  %v5221_v16 = vunpack.i.l.bf16 %v14103_v34  ;;  %v5157_v51 = vunpack.i.h.bf16 %v14101_v2  ;;  %v7269_v50 = vld [vmem:[%s7422_s7 + $0x18] sm:$0xff] }
 0x424   : > { %v6917_v45 = vunpack.i.h.bf16 %v6915_v41  ;;  %v6916_v15 = vunpack.i.l.bf16 %v6915_v41  ;;  %v2685_v60 = vsel %vm2682_vm2, %v7269_v50, %v5156_v39  ;;  %7069 = vrot.lane.b32.xlu0 %v14051_v11, %s14074_s26  ;;  %v5236_v39 = vunpack.i.l.bf16 %v14104_v21  ;;  %v14107_v41 = vld [vmem:[#allocation22_spill] sm:$0xff] }
 0x425   : > { %v6865_v23 = vpop.permute.xlu1 %6864  ;;  %v5182_v50 = vunpack.i.h.bf16 %v14107_v41  ;;  %v5181_v33 = vunpack.i.l.bf16 %v14107_v41  ;;  %v5252_v8 = vunpack.i.h.bf16 %v14108_v3  ;;  %v5251_v41 = vunpack.i.l.bf16 %v14108_v3 }
 0x426   : > { %v11039_v55 = vsel %vm13553_vm9, %v10940_v61, %v6916_v15  ;;  %v11043_v2 = vsel %vm13553_vm9, %v10944_v7, %v6917_v45  ;;  %v6867_v56 = vunpack.i.h.bf16 %v6865_v23  ;;  %v6866_v34 = vunpack.i.l.bf16 %v6865_v23  ;;  %v7270_v23 = vld [vmem:[%s7422_s7 + $0x20] sm:$0xff] }
 0x427   : > { %14105 = vst [vmem:[#allocation152_spill] sm:$0xff] %v11039_v55  ;;  %v2686_v21 = vsel %vm2682_vm2, %v7270_v23, %v5157_v51  ;;  %v7274_v23 = vld [vmem:[%s7422_s7 + $0x150] sm:$0xff] }
 0x428   : > { %14106 = vst [vmem:[#allocation151_spill] sm:$0xff] %v11043_v2  ;;  %v6860_v11 = vpop.permute.xlu0 %6859  ;;  %v11050_v61 = vsel %vm2880_vm8, %v10869_v35, %v6866_v34  ;;  %v11054_v7 = vsel %vm2880_vm8, %v10873_v36, %v6867_v56  ;;  %7094 = vrot.lane.b32.xlu2 %v14109_v24, %s7341_s6  ;;  %v7271_v35 = vld [vmem:[%s7422_s7 + $0x8] sm:$0xff]  ;;  %v7272_v36 = vld [vmem:[%s7422_s7] sm:$0xff] }
 0x429   : > { %v6862_v45 = vunpack.i.h.bf16 %v6860_v11  ;;  %v6861_v15 = vunpack.i.l.bf16 %v6860_v11  ;;  %v11064_v34 = vsel %vm2682_vm2, %v7271_v35, %v5152_v46  ;;  %v11068_v56 = vsel %vm2682_vm2, %v7272_v36, %v5151_v29  ;;  %v7273_v11 = vld [vmem:[%s7422_s7 + $0x158] sm:$0xff]  ;;  %v14110_v29 = vld [vmem:[#allocation4_spill] sm:$0xff] }
 0x42a   : > { %v11080_v24 = vsel %vm2682_vm2, %v7273_v11, %v5222_v12  ;;  %v11084_v46 = vsel %vm2682_vm2, %v7274_v23, %v5221_v16  ;;  %v11087_v35 = vsel %vm2715_vm3, %v2685_v60, %v5236_v39  ;;  %v5202_v36 = vunpack.i.h.bf16 %v14110_v29  ;;  %v7275_v12 = vld [vmem:[%s7422_s7 + $0x98] sm:$0xff]  ;;  %v7276_v16 = vld [vmem:[%s7422_s7 + $0x90] sm:$0xff] }
 0x42b   : > { %v11072_v51 = vsel %vm2880_vm8, %v10745_v57, %v6861_v15  ;;  %v11076_v3 = vsel %vm2880_vm8, %v10748_v9, %v6862_v45  ;;  %7089 = vrot.lane.b32.xlu1 %v10675_v43, %s14074_s26  ;;  %v11092_v57 = vpop.permute.xlu2 %6929  ;;  %v11095_v9 = vsel %vm2715_vm3, %v2686_v21, %v5237_v27  ;;  %v11099_v45 = vsel %vm2682_vm2, %v7275_v12, %v5182_v50  ;;  %v14112_v27 = vld [vmem:[#allocation2_spill] sm:$0xff]  ;;  %v14114_v12 = vld [vmem:[#allocation7_spill] sm:$0xff] }
 0x42c   : > { %14111 = vst [vmem:[#allocation277_spill] sm:$0xff] %v11092_v57  ;;  %v11103_v15 = vsel %vm2682_vm2, %v7276_v16, %v5181_v33  ;;  %v5201_v60 = vunpack.i.l.bf16 %v14110_v29  ;;  %v11108_v39 = vsel %vm2715_vm3, %v10961_v13, %v5252_v8  ;;  %v11112_v43 = vsel %vm2715_vm3, %v10979_v20, %v5251_v41  ;;  %7084 = vrot.lane.b32.xlu0 %v14052_v59, %s14074_s26  ;;  %v14113_v50 = vld [vmem:[#allocation6_spill] sm:$0xff]  ;;  %v7277_v20 = vld [vmem:[%s7422_s7 + $0xf8] sm:$0xff]  ;;  %v7278_v57 = vld [vmem:[%s7422_s7 + $0xf0] sm:$0xff] }
 0x42d   : > { %v5197_v21 = vunpack.i.h.bf16 %v14112_v27  ;;  %v5196_v11 = vunpack.i.l.bf16 %v14112_v27  ;;  %v6880_v33 = vpop.permute.xlu1 %6879  ;;  %v5217_v23 = vunpack.i.h.bf16 %v14113_v50  ;;  %v5216_v29 = vunpack.i.l.bf16 %v14113_v50 }
 0x42e   : > { %v6882_v13 = vunpack.i.h.bf16 %v6880_v33  ;;  %v6881_v8 = vunpack.i.l.bf16 %v6880_v33  ;;  %v2704_v41 = vsel %vm2682_vm2, %v7277_v20, %v5202_v36  ;;  %v5212_v16 = vunpack.i.h.bf16 %v14114_v12  ;;  %v7279_v20 = vld [vmem:[%s7422_s7 + $0xe0] sm:$0xff] }
 0x42f   : > { %v5211_v27 = vunpack.i.l.bf16 %v14114_v12  ;;  %v2703_v36 = vsel %vm2682_vm2, %v7278_v57, %v5201_v60  ;;  %v11136_v2 = vsel %vm2682_vm2, %v7279_v20, %v5197_v21  ;;  %v7280_v12 = vld [vmem:[%s7422_s7 + $0xd8] sm:$0xff]  ;;  %v7283_v60 = vld [vmem:[%s7422_s7 + $0x128] sm:$0xff] }
 0x430   : > { %v6875_v48 = vpop.permute.xlu0 %6874  ;;  %v11126_v59 = vsel %vm2880_vm8, %v10894_v18, %v6881_v8  ;;  %v11130_v50 = vsel %vm2880_vm8, %v10898_v4, %v6882_v13  ;;  %v11140_v55 = vsel %vm2682_vm2, %v7280_v12, %v5196_v11  ;;  %v7281_v18 = vld [vmem:[%s7422_s7 + $0x140] sm:$0xff]  ;;  %v2709_v4 = vsel %vm2682_vm2, %v7282_v63, %v5216_v29 }
 0x431   : > { %v6877_v33 = vunpack.i.h.bf16 %v6875_v48  ;;  %v6876_v44 = vunpack.i.l.bf16 %v6875_v48  ;;  %v2710_v8 = vsel %vm2682_vm2, %v7281_v18, %v5217_v23  ;;  %v11156_v21 = vsel %vm2682_vm2, %v7283_v60, %v5212_v16  ;;  %v7284_v11 = vld [vmem:[%s7422_s7 + $0x120] sm:$0xff]  ;;  %v14117_v23 = vld [vmem:[#allocation9_spill] sm:$0xff]  ;;  %v14119_v16 = vld [vmem:[#allocation24_spill] sm:$0xff] }
 0x432   : > { %v11160_v13 = vsel %vm2682_vm2, %v7284_v11, %v5211_v27  ;;  %v5282_v20 = vunpack.i.h.bf16 %v14117_v23  ;;  %v5281_v63 = vunpack.i.l.bf16 %v14117_v23  ;;  %v5297_v18 = vunpack.i.h.bf16 %v14119_v16  ;;  %v14120_v27 = vld [vmem:[#allocation25_spill] sm:$0xff] }
 0x433   : > { %v11148_v48 = vsel %vm2880_vm8, %v10772_v40, %v6876_v44  ;;  %v11152_v57 = vsel %vm2880_vm8, %v10775_v30, %v6877_v33  ;;  %7104 = vrot.lane.b32.xlu1 %v14047_v19, %s14074_s26  ;;  %v6945_v40 = vpop.permute.xlu2 %6944  ;;  %v14118_v44 = vld [vmem:[#allocation10_spill] sm:$0xff]  ;;  %v5296_v60 = vunpack.i.l.bf16 %v14119_v16  ;;  %v5242_v11 = vunpack.i.h.bf16 %v14120_v27 }
 0x434   : > { %14115 = vst [vmem:[#allocation163_spill] sm:$0xff] %v11148_v48  ;;  %v5232_v29 = vunpack.i.h.bf16 %v14118_v44  ;;  %v5231_v30 = vunpack.i.l.bf16 %v14118_v44  ;;  %v6947_v33 = vunpack.i.h.bf16 %v6945_v40  ;;  %v6946_v12 = vunpack.i.l.bf16 %v6945_v40  ;;  %7099 = vrot.lane.b32.xlu0 %v14044_v52, %s14074_s26 }
 0x435   : > { %14116 = vst [vmem:[#allocation162_spill] sm:$0xff] %v11152_v57  ;;  %v5241_v31 = vunpack.i.l.bf16 %v14120_v27  ;;  %v6895_v23 = vpop.permute.xlu1 %6894  ;;  %v5312_v16 = vunpack.i.h.bf16 %v14123_v14  ;;  %v5262_v27 = vunpack.i.h.bf16 %v14124_v58  ;;  %v14125_v57 = vld [vmem:[#allocation28_spill] sm:$0xff]  ;;  %v11199_v14 = vsel %vm2715_vm3, %v2704_v41, %v5282_v20 }
 0x436   : > { %v11176_v19 = vsel %vm13553_vm9, %v11050_v61, %v6946_v12  ;;  %v11180_v44 = vsel %vm13553_vm9, %v11054_v7, %v6947_v33  ;;  %v6897_v40 = vunpack.i.h.bf16 %v6895_v23  ;;  %v6896_v28 = vunpack.i.l.bf16 %v6895_v23 }
 0x437   : > { %14121 = vst [vmem:[#allocation132_spill] sm:$0xff] %v11176_v19  ;;  %v5257_v48 = vunpack.i.h.bf16 %v14125_v57  ;;  %v5256_v61 = vunpack.i.l.bf16 %v14125_v57  ;;  %v11202_v12 = vsel %vm2715_vm3, %v2703_v36, %v5281_v63  ;;  %v2716_v58 = vsel %vm2715_vm3, %v11068_v56, %v5231_v30  ;;  %v14128_v30 = vld [vmem:[#allocation32_spill] sm:$0xff] }
 0x438   : > { %14122 = vst [vmem:[#allocation131_spill] sm:$0xff] %v11180_v44  ;;  %v11186_v52 = vpop.permute.xlu0 %6889  ;;  %v11192_v7 = vsel %vm2880_vm8, %v10921_v10, %v6896_v28  ;;  %v11196_v33 = vsel %vm2880_vm8, %v10925_v49, %v6897_v40  ;;  %v2717_v57 = vsel %vm2715_vm3, %v11064_v34, %v5232_v29  ;;  %v11209_v23 = vsel %vm2715_vm3, %v2710_v8, %v5297_v18  ;;  %v14127_v29 = vld [vmem:[#allocation31_spill] sm:$0xff] }
 0x439   : > { %v11212_v28 = vsel %vm2715_vm3, %v2709_v4, %v5296_v60  ;;  %v11216_v10 = vsel %vm2715_vm3, %v11012_v38, %v5242_v11  ;;  %v11220_v49 = vsel %vm2715_vm3, %v11024_v26, %v5241_v31  ;;  %v11223_v41 = vsel %vm2748_vm4, %v2716_v58, %v5311_v42  ;;  %v14126_v4 = vld [vmem:[#allocation30_spill] sm:$0xff]  ;;  %v14131_v60 = vld [vmem:[#allocation33_spill] sm:$0xff] }
 0x43a   : > { %v11226_v56 = vsel %vm2748_vm4, %v2717_v57, %v5312_v16  ;;  %v2728_v34 = vsel %vm2715_vm3, %v11103_v15, %v5261_v22  ;;  %v2729_v36 = vsel %vm2715_vm3, %v11099_v45, %v5262_v27  ;;  %v11234_v38 = vsel %vm2715_vm3, %v10983_v47, %v5257_v48  ;;  %v14132_v16 = vld [vmem:[#allocation35_spill] sm:$0xff]  ;;  %v14133_v57 = vld [vmem:[#allocation37_spill] sm:$0xff] }
 0x43b   : > { %v6960_v8 = vpop.permute.xlu2 %6959  ;;  %v11238_v31 = vsel %vm2715_vm3, %v10998_v17, %v5256_v61  ;;  %v5277_v20 = vunpack.i.h.bf16 %v14126_v4  ;;  %v5276_v63 = vunpack.i.l.bf16 %v14126_v4  ;;  %v5272_v22 = vunpack.i.h.bf16 %v14127_v29 }
 0x43c   : > { %v6962_v42 = vunpack.i.h.bf16 %v6960_v8  ;;  %v6961_v26 = vunpack.i.l.bf16 %v6960_v8  ;;  %v5271_v15 = vunpack.i.l.bf16 %v14127_v29  ;;  %v5342_v18 = vunpack.i.h.bf16 %v14128_v30 }
 0x43d   : > { %v11244_v45 = vpop.permute.xlu1 %6909  ;;  %v5341_v47 = vunpack.i.l.bf16 %v14128_v30  ;;  %v5292_v11 = vunpack.i.h.bf16 %v14131_v60  ;;  %v5291_v40 = vunpack.i.l.bf16 %v14131_v60  ;;  %v5357_v27 = vunpack.i.h.bf16 %v14132_v16 }
 0x43e   : > { %v11250_v17 = vsel %vm13553_vm9, %v11126_v59, %v6961_v26  ;;  %v11254_v48 = vsel %vm13553_vm9, %v11130_v50, %v6962_v42  ;;  %v5356_v61 = vunpack.i.l.bf16 %v14132_v16  ;;  %v5302_v8 = vunpack.i.h.bf16 %v14133_v57 }
 0x43f   : > { %14129 = vst [vmem:[#allocation119_spill] sm:$0xff] %v11250_v17  ;;  %v5301_v4 = vunpack.i.l.bf16 %v14133_v57  ;;  %v2734_v26 = vsel %vm2715_vm3, %v11140_v55, %v5276_v63  ;;  %v2735_v50 = vsel %vm2715_vm3, %v11136_v2, %v5277_v20  ;;  %v11268_v42 = vsel %vm2715_vm3, %v11002_v0, %v5272_v22  ;;  %v14135_v22 = vld [vmem:[#allocation39_spill] sm:$0xff]  ;;  %v14172_v17 = vld [vmem:[#allocation284_spill] sm:$0xff] }
 0x440   : > { %14130 = vst [vmem:[#allocation118_spill] sm:$0xff] %v11254_v48  ;;  %v6905_v58 = vpop.permute.xlu0 %6904  ;;  %v11272_v30 = vsel %vm2715_vm3, %v11008_v32, %v5271_v15  ;;  %v11275_v60 = vsel %vm2748_vm4, %v2728_v34, %v5341_v47  ;;  %v11278_v16 = vsel %vm2748_vm4, %v2729_v36, %v5342_v18  ;;  %v2740_v0 = vsel %vm2715_vm3, %v11160_v13, %v5291_v40  ;;  %v14134_v13 = vld [vmem:[#allocation38_spill] sm:$0xff]  ;;  %v14136_v47 = vld [vmem:[#allocation40_spill] sm:$0xff]  ;;  %v14170_v48 = vld [vmem:[#allocation305_spill] sm:$0xff] }
 0x441   : > { %v6907_v29 = vunpack.i.h.bf16 %v6905_v58  ;;  %v6906_v59 = vunpack.i.l.bf16 %v6905_v58  ;;  %v2741_v32 = vsel %vm2715_vm3, %v11156_v21, %v5292_v11  ;;  %v11293_v34 = vsel %vm2748_vm4, %v2734_v26, %v5356_v61  ;;  %v14137_v61 = vld [vmem:[#allocation42_spill] sm:$0xff] }
 0x442   : > { %v11296_v36 = vsel %vm2748_vm4, %v2735_v50, %v5357_v27  ;;  %v5372_v63 = vunpack.i.h.bf16 %v14134_v13  ;;  %v5371_v21 = vunpack.i.l.bf16 %v14134_v13  ;;  %v5322_v15 = vunpack.i.h.bf16 %v14135_v22 }
 0x443   : > { %v11282_v55 = vsel %vm2880_vm8, %v10830_v62, %v6906_v59  ;;  %v11286_v2 = vsel %vm2880_vm8, %v10833_v5, %v6907_v29  ;;  %v11298_v20 = vpop.permute.xlu2 %6974  ;;  %v11302_v62 = vsel %vm2715_vm3, %v11080_v24, %v5302_v8  ;;  %v11306_v5 = vsel %vm2715_vm3, %v11084_v46, %v5301_v4  ;;  %v14138_v8 = vld [vmem:[#allocation43_spill] sm:$0xff]  ;;  %v14139_v59 = vld [vmem:[#allocation44_spill] sm:$0xff] }
 0x444   : > { %v5321_v18 = vunpack.i.l.bf16 %v14135_v22  ;;  %v5317_v11 = vunpack.i.h.bf16 %v14136_v47  ;;  %v5316_v40 = vunpack.i.l.bf16 %v14136_v47  ;;  %v5337_v24 = vunpack.i.h.bf16 %v14137_v61 }
 0x445   : > { %v6925_v27 = vpop.permute.xlu1 %6924  ;;  %v5336_v58 = vunpack.i.l.bf16 %v14137_v61  ;;  %v5332_v4 = vunpack.i.h.bf16 %v14138_v8  ;;  %v5331_v29 = vunpack.i.l.bf16 %v14138_v8  ;;  %v5402_v26 = vunpack.i.h.bf16 %v14139_v59 }
 0x446   : > { %v6927_v57 = vunpack.i.h.bf16 %v6925_v27  ;;  %v6926_v46 = vunpack.i.l.bf16 %v6925_v27  ;;  %v5401_v50 = vunpack.i.l.bf16 %v14139_v59  ;;  %v11329_v27 = vsel %vm2748_vm4, %v2740_v0, %v5371_v21  ;;  %v14145_v21 = vld [vmem:[#allocation47_spill] sm:$0xff] }
 0x447   : > { %v11332_v8 = vsel %vm2748_vm4, %v2741_v32, %v5372_v63  ;;  %v2753_v59 = vsel %vm2748_vm4, %v11220_v49, %v5321_v18  ;;  %v2754_v44 = vsel %vm2748_vm4, %v11216_v10, %v5322_v15  ;;  %v2759_v49 = vsel %vm2748_vm4, %v11238_v31, %v5336_v58  ;;  %v14144_v31 = vld [vmem:[#allocation45_spill] sm:$0xff] }
 0x448   : > { %v6920_v13 = vpop.permute.xlu0 %6919  ;;  %v11322_v22 = vsel %vm13553_vm9, %v11016_v1, %v6926_v46  ;;  %v11326_v47 = vsel %vm13553_vm9, %v11020_v37, %v6927_v57  ;;  %v2751_v1 = vsel %vm2748_vm4, %v11087_v35, %v5316_v40  ;;  %v11342_v37 = vsel %vm2748_vm4, %v11095_v9, %v5317_v11  ;;  %v14146_v18 = vld [vmem:[#allocation49_spill] sm:$0xff] }
 0x449   : > { %14140 = vst [vmem:[#allocation294_spill] sm:$0xff] %v11322_v22  ;;  %v6922_v61 = vunpack.i.h.bf16 %v6920_v13  ;;  %v6921_v19 = vunpack.i.l.bf16 %v6920_v13  ;;  %v2760_v10 = vsel %vm2748_vm4, %v11234_v38, %v5337_v24  ;;  %v11358_v35 = vsel %vm2748_vm4, %v11108_v39, %v5332_v4  ;;  %v14147_v24 = vld [vmem:[#allocation50_spill] sm:$0xff]  ;;  %v14148_v4 = vld [vmem:[#allocation51_spill] sm:$0xff] }
 0x44a   : > { %14141 = vst [vmem:[#allocation198_spill] sm:$0xff] %v11326_v47  ;;  %v11362_v9 = vsel %vm2748_vm4, %v11112_v43, %v5331_v29  ;;  %v5352_v63 = vunpack.i.h.bf16 %v14144_v31  ;;  %v5351_v38 = vunpack.i.l.bf16 %v14144_v31  ;;  %v5417_v15 = vunpack.i.h.bf16 %v14145_v21 }
 0x44b   : > { %v11346_v0 = vsel %vm13553_vm9, %v10854_v25, %v6921_v19  ;;  %v11350_v32 = vsel %vm13553_vm9, %v10857_v54, %v6922_v61  ;;  %v11364_v25 = vpop.permute.xlu2 %6989  ;;  %v11367_v19 = vsel %vm2781_vm5, %v2753_v59, %v5401_v50  ;;  %v11370_v54 = vsel %vm2781_vm5, %v2754_v44, %v5402_v26  ;;  %v14149_v50 = vld [vmem:[#allocation52_spill] sm:$0xff] }
 0x44c   : > { %14142 = vst [vmem:[#allocation197_spill] sm:$0xff] %v11346_v0  ;;  %v5416_v39 = vunpack.i.l.bf16 %v14145_v21  ;;  %v5362_v11 = vunpack.i.h.bf16 %v14146_v18  ;;  %v5361_v43 = vunpack.i.l.bf16 %v14146_v18  ;;  %v5432_v58 = vunpack.i.h.bf16 %v14147_v24 }
 0x44d   : > { %14143 = vst [vmem:[#allocation144_spill] sm:$0xff] %v11350_v32  ;;  %v6940_v40 = vpop.permute.xlu1 %6939  ;;  %v5431_v57 = vunpack.i.l.bf16 %v14147_v24  ;;  %v5382_v29 = vunpack.i.h.bf16 %v14148_v4  ;;  %v5381_v26 = vunpack.i.l.bf16 %v14148_v4  ;;  %v5377_v13 = vunpack.i.h.bf16 %v14149_v50  ;;  %v14162_v32 = vld [vmem:[#allocation63_spill] sm:$0xff] }
 0x44e   : > { %v6942_v46 = vunpack.i.h.bf16 %v6940_v40  ;;  %v6941_v44 = vunpack.i.l.bf16 %v6940_v40  ;;  %v5376_v61 = vunpack.i.l.bf16 %v14149_v50  ;;  %v2765_v40 = vsel %vm2748_vm4, %v11272_v30, %v5351_v38  ;;  %v14152_v50 = vld [vmem:[#allocation54_spill] sm:$0xff] }
 0x44f   : > { %v2766_v4 = vsel %vm2748_vm4, %v11268_v42, %v5352_v63  ;;  %v11397_v22 = vsel %vm2781_vm5, %v2759_v49, %v5416_v39  ;;  %v5396_v47 = vunpack.i.l.bf16 %v14152_v50  ;;  %v2769_v42 = vsel %vm2748_vm4, %v11202_v12, %v5361_v43  ;;  %v14154_v39 = vld [vmem:[#allocation55_spill] sm:$0xff] }
 0x450   : > { %v6935_v59 = vpop.permute.xlu0 %6934  ;;  %v11386_v31 = vsel %vm13553_vm9, %v11072_v51, %v6941_v44  ;;  %v11390_v21 = vsel %vm13553_vm9, %v11076_v3, %v6942_v46  ;;  %v11401_v51 = vsel %vm2781_vm5, %v2760_v10, %v5417_v15  ;;  %v2770_v3 = vsel %vm2748_vm4, %v11199_v14, %v5362_v11 }
 0x451   : > { %14150 = vst [vmem:[#allocation143_spill] sm:$0xff] %v11386_v31  ;;  %v6937_v18 = vunpack.i.h.bf16 %v6935_v59  ;;  %v6936_v24 = vunpack.i.l.bf16 %v6935_v59  ;;  %v11416_v49 = vsel %vm2781_vm5, %v2765_v40, %v5431_v57  ;;  %v11419_v10 = vsel %vm2781_vm5, %v2766_v4, %v5432_v58  ;;  %v14159_v40 = vld [vmem:[#allocation62_spill] sm:$0xff] }
 0x452   : > { %14151 = vst [vmem:[#allocation125_spill] sm:$0xff] %v11390_v21  ;;  %v2777_v14 = vsel %vm2748_vm4, %v11306_v5, %v5381_v26  ;;  %v2775_v12 = vsel %vm2748_vm4, %v11212_v28, %v5376_v61  ;;  %v5397_v38 = vunpack.i.h.bf16 %v14152_v50  ;;  %v2784_v15 = vsel %vm2781_vm5, %v2751_v1, %v5396_v47  ;;  %v14155_v5 = vld [vmem:[#allocation56_spill] sm:$0xff]  ;;  %v14157_v28 = vld [vmem:[#allocation59_spill] sm:$0xff]  ;;  %v14158_v47 = vld [vmem:[#allocation61_spill] sm:$0xff] }
 0x453   : > { %v11407_v46 = vsel %vm13553_vm9, %v10879_v6, %v6936_v24  ;;  %v11411_v30 = vsel %vm13553_vm9, %v10882_v53, %v6937_v18  ;;  %v11423_v63 = vpop.permute.xlu2 %7004  ;;  %v2778_v6 = vsel %vm2748_vm4, %v11302_v62, %v5382_v29  ;;  %v2776_v53 = vsel %vm2748_vm4, %v11209_v23, %v5377_v13  ;;  %v14156_v62 = vld [vmem:[#allocation57_spill] sm:$0xff]  ;;  %v14160_v50 = vld [vmem:[#allocation163_spill] sm:$0xff] }
 0x454   : > { %14153 = vst [vmem:[#allocation124_spill] sm:$0xff] %v11411_v30  ;;  %v5392_v11 = vunpack.i.h.bf16 %v14154_v39  ;;  %v5391_v43 = vunpack.i.l.bf16 %v14154_v39  ;;  %v5462_v58 = vunpack.i.h.bf16 %v14155_v5  ;;  %v5461_v44 = vunpack.i.l.bf16 %v14155_v5  ;;  %v14161_v5 = vld [vmem:[#allocation162_spill] sm:$0xff] }
 0x455   : > { %v6955_v57 = vpop.permute.xlu1 %6954  ;;  %v5412_v29 = vunpack.i.h.bf16 %v14156_v62  ;;  %v5411_v13 = vunpack.i.l.bf16 %v14156_v62  ;;  %v5477_v61 = vunpack.i.h.bf16 %v14157_v28  ;;  %v5476_v59 = vunpack.i.l.bf16 %v14157_v28 }
 0x456   : > { %v6957_v26 = vunpack.i.h.bf16 %v6955_v57  ;;  %v6956_v23 = vunpack.i.l.bf16 %v6955_v57  ;;  %v5422_v1 = vunpack.i.h.bf16 %v14158_v47  ;;  %v5421_v24 = vunpack.i.l.bf16 %v14158_v47 }
 0x457   : > { %v5491_v4 = vunpack.i.l.bf16 %v14159_v40  ;;  %v2785_v62 = vsel %vm2781_vm5, %v11342_v37, %v5397_v38  ;;  %v5492_v28 = vunpack.i.h.bf16 %v14159_v40  ;;  %v5442_v0 = vunpack.i.h.bf16 %v14162_v32 }
 0x458   : > { %v11442_v18 = vpop.permute.xlu0 %6949  ;;  %v11448_v39 = vsel %vm13553_vm9, %v14160_v50, %v6956_v23  ;;  %v11452_v57 = vsel %vm13553_vm9, %v14161_v5, %v6957_v26  ;;  %v5441_v21 = vunpack.i.l.bf16 %v14162_v32  ;;  %v2782_v47 = vsel %vm2781_vm5, %v11223_v41, %v5391_v43  ;;  %v14163_v26 = vld [vmem:[#allocation64_spill] sm:$0xff] }
 0x459   : > { %v2783_v23 = vsel %vm2781_vm5, %v11226_v56, %v5392_v11  ;;  %v11464_v50 = vsel %vm2781_vm5, %v2777_v14, %v5461_v44  ;;  %v5436_v5 = vunpack.i.l.bf16 %v14163_v26  ;;  %v11468_v31 = vsel %vm2781_vm5, %v2778_v6, %v5462_v58 }
 0x45a   : > { %v2790_v37 = vsel %vm2781_vm5, %v11362_v9, %v5411_v13  ;;  %v2791_v32 = vsel %vm2781_vm5, %v11358_v35, %v5412_v29  ;;  %v11475_v38 = vsel %vm2814_vm6, %v2784_v15, %v5476_v59  ;;  %v11480_v56 = vsel %vm2814_vm6, %v2785_v62, %v5477_v61  ;;  %v14165_v13 = vld [vmem:[#allocation67_spill] sm:$0xff] }
 0x45b   : > { %v11477_v41 = vpop.permute.xlu2 %7019  ;;  %v11484_v14 = vsel %vm2781_vm5, %v11275_v60, %v5421_v24  ;;  %v11488_v6 = vsel %vm2781_vm5, %v11278_v16, %v5422_v1  ;;  %v11491_v9 = vsel %vm2814_vm6, %v2790_v37, %v5491_v4  ;;  %v11494_v35 = vsel %vm2814_vm6, %v2791_v32, %v5492_v28  ;;  %v14164_v16 = vld [vmem:[#allocation66_spill] sm:$0xff]  ;;  %v14166_v1 = vld [vmem:[#allocation68_spill] sm:$0xff]  ;;  %v14168_v4 = vld [vmem:[#allocation71_spill] sm:$0xff] }
 0x45c   : > { %v2802_v15 = vsel %vm2781_vm5, %v2769_v42, %v5441_v21  ;;  %v2803_v11 = vsel %vm2781_vm5, %v2770_v3, %v5442_v0  ;;  %v5437_v43 = vunpack.i.h.bf16 %v14163_v26  ;;  %v11503_v60 = vsel %vm2781_vm5, %v11293_v34, %v5436_v5  ;;  %v14167_v3 = vld [vmem:[#allocation69_spill] sm:$0xff] }
 0x45d   : > { %v11499_v58 = vpop.permute.xlu1 %6969  ;;  %v5457_v44 = vunpack.i.h.bf16 %v14164_v16  ;;  %v5456_v29 = vunpack.i.l.bf16 %v14164_v16  ;;  %v5452_v61 = vunpack.i.h.bf16 %v14165_v13  ;;  %v5451_v59 = vunpack.i.l.bf16 %v14165_v13  ;;  %v14169_v37 = vld [vmem:[#allocation73_spill] sm:$0xff] }
 0x45e   : > { %v5522_v21 = vunpack.i.h.bf16 %v14166_v1  ;;  %v5521_v0 = vunpack.i.l.bf16 %v14166_v1  ;;  %v5472_v42 = vunpack.i.h.bf16 %v14167_v3  ;;  %v5471_v40 = vunpack.i.l.bf16 %v14167_v3 }
 0x45f   : > { %v5536_v34 = vunpack.i.l.bf16 %v14168_v4  ;;  %v2801_v26 = vsel %vm2781_vm5, %v11296_v36, %v5437_v43  ;;  %v5537_v5 = vunpack.i.h.bf16 %v14168_v4  ;;  %v5482_v32 = vunpack.i.h.bf16 %v14169_v37 }
 0x460   : > { %v6965_v24 = vpop.permute.xlu0 %6964  ;;  %v5481_v16 = vunpack.i.l.bf16 %v14169_v37  ;;  %v2808_v13 = vsel %vm2781_vm5, %v2775_v12, %v5456_v29  ;;  %v2809_v1 = vsel %vm2781_vm5, %v2776_v53, %v5457_v44  ;;  %v11531_v36 = vsel %vm2781_vm5, %v11329_v27, %v5451_v59  ;;  %v14174_v53 = vld [vmem:[#allocation74_spill] sm:$0xff]  ;;  %v505_v37 = vld [vmem:[%s9373_s16 + $0x1a8] sm:$0x3] }
 0x461   : > { %v6967_v62 = vunpack.i.h.bf16 %v6965_v24  ;;  %v6966_v28 = vunpack.i.l.bf16 %v6965_v24  ;;  %v11535_v43 = vsel %vm2781_vm5, %v11332_v8, %v5452_v61  ;;  %v11538_v12 = vsel %vm2814_vm6, %v2802_v15, %v5521_v0  ;;  %v14175_v59 = vld [vmem:[#allocation278_spill] sm:$0xff] }
 0x462   : > { %v5551_v44 = vunpack.i.l.bf16 %v14174_v53  ;;  %v2816_v4 = vsel %vm2814_vm6, %v2783_v23, %v5472_v42  ;;  %v11549_v27 = vsel %vm2814_vm6, %v2808_v13, %v5536_v34  ;;  %v11552_v8 = vsel %vm2814_vm6, %v2809_v1, %v5537_v5 }
 0x463   : > { %v11523_v3 = vsel %vm13553_vm9, %v14170_v48, %v6966_v28  ;;  %v11527_v24 = vsel %vm13553_vm9, %v14172_v17, %v6967_v62  ;;  %v11541_v29 = vpop.permute.xlu2 %7034  ;;  %v11544_v48 = vsel %vm2814_vm6, %v2803_v11, %v5522_v21  ;;  %v2815_v17 = vsel %vm2814_vm6, %v2782_v47, %v5471_v40  ;;  %v14176_v21 = vld [vmem:[#allocation266_spill] sm:$0xff]  ;;  %v14178_v62 = vld [vmem:[#allocation75_spill] sm:$0xff] }
 0x464   : > { %14171 = vst [vmem:[#allocation302_spill] sm:$0xff] %v11523_v3  ;;  %v11556_v15 = vsel %vm2814_vm6, %v11367_v19, %v5481_v16  ;;  %v11560_v61 = vsel %vm2814_vm6, %v11370_v54, %v5482_v32  ;;  %v5552_v11 = vunpack.i.h.bf16 %v14174_v53  ;;  %v1233_v23 = vrot.slane %v14175_v59, 1  ;;  %v14180_v16 = vld [vmem:[#allocation76_spill] sm:$0xff] }
 0x465   : > { %14173 = vst [vmem:[#allocation156_spill] sm:$0xff] %v11527_v24  ;;  %v6985_v47 = vpop.permute.xlu1 %6984  ;;  %v1232_v0 = vrot.slane %v14176_v21, 1  ;;  %v11566_v34 = vsel %vm2847_vm7, %v2815_v17, %v5551_v44  ;;  %v5502_v28 = vunpack.i.h.bf16 %v14178_v62  ;;  %v1238_v19 = vrot.slane %v14175_v59, 2  ;;  %v14183_v17 = vld [vmem:[#allocation78_spill] sm:$0xff]  ;;  %v14184_v24 = vld [vmem:[#allocation79_spill] sm:$0xff] }
 0x466   : > { %v6987_v42 = vunpack.i.h.bf16 %v6985_v47  ;;  %v6986_v40 = vunpack.i.l.bf16 %v6985_v47  ;;  %14177 = vst [vmem:[#allocation155_spill] sm:$0xff] %v11566_v34  ;;  %v1237_v5 = vrot.slane %v14176_v21, 2  ;;  %v5501_v32 = vunpack.i.l.bf16 %v14178_v62 }
 0x467   : > { %v5497_v13 = vunpack.i.h.bf16 %v14180_v16  ;;  %v5496_v44 = vunpack.i.l.bf16 %v14180_v16  ;;  %v5517_v47 = vunpack.i.h.bf16 %v14183_v17  ;;  %v1235_v59 = vrot.slane %v505_v37, 1 }
 0x468   : > { %v11571_v54 = vpop.permute.xlu0 %6979  ;;  %v11578_v1 = vsel %vm13553_vm9, %v11282_v55, %v6986_v40  ;;  %v11582_v53 = vsel %vm13553_vm9, %v11286_v2, %v6987_v42  ;;  %v1240_v21 = vrot.slane %v505_v37, 2  ;;  %v5516_v3 = vunpack.i.l.bf16 %v14183_v17  ;;  %v14185_v55 = vld [vmem:[#allocation80_spill] sm:$0xff] }
 0x469   : > { %14179 = vst [vmem:[#allocation137_spill] sm:$0xff] %v11571_v54  ;;  %v5512_v62 = vunpack.i.h.bf16 %v14184_v24  ;;  %v5511_v34 = vunpack.i.l.bf16 %v14184_v24  ;;  %v11590_v54 = vsel %vm554_vm0, %v1232_v0, %v1233_v23  ;;  %v5581_v40 = vunpack.i.l.bf16 %v14185_v55  ;;  %v14194_v17 = vld [vmem:[#allocation272_spill] sm:$0xff] }
 0x46a   : > { %14181 = vst [vmem:[#allocation289_spill] sm:$0xff] %v11578_v1  ;;  %v11596_v2 = vsel %vm554_vm0, %v1233_v23, %v1235_v59  ;;  %v11599_v42 = vsel %vm635_vm1, %v1237_v5, %v1238_v19  ;;  %v11602_v37 = vsel %vm635_vm1, %v1238_v19, %v1240_v21  ;;  %v11605_v16 = vsel %vm2847_vm7, %v2816_v4, %v5552_v11 }
 0x46b   : > { %14182 = vst [vmem:[#allocation136_spill] sm:$0xff] %v11582_v53  ;;  %v11593_v1 = vpop.permute.xlu2 %7049  ;;  %v5582_v24 = vunpack.i.h.bf16 %v14185_v55  ;;  %v2827_v23 = vsel %vm2814_vm6, %v11484_v14, %v5501_v32  ;;  %v2828_v5 = vsel %vm2814_vm6, %v11488_v6, %v5502_v28  ;;  %v11618_v19 = vsel %vm2814_vm6, %v11397_v22, %v5496_v44  ;;  %v14191_v44 = vld [vmem:[#allocation295_spill] sm:$0xff] }
 0x46c   : > { %14186 = vst [vmem:[#allocation171_spill] sm:$0xff] %v11605_v16  ;;  %v6952_v4 = vunpack.i.h.bf16 %v11442_v18  ;;  %v11625_v59 = vsel %vm2814_vm6, %v11401_v51, %v5497_v13  ;;  %v11629_v21 = vsel %vm2814_vm6, %v11503_v60, %v5516_v3  ;;  %v11632_v14 = vsel %vm2814_vm6, %v2801_v26, %v5517_v47  ;;  %v14190_v26 = vld [vmem:[#allocation81_spill] sm:$0xff]  ;;  %v14195_v53 = vld [vmem:[#allocation287_spill] sm:$0xff] }
 0x46d   : > { %v11621_v11 = vpop.permute.xlu1 %6999  ;;  %v11636_v6 = vsel %vm2814_vm6, %v11416_v49, %v5511_v34  ;;  %v11640_v22 = vsel %vm2814_vm6, %v11419_v10, %v5512_v62  ;;  %v11643_v28 = vsel %vm2847_vm7, %v2827_v23, %v5581_v40  ;;  %v6892_v51 = vunpack.i.h.bf16 %v11186_v52 }
 0x46e   : > { %14187 = vst [vmem:[#allocation170_spill] sm:$0xff] %v11621_v11  ;;  %v6891_v32 = vunpack.i.l.bf16 %v11186_v52  ;;  %v11648_v3 = vsel %vm2847_vm7, %v2828_v5, %v5582_v24  ;;  %v5532_v13 = vunpack.i.h.bf16 %v14190_v26  ;;  %v7006_v49 = vunpack.i.l.bf16 %v11423_v63  ;;  %v14192_v52 = vld [vmem:[#allocation83_spill] sm:$0xff]  ;;  %v14193_v24 = vld [vmem:[#allocation270_spill] sm:$0xff] }
 0x46f   : > { %14188 = vst [vmem:[#allocation315_spill] sm:$0xff] %v11643_v28  ;;  %v6951_v34 = vunpack.i.l.bf16 %v11442_v18  ;;  %v4378_v10 = vsel %vm13553_vm9, %v14191_v44, %v6952_v4  ;;  %v6971_v47 = vunpack.i.l.bf16 %v11499_v58  ;;  %v5531_v40 = vunpack.i.l.bf16 %v14190_v26 }
 0x470   : > { %v6995_v60 = vpop.permute.xlu0 %6994  ;;  %14189 = vst [vmem:[#allocation310_spill] sm:$0xff] %v11648_v3  ;;  %v5596_v23 = vunpack.i.l.bf16 %v14192_v52  ;;  %v4353_v5 = vsel %vm2880_vm8, %v14193_v24, %v6891_v32  ;;  %v4354_v0 = vsel %vm2880_vm8, %v14194_v17, %v6892_v51  ;;  %v7007_v18 = vunpack.i.h.bf16 %v11423_v63  ;;  %v14196_v32 = vld [vmem:[#allocation152_spill] sm:$0xff]  ;;  %v14197_v17 = vld [vmem:[#allocation151_spill] sm:$0xff] }
 0x471   : > { %v6997_v62 = vunpack.i.h.bf16 %v6995_v60  ;;  %v6996_v55 = vunpack.i.l.bf16 %v6995_v60  ;;  %v7002_v4 = vunpack.i.h.bf16 %v11621_v11  ;;  %v4377_v60 = vsel %vm13553_vm9, %v14195_v53, %v6951_v34 }
 0x472   : > { %v4410_v28 = vsel %vm2946_vm10, %v4378_v10, %v7006_v49  ;;  %v6972_v16 = vunpack.i.h.bf16 %v11499_v58  ;;  %v4385_v30 = vsel %vm13553_vm9, %v4353_v5, %v6971_v47  ;;  %v7022_v49 = vunpack.i.h.bf16 %v11477_v41 }
 0x473   : > { %v7065_v44 = vpop.permute.xlu2 %7064  ;;  %v4395_v24 = vsel %vm2946_vm10, %v14196_v32, %v6996_v55  ;;  %v4396_v63 = vsel %vm2946_vm10, %v14197_v17, %v6997_v62  ;;  %v7021_v58 = vunpack.i.l.bf16 %v11477_v41  ;;  %v4409_v10 = vsel %vm2946_vm10, %v4377_v60, %v7002_v4 }
 0x474   : > { %v7067_v3 = vunpack.i.h.bf16 %v7065_v44  ;;  %v7066_v26 = vunpack.i.l.bf16 %v7065_v44  ;;  %v4417_v62 = vsel %vm2946_vm10, %v4385_v30, %v7007_v18  ;;  %v2839_v32 = vsel %vm2814_vm6, %v11531_v36, %v5531_v40  ;;  %v14199_v40 = vld [vmem:[#allocation85_spill] sm:$0xff] }
 0x475   : > { %v7015_v51 = vpop.permute.xlu1 %7014  ;;  %v4386_v41 = vsel %vm13553_vm9, %v4354_v0, %v6972_v16  ;;  %v2840_v4 = vsel %vm2814_vm6, %v11535_v43, %v5532_v13  ;;  %v6912_v60 = vunpack.i.h.bf16 %v11244_v45  ;;  %v6911_v30 = vunpack.i.l.bf16 %v11244_v45 }
 0x476   : > { %v11674_v11 = vsel %vm2979_vm11, %v4395_v24, %v7066_v26  ;;  %v11677_v53 = vsel %vm2979_vm11, %v4396_v63, %v7067_v3  ;;  %v7017_v34 = vunpack.i.h.bf16 %v7015_v51  ;;  %v7016_v44 = vunpack.i.l.bf16 %v7015_v51  ;;  %v14198_v24 = vld [vmem:[#allocation277_spill] sm:$0xff] }
 0x477   : > { %v7178_v47 = vpack.i.bf16 %v11677_v53, %v11674_v11  ;;  %v6931_v17 = vunpack.i.l.bf16 %v14198_v24  ;;  %v6991_v51 = vunpack.i.l.bf16 %v11364_v25  ;;  %v4449_v36 = vsel %vm2979_vm11, %v4417_v62, %v7021_v58  ;;  %v14201_v62 = vld [vmem:[#allocation128_spill] sm:$0xff]  ;;  %v14239_v11 = vld [vmem:[#allocation138_spill] sm:$0xff] }
 0x478   : > { %v7010_v55 = vpop.permute.xlu0 %7009  ;;  %v4441_v5 = vsel %vm2979_vm11, %v4409_v10, %v7016_v44  ;;  %v4442_v26 = vsel %vm2979_vm11, %v4410_v28, %v7017_v34  ;;  %v6992_v28 = vunpack.i.h.bf16 %v11364_v25  ;;  %v5597_v0 = vunpack.i.h.bf16 %v14192_v52  ;;  %v14200_v10 = vld [vmem:[#allocation318_spill] sm:$0xff]  ;;  %v14202_v52 = vld [vmem:[#allocation127_spill] sm:$0xff] }
 0x479   : > { %v7011_v3 = vunpack.i.l.bf16 %v7010_v55  ;;  %v7108_v63 = vpack.i.bf16 %v4442_v26, %v4441_v5  ;;  %v11704_v43 = vsel %vm2847_vm7, %v11629_v21, %v5596_v23  ;;  %v7012_v45 = vunpack.i.h.bf16 %v7010_v55 }
 0x47a   : > { %v5542_v34 = vunpack.i.h.bf16 %v14199_v40  ;;  %v5541_v44 = vunpack.i.l.bf16 %v14199_v40  ;;  %v6932_v25 = vunpack.i.h.bf16 %v14198_v24  ;;  %v4369_v5 = vsel %vm13553_vm9, %v14200_v10, %v6931_v17  ;;  %v14204_v40 = vld [vmem:[#allocation321_spill] sm:$0xff]  ;;  %v14205_v10 = vld [vmem:[#allocation87_spill] sm:$0xff] }
 0x47b   : > { %v4418_v18 = vsel %vm2946_vm10, %v4386_v41, %v7011_v3  ;;  %7109 = vrot.lane.b32.xlu2 %v7108_v63, %s7348_s8  ;;  %v4362_v26 = vsel %vm13553_vm9, %v14202_v52, %v6912_v60  ;;  %v7037_v24 = vunpack.i.h.bf16 %v11541_v29  ;;  %v7036_v41 = vunpack.i.l.bf16 %v11541_v29 }
 0x47c   : > { %v4450_v16 = vsel %vm2979_vm11, %v4418_v18, %v7022_v49  ;;  %v4361_v49 = vsel %vm13553_vm9, %v14201_v62, %v6911_v30  ;;  %v4394_v3 = vsel %vm2946_vm10, %v4362_v26, %v6992_v28  ;;  %v4401_v63 = vsel %vm2946_vm10, %v4369_v5, %v7012_v45  ;;  %v14206_v26 = vld [vmem:[#allocation88_spill] sm:$0xff] }
 0x47d   : > { %v7113_v13 = vpack.i.bf16 %v4450_v16, %v4449_v36  ;;  %v7030_v58 = vpop.permute.xlu1 %7029  ;;  %v4393_v55 = vsel %vm2946_vm10, %v4361_v49, %v6991_v51  ;;  %v14203_v36 = vld [vmem:[#allocation86_spill] sm:$0xff]  ;;  %v4370_v51 = vsel %vm13553_vm9, %v14204_v40, %v6932_v25  ;;  %v5561_v29 = vunpack.i.l.bf16 %v14205_v10 }
 0x47e   : > { %v7032_v21 = vunpack.i.h.bf16 %v7030_v58  ;;  %v7031_v23 = vunpack.i.l.bf16 %v7030_v58  ;;  %v5612_v16 = vunpack.i.h.bf16 %v14203_v36  ;;  %v5562_v58 = vunpack.i.h.bf16 %v14205_v10  ;;  %v14211_v10 = vld [vmem:[#allocation95_spill] sm:$0xff] }
 0x47f   : > { %7114 = vrot.lane.b32.xlu0 %v7113_v13, %s7348_s8  ;;  %v5611_v13 = vunpack.i.l.bf16 %v14203_v36  ;;  %v11732_v45 = vsel %vm2847_vm7, %v11632_v14, %v5597_v0  ;;  %v11736_v5 = vsel %vm2814_vm6, %v11464_v50, %v5541_v44  ;;  %v4433_v49 = vsel %vm2979_vm11, %v4401_v63, %v7036_v41  ;;  %v14207_v44 = vld [vmem:[#allocation90_spill] sm:$0xff] }
 0x480   : > { %v7025_v17 = vpop.permute.xlu0 %7024  ;;  %v4425_v30 = vsel %vm2979_vm11, %v4393_v55, %v7031_v23  ;;  %v4426_v18 = vsel %vm2979_vm11, %v4394_v3, %v7032_v21  ;;  %v11743_v52 = vsel %vm2814_vm6, %v11468_v31, %v5542_v34  ;;  %v5556_v21 = vunpack.i.l.bf16 %v14206_v26 }
 0x481   : > { %v7026_v60 = vunpack.i.l.bf16 %v7025_v17  ;;  %v7118_v28 = vpack.i.bf16 %v4426_v18, %v4425_v30  ;;  %v7027_v23 = vunpack.i.h.bf16 %v7025_v17  ;;  %v11747_v14 = vsel %vm2847_vm7, %v2839_v32, %v5611_v13  ;;  %v14208_v17 = vld [vmem:[#allocation92_spill] sm:$0xff]  ;;  %v14210_v30 = vld [vmem:[#allocation94_spill] sm:$0xff] }
 0x482   : > { %v11750_v50 = vsel %vm2847_vm7, %v2840_v4, %v5612_v16  ;;  %v5557_v0 = vunpack.i.h.bf16 %v14206_v26  ;;  %v5576_v3 = vunpack.i.l.bf16 %v14207_v44  ;;  %v2852_v31 = vsel %vm2847_vm7, %v11556_v15, %v5561_v29  ;;  %v14209_v4 = vld [vmem:[#allocation322_spill] sm:$0xff] }
 0x483   : > { %v4402_v62 = vsel %vm2946_vm10, %v4370_v51, %v7026_v60  ;;  %7119 = vrot.lane.b32.xlu1 %v7118_v28, %s7348_s8  ;;  %v2853_v34 = vsel %vm2847_vm7, %v11560_v61, %v5562_v58  ;;  %v5571_v32 = vunpack.i.l.bf16 %v14208_v17  ;;  %v5572_v63 = vunpack.i.h.bf16 %v14208_v17  ;;  %v14217_v17 = vld [vmem:[#allocation106_spill] sm:$0xff] }
 0x484   : > { %v4434_v25 = vsel %vm2979_vm11, %v4402_v62, %v7037_v24  ;;  %v5577_v24 = vunpack.i.h.bf16 %v14207_v44  ;;  %v5641_v18 = vunpack.i.l.bf16 %v14210_v30  ;;  %v7052_v60 = vunpack.i.h.bf16 %v11593_v1 }
 0x485   : > { %v7123_v55 = vpack.i.bf16 %v4434_v25, %v4433_v49  ;;  %v11754_v41 = vpop.permute.xlu1 %7044  ;;  %v7051_v15 = vunpack.i.l.bf16 %v11593_v1  ;;  %v11771_v61 = vsel %vm2847_vm7, %v11475_v38, %v5556_v21  ;;  %v5642_v16 = vunpack.i.h.bf16 %v14210_v30 }
 0x486   : > { %v4411_v13 = vsel %vm2946_vm10, %v11448_v39, %v7027_v23  ;;  %v11778_v51 = vsel %vm2847_vm7, %v11480_v56, %v5557_v0  ;;  %v2858_v28 = vsel %vm2847_vm7, %v11618_v19, %v5576_v3  ;;  %v5592_v1 = vunpack.i.h.bf16 %v14211_v10  ;;  %v14214_v3 = vld [vmem:[#allocation102_spill] sm:$0xff] }
 0x487   : > { %7124 = vrot.lane.b32.xlu2 %v7123_v55, %s7348_s8  ;;  %7129 = vrot.lane.b32.xlu0 %v14209_v4, %s7341_s6  ;;  %v5591_v58 = vunpack.i.l.bf16 %v14211_v10  ;;  %v2859_v38 = vsel %vm2847_vm7, %v11625_v59, %v5577_v24  ;;  %v11788_v29 = vsel %vm2847_vm7, %v11491_v9, %v5571_v32  ;;  %v11794_v56 = vsel %vm2847_vm7, %v11494_v35, %v5572_v63  ;;  %v14213_v55 = vld [vmem:[#allocation99_spill] sm:$0xff]  ;;  %v5066_v24 = vld [vmem:[%s13128_s3 + $0x30] sm:$0x30] }
 0x488   : > { %v7040_v36 = vpop.permute.xlu0 %7039  ;;  %v11797_v19 = vsel %vm2880_vm8, %v2852_v31, %v5641_v18  ;;  %v14212_v62 = vpack.i.bf16 %v11596_v2, %v11590_v54  ;;  %v11804_v59 = vsel %vm2979_vm11, %v4411_v13, %v7051_v15  ;;  %v6977_v35 = vunpack.i.h.bf16 %v11298_v20  ;;  %v14218_v13 = vld [vmem:[#allocation107_spill] sm:$0xff] }
 0x489   : > { %v7041_v40 = vunpack.i.l.bf16 %v7040_v36  ;;  %v6976_v49 = vunpack.i.l.bf16 %v11298_v20  ;;  %v2864_v54 = vsel %vm2847_vm7, %v11636_v6, %v5591_v58  ;;  %v2865_v2 = vsel %vm2847_vm7, %v11640_v22, %v5592_v1  ;;  %v5040_v22 = vld [vmem:[%s13128_s3 + $0x30] sm:$0xf]  ;;  %v14219_v58 = vld [vmem:[#allocation109_spill] sm:$0xff] }
 0x48a   : > { %v7046_v26 = vunpack.i.l.bf16 %v11754_v41  ;;  %v7042_v21 = vunpack.i.h.bf16 %v7040_v36  ;;  %v5657_v0 = vunpack.i.h.bf16 %v14213_v55  ;;  %v5656_v44 = vunpack.i.l.bf16 %v14213_v55 }
 0x48b   : > { %v4412_v39 = vsel %vm2946_vm10, %v11452_v57, %v7041_v40  ;;  %7134 = vrot.lane.b32.xlu1 %v14212_v62, %s7341_s6  ;;  %v11810_v57 = vsel %vm2880_vm8, %v2853_v34, %v5642_v16  ;;  %v5602_v20 = vunpack.i.h.bf16 %v14214_v3  ;;  %v5601_v31 = vunpack.i.l.bf16 %v14214_v3  ;;  %v14215_v34 = vld [vmem:[#allocation334_spill] sm:$0xff] }
 0x48c   : > { %v11807_v9 = vsel %vm2979_vm11, %v4412_v39, %v7052_v60  ;;  %v14216_v6 = vpack.i.bf16 %v11602_v37, %v11599_v42  ;;  %v5672_v32 = vunpack.i.h.bf16 %v14217_v17  ;;  %v5671_v4 = vunpack.i.l.bf16 %v14217_v17 }
 0x48d   : > { %v7168_v25 = vpack.i.bf16 %v11807_v9, %v11804_v59  ;;  %v11821_v23 = vpop.permute.xlu1 %7059  ;;  %v5041_v30 = vor.u32 %v5066_v24, %v5040_v22  ;;  %v4387_v18 = vsel %vm13553_vm9, %v11192_v7, %v6976_v49  ;;  %v4388_v42 = vsel %vm13553_vm9, %v11196_v33, %v6977_v35  ;;  %v14220_v35 = vld [vmem:[#allocation293_spill] sm:$0xff]  ;;  %v5065_v49 = vld [vmem:[%s13128_s3 + $0x28] sm:$0xff] }
 0x48e   : > { %v4420_v15 = vsel %vm2946_vm10, %v4388_v42, %v7046_v26  ;;  %v4419_v36 = vsel %vm2946_vm10, %v4387_v18, %v7042_v21  ;;  %v5621_v40 = vunpack.i.l.bf16 %v14218_v13  ;;  %v11856_v7 = vsel %vm2880_vm8, %v2858_v28, %v5656_v44  ;;  %v14221_v44 = vld [vmem:[#allocation113_spill] sm:$0xff] }
 0x48f   : > { %7139 = vrot.lane.b32.xlu2 %v14215_v34, %s14074_s26  ;;  %7144 = vrot.lane.b32.xlu0 %v14216_v6, %s14074_s26  ;;  %v4743_v16 = vsel %vm635_vm1, %v5041_v30, 0  ;;  %v5622_v33 = vunpack.i.h.bf16 %v14218_v13  ;;  %v5616_v39 = vunpack.i.l.bf16 %v14219_v58  ;;  %v11868_v26 = vsel %vm2880_vm8, %v2859_v38, %v5657_v0  ;;  %v14222_v22 = vld [vmem:[#allocation297_spill] sm:$0xff]  ;;  %v14227_v13 = vld [vmem:[#allocation155_spill] sm:$0xff] }
 0x490   : > { %v7055_v63 = vpop.permute.xlu0 %7054  ;;  %5068 = vmatpush.bf16.msra.mxu2 %v4743_v16  ;;  %5067 = vmatpush.bf16.msra.mxu1 %v4743_v16  ;;  %v11872_v28 = vsel %vm2847_vm7, %v11538_v12, %v5601_v31  ;;  %v11876_v21 = vsel %vm2847_vm7, %v11544_v48, %v5602_v20  ;;  %v5617_v55 = vunpack.i.h.bf16 %v14219_v58  ;;  %v5637_v3 = vunpack.i.h.bf16 %v14221_v44  ;;  %v11895_v20 = vpop.permute.xlu2 %7079  ;;  %v14228_v58 = vld [vmem:[#allocation332_spill] sm:$0xff] }
 0x491   : > { %v7057_v37 = vunpack.i.h.bf16 %v7055_v63  ;;  %v7056_v60 = vunpack.i.l.bf16 %v7055_v63  ;;  %5069 = vmatpush.bf16.msra.mxu3 %v4743_v16  ;;  %4746 = vmatpush.bf16.msra.mxu0 %v4743_v16  ;;  %v5636_v34 = vunpack.i.l.bf16 %v14221_v44  ;;  %v7047_v6 = vunpack.i.h.bf16 %v11754_v41  ;;  %v14223_v41 = vld [vmem:[#allocation324_spill] sm:$0xff] }
 0x492   : > { %v7061_v38 = vunpack.i.l.bf16 %v11821_v23  ;;  %v11886_v12 = vsel %vm2880_vm8, %v2864_v54, %v5671_v4  ;;  %v11889_v31 = vsel %vm2880_vm8, %v2865_v2, %v5672_v32  ;;  %v11893_v48 = vsel %vm2847_vm7, %v11736_v5, %v5621_v40  ;;  %v14224_v2 = vld [vmem:[#allocation115_spill] sm:$0xff]  ;;  %v5064_v32 = vld [vmem:[%s13128_s3 + $0x20] sm:$0xff] }
 0x493   : > { %v11850_v10 = vsel %vm2979_vm11, %v4419_v36, %v7056_v60  ;;  %v11853_v1 = vsel %vm2979_vm11, %v4420_v15, %v7057_v37  ;;  %7149 = vrot.lane.b32.xlu1 %v14220_v35, %s7341_s6  ;;  %v11903_v24 = vsel %vm2847_vm7, %v11743_v52, %v5622_v33  ;;  %v11907_v54 = vsel %vm2847_vm7, %v11549_v27, %v5616_v39  ;;  %v14225_v37 = vld [vmem:[#allocation124_spill] sm:$0xff]  ;;  %v14226_v60 = vld [vmem:[#allocation137_spill] sm:$0xff]  ;;  %v14229_v35 = vld [vmem:[#allocation171_spill] sm:$0xff] }
 0x494   : > { %v7173_v62 = vpack.i.bf16 %v11853_v1, %v11850_v10  ;;  %v5631_v17 = vunpack.i.l.bf16 %v14224_v2  ;;  %5071 = vmatpush.bf16.msra.mxu2 %v5065_v49  ;;  %5070 = vmatpush.bf16.msra.mxu1 %v5065_v49  ;;  %v11915_v4 = vsel %vm2847_vm7, %v11552_v8, %v5617_v55  ;;  %v5632_v52 = vunpack.i.h.bf16 %v14224_v2  ;;  %v5063_v39 = vld [vmem:[%s13128_s3 + $0x18] sm:$0xff]  ;;  %v14230_v55 = vld [vmem:[#allocation120_spill] sm:$0xff] }
 0x495   : > { %v11883_v0 = vpop.permute.xlu1 %7074  ;;  %5072 = vmatpush.bf16.msra.mxu3 %v5065_v49  ;;  %4747 = vmatpush.bf16.msra.mxu0 %v5065_v49  ;;  %v11920_v27 = vsel %vm2880_vm8, %v11771_v61, %v5636_v34  ;;  %v11924_v18 = vsel %vm2880_vm8, %v11778_v51, %v5637_v3  ;;  %v4403_v42 = vsel %vm2946_vm10, %v11407_v46, %v7047_v6  ;;  %v6982_v15 = vunpack.i.h.bf16 %v14226_v60  ;;  %v14231_v34 = vld [vmem:[#allocation121_spill] sm:$0xff]  ;;  %v5062_v10 = vld [vmem:[%s13128_s3 + $0x10] sm:$0xff] }
 0x496   : > { %v4404_v8 = vsel %vm2946_vm10, %v14225_v37, %v7061_v38  ;;  %v6981_v36 = vunpack.i.l.bf16 %v14226_v60  ;;  %v11940_v51 = vsel %vm2880_vm8, %v14227_v13, %v5631_v17  ;;  %v7081_v40 = vunpack.i.l.bf16 %v11895_v20  ;;  %v14235_v37 = vld [vmem:[#allocation133_spill] sm:$0xff] }
 0x497   : > { %7154 = vrot.lane.b32.xlu2 %v14222_v22, %s7341_s6  ;;  %7159 = vrot.lane.b32.xlu0 %v14223_v41, %s14074_s26  ;;  %v7077_v46 = vunpack.i.h.bf16 %v11883_v0  ;;  %v11953_v49 = vsel %vm2880_vm8, %v14229_v35, %v5632_v52  ;;  %v5702_v44 = vunpack.i.h.bf16 %v14230_v55  ;;  %v5701_v3 = vunpack.i.l.bf16 %v14230_v55  ;;  %v14232_v22 = vld [vmem:[#allocation126_spill] sm:$0xff]  ;;  %v14233_v52 = vld [vmem:[#allocation140_spill] sm:$0xff] }
 0x498   : > { %v7070_v5 = vpop.permute.xlu0 %7069  ;;  %5074 = vmatpush.bf16.msra.mxu2 %v5064_v32  ;;  %v5652_v6 = vunpack.i.h.bf16 %v14231_v34  ;;  %5073 = vmatpush.bf16.msra.mxu1 %v5064_v32  ;;  %v5651_v38 = vunpack.i.l.bf16 %v14231_v34  ;;  %v5717_v41 = vunpack.i.h.bf16 %v14232_v22  ;;  %v7062_v2 = vunpack.i.h.bf16 %v11821_v23  ;;  %v7095_v1 = vpop.permute.xlu2 %7094 }
 0x499   : > { %v7072_v63 = vunpack.i.h.bf16 %v7070_v5  ;;  %v7071_v30 = vunpack.i.l.bf16 %v7070_v5  ;;  %5075 = vmatpush.bf16.msra.mxu3 %v5064_v32  ;;  %v7076_v17 = vunpack.i.l.bf16 %v11883_v0  ;;  %4748 = vmatpush.bf16.msra.mxu0 %v5064_v32  ;;  %v5716_v32 = vunpack.i.l.bf16 %v14232_v22 }
 0x49a   : > { %v11989_v13 = vsel %vm2880_vm8, %v11893_v48, %v5701_v3  ;;  %v11999_v34 = vsel %vm2880_vm8, %v11903_v24, %v5702_v44  ;;  %v2889_v22 = vsel %vm2880_vm8, %v11788_v29, %v5651_v38  ;;  %v5061_v29 = vld [vmem:[%s13128_s3 + $0x8] sm:$0xff]  ;;  %v5732_v53 = vunpack.i.h.bf16 %v14239_v11  ;;  %v14240_v38 = vld [vmem:[#allocation170_spill] sm:$0xff] }
 0x49b   : > { %v11933_v16 = vsel %vm2979_vm11, %v4403_v42, %v7071_v30  ;;  %v11936_v61 = vsel %vm2979_vm11, %v4404_v8, %v7072_v63  ;;  %7164 = vrot.lane.b32.xlu1 %v14228_v58, %s14074_s26  ;;  %v4389_v63 = vsel %vm13553_vm9, %v14233_v52, %v6981_v36  ;;  %v14234_v30 = vld [vmem:[#allocation139_spill] sm:$0xff]  ;;  %v5661_v8 = vunpack.i.l.bf16 %v14235_v37  ;;  %v14237_v58 = vld [vmem:[#allocation118_spill] sm:$0xff] }
 0x49c   : > { %v7183_v33 = vpack.i.bf16 %v11936_v61, %v11933_v16  ;;  %v4390_v42 = vsel %vm13553_vm9, %v14234_v30, %v6982_v15  ;;  %v4421_v15 = vsel %vm2946_vm10, %v4389_v63, %v7077_v46  ;;  %5077 = vmatpush.bf16.msra.mxu2 %v5063_v39  ;;  %5076 = vmatpush.bf16.msra.mxu1 %v5063_v39  ;;  %v14238_v44 = vld [vmem:[#allocation315_spill] sm:$0xff]  ;;  %v7001_v63 = vunpack.i.l.bf16 %v14240_v38  ;;  %v14250_v38 = vld [vmem:[#allocation161_spill] sm:$0xff] }
 0x49d   : > { %v7090_v5 = vpop.permute.xlu1 %7089  ;;  %v4422_v60 = vsel %vm2946_vm10, %v4390_v42, %v7081_v40  ;;  %5078 = vmatpush.bf16.msra.mxu3 %v5063_v39  ;;  %v14236_v40 = vld [vmem:[#allocation119_spill] sm:$0xff]  ;;  %v4414_v35 = vsel %vm2946_vm10, %v14237_v58, %v7076_v17  ;;  %4749 = vmatpush.bf16.msra.mxu0 %v5063_v39  ;;  %v7096_v17 = vunpack.i.l.bf16 %v7095_v1  ;;  %v12016_v24 = vsel %vm13553_vm9, %v11920_v27, %v5716_v32  ;;  %v14242_v32 = vld [vmem:[#allocation145_spill] sm:$0xff] }
 0x49e   : > { %v7092_v23 = vunpack.i.h.bf16 %v7090_v5  ;;  %v7091_v0 = vunpack.i.l.bf16 %v7090_v5  ;;  %v4413_v46 = vsel %vm2946_vm10, %v14236_v40, %v7062_v2  ;;  %v2890_v2 = vsel %vm2880_vm8, %v11794_v56, %v5652_v6  ;;  %v14247_v40 = vld [vmem:[#allocation144_spill] sm:$0xff] }
 0x49f   : > { %7174 = vrot.lane.b32.xlu0 %v7173_v62, %s7348_s8  ;;  %7169 = vrot.lane.b32.xlu2 %v7168_v25, %s7348_s8  ;;  %v7097_v5 = vunpack.i.h.bf16 %v7095_v1  ;;  %v12020_v56 = vsel %vm13553_vm9, %v11924_v18, %v5717_v41  ;;  %v5662_v39 = vunpack.i.h.bf16 %v14235_v37  ;;  %v12025_v6 = vsel %vm2880_vm8, %v14238_v44, %v5661_v8  ;;  %v14241_v18 = vld [vmem:[#allocation141_spill] sm:$0xff] }
 0x4a0   : > { %v7085_v36 = vpop.permute.xlu0 %7084  ;;  %v11982_v59 = vsel %vm2979_vm11, %v4421_v15, %v7091_v0  ;;  %v11985_v9 = vsel %vm2979_vm11, %v4422_v60, %v7092_v23  ;;  %5080 = vmatpush.bf16.msra.mxu2 %v5062_v10  ;;  %5079 = vmatpush.bf16.msra.mxu1 %v5062_v10  ;;  %v7082_v27 = vunpack.i.h.bf16 %v11895_v20  ;;  %v5682_v41 = vunpack.i.h.bf16 %v14241_v18  ;;  %v14243_v20 = vld [vmem:[#allocation143_spill] sm:$0xff]  ;;  %v14244_v15 = vld [vmem:[#allocation125_spill] sm:$0xff] }
 0x4a1   : > { %v7087_v25 = vunpack.i.h.bf16 %v7085_v36  ;;  %v7086_v62 = vunpack.i.l.bf16 %v7085_v36  ;;  %v7193_v55 = vpack.i.bf16 %v11985_v9, %v11982_v59  ;;  %5081 = vmatpush.bf16.msra.mxu3 %v5062_v10  ;;  %4750 = vmatpush.bf16.msra.mxu0 %v5062_v10  ;;  %v5681_v42 = vunpack.i.l.bf16 %v14241_v18 }
 0x4a2   : > { %v5677_v37 = vunpack.i.h.bf16 %v14242_v32  ;;  %v5676_v8 = vunpack.i.l.bf16 %v14242_v32  ;;  %v4405_v60 = vsel %vm2946_vm10, %v14243_v20, %v7096_v17  ;;  %v4406_v36 = vsel %vm2946_vm10, %v14244_v15, %v7097_v5  ;;  %v14255_v15 = vld [vmem:[#allocation174_spill] sm:$0xff] }
 0x4a3   : > { %v4445_v48 = vsel %vm2979_vm11, %v4413_v46, %v7086_v62  ;;  %v4446_v3 = vsel %vm2979_vm11, %v4414_v35, %v7087_v25  ;;  %7179 = vrot.lane.b32.xlu1 %v7178_v47, %s7348_s8  ;;  %v5731_v47 = vunpack.i.l.bf16 %v14239_v11  ;;  %v14246_v25 = vld [vmem:[#allocation197_spill] sm:$0xff]  ;;  %v4398_v46 = vsel %vm2946_vm10, %v14247_v40, %v7082_v27  ;;  %v14258_v40 = vld [vmem:[#allocation178_spill] sm:$0xff] }
 0x4a4   : > { %v7188_v52 = vpack.i.bf16 %v4446_v3, %v4445_v48  ;;  %5083 = vmatpush.bf16.msra.mxu2 %v5061_v29  ;;  %5082 = vmatpush.bf16.msra.mxu1 %v5061_v29  ;;  %v4397_v62 = vsel %vm2946_vm10, %v14246_v25, %v7001_v63  ;;  %v14248_v48 = vld [vmem:[#allocation157_spill] sm:$0xff]  ;;  %v5761_v63 = vunpack.i.l.bf16 %v14250_v38  ;;  %v12064_v27 = vsel %vm13553_vm9, %v2890_v2, %v5732_v53 }
 0x4a5   : > { %v7105_v30 = vpop.permute.xlu1 %7104  ;;  %5084 = vmatpush.bf16.msra.mxu3 %v5061_v29  ;;  %4751 = vmatpush.bf16.msra.mxu0 %v5061_v29  ;;  %v5691_v3 = vunpack.i.l.bf16 %v14248_v48  ;;  %v5692_v11 = vunpack.i.h.bf16 %v14248_v48  ;;  %v12061_v29 = vsel %vm13553_vm9, %v2889_v22, %v5731_v47  ;;  %v5762_v18 = vunpack.i.h.bf16 %v14250_v38  ;;  %v14259_v48 = vld [vmem:[#allocation179_spill] sm:$0xff] }
 0x4a6   : > { %v7107_v23 = vunpack.i.h.bf16 %v7105_v30  ;;  %v7106_v0 = vunpack.i.l.bf16 %v7105_v30  ;;  %v2902_v32 = vsel %vm2880_vm8, %v11876_v21, %v5682_v41  ;;  %v2899_v20 = vsel %vm2880_vm8, %v11704_v43, %v5676_v8  ;;  %v14252_v21 = vld [vmem:[#allocation168_spill] sm:$0xff]  ;;  %v14254_v8 = vld [vmem:[#allocation173_spill] sm:$0xff] }
 0x4a7   : > { %7189 = vrot.lane.b32.xlu0 %v7188_v52, %s7348_s8  ;;  %7184 = vrot.lane.b32.xlu2 %v7183_v33, %s7348_s8  ;;  %v14245_v33 = vld [vmem:[#allocation153_spill] sm:$0xff]  ;;  %v14249_v52 = vld [vmem:[#allocation310_spill] sm:$0xff]  ;;  %v2905_v53 = vsel %vm2880_vm8, %v11747_v14, %v5691_v3  ;;  %v2906_v43 = vsel %vm2880_vm8, %v11750_v50, %v5692_v11  ;;  %v5776_v47 = vunpack.i.l.bf16 %v14252_v21  ;;  %v14253_v41 = vld [vmem:[#allocation172_spill] sm:$0xff]  ;;  %v5791_v50 = vunpack.i.l.bf16 %v14254_v8 }
 0x4a8   : > { %v7100_v10 = vpop.permute.xlu0 %7099  ;;  %v4437_v1 = vsel %vm2979_vm11, %v4405_v60, %v7106_v0  ;;  %v4438_v59 = vsel %vm2979_vm11, %v4406_v36, %v7107_v23  ;;  %v5697_v9 = vunpack.i.h.bf16 %v14245_v33  ;;  %v5696_v35 = vunpack.i.l.bf16 %v14245_v33  ;;  %v14251_v23 = vld [vmem:[#allocation164_spill] sm:$0xff] }
 0x4a9   : > { %v7102_v16 = vunpack.i.h.bf16 %v7100_v10  ;;  %v7101_v61 = vunpack.i.l.bf16 %v7100_v10  ;;  %v7203_v58 = vpack.i.bf16 %v4438_v59, %v4437_v1  ;;  %v2894_v44 = vsel %vm2880_vm8, %v14249_v52, %v5662_v39  ;;  %v14256_v59 = vld [vmem:[#allocation175_spill] sm:$0xff] }
 0x4aa   : > { %v5711_v0 = vunpack.i.l.bf16 %v14251_v23  ;;  %v2901_v39 = vsel %vm2880_vm8, %v11872_v28, %v5681_v42  ;;  %v2907_v22 = vsel %vm2880_vm8, %v11907_v54, %v5696_v35  ;;  %v2908_v2 = vsel %vm2880_vm8, %v11915_v4, %v5697_v9 }
 0x4ab   : > { %v4429_v5 = vsel %vm2979_vm11, %v4397_v62, %v7101_v61  ;;  %v4430_v17 = vsel %vm2979_vm11, %v4398_v46, %v7102_v16  ;;  %7194 = vrot.lane.b32.xlu1 %v7193_v55, %s7348_s8  ;;  %v2900_v55 = vsel %vm2880_vm8, %v11732_v45, %v5677_v37  ;;  %v5712_v28 = vunpack.i.h.bf16 %v14251_v23 }
 0x4ac   : > { %v7198_v30 = vpack.i.bf16 %v4430_v17, %v4429_v5  ;;  %v12088_v45 = vsel %vm13553_vm9, %v2901_v39, %v5761_v63  ;;  %v5777_v54 = vunpack.i.h.bf16 %v14252_v21  ;;  %v12093_v4 = vsel %vm13553_vm9, %v2902_v32, %v5762_v18  ;;  %v14261_v39 = vld [vmem:[#allocation182_spill] sm:$0xff] }
 0x4ad   : > { %v2914_v14 = vsel %vm13553_vm9, %v11940_v51, %v5711_v0  ;;  %v5722_v42 = vunpack.i.h.bf16 %v14253_v41  ;;  %v5721_v37 = vunpack.i.l.bf16 %v14253_v41  ;;  %v5792_v60 = vunpack.i.h.bf16 %v14254_v8  ;;  %v14257_v51 = vld [vmem:[#allocation177_spill] sm:$0xff]  ;;  %v14265_v41 = vld [vmem:[#allocation187_spill] sm:$0xff] }
 0x4ae   : > { %v5742_v36 = vunpack.i.h.bf16 %v14255_v15  ;;  %v5741_v10 = vunpack.i.l.bf16 %v14255_v15  ;;  %v2915_v1 = vsel %vm13553_vm9, %v11953_v49, %v5712_v28  ;;  %v5737_v16 = vunpack.i.h.bf16 %v14256_v59 }
 0x4af   : > { %7199 = vrot.lane.b32.xlu2 %v7198_v30, %s7348_s8  ;;  %7204 = vrot.lane.b32.xlu0 %v7203_v58, %s7348_s8  ;;  %v5736_v61 = vunpack.i.l.bf16 %v14256_v59  ;;  %v5756_v33 = vunpack.i.l.bf16 %v14257_v51  ;;  %v12109_v9 = vsel %vm13553_vm9, %v2907_v22, %v5776_v47  ;;  %v12112_v25 = vsel %vm13553_vm9, %v2908_v2, %v5777_v54  ;;  %v5060_v30 = vld [vmem:[%s13128_s3] sm:$0xff]  ;;  %v14263_v2 = vld [vmem:[#allocation185_spill] sm:$0xff] }
 0x4b0   : > { %v5757_v62 = vunpack.i.h.bf16 %v14257_v51  ;;  %v5751_v46 = vunpack.i.l.bf16 %v14258_v40  ;;  %v2918_v58 = vsel %vm13553_vm9, %v11797_v19, %v5721_v37  ;;  %v2919_v49 = vsel %vm13553_vm9, %v11810_v57, %v5722_v42  ;;  %5086 = vmatpush.bf16.msra.mxu2 %v5060_v30  ;;  %5085 = vmatpush.bf16.msra.mxu1 %v5060_v30  ;;  %v14264_v54 = vld [vmem:[#allocation186_spill] sm:$0xff] }
 0x4b1   : > { %v5752_v35 = vunpack.i.h.bf16 %v14258_v40  ;;  %v5821_v3 = vunpack.i.l.bf16 %v14259_v48  ;;  %v12123_v5 = vsel %vm2946_vm10, %v2914_v14, %v5791_v50  ;;  %v12126_v17 = vsel %vm2946_vm10, %v2915_v1, %v5792_v60  ;;  %5087 = vmatpush.bf16.msra.mxu3 %v5060_v30  ;;  %4752 = vmatpush.bf16.msra.mxu0 %v5060_v30  ;;  %v14266_v50 = vld [vmem:[#allocation189_spill] sm:$0xff]  ;;  %v14267_v59 = vld [vmem:[#allocation190_spill] sm:$0xff] }
 0x4b2   : > { %v2926_v52 = vsel %vm13553_vm9, %v12025_v6, %v5741_v10  ;;  %v2927_v11 = vsel %vm13553_vm9, %v2894_v44, %v5742_v36  ;;  %v2924_v19 = vsel %vm13553_vm9, %v11856_v7, %v5736_v61  ;;  %v2925_v57 = vsel %vm13553_vm9, %v11868_v26, %v5737_v16  ;;  %v14260_v44 = vld [vmem:[#allocation180_spill] sm:$0xff] }
 0x4b3   : > { %v2932_v38 = vsel %vm13553_vm9, %v2899_v20, %v5756_v33  ;;  %v5822_v63 = vunpack.i.h.bf16 %v14259_v48  ;;  %v2933_v18 = vsel %vm13553_vm9, %v2900_v55, %v5757_v62  ;;  %v2930_v6 = vsel %vm13553_vm9, %v11886_v12, %v5751_v46  ;;  %v14262_v55 = vld [vmem:[#allocation184_spill] sm:$0xff] }
 0x4b4   : > { %v5772_v23 = vunpack.i.h.bf16 %v14260_v44  ;;  %v5771_v7 = vunpack.i.l.bf16 %v14260_v44  ;;  %v2931_v26 = vsel %vm13553_vm9, %v11889_v31, %v5752_v35  ;;  %v12148_v0 = vsel %vm2946_vm10, %v2926_v52, %v5821_v3  ;;  %v14268_v35 = vld [vmem:[#allocation91_spill] sm:$0xff] }
 0x4b5   : > { %v5837_v32 = vunpack.i.h.bf16 %v14261_v39  ;;  %v5836_v20 = vunpack.i.l.bf16 %v14261_v39  ;;  %v5782_v22 = vunpack.i.h.bf16 %v14262_v55  ;;  %v5781_v12 = vunpack.i.l.bf16 %v14262_v55 }
 0x4b6   : > { %v5852_v28 = vunpack.i.h.bf16 %v14263_v2  ;;  %v5851_v21 = vunpack.i.l.bf16 %v14263_v2  ;;  %v12157_v31 = vsel %vm2946_vm10, %v2927_v11, %v5822_v63  ;;  %v5802_v47 = vunpack.i.h.bf16 %v14264_v54 }
 0x4b7   : > { %v5801_v14 = vunpack.i.l.bf16 %v14264_v54  ;;  %v5796_v42 = vunpack.i.l.bf16 %v14265_v41  ;;  %v2938_v37 = vsel %vm13553_vm9, %v2905_v53, %v5771_v7  ;;  %v2939_v8 = vsel %vm13553_vm9, %v2906_v43, %v5772_v23  ;;  %v14272_v23 = vld [vmem:[#allocation111_spill] sm:$0xff] }
 0x4b8   : > { %v5797_v60 = vunpack.i.h.bf16 %v14265_v41  ;;  %v5816_v15 = vunpack.i.l.bf16 %v14266_v50  ;;  %v12167_v36 = vsel %vm2946_vm10, %v2932_v38, %v5836_v20  ;;  %v12170_v10 = vsel %vm2946_vm10, %v2933_v18, %v5837_v32  ;;  %v14270_v38 = vld [vmem:[#allocation105_spill] sm:$0xff] }
 0x4b9   : > { %v5817_v1 = vunpack.i.h.bf16 %v14266_v50  ;;  %v5811_v16 = vunpack.i.l.bf16 %v14267_v59  ;;  %v2942_v61 = vsel %vm13553_vm9, %v11989_v13, %v5781_v12  ;;  %v2943_v53 = vsel %vm13553_vm9, %v11999_v34, %v5782_v22  ;;  %v14274_v22 = vld [vmem:[#allocation103_spill] sm:$0xff] }
 0x4ba   : > { %v12179_v43 = vsel %vm2946_vm10, %v2938_v37, %v5851_v21  ;;  %v12182_v51 = vsel %vm2946_vm10, %v2939_v8, %v5852_v28  ;;  %v2951_v33 = vsel %vm2946_vm10, %v2918_v58, %v5801_v14  ;;  %v2952_v62 = vsel %vm2946_vm10, %v2919_v49, %v5802_v47  ;;  %v14269_v49 = vld [vmem:[#allocation93_spill] sm:$0xff] }
 0x4bb   : > { %v2949_v40 = vsel %vm2946_vm10, %v12016_v24, %v5796_v42  ;;  %v5812_v46 = vunpack.i.h.bf16 %v14267_v59  ;;  %v2950_v13 = vsel %vm2946_vm10, %v12020_v56, %v5797_v60  ;;  %v2957_v34 = vsel %vm2946_vm10, %v2924_v19, %v5816_v15  ;;  %v14271_v56 = vld [vmem:[#allocation98_spill] sm:$0xff]  ;;  %v14275_v42 = vld [vmem:[#allocation108_spill] sm:$0xff] }
 0x4bc   : > { %v5882_v48 = vunpack.i.h.bf16 %v14268_v35  ;;  %v5881_v3 = vunpack.i.l.bf16 %v14268_v35  ;;  %v2958_v52 = vsel %vm2946_vm10, %v2925_v57, %v5817_v1  ;;  %v2955_v58 = vsel %vm2946_vm10, %v12061_v29, %v5811_v16  ;;  %v14273_v29 = vld [vmem:[#allocation101_spill] sm:$0xff]  ;;  %v14277_v59 = vld [vmem:[#allocation114_spill] sm:$0xff] }
 0x4bd   : > { %v5832_v11 = vunpack.i.h.bf16 %v14269_v49  ;;  %v5831_v24 = vunpack.i.l.bf16 %v14269_v49  ;;  %v5897_v63 = vunpack.i.h.bf16 %v14270_v38  ;;  %v5896_v30 = vunpack.i.l.bf16 %v14270_v38 }
 0x4be   : > { %v5842_v18 = vunpack.i.h.bf16 %v14271_v56  ;;  %v5841_v19 = vunpack.i.l.bf16 %v14271_v56  ;;  %v2956_v44 = vsel %vm2946_vm10, %v12064_v27, %v5812_v46  ;;  %v5912_v57 = vunpack.i.h.bf16 %v14272_v23 }
 0x4bf   : > { %v5911_v7 = vunpack.i.l.bf16 %v14272_v23  ;;  %v5861_v39 = vunpack.i.l.bf16 %v14273_v29  ;;  %v12209_v32 = vsel %vm2979_vm11, %v2951_v33, %v5881_v3  ;;  %v12212_v20 = vsel %vm2979_vm11, %v2952_v62, %v5882_v48  ;;  %v14278_v33 = vld [vmem:[#allocation116_spill] sm:$0xff] }
 0x4c0   : > { %v5862_v55 = vunpack.i.h.bf16 %v14273_v29  ;;  %v5856_v12 = vunpack.i.l.bf16 %v14274_v22  ;;  %v2963_v2 = vsel %vm2946_vm10, %v2930_v6, %v5831_v24  ;;  %v2964_v27 = vsel %vm2946_vm10, %v2931_v26, %v5832_v11  ;;  %v14280_v48 = vld [vmem:[#allocation104_spill] sm:$0xff] }
 0x4c1   : > { %v5857_v28 = vunpack.i.h.bf16 %v14274_v22  ;;  %v12220_v21 = vsel %vm2979_vm11, %v2957_v34, %v5896_v30  ;;  %v12223_v54 = vsel %vm2979_vm11, %v2958_v52, %v5897_v63  ;;  %v2967_v47 = vsel %vm2946_vm10, %v12088_v45, %v5841_v19  ;;  %v14276_v45 = vld [vmem:[#allocation110_spill] sm:$0xff]  ;;  %v14281_v52 = vld [vmem:[#allocation147_spill] sm:$0xff] }
 0x4c2   : > { %v2968_v14 = vsel %vm2946_vm10, %v12093_v4, %v5842_v18  ;;  %v2996_v41 = vsel %vm2979_vm11, %v2963_v2, %v5911_v7  ;;  %v2997_v6 = vsel %vm2979_vm11, %v2964_v27, %v5912_v57  ;;  %v2975_v26 = vsel %vm2946_vm10, %v2942_v61, %v5861_v39  ;;  %v14282_v63 = vld [vmem:[#allocation130_spill] sm:$0xff]  ;;  %v14283_v39 = vld [vmem:[#allocation205_spill] sm:$0xff]  ;;  %v14285_v27 = vld [vmem:[#allocation219_spill] sm:$0xff] }
 0x4c3   : > { %v5876_v37 = vunpack.i.l.bf16 %v14275_v42  ;;  %v2976_v8 = vsel %vm2946_vm10, %v2943_v53, %v5862_v55  ;;  %v12236_v60 = vsel %vm2946_vm10, %v12109_v9, %v5856_v12  ;;  %v5877_v50 = vunpack.i.h.bf16 %v14275_v42  ;;  %v14279_v9 = vld [vmem:[#allocation135_spill] sm:$0xff]  ;;  %v14284_v12 = vld [vmem:[#allocation134_spill] sm:$0xff] }
 0x4c4   : > { %v5871_v15 = vunpack.i.l.bf16 %v14276_v45  ;;  %v12242_v4 = vsel %vm2946_vm10, %v12112_v25, %v5857_v28  ;;  %v5872_v1 = vunpack.i.h.bf16 %v14276_v45  ;;  %v5942_v16 = vunpack.i.h.bf16 %v14277_v59  ;;  %v14286_v42 = vld [vmem:[#allocation146_spill] sm:$0xff] }
 0x4c5   : > { %v5941_v61 = vunpack.i.l.bf16 %v14277_v59  ;;  %v5892_v53 = vunpack.i.h.bf16 %v14278_v33  ;;  %v5891_v62 = vunpack.i.l.bf16 %v14278_v33  ;;  %v5957_v46 = vunpack.i.h.bf16 %v14279_v9  ;;  %v14289_v59 = vld [vmem:[#allocation259_spill] sm:$0xff] }
 0x4c6   : > { %v5956_v34 = vunpack.i.l.bf16 %v14279_v9  ;;  %v2982_v35 = vsel %vm2979_vm11, %v2949_v40, %v5876_v37  ;;  %v5902_v3 = vunpack.i.h.bf16 %v14280_v48  ;;  %v5901_v25 = vunpack.i.l.bf16 %v14280_v48 }
 0x4c7   : > { %v5971_v49 = vunpack.i.l.bf16 %v14281_v52  ;;  %v2983_v11 = vsel %vm2979_vm11, %v2950_v13, %v5877_v50  ;;  %v12258_v24 = vsel %vm2979_vm11, %v12123_v5, %v5871_v15  ;;  %v5972_v38 = vunpack.i.h.bf16 %v14281_v52  ;;  %v14288_v15 = vld [vmem:[#allocation193_spill] sm:$0xff] }
 0x4c8   : > { %v5921_v30 = vunpack.i.l.bf16 %v14282_v63  ;;  %v12264_v56 = vsel %vm2979_vm11, %v12126_v17, %v5872_v1  ;;  %v12267_v40 = vsel %vm2979_vm11, %v2975_v26, %v5941_v61  ;;  %v12270_v18 = vsel %vm2979_vm11, %v2976_v8, %v5942_v16  ;;  %v14287_v8 = vld [vmem:[#allocation224_spill] sm:$0xff] }
 0x4c9   : > { %v5922_v13 = vunpack.i.h.bf16 %v14282_v63  ;;  %v2988_v19 = vsel %vm2979_vm11, %v2955_v58, %v5891_v62  ;;  %v2989_v5 = vsel %vm2979_vm11, %v2956_v44, %v5892_v53  ;;  %v12276_v23 = vsel %vm3012_vm12, %v2982_v35, %v5956_v34  ;;  %v14290_v53 = vld [vmem:[#allocation288_spill] sm:$0xff] }
 0x4ca   : > { %v12279_v57 = vsel %vm3012_vm12, %v2983_v11, %v5957_v46  ;;  %v12283_v17 = vsel %vm2979_vm11, %v12148_v0, %v5901_v25  ;;  %v12287_v7 = vsel %vm2979_vm11, %v12157_v31, %v5902_v3  ;;  %v12290_v29 = vsel %vm3012_vm12, %v2988_v19, %v5971_v49  ;;  %v14291_v11 = vld [vmem:[#allocation154_spill] sm:$0xff] }
 0x4cb   : > { %v12293_v58 = vsel %vm3012_vm12, %v2989_v5, %v5972_v38  ;;  %v3000_v44 = vsel %vm2979_vm11, %v2967_v47, %v5921_v30  ;;  %v5992_v55 = vunpack.i.h.bf16 %v14283_v39  ;;  %v5991_v22 = vunpack.i.l.bf16 %v14283_v39 }
 0x4cc   : > { %v3001_v0 = vsel %vm2979_vm11, %v2968_v14, %v5922_v13  ;;  %v5917_v2 = vunpack.i.h.bf16 %v14284_v12  ;;  %v6072_v31 = vunpack.i.h.bf16 %v14285_v27  ;;  %v6071_v28 = vunpack.i.l.bf16 %v14285_v27 }
 0x4cd   : > { %v5916_v26 = vunpack.i.l.bf16 %v14284_v12  ;;  %v5937_v37 = vunpack.i.h.bf16 %v14286_v42  ;;  %v6152_v50 = vunpack.i.h.bf16 %v14287_v8  ;;  %v6151_v47 = vunpack.i.l.bf16 %v14287_v8 }
 0x4ce   : > { %v5936_v45 = vunpack.i.l.bf16 %v14286_v42  ;;  %v5931_v1 = vunpack.i.l.bf16 %v14288_v15  ;;  %v6232_v14 = vunpack.i.h.bf16 %v14289_v59  ;;  %v6231_v16 = vunpack.i.l.bf16 %v14289_v59 }
 0x4cf   : > { %v3029_v61 = vsel %vm3012_vm12, %v2996_v41, %v5991_v22  ;;  %v3030_v33 = vsel %vm3012_vm12, %v2997_v6, %v5992_v55  ;;  %v6312_v62 = vunpack.i.h.bf16 %v14290_v53  ;;  %v6311_v9 = vunpack.i.l.bf16 %v14290_v53  ;;  %v14292_v55 = vld [vmem:[#allocation158_spill] sm:$0xff] }
 0x4d0   : > { %v3062_v46 = vsel %vm3045_vm13, %v3029_v61, %v6071_v28  ;;  %v3063_v34 = vsel %vm3045_vm13, %v3030_v33, %v6072_v31  ;;  %vm3144_vm0 = vcmask 490496   ;;  %vm4585_vm1 = vcmask 523264   ;;  %v14298_v61 = vld [vmem:[#allocation282_spill] sm:$0xff] }
 0x4d1   : > { %v3095_v35 = vsel %vm3078_vm14, %v3062_v46, %v6151_v47  ;;  %v3096_v48 = vsel %vm3078_vm14, %v3063_v34, %v6152_v50  ;;  %v5932_v49 = vunpack.i.h.bf16 %v14288_v15  ;;  %v6001_v38 = vunpack.i.l.bf16 %v14291_v11  ;;  %v14293_v50 = vld [vmem:[#allocation217_spill] sm:$0xff]  ;;  %v14296_v15 = vld [vmem:[#allocation236_spill] sm:$0xff] }
 0x4d2   : > { %v3128_v41 = vsel %vm3111_vm15, %v3095_v35, %v6231_v16  ;;  %v3129_v6 = vsel %vm3111_vm15, %v3096_v48, %v6232_v14  ;;  %v6002_v13 = vunpack.i.h.bf16 %v14291_v11  ;;  %vm4693_vm9 = vcmask 883712  }
 0x4d3   : > { %v3161_v63 = vsel %vm3144_vm0, %v3128_v41, %v6311_v9  ;;  %v3162_v30 = vsel %vm3144_vm0, %v3129_v6, %v6312_v62  ;;  %v12329_v39 = vsel %vm2979_vm11, %v12167_v36, %v5916_v26  ;;  %v5952_v22 = vunpack.i.h.bf16 %v14292_v55  ;;  %v14299_v9 = vld [vmem:[#allocation200_spill] sm:$0xff] }
 0x4d4   : > { %v5951_v12 = vunpack.i.l.bf16 %v14292_v55  ;;  %v12335_v31 = vsel %vm2979_vm11, %v12170_v10, %v5917_v2  ;;  %v3006_v28 = vsel %vm2979_vm11, %v12236_v60, %v5936_v45  ;;  %v3007_v42 = vsel %vm2979_vm11, %v12242_v4, %v5937_v37  ;;  %v14294_v4 = vld [vmem:[#allocation195_spill] sm:$0xff] }
 0x4d5   : > { %v7110_v3 = vpop.permute.xlu2 %7109  ;;  %v12343_v8 = vsel %vm2979_vm11, %v12179_v43, %v5931_v1  ;;  %v12347_v36 = vsel %vm2979_vm11, %v12182_v51, %v5932_v49  ;;  %v12350_v26 = vsel %vm3012_vm12, %v3000_v44, %v6001_v38  ;;  %v6052_v10 = vunpack.i.h.bf16 %v14293_v50  ;;  %v14295_v43 = vld [vmem:[#allocation231_spill] sm:$0xff] }
 0x4d6   : > { %v7112_v25 = vunpack.i.h.bf16 %v7110_v3  ;;  %v7111_v52 = vunpack.i.l.bf16 %v7110_v3  ;;  %v6051_v2 = vunpack.i.l.bf16 %v14293_v50  ;;  %v12356_v60 = vsel %vm3012_vm12, %v3001_v0, %v6002_v13  ;;  %v14297_v0 = vld [vmem:[#allocation199_spill] sm:$0xff] }
 0x4d7   : > { %v6016_v37 = vunpack.i.l.bf16 %v14294_v4  ;;  %v6132_v47 = vunpack.i.h.bf16 %v14295_v43  ;;  %v6131_v45 = vunpack.i.l.bf16 %v14295_v43  ;;  %v3013_v51 = vsel %vm3012_vm12, %v12258_v24, %v5951_v12  ;;  %v14304_v43 = vld [vmem:[#allocation207_spill] sm:$0xff] }
 0x4d8   : > { %v4602_v19 = vsel %vm4585_vm1, %v3161_v63, %v7111_v52  ;;  %v4603_v5 = vsel %vm4585_vm1, %v3162_v30, %v7112_v25  ;;  %v3014_v44 = vsel %vm3012_vm12, %v12264_v56, %v5952_v22  ;;  %v6212_v1 = vunpack.i.h.bf16 %v14296_v15 }
 0x4d9   : > { %v4626_v27 = vpack.c.bf16 %v4603_v5, %v4602_v19  ;;  %v6211_v59 = vunpack.i.l.bf16 %v14296_v15  ;;  %v6017_v14 = vunpack.i.h.bf16 %v14294_v4  ;;  %v5961_v16 = vunpack.i.l.bf16 %v14297_v0 }
 0x4da   : > { %v6292_v33 = vunpack.i.h.bf16 %v14298_v61  ;;  %v6291_v53 = vunpack.i.l.bf16 %v14298_v61  ;;  %v5962_v62 = vunpack.i.h.bf16 %v14297_v0  ;;  %v6031_v46 = vunpack.i.l.bf16 %v14299_v9  ;;  %v14307_v61 = vld [vmem:[#allocation212_spill] sm:$0xff] }
 0x4db   : > { %5050 = vmatmul.msk.bf16.vlgmr.msra.gmra.mxu2 %vm4693_vm9, %v4626_v27  ;;  %v3054_v24 = vsel %vm3045_vm13, %v12290_v29, %v6051_v2  ;;  %v3055_v56 = vsel %vm3045_vm13, %v12293_v58, %v6052_v10  ;;  %v12378_v34 = vsel %vm3012_vm12, %v3006_v28, %v6016_v37  ;;  %v6032_v35 = vunpack.i.h.bf16 %v14299_v9  ;;  %v14301_v27 = vld [vmem:[#allocation202_spill] sm:$0xff] }
 0x4dc   : > { %v3087_v48 = vsel %vm3078_vm14, %v3054_v24, %v6131_v45  ;;  %v3088_v3 = vsel %vm3078_vm14, %v3055_v56, %v6132_v47  ;;  %v12386_v29 = vsel %vm3012_vm12, %v3007_v42, %v6017_v14  ;;  %v12390_v58 = vsel %vm3012_vm12, %v12209_v32, %v5961_v16  ;;  %v14300_v32 = vld [vmem:[#allocation201_spill] sm:$0xff]  ;;  %v14302_v42 = vld [vmem:[#allocation204_spill] sm:$0xff]  ;;  %v14303_v2 = vld [vmem:[#allocation206_spill] sm:$0xff] }
 0x4dd   : > { %v3120_v6 = vsel %vm3111_vm15, %v3087_v48, %v6211_v59  ;;  %v3121_v25 = vsel %vm3111_vm15, %v3088_v3, %v6212_v1  ;;  %v12396_v63 = vsel %vm3012_vm12, %v12212_v20, %v5962_v62  ;;  %v12399_v30 = vsel %vm3045_vm13, %v3013_v51, %v6031_v46  ;;  %v14305_v51 = vld [vmem:[#allocation209_spill] sm:$0xff]  ;;  %v14306_v1 = vld [vmem:[#allocation211_spill] sm:$0xff] }
 0x4de   : > { %v3153_v11 = vsel %vm3144_vm0, %v3120_v6, %v6291_v53  ;;  %v3154_v38 = vsel %vm3144_vm0, %v3121_v25, %v6292_v33  ;;  %v12404_v5 = vsel %vm3045_vm13, %v3014_v44, %v6032_v35  ;;  %v5982_v55 = vunpack.i.h.bf16 %v14300_v32  ;;  %v14309_v25 = vld [vmem:[#allocation213_spill] sm:$0xff] }
 0x4df   : > { %v5981_v22 = vunpack.i.l.bf16 %v14300_v32  ;;  %v5977_v28 = vunpack.i.h.bf16 %v14301_v27  ;;  %v5976_v20 = vunpack.i.l.bf16 %v14301_v27  ;;  %v5997_v50 = vunpack.i.h.bf16 %v14302_v42  ;;  %v14314_v27 = vld [vmem:[#allocation229_spill] sm:$0xff] }
 0x4e0   : > { %v5996_v10 = vunpack.i.l.bf16 %v14302_v42  ;;  %v6062_v4 = vunpack.i.h.bf16 %v14303_v2  ;;  %v6061_v37 = vunpack.i.l.bf16 %v14303_v2  ;;  %v6012_v47 = vunpack.i.h.bf16 %v14304_v43  ;;  %v14315_v42 = vld [vmem:[#allocation238_spill] sm:$0xff] }
 0x4e1   : > { %v7125_v41 = vpop.permute.xlu2 %7124  ;;  %v6011_v45 = vunpack.i.l.bf16 %v14304_v43  ;;  %v6077_v44 = vunpack.i.h.bf16 %v14305_v51  ;;  %v6076_v15 = vunpack.i.l.bf16 %v14305_v51  ;;  %v6022_v59 = vunpack.i.h.bf16 %v14306_v1 }
 0x4e2   : > { %v7127_v52 = vunpack.i.h.bf16 %v7125_v41  ;;  %v7126_v49 = vunpack.i.l.bf16 %v7125_v41  ;;  %v6021_v14 = vunpack.i.l.bf16 %v14306_v1  ;;  %v3025_v0 = vsel %vm3012_vm12, %v12283_v17, %v5981_v22 }
 0x4e3   : > { %v3026_v16 = vsel %vm3012_vm12, %v12287_v7, %v5982_v55  ;;  %v6092_v33 = vunpack.i.h.bf16 %v14307_v61  ;;  %v6091_v53 = vunpack.i.l.bf16 %v14307_v61  ;;  %v12431_v9 = vsel %vm3012_vm12, %v12220_v21, %v5976_v20  ;;  %v14313_v55 = vld [vmem:[#allocation274_spill] sm:$0xff] }
 0x4e4   : > { %v4594_v13 = vsel %vm4585_vm1, %v3153_v11, %v7126_v49  ;;  %v4595_v19 = vsel %vm4585_vm1, %v3154_v38, %v7127_v52  ;;  %v12435_v46 = vsel %vm3012_vm12, %v12223_v54, %v5977_v28  ;;  %v3031_v17 = vsel %vm3012_vm12, %v12329_v39, %v5996_v10  ;;  %v14310_v49 = vld [vmem:[#allocation216_spill] sm:$0xff]  ;;  %v14311_v38 = vld [vmem:[#allocation263_spill] sm:$0xff] }
 0x4e5   : > { %v4622_v12 = vpack.c.bf16 %v4595_v19, %v4594_v13  ;;  %v3032_v7 = vsel %vm3012_vm12, %v12335_v31, %v5997_v50  ;;  %v12442_v24 = vsel %vm3045_vm13, %v3025_v0, %v6061_v37  ;;  %v12445_v56 = vsel %vm3045_vm13, %v3026_v16, %v6062_v4  ;;  %v14316_v37 = vld [vmem:[#allocation243_spill] sm:$0xff] }
 0x4e6   : > { %v3037_v21 = vsel %vm3012_vm12, %v12343_v8, %v6011_v45  ;;  %v3038_v35 = vsel %vm3012_vm12, %v12347_v36, %v6012_v47  ;;  %v3064_v54 = vsel %vm3045_vm13, %v3031_v17, %v6076_v15  ;;  %v3065_v48 = vsel %vm3045_vm13, %v3032_v7, %v6077_v44  ;;  %v14308_v8 = vld [vmem:[#allocation241_spill] sm:$0xff] }
 0x4e7   : > { %5046 = vmatmul.msk.bf16.vlgmr.msra.gmra.mxu1 %vm4693_vm9, %v4622_v12  ;;  %v12455_v39 = vsel %vm3012_vm12, %v12267_v40, %v6021_v14  ;;  %v12459_v31 = vsel %vm3012_vm12, %v12270_v18, %v6022_v59  ;;  %v3070_v3 = vsel %vm3045_vm13, %v3037_v21, %v6091_v53  ;;  %v3071_v41 = vsel %vm3045_vm13, %v3038_v35, %v6092_v33  ;;  %v14312_v18 = vld [vmem:[#allocation221_spill] sm:$0xff]  ;;  %v14317_v14 = vld [vmem:[#allocation250_spill] sm:$0xff] }
 0x4e8   : > { %v6172_v6 = vunpack.i.h.bf16 %v14308_v8  ;;  %v6171_v36 = vunpack.i.l.bf16 %v14308_v8  ;;  %v6041_v52 = vunpack.i.l.bf16 %v14309_v25  ;;  %v6057_v11 = vunpack.i.h.bf16 %v14310_v49  ;;  %v14318_v53 = vld [vmem:[#allocation257_spill] sm:$0xff] }
 0x4e9   : > { %v12427_v62 = vpop.permute.xlu2 %7139  ;;  %v6252_v13 = vunpack.i.h.bf16 %v14311_v38  ;;  %v6251_v40 = vunpack.i.l.bf16 %v14311_v38  ;;  %v6056_v19 = vunpack.i.l.bf16 %v14310_v49  ;;  %v6137_v32 = vunpack.i.h.bf16 %v14312_v18  ;;  %v14324_v49 = vld [vmem:[#allocation214_spill] sm:$0xff] }
 0x4ea   : > { %v6332_v22 = vunpack.i.h.bf16 %v14313_v55  ;;  %v6331_v12 = vunpack.i.l.bf16 %v14313_v55  ;;  %v6112_v28 = vunpack.i.h.bf16 %v14314_v27  ;;  %v6111_v20 = vunpack.i.l.bf16 %v14314_v27 }
 0x4eb   : > { %v6157_v50 = vunpack.i.h.bf16 %v14315_v42  ;;  %v6156_v10 = vunpack.i.l.bf16 %v14315_v42  ;;  %v3103_v2 = vsel %vm3078_vm14, %v3070_v3, %v6171_v36  ;;  %v3104_v4 = vsel %vm3078_vm14, %v3071_v41, %v6172_v6 }
 0x4ec   : > { %v6192_v43 = vunpack.i.h.bf16 %v14316_v37  ;;  %v6191_v47 = vunpack.i.l.bf16 %v14316_v37  ;;  %v3136_v44 = vsel %vm3111_vm15, %v3103_v2, %v6251_v40  ;;  %v3137_v15 = vsel %vm3111_vm15, %v3104_v4, %v6252_v13 }
 0x4ed   : > { %v6272_v0 = vunpack.i.h.bf16 %v14317_v14  ;;  %v6271_v16 = vunpack.i.l.bf16 %v14317_v14  ;;  %v3169_v61 = vsel %vm3144_vm0, %v3136_v44, %v6331_v12  ;;  %v3170_v33 = vsel %vm3144_vm0, %v3137_v15, %v6332_v22  ;;  %v14319_v22 = vld [vmem:[#allocation268_spill] sm:$0xff]  ;;  %v14320_v15 = vld [vmem:[#allocation253_spill] sm:$0xff] }
 0x4ee   : > { %v6237_v17 = vunpack.i.h.bf16 %v14318_v53  ;;  %v6236_v7 = vunpack.i.l.bf16 %v14318_v53  ;;  %v6136_v3 = vunpack.i.l.bf16 %v14312_v18  ;;  %v3079_v41 = vsel %vm3078_vm14, %v12399_v30, %v6111_v20 }
 0x4ef   : > { %v3080_v8 = vsel %vm3078_vm14, %v12404_v5, %v6112_v28  ;;  %v3097_v36 = vsel %vm3078_vm14, %v3064_v54, %v6156_v10  ;;  %v3098_v38 = vsel %vm3078_vm14, %v3065_v48, %v6157_v50  ;;  %v3112_v13 = vsel %vm3111_vm15, %v3079_v41, %v6191_v47 }
 0x4f0   : > { %v3113_v40 = vsel %vm3111_vm15, %v3080_v8, %v6192_v43  ;;  %v6317_v12 = vunpack.i.h.bf16 %v14319_v22  ;;  %v6316_v27 = vunpack.i.l.bf16 %v14319_v22  ;;  %v3130_v5 = vsel %vm3111_vm15, %v3097_v36, %v6236_v7 }
 0x4f1   : > { %v12481_v45 = vpop.permute.xlu2 %7154  ;;  %v7115_v51 = vpop.permute.xlu0 %7114  ;;  %v3131_v28 = vsel %vm3111_vm15, %v3098_v38, %v6237_v17  ;;  %v3145_v54 = vsel %vm3144_vm0, %v3112_v13, %v6271_v16  ;;  %v3146_v48 = vsel %vm3144_vm0, %v3113_v40, %v6272_v0  ;;  %v7142_v42 = vunpack.i.h.bf16 %v12427_v62  ;;  %v14321_v16 = vld [vmem:[#allocation156_spill] sm:$0xff] }
 0x4f2   : > { %v7117_v1 = vunpack.i.h.bf16 %v7115_v51  ;;  %v7116_v59 = vunpack.i.l.bf16 %v7115_v51  ;;  %v7141_v50 = vunpack.i.l.bf16 %v12427_v62  ;;  %v3163_v14 = vsel %vm3144_vm0, %v3130_v5, %v6316_v27  ;;  %v14323_v40 = vld [vmem:[#allocation280_spill] sm:$0xff] }
 0x4f3   : > { %v3164_v0 = vsel %vm3144_vm0, %v3131_v28, %v6317_v12  ;;  %v6216_v7 = vunpack.i.l.bf16 %v14320_v15  ;;  %v6042_v8 = vunpack.i.h.bf16 %v14309_v25  ;;  %v3057_v36 = vsel %vm3045_vm13, %v12435_v46, %v6057_v11  ;;  %v14325_v5 = vld [vmem:[#allocation136_spill] sm:$0xff]  ;;  %v14326_v28 = vld [vmem:[#allocation289_spill] sm:$0xff] }
 0x4f4   : > { %v4610_v21 = vsel %vm4585_vm1, %v3169_v61, %v7116_v59  ;;  %v4611_v35 = vsel %vm4585_vm1, %v3170_v33, %v7117_v1  ;;  %v6217_v1 = vunpack.i.h.bf16 %v14320_v15  ;;  %v14322_v61 = vld [vmem:[#allocation302_spill] sm:$0xff]  ;;  %v6296_v22 = vunpack.i.l.bf16 %v14323_v40 }
 0x4f5   : > { %v4630_v6 = vpack.c.bf16 %v4611_v35, %v4610_v21  ;;  %v7120_v55 = vpop.permute.xlu1 %7119  ;;  %v3090_v11 = vsel %vm3078_vm14, %v3057_v36, %v6137_v32  ;;  %v6037_v32 = vunpack.i.h.bf16 %v14324_v49 }
 0x4f6   : > { %v7122_v30 = vunpack.i.h.bf16 %v7120_v55  ;;  %v7121_v20 = vunpack.i.l.bf16 %v7120_v55  ;;  %v6297_v55 = vunpack.i.h.bf16 %v14323_v40  ;;  %v14332_v40 = vld [vmem:[#allocation198_spill] sm:$0xff] }
 0x4f7   : > { %5054 = vmatmul.msk.bf16.vlgmr.msra.gmra.mxu3 %vm4693_vm9, %v4630_v6  ;;  %v3056_v6 = vsel %vm3045_vm13, %v12431_v9, %v6056_v19  ;;  %v12542_v9 = vsel %vm3045_vm13, %v12390_v58, %v6041_v52  ;;  %v6036_v19 = vunpack.i.l.bf16 %v14324_v49 }
 0x4f8   : > { %v4586_v4 = vsel %vm4585_vm1, %v3145_v54, %v7121_v20  ;;  %v4587_v37 = vsel %vm4585_vm1, %v3146_v48, %v7122_v30  ;;  %v3089_v46 = vsel %vm3078_vm14, %v3056_v6, %v6136_v3  ;;  %v3123_v20 = vsel %vm3111_vm15, %v3090_v11, %v6217_v1 }
 0x4f9   : > { %v7130_v10 = vpop.permute.xlu0 %7129  ;;  %v7170_v2 = vpop.permute.xlu2 %7169  ;;  %v4618_v59 = vpack.c.bf16 %v4587_v37, %v4586_v4  ;;  %v3122_v30 = vsel %vm3111_vm15, %v3089_v46, %v6216_v7  ;;  %v3156_v4 = vsel %vm3144_vm0, %v3123_v20, %v6297_v55  ;;  %v14330_v7 = vld [vmem:[#allocation228_spill] sm:$0xff] }
 0x4fa   : > { %v7132_v43 = vunpack.i.h.bf16 %v7130_v10  ;;  %v7131_v47 = vunpack.i.l.bf16 %v7130_v10  ;;  %v7172_v51 = vunpack.i.h.bf16 %v7170_v2  ;;  %v7171_v44 = vunpack.i.l.bf16 %v7170_v2 }
 0x4fb   : > { %5042 = vmatmul.msk.bf16.vlgmr.msra.gmra.mxu0 %vm4693_vm9, %v4618_v59  ;;  %v3155_v2 = vsel %vm3144_vm0, %v3122_v30, %v6296_v22  ;;  %v14333_v22 = vld [vmem:[#allocation294_spill] sm:$0xff]  ;;  %v14334_v30 = vld [vmem:[#allocation240_spill] sm:$0xff] }
 0x4fc   : > { %v4416_v62 = vsel %vm2946_vm10, %v14321_v16, %v7132_v43  ;;  %v4415_v33 = vsel %vm2946_vm10, %v14322_v61, %v7131_v47  ;;  %v4604_v53 = vsel %vm4585_vm1, %v3163_v14, %v7171_v44  ;;  %v4605_v17 = vsel %vm4585_vm1, %v3164_v0, %v7172_v51  ;;  %v14328_v0 = vld [vmem:[#allocation225_spill] sm:$0xff]  ;;  %v14329_v61 = vld [vmem:[#allocation226_spill] sm:$0xff] }
 0x4fd   : > { %v4627_v21 = vpack.c.bf16 %v4605_v17, %v4604_v53  ;;  %v4447_v35 = vsel %vm2979_vm11, %v4415_v33, %v7141_v50  ;;  %v4448_v41 = vsel %vm2979_vm11, %v4416_v62, %v7142_v42  ;;  %v7135_v13 = vpop.permute.xlu1 %7134  ;;  %v14327_v50 = vld [vmem:[#allocation223_spill] sm:$0xff]  ;;  %v12566_v44 = vsel %vm3045_vm13, %v12396_v63, %v6042_v8 }
 0x4fe   : > { %v7208_v38 = vpack.i.bf16 %v4448_v41, %v4447_v35  ;;  %v7137_v12 = vunpack.i.h.bf16 %v7135_v13  ;;  %v7136_v27 = vunpack.i.l.bf16 %v7135_v13  ;;  %v6081_v10 = vunpack.i.l.bf16 %v14327_v50  ;;  %v14331_v41 = vld [vmem:[#allocation218_spill] sm:$0xff] }
 0x4ff   : > { %5051 = vmatmul.msk.bf16.gmra.mxu2 %vm4693_vm9, %v4627_v21  ;;  %v6082_v15 = vunpack.i.h.bf16 %v14327_v50  ;;  %v3048_v14 = vsel %vm3045_vm13, %v12276_v23, %v6036_v19  ;;  %v6102_v16 = vunpack.i.h.bf16 %v14328_v0  ;;  %v6101_v62 = vunpack.i.l.bf16 %v14328_v0  ;;  %v14338_v50 = vld [vmem:[#allocation313_spill] sm:$0xff] }
 0x500   : > { %7209 = vrot.lane.b32.xlu1 %v7208_v38, %s7348_s8  ;;  %v4424_v25 = vsel %vm2946_vm10, %v14325_v5, %v7137_v12  ;;  %v4423_v58 = vsel %vm2946_vm10, %v14326_v28, %v7136_v27  ;;  %v6097_v33 = vunpack.i.h.bf16 %v14329_v61  ;;  %v6096_v17 = vunpack.i.l.bf16 %v14329_v61 }
 0x501   : > { %v7145_v52 = vpop.permute.xlu0 %7144  ;;  %v7185_v54 = vpop.permute.xlu2 %7184  ;;  %v6116_v21 = vunpack.i.l.bf16 %v14330_v7  ;;  %v3049_v23 = vsel %vm3045_vm13, %v12279_v57, %v6037_v32  ;;  %v6122_v8 = vunpack.i.h.bf16 %v14331_v41  ;;  %v6121_v6 = vunpack.i.l.bf16 %v14331_v41 }
 0x502   : > { %v7147_v48 = vunpack.i.h.bf16 %v7145_v52  ;;  %v7146_v3 = vunpack.i.l.bf16 %v7145_v52  ;;  %v7187_v42 = vunpack.i.h.bf16 %v7185_v54  ;;  %v7186_v18 = vunpack.i.l.bf16 %v7185_v54 }
 0x503   : > { %v12584_v36 = vsel %vm3045_vm13, %v12350_v26, %v6081_v10  ;;  %v12588_v38 = vsel %vm3045_vm13, %v12356_v60, %v6082_v15  ;;  %v6117_v13 = vunpack.i.h.bf16 %v14330_v7  ;;  %v3074_v27 = vsel %vm3045_vm13, %v12455_v39, %v6101_v62 }
 0x504   : > { %v4455_v37 = vsel %vm2979_vm11, %v4423_v58, %v7146_v3  ;;  %v4456_v43 = vsel %vm2979_vm11, %v4424_v25, %v7147_v48  ;;  %v4596_v47 = vsel %vm4585_vm1, %v3155_v2, %v7186_v18  ;;  %v4597_v51 = vsel %vm4585_vm1, %v3156_v4, %v7187_v42  ;;  %v14337_v42 = vld [vmem:[#allocation233_spill] sm:$0xff] }
 0x505   : > { %v7213_v1 = vpack.i.bf16 %v4456_v43, %v4455_v37  ;;  %v4623_v59 = vpack.c.bf16 %v4597_v51, %v4596_v47  ;;  %v7150_v53 = vpop.permute.xlu1 %7149  ;;  %v12599_v26 = vsel %vm3045_vm13, %v12459_v31, %v6102_v16  ;;  %v3072_v60 = vsel %vm3045_vm13, %v12378_v34, %v6096_v17  ;;  %v14335_v34 = vld [vmem:[#allocation246_spill] sm:$0xff]  ;;  %v14339_v51 = vld [vmem:[#allocation131_spill] sm:$0xff] }
 0x506   : > { %v7152_v63 = vunpack.i.h.bf16 %v7150_v53  ;;  %v7151_v35 = vunpack.i.l.bf16 %v7150_v53  ;;  %v3073_v46 = vsel %vm3045_vm13, %v12386_v29, %v6097_v33  ;;  %v3081_v11 = vsel %vm3078_vm14, %v3048_v14, %v6116_v21  ;;  %v14336_v29 = vld [vmem:[#allocation230_spill] sm:$0xff]  ;;  %v14341_v21 = vld [vmem:[#allocation237_spill] sm:$0xff] }
 0x507   : > { %7214 = vrot.lane.b32.xlu2 %v7213_v1, %s7348_s8  ;;  %5047 = vmatmul.msk.bf16.gmra.mxu1 %vm4693_vm9, %v4623_v59  ;;  %v6176_v20 = vunpack.i.l.bf16 %v14334_v30  ;;  %v7157_v5 = vunpack.i.h.bf16 %v12481_v45  ;;  %v7156_v39 = vunpack.i.l.bf16 %v12481_v45  ;;  %v3082_v28 = vsel %vm3078_vm14, %v3049_v23, %v6117_v13  ;;  %v14340_v1 = vld [vmem:[#allocation132_spill] sm:$0xff] }
 0x508   : > { %v4400_v55 = vsel %vm2946_vm10, %v14332_v40, %v7152_v63  ;;  %v4399_v57 = vsel %vm2946_vm10, %v14333_v22, %v7151_v35  ;;  %v6177_v58 = vunpack.i.h.bf16 %v14334_v30  ;;  %v6256_v52 = vunpack.i.l.bf16 %v14335_v34  ;;  %v14342_v40 = vld [vmem:[#allocation276_spill] sm:$0xff] }
 0x509   : > { %v7160_v12 = vpop.permute.xlu0 %7159  ;;  %v6182_v48 = vunpack.i.h.bf16 %v14336_v29  ;;  %v6181_v3 = vunpack.i.l.bf16 %v14336_v29  ;;  %v6197_v18 = vunpack.i.h.bf16 %v14337_v42  ;;  %v6257_v32 = vunpack.i.h.bf16 %v14335_v34  ;;  %v14345_v34 = vld [vmem:[#allocation300_spill] sm:$0xff] }
 0x50a   : > { %v7162_v49 = vunpack.i.h.bf16 %v7160_v12  ;;  %v7161_v19 = vunpack.i.l.bf16 %v7160_v12  ;;  %v6337_v10 = vunpack.i.h.bf16 %v14338_v50  ;;  %v6336_v2 = vunpack.i.l.bf16 %v14338_v50 }
 0x50b   : > { %v6196_v43 = vunpack.i.l.bf16 %v14337_v42  ;;  %v3105_v47 = vsel %vm3078_vm14, %v3072_v60, %v6176_v20  ;;  %v4408_v15 = vsel %vm2946_vm10, %v14339_v51, %v7157_v5  ;;  %v4407_v59 = vsel %vm2946_vm10, %v14340_v1, %v7156_v39  ;;  %v14344_v39 = vld [vmem:[#allocation235_spill] sm:$0xff] }
 0x50c   : > { %v4431_v25 = vsel %vm2979_vm11, %v4399_v57, %v7161_v19  ;;  %v4432_v31 = vsel %vm2979_vm11, %v4400_v55, %v7162_v49  ;;  %v3106_v14 = vsel %vm3078_vm14, %v3073_v46, %v6177_v58  ;;  %v3138_v0 = vsel %vm3111_vm15, %v3105_v47, %v6256_v52  ;;  %v14343_v19 = vld [vmem:[#allocation242_spill] sm:$0xff]  ;;  %v14347_v51 = vld [vmem:[#allocation271_spill] sm:$0xff] }
 0x50d   : > { %v7218_v54 = vpack.i.bf16 %v4432_v31, %v4431_v25  ;;  %v7165_v45 = vpop.permute.xlu1 %7164  ;;  %v3139_v33 = vsel %vm3111_vm15, %v3106_v14, %v6257_v32  ;;  %v6162_v63 = vunpack.i.h.bf16 %v14341_v21  ;;  %v6161_v35 = vunpack.i.l.bf16 %v14341_v21  ;;  %v14348_v14 = vld [vmem:[#allocation309_spill] sm:$0xff] }
 0x50e   : > { %v7167_v4 = vunpack.i.h.bf16 %v7165_v45  ;;  %v7166_v37 = vunpack.i.l.bf16 %v7165_v45  ;;  %v3171_v23 = vsel %vm3144_vm0, %v3138_v0, %v6336_v2  ;;  %v3172_v13 = vsel %vm3144_vm0, %v3139_v33, %v6337_v10 }
 0x50f   : > { %7219 = vrot.lane.b32.xlu0 %v7218_v54, %s7348_s8  ;;  %v6277_v55 = vunpack.i.h.bf16 %v14342_v40  ;;  %v6276_v22 = vunpack.i.l.bf16 %v14342_v40  ;;  %v3107_v49 = vsel %vm3078_vm14, %v3074_v27, %v6181_v3  ;;  %v6242_v60 = vunpack.i.h.bf16 %v14343_v19 }
 0x510   : > { %v4440_v16 = vsel %vm2979_vm11, %v4408_v15, %v7167_v4  ;;  %v4439_v62 = vsel %vm2979_vm11, %v4407_v59, %v7166_v37  ;;  %v6241_v46 = vunpack.i.l.bf16 %v14343_v19  ;;  %v3114_v20 = vsel %vm3111_vm15, %v3081_v11, %v6196_v43  ;;  %v14346_v4 = vld [vmem:[#allocation251_spill] sm:$0xff] }
 0x511   : > { %v7175_v61 = vpop.permute.xlu0 %7174  ;;  %v7223_v53 = vpack.i.bf16 %v4440_v16, %v4439_v62  ;;  %v3115_v5 = vsel %vm3111_vm15, %v3082_v28, %v6197_v18  ;;  %v6142_v25 = vunpack.i.h.bf16 %v14344_v39  ;;  %v6141_v31 = vunpack.i.l.bf16 %v14344_v39 }
 0x512   : > { %v7177_v17 = vunpack.i.h.bf16 %v7175_v61  ;;  %v7176_v7 = vunpack.i.l.bf16 %v7175_v61  ;;  %v6322_v52 = vunpack.i.h.bf16 %v14345_v34  ;;  %v6321_v54 = vunpack.i.l.bf16 %v14345_v34 }
 0x513   : > { %7224 = vrot.lane.b32.xlu1 %v7223_v53, %s7348_s8  ;;  %v3099_v42 = vsel %vm3078_vm14, %v12584_v36, %v6161_v35  ;;  %v3100_v11 = vsel %vm3078_vm14, %v12588_v38, %v6162_v63  ;;  %v3147_v28 = vsel %vm3144_vm0, %v3114_v20, %v6276_v22  ;;  %v3148_v18 = vsel %vm3144_vm0, %v3115_v5, %v6277_v55  ;;  %v14351_v5 = vld [vmem:[#allocation275_spill] sm:$0xff]  ;;  %s5012_s8 = sshll.u32 %s14430_s19, 8 }
 0x514   : > { %v4612_v57 = vsel %vm4585_vm1, %v3171_v23, %v7176_v7  ;;  %v4613_v12 = vsel %vm4585_vm1, %v3172_v13, %v7177_v17  ;;  %v3132_v32 = vsel %vm3111_vm15, %v3099_v42, %v6241_v46  ;;  %v3133_v45 = vsel %vm3111_vm15, %v3100_v11, %v6242_v60  ;;  %v14349_v17 = vld [vmem:[#allocation262_spill] sm:$0xff]  ;;  %v14350_v23 = vld [vmem:[#allocation249_spill] sm:$0xff] }
 0x515   : > { %v4631_v30 = vpack.c.bf16 %v4613_v12, %v4612_v57  ;;  %v7180_v58 = vpop.permute.xlu1 %7179  ;;  %v6221_v37 = vunpack.i.l.bf16 %v14346_v4  ;;  %v6262_v38 = vunpack.i.h.bf16 %v14347_v51  ;;  %v6261_v15 = vunpack.i.l.bf16 %v14347_v51  ;;  %v7200_v12 = vpop.permute.xlu2 %7199 }
 0x516   : > { %v7182_v27 = vunpack.i.h.bf16 %v7180_v58  ;;  %v7181_v3 = vunpack.i.l.bf16 %v7180_v58  ;;  %v3165_v1 = vsel %vm3144_vm0, %v3132_v32, %v6321_v54  ;;  %v3166_v59 = vsel %vm3144_vm0, %v3133_v45, %v6322_v52 }
 0x517   : > { %5055 = vmatmul.msk.bf16.gmra.mxu3 %vm4693_vm9, %v4631_v30  ;;  %v6342_v0 = vunpack.i.h.bf16 %v14348_v14  ;;  %v6341_v16 = vunpack.i.l.bf16 %v14348_v14  ;;  %v3108_v33 = vsel %vm3078_vm14, %v12599_v26, %v6182_v48  ;;  %v6222_v53 = vunpack.i.h.bf16 %v14346_v4  ;;  %v14353_v4 = vld [vmem:[#allocation20_spill] sm:$0xff]  ;;  %v7286_v14 = vld [vmem:[%s7422_s7 + $0x108] sm:$0xff] }
 0x518   : > { %v4588_v10 = vsel %vm4585_vm1, %v3147_v28, %v7181_v3  ;;  %v4589_v2 = vsel %vm4585_vm1, %v3148_v18, %v7182_v27  ;;  %v6301_v7 = vunpack.i.l.bf16 %v14349_v17  ;;  %v3091_v63 = vsel %vm3078_vm14, %v12442_v24, %v6141_v31 }
 0x519   : > { %v7190_v50 = vpop.permute.xlu0 %7189  ;;  %v4619_v47 = vpack.c.bf16 %v4589_v2, %v4588_v10  ;;  %v3092_v35 = vsel %vm3078_vm14, %v12445_v56, %v6142_v25  ;;  %v6202_v13 = vunpack.i.h.bf16 %v14350_v23  ;;  %v6302_v40 = vunpack.i.h.bf16 %v14349_v17 }
 0x51a   : > { %v7192_v43 = vunpack.i.h.bf16 %v7190_v50  ;;  %v7191_v36 = vunpack.i.l.bf16 %v7190_v50  ;;  %v3140_v29 = vsel %vm3111_vm15, %v3107_v49, %v6261_v15  ;;  %v3141_v26 = vsel %vm3111_vm15, %v3108_v33, %v6262_v38  ;;  %v14355_v38 = vld [vmem:[#allocation11_spill] sm:$0xff]  ;;  %v7287_v33 = vld [vmem:[%s7422_s7 + $0x50] sm:$0xff] }
 0x51b   : > { %5043 = vmatmul.msk.bf16.gmra.mxu0 %vm4693_vm9, %v4619_v47  ;;  %v6201_v57 = vunpack.i.l.bf16 %v14350_v23  ;;  %v3124_v24 = vsel %vm3111_vm15, %v3091_v63, %v6221_v37  ;;  %v3173_v56 = vsel %vm3144_vm0, %v3140_v29, %v6341_v16  ;;  %v3174_v19 = vsel %vm3144_vm0, %v3141_v26, %v6342_v0 }
 0x51c   : > { %v4606_v62 = vsel %vm4585_vm1, %v3165_v1, %v7191_v36  ;;  %v4607_v61 = vsel %vm4585_vm1, %v3166_v59, %v7192_v43  ;;  %v3125_v60 = vsel %vm3111_vm15, %v3092_v35, %v6222_v53  ;;  %v3157_v49 = vsel %vm3144_vm0, %v3124_v24, %v6301_v7  ;;  %v14354_v36 = vld [vmem:[#allocation5_spill] sm:$0xff]  ;;  %v7285_v1 = vld [vmem:[%s7422_s7 + $0x110] sm:$0xff]  ;;  %v7288_v35 = vld [vmem:[%s7422_s7 + $0x48] sm:$0xff] }
 0x51d   : > { %v4628_v21 = vpack.c.bf16 %v4607_v61, %v4606_v62  ;;  %v7195_v55 = vpop.permute.xlu1 %7194  ;;  %v6282_v39 = vunpack.i.h.bf16 %v14351_v5  ;;  %v6281_v25 = vunpack.i.l.bf16 %v14351_v5  ;;  %v7202_v34 = vunpack.i.h.bf16 %v7200_v12  ;;  %v14356_v62 = vld [vmem:[#allocation23_spill] sm:$0xff]  ;;  %v14357_v7 = vld [vmem:[#allocation12_spill] sm:$0xff]  ;;  %v14359_v24 = vld [vmem:[#allocation34_spill] sm:$0xff] }
 0x51e   : > { %v7197_v48 = vunpack.i.h.bf16 %v7195_v55  ;;  %v7196_v22 = vunpack.i.l.bf16 %v7195_v55  ;;  %v7201_v52 = vunpack.i.l.bf16 %v7200_v12  ;;  %v3158_v54 = vsel %vm3144_vm0, %v3125_v60, %v6302_v40  ;;  %v14358_v55 = vld [vmem:[#allocation29_spill] sm:$0xff]  ;;  %v7291_v60 = vld [vmem:[%s7422_s7 + $0x170] sm:$0xff]  ;;  %v7292_v5 = vld [vmem:[%s7422_s7 + $0x168] sm:$0xff] }
 0x51f   : > { %5052 = vmatmul.msk.bf16.gmra.mxu2 %vm4693_vm9, %v4628_v21  ;;  %v3083_v3 = vsel %vm3078_vm14, %v12542_v9, %v6121_v6  ;;  %v3084_v42 = vsel %vm3078_vm14, %v12566_v44, %v6122_v8  ;;  %v14352_v8 = vld [vmem:[#allocation16_spill] sm:$0xff]  ;;  %v5167_v37 = vunpack.i.h.bf16 %v14353_v4  ;;  %v5166_v43 = vunpack.i.l.bf16 %v14353_v4 }
 0x520   : > { %v4614_v30 = vsel %vm4585_vm1, %v3173_v56, %v7196_v22  ;;  %v4615_v20 = vsel %vm4585_vm1, %v3174_v19, %v7197_v48  ;;  %v3116_v18 = vsel %vm3111_vm15, %v3083_v3, %v6201_v57  ;;  %v3117_v32 = vsel %vm3111_vm15, %v3084_v42, %v6202_v13  ;;  %v7289_v13 = vld [vmem:[%s7422_s7 + $0xb0] sm:$0xff]  ;;  %v7290_v48 = vld [vmem:[%s7422_s7 + $0xa8] sm:$0xff]  ;;  %v14362_v3 = vld [vmem:[#allocation46_spill] sm:$0xff]  ;;  %s5011_s7 = sshll.u32 %s14436_s18, 5 }
 0x521   : > { %v7205_v46 = vpop.permute.xlu0 %7204  ;;  %v4632_v27 = vpack.c.bf16 %v4615_v20, %v4614_v30  ;;  %v3149_v50 = vsel %vm3144_vm0, %v3116_v18, %v6281_v25  ;;  %v3150_v10 = vsel %vm3144_vm0, %v3117_v32, %v6282_v39  ;;  %v5207_v6 = vunpack.i.h.bf16 %v14352_v8  ;;  %v14363_v32 = vld [vmem:[#allocation48_spill] sm:$0xff]  ;;  %s340_s18 = sadd.s32 %s5012_s8, %s5011_s7 }
 0x522   : > { %v7207_v31 = vunpack.i.h.bf16 %v7205_v46  ;;  %v7206_v58 = vunpack.i.l.bf16 %v7205_v46  ;;  %v4590_v9 = vsel %vm4585_vm1, %v3149_v50, %v7201_v52  ;;  %v4591_v44 = vsel %vm4585_vm1, %v3150_v10, %v7202_v34  ;;  %s5013_s19 = sshll.u32 %s340_s18, 3 }
 0x523   : > { %v4620_v41 = vpack.c.bf16 %v4591_v44, %v4590_v9  ;;  %v5206_v2 = vunpack.i.l.bf16 %v14352_v8  ;;  %v5187_v47 = vunpack.i.h.bf16 %v14354_v36  ;;  %v5186_v51 = vunpack.i.l.bf16 %v14354_v36  ;;  %v14364_v44 = vld [vmem:[#allocation53_spill] sm:$0xff]  ;;  %s12859_s13 = scalar_lea.vmem %s13130_s5, %s5013_s19 }
 0x524   : > { %v4598_v11 = vsel %vm4585_vm1, %v3157_v49, %v7206_v58  ;;  %v4599_v28 = vsel %vm4585_vm1, %v3158_v54, %v7207_v31  ;;  %v5267_v15 = vunpack.i.h.bf16 %v14355_v38  ;;  %v2706_v59 = vsel %vm2682_vm2, %v7285_v1, %v5207_v6  ;;  %v14360_v49 = vld [vmem:[#allocation36_spill] sm:$0xff]  ;;  %v14361_v58 = vld [vmem:[#allocation41_spill] sm:$0xff] }
 0x525   : > { %v4624_v45 = vpack.c.bf16 %v4599_v28, %v4598_v11  ;;  %v2705_v0 = vsel %vm2682_vm2, %v7286_v14, %v5206_v2  ;;  %v5266_v16 = vunpack.i.l.bf16 %v14355_v38  ;;  %v5227_v61 = vunpack.i.h.bf16 %v14356_v62  ;;  %v14365_v2 = vld [vmem:[#allocation58_spill] sm:$0xff] }
 0x526   : > { %v2690_v53 = vsel %vm2682_vm2, %v7287_v33, %v5167_v37  ;;  %v5226_v17 = vunpack.i.l.bf16 %v14356_v62  ;;  %v5247_v21 = vunpack.i.h.bf16 %v14357_v7  ;;  %v5246_v63 = vunpack.i.l.bf16 %v14357_v7 }
 0x527   : > { %5048 = vmatmul.msk.bf16.gmra.mxu1 %vm4693_vm9, %v4624_v45  ;;  %5056 = vmatmul.msk.bf16.gmra.mxu3 %vm4693_vm9, %v4632_v27  ;;  %v2689_v23 = vsel %vm2682_vm2, %v7288_v35, %v5166_v43  ;;  %v2698_v40 = vsel %vm2682_vm2, %v7289_v13, %v5187_v47  ;;  %v5327_v29 = vunpack.i.h.bf16 %v14358_v55  ;;  %v5326_v26 = vunpack.i.l.bf16 %v14358_v55  ;;  %v14366_v47 = vld [vmem:[#allocation60_spill] sm:$0xff] }
 0x528   : > { %v2697_v22 = vsel %vm2682_vm2, %v7290_v48, %v5186_v51  ;;  %v2731_v57 = vsel %vm2715_vm3, %v2698_v40, %v5267_v15  ;;  %v5287_v12 = vunpack.i.h.bf16 %v14359_v24  ;;  %v5286_v56 = vunpack.i.l.bf16 %v14359_v24  ;;  %v14370_v40 = vld [vmem:[#allocation84_spill] sm:$0xff] }
 0x529   : > { %v2730_v19 = vsel %vm2715_vm3, %v2697_v22, %v5266_v16  ;;  %v2714_v46 = vsel %vm2682_vm2, %v7291_v60, %v5227_v61  ;;  %v5307_v30 = vunpack.i.h.bf16 %v14360_v49  ;;  %v5306_v20 = vunpack.i.l.bf16 %v14360_v49  ;;  %v14368_v61 = vld [vmem:[#allocation70_spill] sm:$0xff]  ;;  %v14371_v22 = vld [vmem:[#allocation89_spill] sm:$0xff] }
 0x52a   : > { %v2713_v39 = vsel %vm2682_vm2, %v7292_v5, %v5226_v17  ;;  %v2723_v25 = vsel %vm2715_vm3, %v2690_v53, %v5247_v21  ;;  %v2722_v31 = vsel %vm2715_vm3, %v2689_v23, %v5246_v63  ;;  %v5386_v34 = vunpack.i.l.bf16 %v14361_v58  ;;  %v14369_v63 = vld [vmem:[#allocation72_spill] sm:$0xff] }
 0x52b   : > { %5044 = vmatmul.msk.bf16.gmra.mxu0 %vm4693_vm9, %v4620_v41  ;;  %v2755_v52 = vsel %vm2748_vm4, %v2722_v31, %v5326_v26  ;;  %v2756_v54 = vsel %vm2748_vm4, %v2723_v25, %v5327_v29  ;;  %v5387_v27 = vunpack.i.h.bf16 %v14361_v58  ;;  %v5347_v42 = vunpack.i.h.bf16 %v14362_v3  ;;  %v14374_v58 = vld [vmem:[#allocation188_spill] sm:$0xff] }
 0x52c   : > { %v2739_v11 = vsel %vm2715_vm3, %v2706_v59, %v5287_v12  ;;  %v2738_v28 = vsel %vm2715_vm3, %v2705_v0, %v5286_v56  ;;  %v5346_v18 = vunpack.i.l.bf16 %v14362_v3  ;;  %v5366_v45 = vunpack.i.l.bf16 %v14363_v32  ;;  %v14367_v59 = vld [vmem:[#allocation65_spill] sm:$0xff]  ;;  %v14375_v3 = vld [vmem:[#allocation194_spill] sm:$0xff] }
 0x52d   : > { %v2746_v50 = vsel %vm2715_vm3, %v2713_v39, %v5306_v20  ;;  %v2747_v10 = vsel %vm2715_vm3, %v2714_v46, %v5307_v30  ;;  %v5367_v9 = vunpack.i.h.bf16 %v14363_v32  ;;  %v5446_v41 = vunpack.i.l.bf16 %v14364_v44  ;;  %v14373_v20 = vld [vmem:[#allocation183_spill] sm:$0xff]  ;;  %v14376_v32 = vld [vmem:[#allocation210_spill] sm:$0xff] }
 0x52e   : > { %v2779_v8 = vsel %vm2748_vm4, %v2746_v50, %v5386_v34  ;;  %v5447_v6 = vunpack.i.h.bf16 %v14364_v44  ;;  %v5407_v4 = vunpack.i.h.bf16 %v14365_v2  ;;  %v5406_v37 = vunpack.i.l.bf16 %v14365_v2  ;;  %v14379_v44 = vld [vmem:[#allocation215_spill] sm:$0xff] }
 0x52f   : > { %v2780_v43 = vsel %vm2748_vm4, %v2747_v10, %v5387_v27  ;;  %v2764_v36 = vsel %vm2748_vm4, %v2731_v57, %v5347_v42  ;;  %v5427_v51 = vunpack.i.h.bf16 %v14366_v47  ;;  %v5426_v38 = vunpack.i.l.bf16 %v14366_v47 }
 0x530   : > { %v2763_v15 = vsel %vm2748_vm4, %v2730_v19, %v5346_v18  ;;  %v2771_v1 = vsel %vm2748_vm4, %v2738_v28, %v5366_v45  ;;  %v5507_v14 = vunpack.i.h.bf16 %v14367_v59  ;;  %v5506_v0 = vunpack.i.l.bf16 %v14367_v59  ;;  %v14372_v19 = vld [vmem:[#allocation167_spill] sm:$0xff] }
 0x531   : > { %v2772_v16 = vsel %vm2748_vm4, %v2739_v11, %v5367_v9  ;;  %v12787_v62 = vsel %vm2781_vm5, %v2771_v1, %v5446_v41  ;;  %v5467_v33 = vunpack.i.h.bf16 %v14368_v61  ;;  %v5466_v53 = vunpack.i.l.bf16 %v14368_v61 }
 0x532   : > { %v12792_v17 = vsel %vm2781_vm5, %v2772_v16, %v5447_v6  ;;  %v12795_v7 = vsel %vm2781_vm5, %v2756_v54, %v5407_v4  ;;  %v2788_v21 = vsel %vm2781_vm5, %v2755_v52, %v5406_v37  ;;  %v5486_v35 = vunpack.i.l.bf16 %v14369_v63  ;;  %v12842_v6 = vld [vmem:[%s13129_s4] ss:$0 sm:$0xff]  ;;  %v14380_v37 = vld [vmem:[#allocation244_spill] sm:$0xff] }
 0x533   : > { %v2796_v23 = vsel %vm2781_vm5, %v2763_v15, %v5426_v38  ;;  %v2797_v13 = vsel %vm2781_vm5, %v2764_v36, %v5427_v51  ;;  %v5547_v55 = vunpack.i.h.bf16 %v14370_v40  ;;  %v5546_v29 = vunpack.i.l.bf16 %v14370_v40  ;;  %v14381_v38 = vld [vmem:[#allocation269_spill] sm:$0xff] }
 0x534   : > { %v12804_v26 = vsel %vm2814_vm6, %v2796_v23, %v5506_v0  ;;  %v12807_v48 = vsel %vm2814_vm6, %v2797_v13, %v5507_v14  ;;  %v5627_v57 = vunpack.i.h.bf16 %v14371_v22  ;;  %v5626_v24 = vunpack.i.l.bf16 %v14371_v22  ;;  %v14382_v0 = vld [vmem:[#allocation279_spill] sm:$0xff] }
 0x535   : > { %v2812_v12 = vsel %vm2781_vm5, %v2779_v8, %v5466_v53  ;;  %v2813_v56 = vsel %vm2781_vm5, %v2780_v43, %v5467_v33  ;;  %v5707_v60 = vunpack.i.h.bf16 %v14372_v19  ;;  %v5706_v46 = vunpack.i.l.bf16 %v14372_v19  ;;  %v14383_v53 = vld [vmem:[#allocation77_spill] sm:$0xff] }
 0x536   : > { %v5487_v49 = vunpack.i.h.bf16 %v14369_v63  ;;  %v12819_v30 = vsel %vm2814_vm6, %v2788_v21, %v5486_v35  ;;  %v5787_v5 = vunpack.i.h.bf16 %v14373_v20  ;;  %v5786_v39 = vunpack.i.l.bf16 %v14373_v20  ;;  %v14385_v20 = vld [vmem:[#allocation97_spill] sm:$0xff] }
 0x537   : > { %v2845_v25 = vsel %vm2814_vm6, %v2812_v12, %v5546_v29  ;;  %v2846_v31 = vsel %vm2814_vm6, %v2813_v56, %v5547_v55  ;;  %v5867_v34 = vunpack.i.h.bf16 %v14374_v58  ;;  %v5866_v52 = vunpack.i.l.bf16 %v14374_v58  ;;  %v14384_v55 = vld [vmem:[#allocation82_spill] sm:$0xff]  ;;  %v14386_v58 = vld [vmem:[#allocation100_spill] sm:$0xff] }
 0x538   : > { %v2878_v54 = vsel %vm2847_vm7, %v2845_v25, %v5626_v24  ;;  %v2879_v27 = vsel %vm2847_vm7, %v2846_v31, %v5627_v57  ;;  %v5947_v42 = vunpack.i.h.bf16 %v14375_v3  ;;  %v5946_v11 = vunpack.i.l.bf16 %v14375_v3 }
 0x539   : > { %v2911_v28 = vsel %vm2880_vm8, %v2878_v54, %v5706_v46  ;;  %v2912_v18 = vsel %vm2880_vm8, %v2879_v27, %v5707_v60  ;;  %v6027_v45 = vunpack.i.h.bf16 %v14376_v32  ;;  %v6026_v50 = vunpack.i.l.bf16 %v14376_v32 }
 0x53a   : > { %vm14377_vm2 = vcmask 261120   ;;  %v6107_v41 = vunpack.i.h.bf16 %v14379_v44  ;;  %v6106_v8 = vunpack.i.l.bf16 %v14379_v44  ;;  %v6187_v43 = vunpack.i.h.bf16 %v14380_v37 }
 0x53b   : > { %v2944_v10 = vsel %vm14377_vm2, %v2911_v28, %v5786_v39  ;;  %vm14378_vm3 = vmmov %vm14377_vm2  ;;  %v6186_v36 = vunpack.i.l.bf16 %v14380_v37  ;;  %v6267_v15 = vunpack.i.h.bf16 %v14381_v38  ;;  %v6266_v1 = vunpack.i.l.bf16 %v14381_v38 }
 0x53c   : > { %v2945_v9 = vsel %vm14378_vm3, %v2912_v18, %v5787_v5  ;;  %v2977_v2 = vsel %vm2946_vm10, %v2944_v10, %v5866_v52  ;;  %v6347_v16 = vunpack.i.h.bf16 %v14382_v0  ;;  %v6346_v61 = vunpack.i.l.bf16 %v14382_v0  ;;  %v14388_v10 = vld [vmem:[#allocation123_spill] sm:$0xff]  ;;  %vm14393_vm4 = vmmov %vm14377_vm2 }
 0x53d   : > { %v2978_v4 = vsel %vm2946_vm10, %v2945_v9, %v5867_v34  ;;  %v3010_v47 = vsel %vm2979_vm11, %v2977_v2, %v5946_v11  ;;  %v5567_v21 = vunpack.i.h.bf16 %v14383_v53  ;;  %v5566_v40 = vunpack.i.l.bf16 %v14383_v53  ;;  %v14389_v2 = vld [vmem:[#allocation181_spill] sm:$0xff]  ;;  %v14394_v53 = vld [vmem:[#allocation208_spill] sm:$0xff]  ;;  %vm14395_vm5 = vmmov %vm14377_vm2 }
 0x53e   : > { %v3011_v51 = vsel %vm2979_vm11, %v2978_v4, %v5947_v42  ;;  %v3043_v59 = vsel %vm3012_vm12, %v3010_v47, %v6026_v50  ;;  %v5527_v29 = vunpack.i.h.bf16 %v14384_v55  ;;  %v5526_v46 = vunpack.i.l.bf16 %v14384_v55  ;;  %v14387_v42 = vld [vmem:[#allocation112_spill] sm:$0xff]  ;;  %vm14407_vm3 = vmmov %vm14377_vm2 }
 0x53f   : > { %v3044_v14 = vsel %vm3012_vm12, %v3011_v51, %v6027_v45  ;;  %v3076_v35 = vsel %vm3045_vm13, %v3043_v59, %v6106_v8  ;;  %v5587_v5 = vunpack.i.h.bf16 %v14385_v20  ;;  %v5586_v31 = vunpack.i.l.bf16 %v14385_v20  ;;  %v14391_v59 = vld [vmem:[#allocation129_spill] sm:$0xff] }
 0x540   : > { %v3077_v23 = vsel %vm3045_vm13, %v3044_v14, %v6107_v41  ;;  %v3109_v22 = vsel %vm3078_vm14, %v3076_v35, %v6186_v36  ;;  %v5606_v34 = vunpack.i.l.bf16 %v14386_v58  ;;  %v5607_v3 = vunpack.i.h.bf16 %v14386_v58  ;;  %v14392_v14 = vld [vmem:[#allocation117_spill] sm:$0xff]  ;;  %v14399_v58 = vld [vmem:[#allocation296_spill] sm:$0xff] }
 0x541   : > { %v3110_v57 = vsel %vm3078_vm14, %v3077_v23, %v6187_v43  ;;  %v3142_v12 = vsel %vm3111_vm15, %v3109_v22, %v6266_v1  ;;  %v5686_v11 = vunpack.i.l.bf16 %v14387_v42  ;;  %v2822_v32 = vsel %vm2814_vm6, %v12795_v7, %v5487_v49  ;;  %v14398_v20 = vld [vmem:[#allocation265_spill] sm:$0xff] }
 0x542   : > { %v3143_v56 = vsel %vm3111_vm15, %v3110_v57, %v6267_v15  ;;  %v3175_v39 = vsel %vm3144_vm0, %v3142_v12, %v6346_v61  ;;  %v2854_v45 = vsel %vm2847_vm7, %v12819_v30, %v5566_v40  ;;  %v5687_v50 = vunpack.i.h.bf16 %v14387_v42  ;;  %v14396_v40 = vld [vmem:[#allocation222_spill] sm:$0xff]  ;;  %v14397_v12 = vld [vmem:[#allocation227_spill] sm:$0xff] }
 0x543   : > { %v3176_v25 = vsel %vm3144_vm0, %v3143_v56, %v6347_v16  ;;  %v5646_v9 = vunpack.i.l.bf16 %v14388_v10  ;;  %v2855_v44 = vsel %vm2847_vm7, %v2822_v32, %v5567_v21  ;;  %v2837_v41 = vsel %vm2814_vm6, %v12787_v62, %v5526_v46 }
 0x544   : > { %v2838_v8 = vsel %vm2814_vm6, %v12792_v17, %v5527_v29  ;;  %v5647_v63 = vunpack.i.h.bf16 %v14388_v10  ;;  %v2862_v49 = vsel %vm2847_vm7, %v12804_v26, %v5586_v31  ;;  %v2870_v30 = vsel %vm2847_vm7, %v2837_v41, %v5606_v34  ;;  %v14390_v26 = vld [vmem:[#allocation96_spill] sm:$0xff]  ;;  %vm14405_vm6 = vmmov %vm14377_vm2 }
 0x545   : > { %v5766_v4 = vunpack.i.l.bf16 %v14389_v2  ;;  %v2863_v17 = vsel %vm2847_vm7, %v12807_v48, %v5587_v5  ;;  %v2871_v37 = vsel %vm2847_vm7, %v2838_v8, %v5607_v3  ;;  %v2903_v43 = vsel %vm2880_vm8, %v2870_v30, %v5686_v11  ;;  %vm14406_vm7 = vmmov %vm14377_vm2 }
 0x546   : > { %v5767_v36 = vunpack.i.h.bf16 %v14389_v2  ;;  %v2904_v47 = vsel %vm2880_vm8, %v2871_v37, %v5687_v50  ;;  %v2887_v51 = vsel %vm2880_vm8, %v2854_v45, %v5646_v9  ;;  %v5847_v38 = vunpack.i.h.bf16 %v14390_v26  ;;  %v14403_v37 = vld [vmem:[#allocation191_spill] sm:$0xff] }
 0x547   : > { %v5846_v15 = vunpack.i.l.bf16 %v14390_v26  ;;  %v2888_v1 = vsel %vm2880_vm8, %v2855_v44, %v5647_v63  ;;  %v5667_v48 = vunpack.i.h.bf16 %v14391_v59  ;;  %v5927_v0 = vunpack.i.h.bf16 %v14392_v14  ;;  %v14402_v63 = vld [vmem:[#allocation176_spill] sm:$0xff] }
 0x548   : > { %v5926_v16 = vunpack.i.l.bf16 %v14392_v14  ;;  %v5666_v61 = vunpack.i.l.bf16 %v14391_v59  ;;  %v6007_v21 = vunpack.i.h.bf16 %v14394_v53  ;;  %v6006_v35 = vunpack.i.l.bf16 %v14394_v53 }
 0x549   : > { %v6087_v55 = vunpack.i.h.bf16 %v14396_v40  ;;  %v6086_v29 = vunpack.i.l.bf16 %v14396_v40  ;;  %v6167_v56 = vunpack.i.h.bf16 %v14397_v12  ;;  %v6247_v5 = vunpack.i.h.bf16 %v14398_v20 }
 0x54a   : > { %v6327_v34 = vunpack.i.h.bf16 %v14399_v58  ;;  %v5806_v30 = vunpack.i.l.bf16 %v14402_v63  ;;  %v2896_v26 = vsel %vm2880_vm8, %v2863_v17, %v5667_v48 }
 0x55e   : > { %v4794_v33 = vpop.f32.mrf.mxu2 }
 0x55f   : > { %v4795_v13 = vadd.f32 %v12842_v6, %v4794_v33  ;;  %v2936_v33 = vsel %vm14393_vm4, %v2903_v43, %v5766_v4  ;;  %v5826_v43 = vunpack.i.l.bf16 %v14403_v37 }
 0x560   : > { %v2969_v57 = vsel %vm2946_vm10, %v2936_v33, %v5846_v15  ;;  %v14404_v15 = vld [vmem:[#allocation192_spill] sm:$0xff] }
 0x561   : > { %v7215_v24 = vpop.permute.xlu2 %7214  ;;  %4850 = vst.msk [vmem:[%s12859_s13 + $0x80] sm:$0xff] %vm4585_vm1, %v4795_v13  ;;  %v2937_v13 = vsel %vm14395_vm5, %v2904_v47, %v5767_v36  ;;  %v5886_v59 = vunpack.i.l.bf16 %v14404_v15 }
 0x562   : > { %v7217_v19 = vunpack.i.h.bf16 %v7215_v24  ;;  %v7216_v60 = vunpack.i.l.bf16 %v7215_v24  ;;  %v2970_v24 = vsel %vm2946_vm10, %v2937_v13, %v5847_v38  ;;  %v5827_v38 = vunpack.i.h.bf16 %v14403_v37  ;;  %v14409_v13 = vld [vmem:[#allocation142_spill] sm:$0xff] }
 0x563   : > { %v3003_v46 = vsel %vm2979_vm11, %v2970_v24, %v5927_v0  ;;  %v5987_v40 = vunpack.i.h.bf16 %v14409_v13 }
 0x564   : > { %v4774_v52 = vpop.f32.mrf.mxu1  ;;  %v4616_v54 = vsel %vm4585_vm1, %v3175_v39, %v7216_v60  ;;  %v4617_v27 = vsel %vm4585_vm1, %v3176_v25, %v7217_v19  ;;  %v6166_v19 = vunpack.i.l.bf16 %v14397_v12  ;;  %v3002_v60 = vsel %vm2979_vm11, %v2969_v57, %v5926_v16 }
 0x565   : > { %v4775_v28 = vadd.f32 %v12842_v6, %v4774_v52  ;;  %v4633_v18 = vpack.c.bf16 %v4617_v27, %v4616_v54  ;;  %v6246_v39 = vunpack.i.l.bf16 %v14398_v20  ;;  %v3035_v25 = vsel %vm3012_vm12, %v3002_v60, %v6006_v35  ;;  %v14400_v54 = vld [vmem:[#allocation150_spill] sm:$0xff] }
 0x566   : > { %v4796_v7 = vpop.f32.mrf.mxu2  ;;  %v3036_v31 = vsel %vm3012_vm12, %v3003_v46, %v6007_v21  ;;  %v6326_v52 = vunpack.i.l.bf16 %v14399_v58  ;;  %v5747_v27 = vunpack.i.h.bf16 %v14400_v54  ;;  %v5746_v3 = vunpack.i.l.bf16 %v14400_v54  ;;  %v14408_v21 = vld [vmem:[#allocation122_spill] sm:$0xff] }
 0x567   : > { %4842 = vst.msk [vmem:[%s12859_s13 + $0x40] sm:$0xff] %vm4585_vm1, %v4775_v28  ;;  %5057 = vmatmul.msk.bf16.gmra.mxu3 %vm4693_vm9, %v4633_v18  ;;  %v4797_v62 = vadd.f32 %v12842_v6, %v4796_v7  ;;  %v3068_v42 = vsel %vm3045_vm13, %v3035_v25, %v6086_v29  ;;  %v3069_v11 = vsel %vm3045_vm13, %v3036_v31, %v6087_v55  ;;  %v14401_v28 = vld [vmem:[#allocation169_spill] sm:$0xff]  ;;  %v5807_v7 = vunpack.i.h.bf16 %v14402_v63  ;;  %v14410_v29 = vld [vmem:[#allocation196_spill] sm:$0xff] }
 0x568   : > { %v5727_v18 = vunpack.i.h.bf16 %v14401_v28  ;;  %v5726_v32 = vunpack.i.l.bf16 %v14401_v28  ;;  %v3101_v45 = vsel %vm3078_vm14, %v3068_v42, %v6166_v19  ;;  %v3102_v50 = vsel %vm3078_vm14, %v3069_v11, %v6167_v56  ;;  %v14411_v56 = vld [vmem:[#allocation203_spill] sm:$0xff]  ;;  %v14412_v25 = vld [vmem:[#allocation232_spill] sm:$0xff] }
 0x569   : > { %4851 = vst.msk [vmem:[%s12859_s13 + $0x88] sm:$0xff] %vm4585_vm1, %v4797_v62  ;;  %v3134_v9 = vsel %vm3111_vm15, %v3101_v45, %v6246_v39  ;;  %v3135_v44 = vsel %vm3111_vm15, %v3102_v50, %v6247_v5  ;;  %v2895_v62 = vsel %vm2880_vm8, %v2862_v49, %v5666_v61  ;;  %v2929_v16 = vsel %vm14406_vm7, %v2896_v26, %v5747_v27  ;;  %v14413_v27 = vld [vmem:[#allocation247_spill] sm:$0xff] }
 0x56a   : > { %v3167_v2 = vsel %vm3144_vm0, %v3134_v9, %v6326_v52  ;;  %v3168_v4 = vsel %vm3144_vm0, %v3135_v44, %v6327_v34  ;;  %v2928_v0 = vsel %vm14405_vm6, %v2895_v62, %v5746_v3  ;;  %v2920_v33 = vsel %vm14377_vm2, %v2887_v51, %v5726_v32 }
 0x56b   : > { %v2921_v49 = vsel %vm14407_vm3, %v2888_v1, %v5727_v18  ;;  %v2953_v61 = vsel %vm2946_vm10, %v2920_v33, %v5806_v30  ;;  %v5907_v35 = vunpack.i.h.bf16 %v14408_v21  ;;  %v5906_v17 = vunpack.i.l.bf16 %v14408_v21  ;;  %v14414_v18 = vld [vmem:[#allocation256_spill] sm:$0xff] }
 0x56c   : > { %v4776_v23 = vpop.f32.mrf.mxu1  ;;  %v2954_v53 = vsel %vm2946_vm10, %v2921_v49, %v5807_v7  ;;  %v2961_v48 = vsel %vm2946_vm10, %v2928_v0, %v5826_v43  ;;  %v5986_v51 = vunpack.i.l.bf16 %v14409_v13  ;;  %v2962_v1 = vsel %vm2946_vm10, %v2929_v16, %v5827_v38  ;;  %v14416_v7 = vld [vmem:[#allocation234_spill] sm:$0xff]  ;;  %v14418_v0 = vld [vmem:[#allocation292_spill] sm:$0xff] }
 0x56d   : > { %v4777_v22 = vadd.f32 %v12842_v6, %v4776_v23  ;;  %v5887_v23 = vunpack.i.h.bf16 %v14404_v15  ;;  %v2986_v55 = vsel %vm2979_vm11, %v2953_v61, %v5886_v59  ;;  %v5966_v57 = vunpack.i.l.bf16 %v14410_v29 }
 0x56e   : > { %v6047_v19 = vunpack.i.h.bf16 %v14411_v56  ;;  %v6046_v60 = vunpack.i.l.bf16 %v14411_v56  ;;  %v2994_v5 = vsel %vm2979_vm11, %v2961_v48, %v5906_v17  ;;  %v2995_v39 = vsel %vm2979_vm11, %v2962_v1, %v5907_v35 }
 0x56f   : > { %4843 = vst.msk [vmem:[%s12859_s13 + $0x48] sm:$0xff] %vm4585_vm1, %v4777_v22  ;;  %v5967_v22 = vunpack.i.h.bf16 %v14410_v29  ;;  %v6127_v31 = vunpack.i.h.bf16 %v14412_v25  ;;  %v6126_v58 = vunpack.i.l.bf16 %v14412_v25  ;;  %v2987_v34 = vsel %vm2979_vm11, %v2954_v53, %v5887_v23 }
 0x570   : > { %v3027_v52 = vsel %vm3012_vm12, %v2994_v5, %v5986_v51  ;;  %v3028_v54 = vsel %vm3012_vm12, %v2995_v39, %v5987_v40  ;;  %v6206_v3 = vunpack.i.l.bf16 %v14413_v27  ;;  %v3019_v42 = vsel %vm3012_vm12, %v2986_v55, %v5966_v57 }
 0x571   : > { %v3020_v11 = vsel %vm3012_vm12, %v2987_v34, %v5967_v22  ;;  %v6207_v28 = vunpack.i.h.bf16 %v14413_v27  ;;  %v6286_v32 = vunpack.i.l.bf16 %v14414_v18  ;;  %v3052_v45 = vsel %vm3045_vm13, %v3019_v42, %v6046_v60 }
 0x572   : > { %v7210_v10 = vpop.permute.xlu1 %7209  ;;  %v3053_v50 = vsel %vm3045_vm13, %v3020_v11, %v6047_v19  ;;  %v6287_v44 = vunpack.i.h.bf16 %v14414_v18  ;;  %v6147_v30 = vunpack.i.h.bf16 %v14416_v7  ;;  %v6307_v16 = vunpack.i.h.bf16 %v14418_v0 }
 0x573   : > { %v7212_v41 = vunpack.i.h.bf16 %v7210_v10  ;;  %v7211_v8 = vunpack.i.l.bf16 %v7210_v10  ;;  %v14415_v10 = vld [vmem:[#allocation220_spill] sm:$0xff]  ;;  %v3086_v63 = vsel %vm3078_vm14, %v3053_v50, %v6127_v31  ;;  %v6306_v21 = vunpack.i.l.bf16 %v14418_v0 }
 0x574   : > { %v6067_v9 = vunpack.i.h.bf16 %v14415_v10 }
 0x575   : > { %v4608_v36 = vsel %vm4585_vm1, %v3167_v2, %v7211_v8  ;;  %v4609_v47 = vsel %vm4585_vm1, %v3168_v4, %v7212_v41  ;;  %v6066_v41 = vunpack.i.l.bf16 %v14415_v10  ;;  %v3085_v8 = vsel %vm3078_vm14, %v3052_v45, %v6126_v58  ;;  %v14417_v4 = vld [vmem:[#allocation239_spill] sm:$0xff] }
 0x576   : > { %v4629_v14 = vpack.c.bf16 %v4609_v47, %v4608_v36  ;;  %v6146_v2 = vunpack.i.l.bf16 %v14416_v7  ;;  %v6227_v62 = vunpack.i.h.bf16 %v14417_v4  ;;  %v6226_v37 = vunpack.i.l.bf16 %v14417_v4 }
 0x577   : > { %v3118_v43 = vsel %vm3111_vm15, %v3085_v8, %v6206_v3  ;;  %v3119_v47 = vsel %vm3111_vm15, %v3086_v63, %v6207_v28  ;;  %v3060_v13 = vsel %vm3045_vm13, %v3027_v52, %v6066_v41  ;;  %v3061_v40 = vsel %vm3045_vm13, %v3028_v54, %v6067_v9 }
 0x578   : > { %5053 = vmatmul.msk.bf16.gmra.mxu2 %vm4693_vm9, %v4629_v14  ;;  %v4754_v12 = vpop.f32.mrf.mxu0  ;;  %v3151_v14 = vsel %vm3144_vm0, %v3118_v43, %v6286_v32  ;;  %v3152_v53 = vsel %vm3144_vm0, %v3119_v47, %v6287_v44  ;;  %v3093_v55 = vsel %vm3078_vm14, %v3060_v13, %v6146_v2  ;;  %v3094_v29 = vsel %vm3078_vm14, %v3061_v40, %v6147_v30 }
 0x579   : > { %v4755_v20 = vadd.f32 %v12842_v6, %v4754_v12  ;;  %v3126_v57 = vsel %vm3111_vm15, %v3093_v55, %v6226_v37 }
 0x57a   : > { %v4814_v24 = vpop.f32.mrf.mxu3  ;;  %v3159_v19 = vsel %vm3144_vm0, %v3126_v57, %v6306_v21 }
 0x57b   : > { %v4815_v46 = vadd.f32 %v12842_v6, %v4814_v24  ;;  %4834 = vst.msk [vmem:[%s12859_s13] sm:$0xff] %vm4585_vm1, %v4755_v20  ;;  %v3127_v24 = vsel %vm3111_vm15, %v3094_v29, %v6227_v62 }
 0x57c   : > { %v3160_v60 = vsel %vm3144_vm0, %v3127_v24, %v6307_v16 }
 0x57d   : > { %4858 = vst.msk [vmem:[%s12859_s13 + $0xc0] sm:$0xff] %vm4585_vm1, %v4815_v46 }
 0x580   : > { %v4756_v61 = vpop.f32.mrf.mxu0 }
 0x581   : > { %v7220_v36 = vpop.permute.xlu0 %7219  ;;  %v4757_v35 = vadd.f32 %v12842_v6, %v4756_v61 }
 0x582   : > { %v7222_v26 = vunpack.i.h.bf16 %v7220_v36  ;;  %v7221_v38 = vunpack.i.l.bf16 %v7220_v36  ;;  %v4799_v15 = vpop.f32.mrf.mxu2  ;;  %v4816_v59 = vpop.f32.mrf.mxu3 }
 0x583   : > { %v4800_v33 = vadd.f32 %v12842_v6, %v4799_v15  ;;  %v4817_v49 = vadd.f32 %v12842_v6, %v4816_v59  ;;  %4835 = vst.msk [vmem:[%s12859_s13 + $0x8] sm:$0xff] %vm4585_vm1, %v4757_v35 }
 0x584   : > { %v4779_v17 = vpop.f32.mrf.mxu1  ;;  %v4592_v48 = vsel %vm4585_vm1, %v3151_v14, %v7221_v38  ;;  %v4593_v23 = vsel %vm4585_vm1, %v3152_v53, %v7222_v26 }
 0x585   : > { %4852 = vst.msk [vmem:[%s12859_s13 + $0x90] sm:$0xff] %vm4585_vm1, %v4800_v33  ;;  %v4780_v51 = vadd.f32 %v12842_v6, %v4779_v17  ;;  %v4621_v1 = vpack.c.bf16 %v4593_v23, %v4592_v48  ;;  %v7225_v22 = vpop.permute.xlu1 %7224 }
 0x586   : > { %4859 = vst.msk [vmem:[%s12859_s13 + $0xc8] sm:$0xff] %vm4585_vm1, %v4817_v49  ;;  %v7227_v12 = vunpack.i.h.bf16 %v7225_v22  ;;  %v7226_v56 = vunpack.i.l.bf16 %v7225_v22 }
 0x587   : > { %5045 = vmatmul.msk.bf16.gmra.mxu0 %vm4693_vm9, %v4621_v1  ;;  %4844 = vst.msk [vmem:[%s12859_s13 + $0x50] sm:$0xff] %vm4585_vm1, %v4780_v51 }
 0x588   : > { %v4600_v46 = vsel %vm4585_vm1, %v3159_v19, %v7226_v56  ;;  %v4601_v20 = vsel %vm4585_vm1, %v3160_v60, %v7227_v12 }
 0x589   : > { %v4625_v39 = vpack.c.bf16 %v4601_v20, %v4600_v46 }
 0x58a   : > { %v4801_v5 = vpop.f32.mrf.mxu2 }
 0x58b   : > { %v4802_v25 = vadd.f32 %v12842_v6, %v4801_v5  ;;  %5049 = vmatmul.msk.bf16.gmra.mxu1 %vm4693_vm9, %v4625_v39 }
 0x58c   : > { %v4781_v31 = vpop.f32.mrf.mxu1 }
 0x58d   : > { %4853 = vst.msk [vmem:[%s12859_s13 + $0x98] sm:$0xff] %vm4585_vm1, %v4802_v25  ;;  %v4782_v58 = vadd.f32 %v12842_v6, %v4781_v31 }
 0x58f   : > { %4845 = vst.msk [vmem:[%s12859_s13 + $0x58] sm:$0xff] %vm4585_vm1, %v4782_v58 }
 0x598   : > { %v4759_v34 = vpop.f32.mrf.mxu0 }
 0x599   : > { %v4760_v54 = vadd.f32 %v12842_v6, %v4759_v34 }
 0x59a   : > { %v4819_v52 = vpop.f32.mrf.mxu3 }
 0x59b   : > { %v4820_v27 = vadd.f32 %v12842_v6, %v4819_v52  ;;  %4836 = vst.msk [vmem:[%s12859_s13 + $0x10] sm:$0xff] %vm4585_vm1, %v4760_v54 }
 0x59d   : > { %4860 = vst.msk [vmem:[%s12859_s13 + $0xd0] sm:$0xff] %vm4585_vm1, %v4820_v27 }
 0x5a0   : > { %v4761_v3 = vpop.f32.mrf.mxu0 }
 0x5a1   : > { %v4762_v28 = vadd.f32 %v12842_v6, %v4761_v3 }
 0x5a2   : > { %v4804_v42 = vpop.f32.mrf.mxu2  ;;  %v4821_v11 = vpop.f32.mrf.mxu3 }
 0x5a3   : > { %v4805_v18 = vadd.f32 %v12842_v6, %v4804_v42  ;;  %v4822_v32 = vadd.f32 %v12842_v6, %v4821_v11  ;;  %4837 = vst.msk [vmem:[%s12859_s13 + $0x18] sm:$0xff] %vm4585_vm1, %v4762_v28 }
 0x5a4   : > { %v4784_v45 = vpop.f32.mrf.mxu1 }
 0x5a5   : > { %4854 = vst.msk [vmem:[%s12859_s13 + $0xa0] sm:$0xff] %vm4585_vm1, %v4805_v18  ;;  %v4785_v50 = vadd.f32 %v12842_v6, %v4784_v45 }
 0x5a6   : > { %4861 = vst.msk [vmem:[%s12859_s13 + $0xd8] sm:$0xff] %vm4585_vm1, %v4822_v32 }
 0x5a7   : > { %4846 = vst.msk [vmem:[%s12859_s13 + $0x60] sm:$0xff] %vm4585_vm1, %v4785_v50 }
 0x5a8   : > { %v4764_v10 = vpop.f32.mrf.mxu0 }
 0x5a9   : > { %v4765_v41 = vadd.f32 %v12842_v6, %v4764_v10 }
 0x5aa   : > { %v4806_v9 = vpop.f32.mrf.mxu2  ;;  %v4824_v44 = vpop.f32.mrf.mxu3 }
 0x5ab   : > { %v4807_v8 = vadd.f32 %v12842_v6, %v4806_v9  ;;  %v4825_v63 = vadd.f32 %v12842_v6, %v4824_v44  ;;  %4838 = vst.msk [vmem:[%s12859_s13 + $0x20] sm:$0xff] %vm4585_vm1, %v4765_v41 }
 0x5ac   : > { %v4786_v7 = vpop.f32.mrf.mxu1 }
 0x5ad   : > { %4855 = vst.msk [vmem:[%s12859_s13 + $0xa8] sm:$0xff] %vm4585_vm1, %v4807_v8  ;;  %v4787_v30 = vadd.f32 %v12842_v6, %v4786_v7 }
 0x5ae   : > { %4862 = vst.msk [vmem:[%s12859_s13 + $0xe0] sm:$0xff] %vm4585_vm1, %v4825_v63 }
 0x5af   : > { %4847 = vst.msk [vmem:[%s12859_s13 + $0x68] sm:$0xff] %vm4585_vm1, %v4787_v30 }
 0x5b0   : > { %v4766_v2 = vpop.f32.mrf.mxu0 }
 0x5b1   : > { %v4767_v62 = vadd.f32 %v12842_v6, %v4766_v2 }
 0x5b2   : > { %v4826_v4 = vpop.f32.mrf.mxu3 }
 0x5b3   : > { %v4827_v37 = vadd.f32 %v12842_v6, %v4826_v4  ;;  %4839 = vst.msk [vmem:[%s12859_s13 + $0x28] sm:$0xff] %vm4585_vm1, %v4767_v62 }
 0x5b5   : > { %4863 = vst.msk [vmem:[%s12859_s13 + $0xe8] sm:$0xff] %vm4585_vm1, %v4827_v37 }
 0x5ea   : > { %v4829_v43 = vpop.f32.mrf.mxu3 }
 0x5eb   : > { %v4830_v36 = vadd.f32 %v12842_v6, %v4829_v43 }
 0x5ed   : > { %4864 = vst.msk [vmem:[%s12859_s13 + $0xf0] sm:$0xff] %vm4585_vm1, %v4830_v36 }
 0x5f2   : > { %v4831_v47 = vpop.f32.mrf.mxu3 }
 0x5f3   : > { %v4832_v26 = vadd.f32 %v12842_v6, %v4831_v47 }
 0x5f5   : > { %4865 = vst.msk [vmem:[%s12859_s13 + $0xf8] sm:$0xff] %vm4585_vm1, %v4832_v26 }
 0x5fb   : > { %v4809_v38 = vpop.f32.mrf.mxu2 }
 0x5fc   : > { %v4810_v15 = vadd.f32 %v12842_v6, %v4809_v38 }
 0x5fe   : > { %4856 = vst.msk [vmem:[%s12859_s13 + $0xb0] sm:$0xff] %vm4585_vm1, %v4810_v15 }
 0x603   : > { %v4811_v59 = vpop.f32.mrf.mxu2 }
 0x604   : > { %v4812_v14 = vadd.f32 %v12842_v6, %v4811_v59  ;;  %v4769_v0 = vpop.f32.mrf.mxu0 }
 0x605   : > { %v4770_v16 = vadd.f32 %v12842_v6, %v4769_v0 }
 0x606   : > { %4857 = vst.msk [vmem:[%s12859_s13 + $0xb8] sm:$0xff] %vm4585_vm1, %v4812_v14 }
 0x607   : > { %4840 = vst.msk [vmem:[%s12859_s13 + $0x30] sm:$0xff] %vm4585_vm1, %v4770_v16 }
 0x608   : > { %v4789_v33 = vpop.f32.mrf.mxu1 }
 0x609   : > { %v4790_v49 = vadd.f32 %v12842_v6, %v4789_v33 }
 0x60b   : > { %4848 = vst.msk [vmem:[%s12859_s13 + $0x70] sm:$0xff] %vm4585_vm1, %v4790_v49 }
 0x60c   : > { %v4771_v61 = vpop.f32.mrf.mxu0 }
 0x60d   : > { %v4772_v53 = vadd.f32 %v12842_v6, %v4771_v61 }
 0x60f   : > { %4841 = vst.msk [vmem:[%s12859_s13 + $0x38] sm:$0xff] %vm4585_vm1, %v4772_v53 }
 0x610   : > { %v4791_v21 = vpop.f32.mrf.mxu1 }
 0x611   : > { %v4792_v35 = vadd.f32 %v12842_v6, %v4791_v21 }
 0x613   : > { %4849 = vst.msk [vmem:[%s12859_s13 + $0x78] sm:$0xff] %vm4585_vm1, %v4792_v35 }
 0x614 PF: > { %s15_s22 = sadd.s32 1, %s7331_s22   ;;  %s14419_s18 = smov %s7323_s20 }
 0x615   : > { %p12_p10 = scmp.ge.s32.totalorder %s15_s22, 18   ;;  %s14420_s19 = smov %s7327_s21 }
 0x616   : > { %s14421_s20 = smov %s14424_s23  ;;  %s14422_s21 = smov %s14428_s24 }
 0x617   :  { %14 = sbr.rel (!%p12_p10) target bundleno = 3 (0x3), region = 76 }

</bundles_post_ra>
